<compile_context>
chip_gen: v6e
topology: v6e:2x2x1
jax: 0.10.0
libtpu: 0.0.40
codegen_flags: <defaults>
</compile_context>

<pallas_src>
import functools

import numpy as np
import jax
import jax.numpy as jnp
from jax import lax
from jax.experimental import pallas as pl
from jax.experimental.pallas import tpu as pltpu

# ---------------------------------------------------------------------------
# Deterministic parameters (verbatim from the PyTorch module __init__)
# ---------------------------------------------------------------------------
LAPLACIAN_FILTER = np.array(
    [[0.0025, 0.0125, 0.02, 0.0125, 0.0025],
     [0.0125, 0.0625, 0.1, 0.0625, 0.0125],
     [0.02, 0.1, 0.16, 0.1, 0.02],
     [0.0125, 0.0625, 0.1, 0.0625, 0.0125],
     [0.0025, 0.0125, 0.02, 0.0125, 0.0025]], dtype=np.float32)

_DN_FILTS = [
    np.array([[0, 0.1011, 0], [0.1493, 0, 0.1460], [0, 0.1015, 0.0]], np.float32),
    np.array([[0, 0.0757, 0], [0.1986, 0, 0.1846], [0, 0.0837, 0]], np.float32),
    np.array([[0, 0.0477, 0], [0.2138, 0, 0.2243], [0, 0.0467, 0]], np.float32),
    np.array([[0, 0, 0], [0.2503, 0, 0.2616], [0, 0, 0]], np.float32),
    np.array([[0, 0, 0], [0.2598, 0, 0.2552], [0, 0, 0]], np.float32),
    np.array([[0, 0, 0], [0.2215, 0, 0.0717], [0, 0, 0]], np.float32),
]
SIGMAS = [0.0248, 0.0185, 0.0179, 0.0191, 0.022, 0.2782]
K_LEVELS = 6     # module default k=6
CHANNELS = 1     # module default channels=1 (y-channel path)

# 1-D factor of the separable Laplacian filter: outer(V5, V5) == LAPLACIAN_FILTER.
V5 = np.array([0.05, 0.25, 0.4, 0.25, 0.05], dtype=np.float64)
assert np.allclose(np.outer(V5, V5), LAPLACIAN_FILTER, atol=1e-6)

# The module applies F.conv2d(ZeroPad2d(1)(|out|), tf.rotate(dn_filt, 180)).
# Every DN filter is cross shaped (zero corners, zero centre), so the 3x3 conv is
#   conv[y,x] = up*|o|[y-1,x] + down*|o|[y+1,x] + left*|o|[y,x-1] + right*|o|[y,x+1]
# with (up, down, left, right) = (orig[2,1], orig[0,1], orig[1,2], orig[1,0]).
DN_TAPS = []
for _f in _DN_FILTS:
    assert _f[0, 0] == _f[0, 2] == _f[2, 0] == _f[2, 2] == _f[1, 1] == 0.0
    DN_TAPS.append((float(_f[2, 1]), float(_f[0, 1]), float(_f[1, 2]), float(_f[1, 0])))

# MXU operand precision for the large (MXU-bound) pyramid levels.  f32 accumulation is
# always used (preferred_element_type).  Set to jnp.float32 for exact f32 reference
# numerics at ~4x MXU cost (review correctness note on a perceptual metric).
_MXU_DTYPE = jnp.bfloat16

# Levels whose images have at most this many pixels are fused into one tail kernel.
_TAIL_MAX_ELEMS = 64 * 64

# Tile-aligned origin of the image inside the DN zero-pad scratch.
_ROW0, _COL0 = 8, 128


# ---------------------------------------------------------------------------
# Banded matrices that fold padding + 5-tap conv + stride/upsample into matmuls
# (built in numpy at trace time; the Laplacian filter is rank-1 separable).
# ---------------------------------------------------------------------------
@functools.lru_cache(maxsize=None)
def _downsample_matrix(n):
    """(ceil(n/2), n) matrix folding [symmetric pad 2 | 5-tap conv | stride 2]."""
    nh = (n + 1) // 2
    sym = np.pad(np.arange(n), (2, 2), mode='symmetric')   # == ExactPadding2d 'symmetric'
    D = np.zeros((nh, n), np.float64)
    for a in range(nh):
        for d in range(5):
            D[a, sym[2 * a + d]] += V5[d]
    return D


@functools.lru_cache(maxsize=None)
def _upsample_matrix(n):
    """(n, ceil(n/2)) matrix folding the module's upsample path:
    [replication pad 1 | zero-insert x2 (PixelShuffle) | zero pad 2 | 5-tap conv | crop].
    The x4 gain is NOT included here."""
    nh = (n + 1) // 2
    U = np.zeros((n, nh), np.float64)
    for r in range(n):
        for m in range(nh + 2):          # m indexes the replication-padded half-res signal
            d = 2 * m - r
            if 0 <= d <= 4:
                U[r, min(max(m - 1, 0), nh - 1)] += V5[d]
    return U


@functools.lru_cache(maxsize=1)
def _vmem_limit_bytes():
    """VMEM budget derived from the actual chip (v5e/v6e 128 MiB, v7x 64 MiB)."""
    try:
        cap = int(pltpu.get_tpu_info().vmem_capacity_bytes)
        return int(min(max(cap * 3 // 4, 32 * 1024 * 1024), 100 * 1024 * 1024))
    except Exception:
        return 48 * 1024 * 1024


# ---------------------------------------------------------------------------
# In-kernel helpers
# ---------------------------------------------------------------------------
def _zero_dn_ring(pad_ref, H, W):
    """Zero only the 1-pixel ring around the (H, W) interior that the cross-shaped
    3x3 DN conv actually reads (instead of zeroing the whole scratch)."""
    zrow = jnp.zeros((1, W), jnp.float32)
    zcol = jnp.zeros((H, 1), jnp.float32)
    pad_ref[_ROW0 - 1:_ROW0, _COL0:_COL0 + W] = zrow
    pad_ref[_ROW0 + H:_ROW0 + H + 1, _COL0:_COL0 + W] = zrow
    pad_ref[_ROW0:_ROW0 + H, _COL0 - 1:_COL0] = zcol
    pad_ref[_ROW0:_ROW0 + H, _COL0 + W:_COL0 + W + 1] = zcol


def _dn_divisive_norm(out, pad_ref, taps, sigma, H, W):
    """out / (sigma + cross_conv3x3(|out| zero-padded by 1)).

    The zero pad ring lives in a VMEM scratch (interior written at a tile-aligned
    offset); the conv is <=4 shifted slice mul-adds on the VPU."""
    f_up, f_down, f_left, f_right = taps
    pad_ref[_ROW0:_ROW0 + H, _COL0:_COL0 + W] = jnp.abs(out)
    conv = jnp.zeros((H, W), jnp.float32)
    if f_up != 0.0:
        conv = conv + f_up * pad_ref[_ROW0 - 1:_ROW0 - 1 + H, _COL0:_COL0 + W]
    if f_down != 0.0:
        conv = conv + f_down * pad_ref[_ROW0 + 1:_ROW0 + 1 + H, _COL0:_COL0 + W]
    if f_left != 0.0:
        conv = conv + f_left * pad_ref[_ROW0:_ROW0 + H, _COL0 - 1:_COL0 - 1 + W]
    if f_right != 0.0:
        conv = conv + f_right * pad_ref[_ROW0:_ROW0 + H, _COL0 + 1:_COL0 + 1 + W]
    return out / (sigma + conv)


# ---------------------------------------------------------------------------
# Pallas kernels
# ---------------------------------------------------------------------------
def _make_level_kernel(H, W, taps, sigma):
    """Fused large pyramid level (one image per grid step): downsample, upsample,
    residual, DN norm, per-level RMS.  Matmuls use bf16 operands / f32 accumulation."""
    inv_hw = 1.0 / float(H * W * CHANNELS)

    def kernel(dr_ref, dct_ref, ur_ref, uct_ref, j1_ref, j2_ref,
               i1_ref, i2_ref, rms_ref, pad_ref):
        _zero_dn_ring(pad_ref, H, W)
        dr, dct = dr_ref[...], dct_ref[...]
        ur, uct = ur_ref[...], uct_ref[...]
        norms = []
        for j_ref, i_ref in ((j1_ref, i1_ref), (j2_ref, i2_ref)):
            jimg = j_ref[...]                                                   # (H, W) f32
            jmx = jimg.astype(_MXU_DTYPE)
            # stride-2 5x5 downsample conv (symmetric pad folded into dr/dct):
            # only the kept even rows/cols are ever computed.
            i_half = jnp.dot(
                jnp.dot(dr, jmx, preferred_element_type=jnp.float32).astype(_MXU_DTYPE),
                dct, preferred_element_type=jnp.float32)                        # (Hh, Wh)
            i_ref[...] = i_half
            # polyphase zero-insert upsample + 5x5 conv + crop (folded into ur/uct):
            # the 75%-zero upsampled intermediate is never materialised.
            up = jnp.dot(
                jnp.dot(ur, i_half.astype(_MXU_DTYPE),
                        preferred_element_type=jnp.float32).astype(_MXU_DTYPE),
                uct, preferred_element_type=jnp.float32)                        # (H, W)
            norms.append(_dn_divisive_norm(jimg - up, pad_ref, taps, sigma, H, W))
        diff = norms[0] - norms[1]
        rms_ref[...] = jnp.sqrt(jnp.sum(diff * diff, keepdims=True) * inv_hw)   # (1, 1)

    return kernel


def _make_tail_kernel(Nb, tail_shapes, tail_start):
    """All remaining small pyramid levels fused into one kernel.  Intermediates stay in
    VMEM; images are iterated with lax.fori_loop (bounded live ranges)."""
    L = len(tail_shapes)

    def kernel(*refs):
        nmat = 4 * (L - 1)
        mat_refs = refs[:nmat]
        j1_ref, j2_ref, rms_ref, pad_ref = refs[nmat:nmat + 4]
        mats = [m[...] for m in mat_refs]          # small banded matrices, loaded once

        def per_image(n, carry):
            imgs = [j1_ref[n], j2_ref[n]]          # (H0, W0) each
            level_scores = []
            for li in range(L):
                H, W = tail_shapes[li]
                inv_hw = 1.0 / float(H * W * CHANNELS)
                taps = DN_TAPS[tail_start + li]
                sigma = SIGMAS[tail_start + li]
                _zero_dn_ring(pad_ref, H, W)
                if li < L - 1:
                    dr, dct, ur, uct = mats[4 * li:4 * li + 4]
                    norms, nxt = [], []
                    for jimg in imgs:
                        i_half = jnp.dot(
                            jnp.dot(dr, jimg, preferred_element_type=jnp.float32),
                            dct, preferred_element_type=jnp.float32)
                        nxt.append(i_half)
                        up = jnp.dot(
                            jnp.dot(ur, i_half, preferred_element_type=jnp.float32),
                            uct, preferred_element_type=jnp.float32)
                        norms.append(
                            _dn_divisive_norm(jimg - up, pad_ref, taps, sigma, H, W))
                    imgs = nxt
                else:
                    norms = [_dn_divisive_norm(jimg, pad_ref, taps, sigma, H, W)
                             for jimg in imgs]
                diff = norms[0] - norms[1]
                level_scores.append(
                    jnp.sqrt(jnp.sum(diff * diff, keepdims=True) * inv_hw))      # (1, 1)
            # single lane-contiguous row store of all L level scores for this image
            rms_ref[pl.ds(n, 1)] = jnp.concatenate(level_scores, axis=1).reshape(1, 1, L)
            return carry

        lax.fori_loop(0, Nb, per_image, 0)

    return kernel


# ---------------------------------------------------------------------------
# pallas_call wrappers
# ---------------------------------------------------------------------------
def _level_call(J1, J2, level):
    """One fused pallas_call for a large pyramid level: reads J1, J2 once and writes
    only the half-resolution next-level images plus one RMS scalar per image."""
    N, H, W = J1.shape
    Hh, Wh = (H + 1) // 2, (W + 1) // 2
    dr = jnp.asarray(_downsample_matrix(H).astype(np.float32), dtype=_MXU_DTYPE)    # (Hh, H)
    dct = jnp.asarray(_downsample_matrix(W).T.astype(np.float32), dtype=_MXU_DTYPE)  # (W, Wh)
    ur = jnp.asarray((4.0 * _upsample_matrix(H)).astype(np.float32),
                     dtype=_MXU_DTYPE)                                               # (H, Hh)
    uct = jnp.asarray(_upsample_matrix(W).T.astype(np.float32), dtype=_MXU_DTYPE)    # (Wh, W)

    const2 = lambda b: (0, 0)
    per_img = lambda b: (b, 0, 0)

    i1, i2, rms = pl.pallas_call(
        _make_level_kernel(H, W, DN_TAPS[level], SIGMAS[level]),
        out_shape=(jax.ShapeDtypeStruct((N, Hh, Wh), jnp.float32),
                   jax.ShapeDtypeStruct((N, Hh, Wh), jnp.float32),
                   jax.ShapeDtypeStruct((N, 1, 1), jnp.float32)),
        grid=(N,),
        in_specs=[pl.BlockSpec((Hh, H), const2),
                  pl.BlockSpec((W, Wh), const2),
                  pl.BlockSpec((H, Hh), const2),
                  pl.BlockSpec((Wh, W), const2),
                  pl.BlockSpec((None, H, W), per_img),
                  pl.BlockSpec((None, H, W), per_img)],
        out_specs=(pl.BlockSpec((None, Hh, Wh), per_img),
                   pl.BlockSpec((None, Hh, Wh), per_img),
                   pl.BlockSpec((None, 1, 1), per_img)),
        scratch_shapes=[pltpu.VMEM((H + 2 * _ROW0, W + 2 * _COL0), jnp.float32)],
        compiler_params=pltpu.CompilerParams(
            dimension_semantics=("parallel",),
            vmem_limit_bytes=_vmem_limit_bytes()),
    )(dr, dct, ur, uct, J1, J2)
    return i1, i2, rms[:, 0, 0]


def _tail_images_per_block(N):
    for nb in (8, 4, 2, 1):
        if nb <= N and N % nb == 0:
            return nb
    return 1


def _tail_call(J1, J2, tail_start, tail_shapes):
    """Single fused pallas_call for all remaining small pyramid levels."""
    N = J1.shape[0]
    H0, W0 = tail_shapes[0]
    L = len(tail_shapes)
    Nb = _tail_images_per_block(N)

    mats, mat_specs = [], []
    const2 = lambda b: (0, 0)
    for li in range(L - 1):
        h, w = tail_shapes[li]
        hh, wh = (h + 1) // 2, (w + 1) // 2
        mats += [jnp.asarray(_downsample_matrix(h).astype(np.float32)),
                 jnp.asarray(_downsample_matrix(w).T.astype(np.float32)),
                 jnp.asarray((4.0 * _upsample_matrix(h)).astype(np.float32)),
                 jnp.asarray(_upsample_matrix(w).T.astype(np.float32))]
        mat_specs += [pl.BlockSpec((hh, h), const2),
                      pl.BlockSpec((w, wh), const2),
                      pl.BlockSpec((h, hh), const2),
                      pl.BlockSpec((wh, w), const2)]

    per_blk = lambda b: (b, 0, 0)
    rms = pl.pallas_call(
        _make_tail_kernel(Nb, tuple(tail_shapes), tail_start),
        out_shape=jax.ShapeDtypeStruct((N, 1, L), jnp.float32),
        grid=(N // Nb,),
        in_specs=mat_specs + [pl.BlockSpec((Nb, H0, W0), per_blk),
                              pl.BlockSpec((Nb, H0, W0), per_blk)],
        out_specs=pl.BlockSpec((Nb, 1, L), per_blk),
        scratch_shapes=[pltpu.VMEM((H0 + 2 * _ROW0, W0 + 2 * _COL0), jnp.float32)],
        compiler_params=pltpu.CompilerParams(
            dimension_semantics=("parallel",),
            vmem_limit_bytes=_vmem_limit_bytes()),
    )(*mats, J1, J2)
    return rms[:, 0, :]                                        # (N, L)


# ---------------------------------------------------------------------------
# NLPD forward (thin JAX glue around the fused per-level Pallas kernels)
# ---------------------------------------------------------------------------
def to_y_channel(img):
    """(N, 3, H, W) RGB in [0,1] -> (N, H, W) luma.
    # TODO(synk): the helper `to_y_channel` is external to the module; this matches
    # pyiqa's default (rgb2yiq luma on [0,1]: 0.299R + 0.587G + 0.114B)."""
    r, g, b = img[:, 0], img[:, 1], img[:, 2]
    return (0.299 * r + 0.587 * g + 0.114 * b).astype(jnp.float32)


@jax.jit
def nlpd_forward(X, Y):
    """X, Y: (N, 3, H, W) RGB in [0,1].  Returns (N,) NLPD scores."""
    J1 = to_y_channel(X)
    J2 = to_y_channel(Y)
    _, H, W = J1.shape

    shapes = []
    h, w = H, W
    for _ in range(K_LEVELS):
        shapes.append((h, w))
        h, w = (h + 1) // 2, (w + 1) // 2

    tail_start = K_LEVELS - 1
    for i, (h, w) in enumerate(shapes):
        if h * w <= _TAIL_MAX_ELEMS:
            tail_start = i
            break

    scores = []
    for i in range(tail_start):
        J1, J2, rms = _level_call(J1, J2, i)
        scores.append(rms[:, None])                            # (N, 1)
    scores.append(_tail_call(J1, J2, tail_start, shapes[tail_start:]))  # (N, L)
    return jnp.concatenate(scores, axis=1).mean(axis=1)


# ---------------------------------------------------------------------------
if __name__ == "__main__":
    key = jax.random.PRNGKey(0)
    kx, ky = jax.random.split(key)
    # 128x128 exercises both the large-level (bf16 MXU) kernel (level 0) and the fused
    # small-level tail kernel (levels 1-5) while staying small and fast.
    X = jax.random.uniform(kx, (2, 3, 128, 128), dtype=jnp.float32)
    Y = jax.random.uniform(ky, (2, 3, 128, 128), dtype=jnp.float32)

    score = nlpd_forward(X, Y)
    jax.block_until_ready(score)
    assert score.shape == (2,), score.shape
    assert bool(jnp.all(jnp.isfinite(score)))

    # identical inputs -> exactly-zero distance (both branches follow the same code path)
    self_score = nlpd_forward(X, X)
    jax.block_until_ready(self_score)
    assert float(jnp.max(jnp.abs(self_score))) < 1e-6

    print("KERNEL_OK")
</pallas_src>

<mosaic_0001>
module attributes {stable_mosaic.version = 11 : i64} {
  func.func @kernel(%arg0: i32, %arg1: memref<64x128xbf16, #tpu.memory_space<vmem>>, %arg2: memref<128x64xbf16, #tpu.memory_space<vmem>>, %arg3: memref<128x64xbf16, #tpu.memory_space<vmem>>, %arg4: memref<64x128xbf16, #tpu.memory_space<vmem>>, %arg5: memref<1x128x128xf32, #tpu.memory_space<vmem>>, %arg6: memref<1x128x128xf32, #tpu.memory_space<vmem>>, %arg7: memref<1x64x64xf32, #tpu.memory_space<vmem>>, %arg8: memref<1x64x64xf32, #tpu.memory_space<vmem>>, %arg9: memref<1x1x1xf32, #tpu.memory_space<vmem>>, %arg10: memref<144x384xf32, #tpu.memory_space<vmem>>) attributes {dimension_semantics = [#tpu.dimension_semantics<parallel>], iteration_bounds = array<i64: 2>, scalar_prefetch = 0 : i64, scratch_operands = 1 : i64, tpu.core_type = #tpu.core_type<tc>, window_params = [{pipeline_mode = #tpu.pipeline_mode<synchronous>, transform_indices = @transform_0, window_bounds = array<i64: 64, 128>}, {pipeline_mode = #tpu.pipeline_mode<synchronous>, transform_indices = @transform_1, window_bounds = array<i64: 128, 64>}, {pipeline_mode = #tpu.pipeline_mode<synchronous>, transform_indices = @transform_2, window_bounds = array<i64: 128, 64>}, {pipeline_mode = #tpu.pipeline_mode<synchronous>, transform_indices = @transform_3, window_bounds = array<i64: 64, 128>}, {transform_indices = @transform_4, window_bounds = array<i64: 1, 128, 128>}, {transform_indices = @transform_5, window_bounds = array<i64: 1, 128, 128>}, {transform_indices = @transform_6, window_bounds = array<i64: 1, 64, 64>}, {transform_indices = @transform_7, window_bounds = array<i64: 1, 64, 64>}, {transform_indices = @transform_8, window_bounds = array<i64: 1, 1, 1>}]} {
    %cst = arith.constant 0.000000e+00 : f32
    %0 = vector.broadcast %cst : f32 to vector<1x128xf32>
    %cst_0 = arith.constant 0.000000e+00 : f32
    %1 = vector.broadcast %cst_0 : f32 to vector<128x1xf32>
    %c7 = arith.constant 7 : index
    %c128 = arith.constant 128 : index
    %2 = vector.load %arg10[%c7, %c128] : memref<144x384xf32, #tpu.memory_space<vmem>>, vector<1x128xf32>
    tpu.vector_store %arg10[%c7, %c128], %0 {strides = array<i32>} : memref<144x384xf32, #tpu.memory_space<vmem>>, vector<1x128xf32>,
    %c136 = arith.constant 136 : index
    %c128_1 = arith.constant 128 : index
    %3 = vector.load %arg10[%c136, %c128_1] : memref<144x384xf32, #tpu.memory_space<vmem>>, vector<1x128xf32>
    tpu.vector_store %arg10[%c136, %c128_1], %0 {strides = array<i32>} : memref<144x384xf32, #tpu.memory_space<vmem>>, vector<1x128xf32>,
    %c8 = arith.constant 8 : index
    %c127 = arith.constant 127 : index
    %4 = vector.load %arg10[%c8, %c127] : memref<144x384xf32, #tpu.memory_space<vmem>>, vector<128x1xf32>
    tpu.vector_store %arg10[%c8, %c127], %1 {strides = array<i32>} : memref<144x384xf32, #tpu.memory_space<vmem>>, vector<128x1xf32>,
    %c8_2 = arith.constant 8 : index
    %c256 = arith.constant 256 : index
    %5 = vector.load %arg10[%c8_2, %c256] : memref<144x384xf32, #tpu.memory_space<vmem>>, vector<128x1xf32>
    tpu.vector_store %arg10[%c8_2, %c256], %1 {strides = array<i32>} : memref<144x384xf32, #tpu.memory_space<vmem>>, vector<128x1xf32>,
    %c0 = arith.constant 0 : index
    %c0_3 = arith.constant 0 : index
    %6 = vector.load %arg1[%c0, %c0_3] : memref<64x128xbf16, #tpu.memory_space<vmem>>, vector<64x128xbf16>
    %c0_4 = arith.constant 0 : index
    %c0_5 = arith.constant 0 : index
    %7 = vector.load %arg2[%c0_4, %c0_5] : memref<128x64xbf16, #tpu.memory_space<vmem>>, vector<128x64xbf16>
    %c0_6 = arith.constant 0 : index
    %c0_7 = arith.constant 0 : index
    %8 = vector.load %arg3[%c0_6, %c0_7] : memref<128x64xbf16, #tpu.memory_space<vmem>>, vector<128x64xbf16>
    %c0_8 = arith.constant 0 : index
    %c0_9 = arith.constant 0 : index
    %9 = vector.load %arg4[%c0_8, %c0_9] : memref<64x128xbf16, #tpu.memory_space<vmem>>, vector<64x128xbf16>
    %c0_10 = arith.constant 0 : index
    %c0_11 = arith.constant 0 : index
    %c0_12 = arith.constant 0 : index
    %10 = vector.load %arg5[%c0_10, %c0_11, %c0_12] : memref<1x128x128xf32, #tpu.memory_space<vmem>>, vector<1x128x128xf32>
    %11 = vector.shape_cast %10 : vector<1x128x128xf32> to vector<128x128xf32>
    %12 = arith.truncf %11 : vector<128x128xf32> to vector<128x128xbf16>
    %cst_13 = arith.constant dense<0.000000e+00> : vector<64x128xf32>
    %13 = tpu.matmul %6, %12, %cst_13 {dimension_numbers = #tpu.dot_dimension_numbers<[1], [0], [0], [1], [0, 0, 1, 1], [], []>} : vector<64x128xbf16>, vector<128x128xbf16>, vector<64x128xf32> -> vector<64x128xf32>
    %14 = arith.truncf %13 : vector<64x128xf32> to vector<64x128xbf16>
    %cst_14 = arith.constant dense<0.000000e+00> : vector<64x64xf32>
    %15 = tpu.matmul %14, %7, %cst_14 {dimension_numbers = #tpu.dot_dimension_numbers<[1], [0], [0], [1], [0, 0, 1, 1], [], []>} : vector<64x128xbf16>, vector<128x64xbf16>, vector<64x64xf32> -> vector<64x64xf32>
    %c0_15 = arith.constant 0 : index
    %c0_16 = arith.constant 0 : index
    %c0_17 = arith.constant 0 : index
    %16 = vector.load %arg7[%c0_15, %c0_16, %c0_17] : memref<1x64x64xf32, #tpu.memory_space<vmem>>, vector<1x64x64xf32>
    %17 = vector.shape_cast %16 : vector<1x64x64xf32> to vector<64x64xf32>
    %18 = vector.shape_cast %15 : vector<64x64xf32> to vector<1x64x64xf32>
    tpu.vector_store %arg7[%c0_15, %c0_16, %c0_17], %18 {strides = array<i32>} : memref<1x64x64xf32, #tpu.memory_space<vmem>>, vector<1x64x64xf32>,
    %19 = arith.truncf %15 : vector<64x64xf32> to vector<64x64xbf16>
    %cst_18 = arith.constant dense<0.000000e+00> : vector<128x64xf32>
    %20 = tpu.matmul %8, %19, %cst_18 {dimension_numbers = #tpu.dot_dimension_numbers<[1], [0], [0], [1], [0, 0, 1, 1], [], []>} : vector<128x64xbf16>, vector<64x64xbf16>, vector<128x64xf32> -> vector<128x64xf32>
    %21 = arith.truncf %20 : vector<128x64xf32> to vector<128x64xbf16>
    %cst_19 = arith.constant dense<0.000000e+00> : vector<128x128xf32>
    %22 = tpu.matmul %21, %9, %cst_19 {dimension_numbers = #tpu.dot_dimension_numbers<[1], [0], [0], [1], [0, 0, 1, 1], [], []>} : vector<128x64xbf16>, vector<64x128xbf16>, vector<128x128xf32> -> vector<128x128xf32>
    %23 = arith.subf %11, %22 : vector<128x128xf32>
    %24 = math.absf %23 : vector<128x128xf32>
    %c8_20 = arith.constant 8 : index
    %c128_21 = arith.constant 128 : index
    %25 = vector.load %arg10[%c8_20, %c128_21] : memref<144x384xf32, #tpu.memory_space<vmem>>, vector<128x128xf32>
    tpu.vector_store %arg10[%c8_20, %c128_21], %24 {strides = array<i32>} : memref<144x384xf32, #tpu.memory_space<vmem>>, vector<128x128xf32>,
    %cst_22 = arith.constant 0.000000e+00 : f32
    %26 = vector.broadcast %cst_22 : f32 to vector<128x128xf32>
    %c7_23 = arith.constant 7 : index
    %c128_24 = arith.constant 128 : index
    %27 = vector.load %arg10[%c7_23, %c128_24] : memref<144x384xf32, #tpu.memory_space<vmem>>, vector<128x128xf32>
    %cst_25 = arith.constant 1.015000e-01 : f32
    %28 = vector.broadcast %cst_25 : f32 to vector<128x128xf32>
    %29 = arith.mulf %28, %27 : vector<128x128xf32>
    %30 = arith.addf %26, %29 : vector<128x128xf32>
    %c9 = arith.constant 9 : index
    %c128_26 = arith.constant 128 : index
    %31 = vector.load %arg10[%c9, %c128_26] : memref<144x384xf32, #tpu.memory_space<vmem>>, vector<128x128xf32>
    %cst_27 = arith.constant 1.011000e-01 : f32
    %32 = vector.broadcast %cst_27 : f32 to vector<128x128xf32>
    %33 = arith.mulf %32, %31 : vector<128x128xf32>
    %34 = arith.addf %30, %33 : vector<128x128xf32>
    %c8_28 = arith.constant 8 : index
    %c127_29 = arith.constant 127 : index
    %35 = vector.load %arg10[%c8_28, %c127_29] : memref<144x384xf32, #tpu.memory_space<vmem>>, vector<128x128xf32>
    %cst_30 = arith.constant 1.460000e-01 : f32
    %36 = vector.broadcast %cst_30 : f32 to vector<128x128xf32>
    %37 = arith.mulf %36, %35 : vector<128x128xf32>
    %38 = arith.addf %34, %37 : vector<128x128xf32>
    %c8_31 = arith.constant 8 : index
    %c129 = arith.constant 129 : index
    %39 = vector.load %arg10[%c8_31, %c129] : memref<144x384xf32, #tpu.memory_space<vmem>>, vector<128x128xf32>
    %cst_32 = arith.constant 1.493000e-01 : f32
    %40 = vector.broadcast %cst_32 : f32 to vector<128x128xf32>
    %41 = arith.mulf %40, %39 : vector<128x128xf32>
    %42 = arith.addf %38, %41 : vector<128x128xf32>
    %cst_33 = arith.constant 2.480000e-02 : f32
    %43 = vector.broadcast %cst_33 : f32 to vector<128x128xf32>
    %44 = arith.addf %43, %42 : vector<128x128xf32>
    %45 = arith.divf %23, %44 : vector<128x128xf32>
    %c0_34 = arith.constant 0 : index
    %c0_35 = arith.constant 0 : index
    %c0_36 = arith.constant 0 : index
    %46 = vector.load %arg6[%c0_34, %c0_35, %c0_36] : memref<1x128x128xf32, #tpu.memory_space<vmem>>, vector<1x128x128xf32>
    %47 = vector.shape_cast %46 : vector<1x128x128xf32> to vector<128x128xf32>
    %48 = arith.truncf %47 : vector<128x128xf32> to vector<128x128xbf16>
    %cst_37 = arith.constant dense<0.000000e+00> : vector<64x128xf32>
    %49 = tpu.matmul %6, %48, %cst_37 {dimension_numbers = #tpu.dot_dimension_numbers<[1], [0], [0], [1], [0, 0, 1, 1], [], []>} : vector<64x128xbf16>, vector<128x128xbf16>, vector<64x128xf32> -> vector<64x128xf32>
    %50 = arith.truncf %49 : vector<64x128xf32> to vector<64x128xbf16>
    %cst_38 = arith.constant dense<0.000000e+00> : vector<64x64xf32>
    %51 = tpu.matmul %50, %7, %cst_38 {dimension_numbers = #tpu.dot_dimension_numbers<[1], [0], [0], [1], [0, 0, 1, 1], [], []>} : vector<64x128xbf16>, vector<128x64xbf16>, vector<64x64xf32> -> vector<64x64xf32>
    %c0_39 = arith.constant 0 : index
    %c0_40 = arith.constant 0 : index
    %c0_41 = arith.constant 0 : index
    %52 = vector.load %arg8[%c0_39, %c0_40, %c0_41] : memref<1x64x64xf32, #tpu.memory_space<vmem>>, vector<1x64x64xf32>
    %53 = vector.shape_cast %52 : vector<1x64x64xf32> to vector<64x64xf32>
    %54 = vector.shape_cast %51 : vector<64x64xf32> to vector<1x64x64xf32>
    tpu.vector_store %arg8[%c0_39, %c0_40, %c0_41], %54 {strides = array<i32>} : memref<1x64x64xf32, #tpu.memory_space<vmem>>, vector<1x64x64xf32>,
    %55 = arith.truncf %51 : vector<64x64xf32> to vector<64x64xbf16>
    %cst_42 = arith.constant dense<0.000000e+00> : vector<128x64xf32>
    %56 = tpu.matmul %8, %55, %cst_42 {dimension_numbers = #tpu.dot_dimension_numbers<[1], [0], [0], [1], [0, 0, 1, 1], [], []>} : vector<128x64xbf16>, vector<64x64xbf16>, vector<128x64xf32> -> vector<128x64xf32>
    %57 = arith.truncf %56 : vector<128x64xf32> to vector<128x64xbf16>
    %cst_43 = arith.constant dense<0.000000e+00> : vector<128x128xf32>
    %58 = tpu.matmul %57, %9, %cst_43 {dimension_numbers = #tpu.dot_dimension_numbers<[1], [0], [0], [1], [0, 0, 1, 1], [], []>} : vector<128x64xbf16>, vector<64x128xbf16>, vector<128x128xf32> -> vector<128x128xf32>
    %59 = arith.subf %47, %58 : vector<128x128xf32>
    %60 = math.absf %59 : vector<128x128xf32>
    %c8_44 = arith.constant 8 : index
    %c128_45 = arith.constant 128 : index
    %61 = vector.load %arg10[%c8_44, %c128_45] : memref<144x384xf32, #tpu.memory_space<vmem>>, vector<128x128xf32>
    tpu.vector_store %arg10[%c8_44, %c128_45], %60 {strides = array<i32>} : memref<144x384xf32, #tpu.memory_space<vmem>>, vector<128x128xf32>,
    %cst_46 = arith.constant 0.000000e+00 : f32
    %62 = vector.broadcast %cst_46 : f32 to vector<128x128xf32>
    %c7_47 = arith.constant 7 : index
    %c128_48 = arith.constant 128 : index
    %63 = vector.load %arg10[%c7_47, %c128_48] : memref<144x384xf32, #tpu.memory_space<vmem>>, vector<128x128xf32>
    %cst_49 = arith.constant 1.015000e-01 : f32
    %64 = vector.broadcast %cst_49 : f32 to vector<128x128xf32>
    %65 = arith.mulf %64, %63 : vector<128x128xf32>
    %66 = arith.addf %62, %65 : vector<128x128xf32>
    %c9_50 = arith.constant 9 : index
    %c128_51 = arith.constant 128 : index
    %67 = vector.load %arg10[%c9_50, %c128_51] : memref<144x384xf32, #tpu.memory_space<vmem>>, vector<128x128xf32>
    %cst_52 = arith.constant 1.011000e-01 : f32
    %68 = vector.broadcast %cst_52 : f32 to vector<128x128xf32>
    %69 = arith.mulf %68, %67 : vector<128x128xf32>
    %70 = arith.addf %66, %69 : vector<128x128xf32>
    %c8_53 = arith.constant 8 : index
    %c127_54 = arith.constant 127 : index
    %71 = vector.load %arg10[%c8_53, %c127_54] : memref<144x384xf32, #tpu.memory_space<vmem>>, vector<128x128xf32>
    %cst_55 = arith.constant 1.460000e-01 : f32
    %72 = vector.broadcast %cst_55 : f32 to vector<128x128xf32>
    %73 = arith.mulf %72, %71 : vector<128x128xf32>
    %74 = arith.addf %70, %73 : vector<128x128xf32>
    %c8_56 = arith.constant 8 : index
    %c129_57 = arith.constant 129 : index
    %75 = vector.load %arg10[%c8_56, %c129_57] : memref<144x384xf32, #tpu.memory_space<vmem>>, vector<128x128xf32>
    %cst_58 = arith.constant 1.493000e-01 : f32
    %76 = vector.broadcast %cst_58 : f32 to vector<128x128xf32>
    %77 = arith.mulf %76, %75 : vector<128x128xf32>
    %78 = arith.addf %74, %77 : vector<128x128xf32>
    %cst_59 = arith.constant 2.480000e-02 : f32
    %79 = vector.broadcast %cst_59 : f32 to vector<128x128xf32>
    %80 = arith.addf %79, %78 : vector<128x128xf32>
    %81 = arith.divf %59, %80 : vector<128x128xf32>
    %82 = arith.subf %45, %81 : vector<128x128xf32>
    %83 = arith.mulf %82, %82 : vector<128x128xf32>
    %84 = vector.shape_cast %83 : vector<128x128xf32> to vector<1x128x128xf32>
    %cst_60 = arith.constant dense<0.000000e+00> : vector<1xf32>
    %85 = vector.multi_reduction <add>, %84, %cst_60 [1, 2] : vector<1x128x128xf32> to vector<1xf32>
    %86 = vector.shape_cast %85 : vector<1xf32> to vector<1x1x1xf32>
    %87 = vector.extract %86[0, 0, 0] : f32 from vector<1x1x1xf32>
    %88 = vector.broadcast %87 : f32 to vector<1x1xf32>
    %cst_61 = arith.constant 6.10351563E-5 : f32
    %89 = vector.broadcast %cst_61 : f32 to vector<1x1xf32>
    %90 = arith.mulf %88, %89 : vector<1x1xf32>
    %91 = math.sqrt %90 : vector<1x1xf32>
    %c0_62 = arith.constant 0 : index
    %c0_63 = arith.constant 0 : index
    %c0_64 = arith.constant 0 : index
    %92 = vector.load %arg9[%c0_62, %c0_63, %c0_64] : memref<1x1x1xf32, #tpu.memory_space<vmem>>, vector<1x1x1xf32>
    %93 = vector.shape_cast %92 : vector<1x1x1xf32> to vector<1x1xf32>
    %94 = vector.shape_cast %91 : vector<1x1xf32> to vector<1x1x1xf32>
    tpu.vector_store %arg9[%c0_62, %c0_63, %c0_64], %94 {strides = array<i32>} : memref<1x1x1xf32, #tpu.memory_space<vmem>>, vector<1x1x1xf32>,
    return
  }
  func.func @transform_0(%arg0: i32) -> (i32, i32) {
    %c0_i32 = arith.constant 0 : i32
    %c0_i32_0 = arith.constant 0 : i32
    %c0_i32_1 = arith.constant 0 : i32
    return %c0_i32, %c0_i32_0 : i32, i32
  }
  func.func @transform_1(%arg0: i32) -> (i32, i32) {
    %c0_i32 = arith.constant 0 : i32
    %c0_i32_0 = arith.constant 0 : i32
    %c0_i32_1 = arith.constant 0 : i32
    return %c0_i32, %c0_i32_0 : i32, i32
  }
  func.func @transform_2(%arg0: i32) -> (i32, i32) {
    %c0_i32 = arith.constant 0 : i32
    %c0_i32_0 = arith.constant 0 : i32
    %c0_i32_1 = arith.constant 0 : i32
    return %c0_i32, %c0_i32_0 : i32, i32
  }
  func.func @transform_3(%arg0: i32) -> (i32, i32) {
    %c0_i32 = arith.constant 0 : i32
    %c0_i32_0 = arith.constant 0 : i32
    %c0_i32_1 = arith.constant 0 : i32
    return %c0_i32, %c0_i32_0 : i32, i32
  }
  func.func @transform_4(%arg0: i32) -> (i32, i32, i32) {
    %c0_i32 = arith.constant 0 : i32
    %c0_i32_0 = arith.constant 0 : i32
    %c0_i32_1 = arith.constant 0 : i32
    return %arg0, %c0_i32, %c0_i32_0 : i32, i32, i32
  }
  func.func @transform_5(%arg0: i32) -> (i32, i32, i32) {
    %c0_i32 = arith.constant 0 : i32
    %c0_i32_0 = arith.constant 0 : i32
    %c0_i32_1 = arith.constant 0 : i32
    return %arg0, %c0_i32, %c0_i32_0 : i32, i32, i32
  }
  func.func @transform_6(%arg0: i32) -> (i32, i32, i32) {
    %c0_i32 = arith.constant 0 : i32
    %c0_i32_0 = arith.constant 0 : i32
    %c0_i32_1 = arith.constant 0 : i32
    return %arg0, %c0_i32, %c0_i32_0 : i32, i32, i32
  }
  func.func @transform_7(%arg0: i32) -> (i32, i32, i32) {
    %c0_i32 = arith.constant 0 : i32
    %c0_i32_0 = arith.constant 0 : i32
    %c0_i32_1 = arith.constant 0 : i32
    return %arg0, %c0_i32, %c0_i32_0 : i32, i32, i32
  }
  func.func @transform_8(%arg0: i32) -> (i32, i32, i32) {
    %c0_i32 = arith.constant 0 : i32
    %c0_i32_0 = arith.constant 0 : i32
    %c0_i32_1 = arith.constant 0 : i32
    return %arg0, %c0_i32, %c0_i32_0 : i32, i32, i32
  }
}

module attributes {stable_mosaic.version = 11 : i64} {
  func.func @kernel(%arg0: i32, %arg1: memref<32x64xf32, #tpu.memory_space<vmem>>, %arg2: memref<64x32xf32, #tpu.memory_space<vmem>>, %arg3: memref<64x32xf32, #tpu.memory_space<vmem>>, %arg4: memref<32x64xf32, #tpu.memory_space<vmem>>, %arg5: memref<16x32xf32, #tpu.memory_space<vmem>>, %arg6: memref<32x16xf32, #tpu.memory_space<vmem>>, %arg7: memref<32x16xf32, #tpu.memory_space<vmem>>, %arg8: memref<16x32xf32, #tpu.memory_space<vmem>>, %arg9: memref<8x16xf32, #tpu.memory_space<vmem>>, %arg10: memref<16x8xf32, #tpu.memory_space<vmem>>, %arg11: memref<16x8xf32, #tpu.memory_space<vmem>>, %arg12: memref<8x16xf32, #tpu.memory_space<vmem>>, %arg13: memref<4x8xf32, #tpu.memory_space<vmem>>, %arg14: memref<8x4xf32, #tpu.memory_space<vmem>>, %arg15: memref<8x4xf32, #tpu.memory_space<vmem>>, %arg16: memref<4x8xf32, #tpu.memory_space<vmem>>, %arg17: memref<2x64x64xf32, #tpu.memory_space<vmem>>, %arg18: memref<2x64x64xf32, #tpu.memory_space<vmem>>, %arg19: memref<2x1x5xf32, #tpu.memory_space<vmem>>, %arg20: memref<80x320xf32, #tpu.memory_space<vmem>>) attributes {dimension_semantics = [#tpu.dimension_semantics<parallel>], iteration_bounds = array<i64: 1>, scalar_prefetch = 0 : i64, scratch_operands = 1 : i64, tpu.core_type = #tpu.core_type<tc>, window_params = [{pipeline_mode = #tpu.pipeline_mode<synchronous>, transform_indices = @transform_0, window_bounds = array<i64: 32, 64>}, {pipeline_mode = #tpu.pipeline_mode<synchronous>, transform_indices = @transform_1, window_bounds = array<i64: 64, 32>}, {pipeline_mode = #tpu.pipeline_mode<synchronous>, transform_indices = @transform_2, window_bounds = array<i64: 64, 32>}, {pipeline_mode = #tpu.pipeline_mode<synchronous>, transform_indices = @transform_3, window_bounds = array<i64: 32, 64>}, {pipeline_mode = #tpu.pipeline_mode<synchronous>, transform_indices = @transform_4, window_bounds = array<i64: 16, 32>}, {pipeline_mode = #tpu.pipeline_mode<synchronous>, transform_indices = @transform_5, window_bounds = array<i64: 32, 16>}, {pipeline_mode = #tpu.pipeline_mode<synchronous>, transform_indices = @transform_6, window_bounds = array<i64: 32, 16>}, {pipeline_mode = #tpu.pipeline_mode<synchronous>, transform_indices = @transform_7, window_bounds = array<i64: 16, 32>}, {pipeline_mode = #tpu.pipeline_mode<synchronous>, transform_indices = @transform_8, window_bounds = array<i64: 8, 16>}, {pipeline_mode = #tpu.pipeline_mode<synchronous>, transform_indices = @transform_9, window_bounds = array<i64: 16, 8>}, {pipeline_mode = #tpu.pipeline_mode<synchronous>, transform_indices = @transform_10, window_bounds = array<i64: 16, 8>}, {pipeline_mode = #tpu.pipeline_mode<synchronous>, transform_indices = @transform_11, window_bounds = array<i64: 8, 16>}, {pipeline_mode = #tpu.pipeline_mode<synchronous>, transform_indices = @transform_12, window_bounds = array<i64: 4, 8>}, {pipeline_mode = #tpu.pipeline_mode<synchronous>, transform_indices = @transform_13, window_bounds = array<i64: 8, 4>}, {pipeline_mode = #tpu.pipeline_mode<synchronous>, transform_indices = @transform_14, window_bounds = array<i64: 8, 4>}, {pipeline_mode = #tpu.pipeline_mode<synchronous>, transform_indices = @transform_15, window_bounds = array<i64: 4, 8>}, {transform_indices = @transform_16, window_bounds = array<i64: 2, 64, 64>}, {transform_indices = @transform_17, window_bounds = array<i64: 2, 64, 64>}, {transform_indices = @transform_18, window_bounds = array<i64: 2, 1, 5>}]} {
    %c0 = arith.constant 0 : index
    %c0_0 = arith.constant 0 : index
    %0 = vector.load %arg1[%c0, %c0_0] : memref<32x64xf32, #tpu.memory_space<vmem>>, vector<32x64xf32>
    %c0_1 = arith.constant 0 : index
    %c0_2 = arith.constant 0 : index
    %1 = vector.load %arg2[%c0_1, %c0_2] : memref<64x32xf32, #tpu.memory_space<vmem>>, vector<64x32xf32>
    %c0_3 = arith.constant 0 : index
    %c0_4 = arith.constant 0 : index
    %2 = vector.load %arg3[%c0_3, %c0_4] : memref<64x32xf32, #tpu.memory_space<vmem>>, vector<64x32xf32>
    %c0_5 = arith.constant 0 : index
    %c0_6 = arith.constant 0 : index
    %3 = vector.load %arg4[%c0_5, %c0_6] : memref<32x64xf32, #tpu.memory_space<vmem>>, vector<32x64xf32>
    %c0_7 = arith.constant 0 : index
    %c0_8 = arith.constant 0 : index
    %4 = vector.load %arg5[%c0_7, %c0_8] : memref<16x32xf32, #tpu.memory_space<vmem>>, vector<16x32xf32>
    %c0_9 = arith.constant 0 : index
    %c0_10 = arith.constant 0 : index
    %5 = vector.load %arg6[%c0_9, %c0_10] : memref<32x16xf32, #tpu.memory_space<vmem>>, vector<32x16xf32>
    %c0_11 = arith.constant 0 : index
    %c0_12 = arith.constant 0 : index
    %6 = vector.load %arg7[%c0_11, %c0_12] : memref<32x16xf32, #tpu.memory_space<vmem>>, vector<32x16xf32>
    %c0_13 = arith.constant 0 : index
    %c0_14 = arith.constant 0 : index
    %7 = vector.load %arg8[%c0_13, %c0_14] : memref<16x32xf32, #tpu.memory_space<vmem>>, vector<16x32xf32>
    %c0_15 = arith.constant 0 : index
    %c0_16 = arith.constant 0 : index
    %8 = vector.load %arg9[%c0_15, %c0_16] : memref<8x16xf32, #tpu.memory_space<vmem>>, vector<8x16xf32>
    %c0_17 = arith.constant 0 : index
    %c0_18 = arith.constant 0 : index
    %9 = vector.load %arg10[%c0_17, %c0_18] : memref<16x8xf32, #tpu.memory_space<vmem>>, vector<16x8xf32>
    %c0_19 = arith.constant 0 : index
    %c0_20 = arith.constant 0 : index
    %10 = vector.load %arg11[%c0_19, %c0_20] : memref<16x8xf32, #tpu.memory_space<vmem>>, vector<16x8xf32>
    %c0_21 = arith.constant 0 : index
    %c0_22 = arith.constant 0 : index
    %11 = vector.load %arg12[%c0_21, %c0_22] : memref<8x16xf32, #tpu.memory_space<vmem>>, vector<8x16xf32>
    %c0_23 = arith.constant 0 : index
    %c0_24 = arith.constant 0 : index
    %12 = vector.load %arg13[%c0_23, %c0_24] : memref<4x8xf32, #tpu.memory_space<vmem>>, vector<4x8xf32>
    %c0_25 = arith.constant 0 : index
    %c0_26 = arith.constant 0 : index
    %13 = vector.load %arg14[%c0_25, %c0_26] : memref<8x4xf32, #tpu.memory_space<vmem>>, vector<8x4xf32>
    %c0_27 = arith.constant 0 : index
    %c0_28 = arith.constant 0 : index
    %14 = vector.load %arg15[%c0_27, %c0_28] : memref<8x4xf32, #tpu.memory_space<vmem>>, vector<8x4xf32>
    %c0_29 = arith.constant 0 : index
    %c0_30 = arith.constant 0 : index
    %15 = vector.load %arg16[%c0_29, %c0_30] : memref<4x8xf32, #tpu.memory_space<vmem>>, vector<4x8xf32>
    %c0_i32 = arith.constant 0 : i32
    %c2_i32 = arith.constant 2 : i32
    %16 = arith.addi %c0_i32, %c2_i32 : i32
    %c1_i32 = arith.constant 1 : i32
    scf.for %arg21 = %c0_i32 to %16 step %c1_i32  : i32 {
      %17 = arith.index_cast %arg21 : i32 to index
      %c0_32 = arith.constant 0 : index
      %c0_33 = arith.constant 0 : index
      %18 = vector.load %arg17[%17, %c0_32, %c0_33] : memref<2x64x64xf32, #tpu.memory_space<vmem>>, vector<1x64x64xf32>
      %19 = vector.shape_cast %18 : vector<1x64x64xf32> to vector<64x64xf32>
      %20 = arith.index_cast %arg21 : i32 to index
      %c0_34 = arith.constant 0 : index
      %c0_35 = arith.constant 0 : index
      %21 = vector.load %arg18[%20, %c0_34, %c0_35] : memref<2x64x64xf32, #tpu.memory_space<vmem>>, vector<1x64x64xf32>
      %22 = vector.shape_cast %21 : vector<1x64x64xf32> to vector<64x64xf32>
      %cst = arith.constant 0.000000e+00 : f32
      %23 = vector.broadcast %cst : f32 to vector<1x64xf32>
      %cst_36 = arith.constant 0.000000e+00 : f32
      %24 = vector.broadcast %cst_36 : f32 to vector<64x1xf32>
      %c7 = arith.constant 7 : index
      %c128 = arith.constant 128 : index
      %25 = vector.load %arg20[%c7, %c128] : memref<80x320xf32, #tpu.memory_space<vmem>>, vector<1x64xf32>
      tpu.vector_store %arg20[%c7, %c128], %23 {strides = array<i32>} : memref<80x320xf32, #tpu.memory_space<vmem>>, vector<1x64xf32>,
      %c72 = arith.constant 72 : index
      %c128_37 = arith.constant 128 : index
      %26 = vector.load %arg20[%c72, %c128_37] : memref<80x320xf32, #tpu.memory_space<vmem>>, vector<1x64xf32>
      tpu.vector_store %arg20[%c72, %c128_37], %23 {strides = array<i32>} : memref<80x320xf32, #tpu.memory_space<vmem>>, vector<1x64xf32>,
      %c8 = arith.constant 8 : index
      %c127 = arith.constant 127 : index
      %27 = vector.load %arg20[%c8, %c127] : memref<80x320xf32, #tpu.memory_space<vmem>>, vector<64x1xf32>
      tpu.vector_store %arg20[%c8, %c127], %24 {strides = array<i32>} : memref<80x320xf32, #tpu.memory_space<vmem>>, vector<64x1xf32>,
      %c8_38 = arith.constant 8 : index
      %c192 = arith.constant 192 : index
      %28 = vector.load %arg20[%c8_38, %c192] : memref<80x320xf32, #tpu.memory_space<vmem>>, vector<64x1xf32>
      tpu.vector_store %arg20[%c8_38, %c192], %24 {strides = array<i32>} : memref<80x320xf32, #tpu.memory_space<vmem>>, vector<64x1xf32>,
      %cst_39 = arith.constant dense<0.000000e+00> : vector<32x64xf32>
      %29 = tpu.matmul %0, %19, %cst_39 {dimension_numbers = #tpu.dot_dimension_numbers<[1], [0], [0], [1], [0, 0, 1, 1], [], []>} : vector<32x64xf32>, vector<64x64xf32>, vector<32x64xf32> -> vector<32x64xf32>
      %cst_40 = arith.constant dense<0.000000e+00> : vector<32x32xf32>
      %30 = tpu.matmul %29, %1, %cst_40 {dimension_numbers = #tpu.dot_dimension_numbers<[1], [0], [0], [1], [0, 0, 1, 1], [], []>} : vector<32x64xf32>, vector<64x32xf32>, vector<32x32xf32> -> vector<32x32xf32>
      %cst_41 = arith.constant dense<0.000000e+00> : vector<64x32xf32>
      %31 = tpu.matmul %2, %30, %cst_41 {dimension_numbers = #tpu.dot_dimension_numbers<[1], [0], [0], [1], [0, 0, 1, 1], [], []>} : vector<64x32xf32>, vector<32x32xf32>, vector<64x32xf32> -> vector<64x32xf32>
      %cst_42 = arith.constant dense<0.000000e+00> : vector<64x64xf32>
      %32 = tpu.matmul %31, %3, %cst_42 {dimension_numbers = #tpu.dot_dimension_numbers<[1], [0], [0], [1], [0, 0, 1, 1], [], []>} : vector<64x32xf32>, vector<32x64xf32>, vector<64x64xf32> -> vector<64x64xf32>
      %33 = arith.subf %19, %32 : vector<64x64xf32>
      %34 = math.absf %33 : vector<64x64xf32>
      %c8_43 = arith.constant 8 : index
      %c128_44 = arith.constant 128 : index
      %35 = vector.load %arg20[%c8_43, %c128_44] : memref<80x320xf32, #tpu.memory_space<vmem>>, vector<64x64xf32>
      tpu.vector_store %arg20[%c8_43, %c128_44], %34 {strides = array<i32>} : memref<80x320xf32, #tpu.memory_space<vmem>>, vector<64x64xf32>,
      %cst_45 = arith.constant 0.000000e+00 : f32
      %36 = vector.broadcast %cst_45 : f32 to vector<64x64xf32>
      %c7_46 = arith.constant 7 : index
      %c128_47 = arith.constant 128 : index
      %37 = vector.load %arg20[%c7_46, %c128_47] : memref<80x320xf32, #tpu.memory_space<vmem>>, vector<64x64xf32>
      %cst_48 = arith.constant 8.370000e-02 : f32
      %38 = vector.broadcast %cst_48 : f32 to vector<64x64xf32>
      %39 = arith.mulf %38, %37 : vector<64x64xf32>
      %40 = arith.addf %36, %39 : vector<64x64xf32>
      %c9 = arith.constant 9 : index
      %c128_49 = arith.constant 128 : index
      %41 = vector.load %arg20[%c9, %c128_49] : memref<80x320xf32, #tpu.memory_space<vmem>>, vector<64x64xf32>
      %cst_50 = arith.constant 7.570000e-02 : f32
      %42 = vector.broadcast %cst_50 : f32 to vector<64x64xf32>
      %43 = arith.mulf %42, %41 : vector<64x64xf32>
      %44 = arith.addf %40, %43 : vector<64x64xf32>
      %c8_51 = arith.constant 8 : index
      %c127_52 = arith.constant 127 : index
      %45 = vector.load %arg20[%c8_51, %c127_52] : memref<80x320xf32, #tpu.memory_space<vmem>>, vector<64x64xf32>
      %cst_53 = arith.constant 1.846000e-01 : f32
      %46 = vector.broadcast %cst_53 : f32 to vector<64x64xf32>
      %47 = arith.mulf %46, %45 : vector<64x64xf32>
      %48 = arith.addf %44, %47 : vector<64x64xf32>
      %c8_54 = arith.constant 8 : index
      %c129 = arith.constant 129 : index
      %49 = vector.load %arg20[%c8_54, %c129] : memref<80x320xf32, #tpu.memory_space<vmem>>, vector<64x64xf32>
      %cst_55 = arith.constant 1.986000e-01 : f32
      %50 = vector.broadcast %cst_55 : f32 to vector<64x64xf32>
      %51 = arith.mulf %50, %49 : vector<64x64xf32>
      %52 = arith.addf %48, %51 : vector<64x64xf32>
      %cst_56 = arith.constant 1.850000e-02 : f32
      %53 = vector.broadcast %cst_56 : f32 to vector<64x64xf32>
      %54 = arith.addf %53, %52 : vector<64x64xf32>
      %55 = arith.divf %33, %54 : vector<64x64xf32>
      %cst_57 = arith.constant dense<0.000000e+00> : vector<32x64xf32>
      %56 = tpu.matmul %0, %22, %cst_57 {dimension_numbers = #tpu.dot_dimension_numbers<[1], [0], [0], [1], [0, 0, 1, 1], [], []>} : vector<32x64xf32>, vector<64x64xf32>, vector<32x64xf32> -> vector<32x64xf32>
      %cst_58 = arith.constant dense<0.000000e+00> : vector<32x32xf32>
      %57 = tpu.matmul %56, %1, %cst_58 {dimension_numbers = #tpu.dot_dimension_numbers<[1], [0], [0], [1], [0, 0, 1, 1], [], []>} : vector<32x64xf32>, vector<64x32xf32>, vector<32x32xf32> -> vector<32x32xf32>
      %cst_59 = arith.constant dense<0.000000e+00> : vector<64x32xf32>
      %58 = tpu.matmul %2, %57, %cst_59 {dimension_numbers = #tpu.dot_dimension_numbers<[1], [0], [0], [1], [0, 0, 1, 1], [], []>} : vector<64x32xf32>, vector<32x32xf32>, vector<64x32xf32> -> vector<64x32xf32>
      %cst_60 = arith.constant dense<0.000000e+00> : vector<64x64xf32>
      %59 = tpu.matmul %58, %3, %cst_60 {dimension_numbers = #tpu.dot_dimension_numbers<[1], [0], [0], [1], [0, 0, 1, 1], [], []>} : vector<64x32xf32>, vector<32x64xf32>, vector<64x64xf32> -> vector<64x64xf32>
      %60 = arith.subf %22, %59 : vector<64x64xf32>
      %61 = math.absf %60 : vector<64x64xf32>
      %c8_61 = arith.constant 8 : index
      %c128_62 = arith.constant 128 : index
      %62 = vector.load %arg20[%c8_61, %c128_62] : memref<80x320xf32, #tpu.memory_space<vmem>>, vector<64x64xf32>
      tpu.vector_store %arg20[%c8_61, %c128_62], %61 {strides = array<i32>} : memref<80x320xf32, #tpu.memory_space<vmem>>, vector<64x64xf32>,
      %cst_63 = arith.constant 0.000000e+00 : f32
      %63 = vector.broadcast %cst_63 : f32 to vector<64x64xf32>
      %c7_64 = arith.constant 7 : index
      %c128_65 = arith.constant 128 : index
      %64 = vector.load %arg20[%c7_64, %c128_65] : memref<80x320xf32, #tpu.memory_space<vmem>>, vector<64x64xf32>
      %cst_66 = arith.constant 8.370000e-02 : f32
      %65 = vector.broadcast %cst_66 : f32 to vector<64x64xf32>
      %66 = arith.mulf %65, %64 : vector<64x64xf32>
      %67 = arith.addf %63, %66 : vector<64x64xf32>
      %c9_67 = arith.constant 9 : index
      %c128_68 = arith.constant 128 : index
      %68 = vector.load %arg20[%c9_67, %c128_68] : memref<80x320xf32, #tpu.memory_space<vmem>>, vector<64x64xf32>
      %cst_69 = arith.constant 7.570000e-02 : f32
      %69 = vector.broadcast %cst_69 : f32 to vector<64x64xf32>
      %70 = arith.mulf %69, %68 : vector<64x64xf32>
      %71 = arith.addf %67, %70 : vector<64x64xf32>
      %c8_70 = arith.constant 8 : index
      %c127_71 = arith.constant 127 : index
      %72 = vector.load %arg20[%c8_70, %c127_71] : memref<80x320xf32, #tpu.memory_space<vmem>>, vector<64x64xf32>
      %cst_72 = arith.constant 1.846000e-01 : f32
      %73 = vector.broadcast %cst_72 : f32 to vector<64x64xf32>
      %74 = arith.mulf %73, %72 : vector<64x64xf32>
      %75 = arith.addf %71, %74 : vector<64x64xf32>
      %c8_73 = arith.constant 8 : index
      %c129_74 = arith.constant 129 : index
      %76 = vector.load %arg20[%c8_73, %c129_74] : memref<80x320xf32, #tpu.memory_space<vmem>>, vector<64x64xf32>
      %cst_75 = arith.constant 1.986000e-01 : f32
      %77 = vector.broadcast %cst_75 : f32 to vector<64x64xf32>
      %78 = arith.mulf %77, %76 : vector<64x64xf32>
      %79 = arith.addf %75, %78 : vector<64x64xf32>
      %cst_76 = arith.constant 1.850000e-02 : f32
      %80 = vector.broadcast %cst_76 : f32 to vector<64x64xf32>
      %81 = arith.addf %80, %79 : vector<64x64xf32>
      %82 = arith.divf %60, %81 : vector<64x64xf32>
      %83 = arith.subf %55, %82 : vector<64x64xf32>
      %84 = arith.mulf %83, %83 : vector<64x64xf32>
      %85 = vector.shape_cast %84 : vector<64x64xf32> to vector<1x64x64xf32>
      %cst_77 = arith.constant dense<0.000000e+00> : vector<1xf32>
      %86 = vector.multi_reduction <add>, %85, %cst_77 [1, 2] : vector<1x64x64xf32> to vector<1xf32>
      %87 = vector.shape_cast %86 : vector<1xf32> to vector<1x1x1xf32>
      %88 = vector.extract %87[0, 0, 0] : f32 from vector<1x1x1xf32>
      %89 = vector.broadcast %88 : f32 to vector<1x1xf32>
      %cst_78 = arith.constant 2.44140625E-4 : f32
      %90 = vector.broadcast %cst_78 : f32 to vector<1x1xf32>
      %91 = arith.mulf %89, %90 : vector<1x1xf32>
      %92 = math.sqrt %91 : vector<1x1xf32>
      %cst_79 = arith.constant 0.000000e+00 : f32
      %93 = vector.broadcast %cst_79 : f32 to vector<1x32xf32>
      %cst_80 = arith.constant 0.000000e+00 : f32
      %94 = vector.broadcast %cst_80 : f32 to vector<32x1xf32>
      %c7_81 = arith.constant 7 : index
      %c128_82 = arith.constant 128 : index
      %95 = vector.load %arg20[%c7_81, %c128_82] : memref<80x320xf32, #tpu.memory_space<vmem>>, vector<1x32xf32>
      tpu.vector_store %arg20[%c7_81, %c128_82], %93 {strides = array<i32>} : memref<80x320xf32, #tpu.memory_space<vmem>>, vector<1x32xf32>,
      %c40 = arith.constant 40 : index
      %c128_83 = arith.constant 128 : index
      %96 = vector.load %arg20[%c40, %c128_83] : memref<80x320xf32, #tpu.memory_space<vmem>>, vector<1x32xf32>
      tpu.vector_store %arg20[%c40, %c128_83], %93 {strides = array<i32>} : memref<80x320xf32, #tpu.memory_space<vmem>>, vector<1x32xf32>,
      %c8_84 = arith.constant 8 : index
      %c127_85 = arith.constant 127 : index
      %97 = vector.load %arg20[%c8_84, %c127_85] : memref<80x320xf32, #tpu.memory_space<vmem>>, vector<32x1xf32>
      tpu.vector_store %arg20[%c8_84, %c127_85], %94 {strides = array<i32>} : memref<80x320xf32, #tpu.memory_space<vmem>>, vector<32x1xf32>,
      %c8_86 = arith.constant 8 : index
      %c160 = arith.constant 160 : index
      %98 = vector.load %arg20[%c8_86, %c160] : memref<80x320xf32, #tpu.memory_space<vmem>>, vector<32x1xf32>
      tpu.vector_store %arg20[%c8_86, %c160], %94 {strides = array<i32>} : memref<80x320xf32, #tpu.memory_space<vmem>>, vector<32x1xf32>,
      %cst_87 = arith.constant dense<0.000000e+00> : vector<16x32xf32>
      %99 = tpu.matmul %4, %30, %cst_87 {dimension_numbers = #tpu.dot_dimension_numbers<[1], [0], [0], [1], [0, 0, 1, 1], [], []>} : vector<16x32xf32>, vector<32x32xf32>, vector<16x32xf32> -> vector<16x32xf32>
      %cst_88 = arith.constant dense<0.000000e+00> : vector<16x16xf32>
      %100 = tpu.matmul %99, %5, %cst_88 {dimension_numbers = #tpu.dot_dimension_numbers<[1], [0], [0], [1], [0, 0, 1, 1], [], []>} : vector<16x32xf32>, vector<32x16xf32>, vector<16x16xf32> -> vector<16x16xf32>
      %cst_89 = arith.constant dense<0.000000e+00> : vector<32x16xf32>
      %101 = tpu.matmul %6, %100, %cst_89 {dimension_numbers = #tpu.dot_dimension_numbers<[1], [0], [0], [1], [0, 0, 1, 1], [], []>} : vector<32x16xf32>, vector<16x16xf32>, vector<32x16xf32> -> vector<32x16xf32>
      %cst_90 = arith.constant dense<0.000000e+00> : vector<32x32xf32>
      %102 = tpu.matmul %101, %7, %cst_90 {dimension_numbers = #tpu.dot_dimension_numbers<[1], [0], [0], [1], [0, 0, 1, 1], [], []>} : vector<32x16xf32>, vector<16x32xf32>, vector<32x32xf32> -> vector<32x32xf32>
      %103 = arith.subf %30, %102 : vector<32x32xf32>
      %104 = math.absf %103 : vector<32x32xf32>
      %c8_91 = arith.constant 8 : index
      %c128_92 = arith.constant 128 : index
      %105 = vector.load %arg20[%c8_91, %c128_92] : memref<80x320xf32, #tpu.memory_space<vmem>>, vector<32x32xf32>
      tpu.vector_store %arg20[%c8_91, %c128_92], %104 {strides = array<i32>} : memref<80x320xf32, #tpu.memory_space<vmem>>, vector<32x32xf32>,
      %cst_93 = arith.constant 0.000000e+00 : f32
      %106 = vector.broadcast %cst_93 : f32 to vector<32x32xf32>
      %c7_94 = arith.constant 7 : index
      %c128_95 = arith.constant 128 : index
      %107 = vector.load %arg20[%c7_94, %c128_95] : memref<80x320xf32, #tpu.memory_space<vmem>>, vector<32x32xf32>
      %cst_96 = arith.constant 4.670000e-02 : f32
      %108 = vector.broadcast %cst_96 : f32 to vector<32x32xf32>
      %109 = arith.mulf %108, %107 : vector<32x32xf32>
      %110 = arith.addf %106, %109 : vector<32x32xf32>
      %c9_97 = arith.constant 9 : index
      %c128_98 = arith.constant 128 : index
      %111 = vector.load %arg20[%c9_97, %c128_98] : memref<80x320xf32, #tpu.memory_space<vmem>>, vector<32x32xf32>
      %cst_99 = arith.constant 4.770000e-02 : f32
      %112 = vector.broadcast %cst_99 : f32 to vector<32x32xf32>
      %113 = arith.mulf %112, %111 : vector<32x32xf32>
      %114 = arith.addf %110, %113 : vector<32x32xf32>
      %c8_100 = arith.constant 8 : index
      %c127_101 = arith.constant 127 : index
      %115 = vector.load %arg20[%c8_100, %c127_101] : memref<80x320xf32, #tpu.memory_space<vmem>>, vector<32x32xf32>
      %cst_102 = arith.constant 2.243000e-01 : f32
      %116 = vector.broadcast %cst_102 : f32 to vector<32x32xf32>
      %117 = arith.mulf %116, %115 : vector<32x32xf32>
      %118 = arith.addf %114, %117 : vector<32x32xf32>
      %c8_103 = arith.constant 8 : index
      %c129_104 = arith.constant 129 : index
      %119 = vector.load %arg20[%c8_103, %c129_104] : memref<80x320xf32, #tpu.memory_space<vmem>>, vector<32x32xf32>
      %cst_105 = arith.constant 2.138000e-01 : f32
      %120 = vector.broadcast %cst_105 : f32 to vector<32x32xf32>
      %121 = arith.mulf %120, %119 : vector<32x32xf32>
      %122 = arith.addf %118, %121 : vector<32x32xf32>
      %cst_106 = arith.constant 1.790000e-02 : f32
      %123 = vector.broadcast %cst_106 : f32 to vector<32x32xf32>
      %124 = arith.addf %123, %122 : vector<32x32xf32>
      %125 = arith.divf %103, %124 : vector<32x32xf32>
      %cst_107 = arith.constant dense<0.000000e+00> : vector<16x32xf32>
      %126 = tpu.matmul %4, %57, %cst_107 {dimension_numbers = #tpu.dot_dimension_numbers<[1], [0], [0], [1], [0, 0, 1, 1], [], []>} : vector<16x32xf32>, vector<32x32xf32>, vector<16x32xf32> -> vector<16x32xf32>
      %cst_108 = arith.constant dense<0.000000e+00> : vector<16x16xf32>
      %127 = tpu.matmul %126, %5, %cst_108 {dimension_numbers = #tpu.dot_dimension_numbers<[1], [0], [0], [1], [0, 0, 1, 1], [], []>} : vector<16x32xf32>, vector<32x16xf32>, vector<16x16xf32> -> vector<16x16xf32>
      %cst_109 = arith.constant dense<0.000000e+00> : vector<32x16xf32>
      %128 = tpu.matmul %6, %127, %cst_109 {dimension_numbers = #tpu.dot_dimension_numbers<[1], [0], [0], [1], [0, 0, 1, 1], [], []>} : vector<32x16xf32>, vector<16x16xf32>, vector<32x16xf32> -> vector<32x16xf32>
      %cst_110 = arith.constant dense<0.000000e+00> : vector<32x32xf32>
      %129 = tpu.matmul %128, %7, %cst_110 {dimension_numbers = #tpu.dot_dimension_numbers<[1], [0], [0], [1], [0, 0, 1, 1], [], []>} : vector<32x16xf32>, vector<16x32xf32>, vector<32x32xf32> -> vector<32x32xf32>
      %130 = arith.subf %57, %129 : vector<32x32xf32>
      %131 = math.absf %130 : vector<32x32xf32>
      %c8_111 = arith.constant 8 : index
      %c128_112 = arith.constant 128 : index
      %132 = vector.load %arg20[%c8_111, %c128_112] : memref<80x320xf32, #tpu.memory_space<vmem>>, vector<32x32xf32>
      tpu.vector_store %arg20[%c8_111, %c128_112], %131 {strides = array<i32>} : memref<80x320xf32, #tpu.memory_space<vmem>>, vector<32x32xf32>,
      %cst_113 = arith.constant 0.000000e+00 : f32
      %133 = vector.broadcast %cst_113 : f32 to vector<32x32xf32>
      %c7_114 = arith.constant 7 : index
      %c128_115 = arith.constant 128 : index
      %134 = vector.load %arg20[%c7_114, %c128_115] : memref<80x320xf32, #tpu.memory_space<vmem>>, vector<32x32xf32>
      %cst_116 = arith.constant 4.670000e-02 : f32
      %135 = vector.broadcast %cst_116 : f32 to vector<32x32xf32>
      %136 = arith.mulf %135, %134 : vector<32x32xf32>
      %137 = arith.addf %133, %136 : vector<32x32xf32>
      %c9_117 = arith.constant 9 : index
      %c128_118 = arith.constant 128 : index
      %138 = vector.load %arg20[%c9_117, %c128_118] : memref<80x320xf32, #tpu.memory_space<vmem>>, vector<32x32xf32>
      %cst_119 = arith.constant 4.770000e-02 : f32
      %139 = vector.broadcast %cst_119 : f32 to vector<32x32xf32>
      %140 = arith.mulf %139, %138 : vector<32x32xf32>
      %141 = arith.addf %137, %140 : vector<32x32xf32>
      %c8_120 = arith.constant 8 : index
      %c127_121 = arith.constant 127 : index
      %142 = vector.load %arg20[%c8_120, %c127_121] : memref<80x320xf32, #tpu.memory_space<vmem>>, vector<32x32xf32>
      %cst_122 = arith.constant 2.243000e-01 : f32
      %143 = vector.broadcast %cst_122 : f32 to vector<32x32xf32>
      %144 = arith.mulf %143, %142 : vector<32x32xf32>
      %145 = arith.addf %141, %144 : vector<32x32xf32>
      %c8_123 = arith.constant 8 : index
      %c129_124 = arith.constant 129 : index
      %146 = vector.load %arg20[%c8_123, %c129_124] : memref<80x320xf32, #tpu.memory_space<vmem>>, vector<32x32xf32>
      %cst_125 = arith.constant 2.138000e-01 : f32
      %147 = vector.broadcast %cst_125 : f32 to vector<32x32xf32>
      %148 = arith.mulf %147, %146 : vector<32x32xf32>
      %149 = arith.addf %145, %148 : vector<32x32xf32>
      %cst_126 = arith.constant 1.790000e-02 : f32
      %150 = vector.broadcast %cst_126 : f32 to vector<32x32xf32>
      %151 = arith.addf %150, %149 : vector<32x32xf32>
      %152 = arith.divf %130, %151 : vector<32x32xf32>
      %153 = arith.subf %125, %152 : vector<32x32xf32>
      %154 = arith.mulf %153, %153 : vector<32x32xf32>
      %155 = vector.shape_cast %154 : vector<32x32xf32> to vector<1x32x32xf32>
      %cst_127 = arith.constant dense<0.000000e+00> : vector<1xf32>
      %156 = vector.multi_reduction <add>, %155, %cst_127 [1, 2] : vector<1x32x32xf32> to vector<1xf32>
      %157 = vector.shape_cast %156 : vector<1xf32> to vector<1x1x1xf32>
      %158 = vector.extract %157[0, 0, 0] : f32 from vector<1x1x1xf32>
      %159 = vector.broadcast %158 : f32 to vector<1x1xf32>
      %cst_128 = arith.constant 9.765625E-4 : f32
      %160 = vector.broadcast %cst_128 : f32 to vector<1x1xf32>
      %161 = arith.mulf %159, %160 : vector<1x1xf32>
      %162 = math.sqrt %161 : vector<1x1xf32>
      %cst_129 = arith.constant 0.000000e+00 : f32
      %163 = vector.broadcast %cst_129 : f32 to vector<1x16xf32>
      %cst_130 = arith.constant 0.000000e+00 : f32
      %164 = vector.broadcast %cst_130 : f32 to vector<16x1xf32>
      %c7_131 = arith.constant 7 : index
      %c128_132 = arith.constant 128 : index
      %165 = vector.load %arg20[%c7_131, %c128_132] : memref<80x320xf32, #tpu.memory_space<vmem>>, vector<1x16xf32>
      tpu.vector_store %arg20[%c7_131, %c128_132], %163 {strides = array<i32>} : memref<80x320xf32, #tpu.memory_space<vmem>>, vector<1x16xf32>,
      %c24 = arith.constant 24 : index
      %c128_133 = arith.constant 128 : index
      %166 = vector.load %arg20[%c24, %c128_133] : memref<80x320xf32, #tpu.memory_space<vmem>>, vector<1x16xf32>
      tpu.vector_store %arg20[%c24, %c128_133], %163 {strides = array<i32>} : memref<80x320xf32, #tpu.memory_space<vmem>>, vector<1x16xf32>,
      %c8_134 = arith.constant 8 : index
      %c127_135 = arith.constant 127 : index
      %167 = vector.load %arg20[%c8_134, %c127_135] : memref<80x320xf32, #tpu.memory_space<vmem>>, vector<16x1xf32>
      tpu.vector_store %arg20[%c8_134, %c127_135], %164 {strides = array<i32>} : memref<80x320xf32, #tpu.memory_space<vmem>>, vector<16x1xf32>,
      %c8_136 = arith.constant 8 : index
      %c144 = arith.constant 144 : index
      %168 = vector.load %arg20[%c8_136, %c144] : memref<80x320xf32, #tpu.memory_space<vmem>>, vector<16x1xf32>
      tpu.vector_store %arg20[%c8_136, %c144], %164 {strides = array<i32>} : memref<80x320xf32, #tpu.memory_space<vmem>>, vector<16x1xf32>,
      %cst_137 = arith.constant dense<0.000000e+00> : vector<8x16xf32>
      %169 = tpu.matmul %8, %100, %cst_137 {dimension_numbers = #tpu.dot_dimension_numbers<[1], [0], [0], [1], [0, 0, 1, 1], [], []>} : vector<8x16xf32>, vector<16x16xf32>, vector<8x16xf32> -> vector<8x16xf32>
      %cst_138 = arith.constant dense<0.000000e+00> : vector<8x8xf32>
      %170 = tpu.matmul %169, %9, %cst_138 {dimension_numbers = #tpu.dot_dimension_numbers<[1], [0], [0], [1], [0, 0, 1, 1], [], []>} : vector<8x16xf32>, vector<16x8xf32>, vector<8x8xf32> -> vector<8x8xf32>
      %cst_139 = arith.constant dense<0.000000e+00> : vector<16x8xf32>
      %171 = tpu.matmul %10, %170, %cst_139 {dimension_numbers = #tpu.dot_dimension_numbers<[1], [0], [0], [1], [0, 0, 1, 1], [], []>} : vector<16x8xf32>, vector<8x8xf32>, vector<16x8xf32> -> vector<16x8xf32>
      %cst_140 = arith.constant dense<0.000000e+00> : vector<16x16xf32>
      %172 = tpu.matmul %171, %11, %cst_140 {dimension_numbers = #tpu.dot_dimension_numbers<[1], [0], [0], [1], [0, 0, 1, 1], [], []>} : vector<16x8xf32>, vector<8x16xf32>, vector<16x16xf32> -> vector<16x16xf32>
      %173 = arith.subf %100, %172 : vector<16x16xf32>
      %174 = math.absf %173 : vector<16x16xf32>
      %c8_141 = arith.constant 8 : index
      %c128_142 = arith.constant 128 : index
      %175 = vector.load %arg20[%c8_141, %c128_142] : memref<80x320xf32, #tpu.memory_space<vmem>>, vector<16x16xf32>
      tpu.vector_store %arg20[%c8_141, %c128_142], %174 {strides = array<i32>} : memref<80x320xf32, #tpu.memory_space<vmem>>, vector<16x16xf32>,
      %cst_143 = arith.constant 0.000000e+00 : f32
      %176 = vector.broadcast %cst_143 : f32 to vector<16x16xf32>
      %c8_144 = arith.constant 8 : index
      %c127_145 = arith.constant 127 : index
      %177 = vector.load %arg20[%c8_144, %c127_145] : memref<80x320xf32, #tpu.memory_space<vmem>>, vector<16x16xf32>
      %cst_146 = arith.constant 2.616000e-01 : f32
      %178 = vector.broadcast %cst_146 : f32 to vector<16x16xf32>
      %179 = arith.mulf %178, %177 : vector<16x16xf32>
      %180 = arith.addf %176, %179 : vector<16x16xf32>
      %c8_147 = arith.constant 8 : index
      %c129_148 = arith.constant 129 : index
      %181 = vector.load %arg20[%c8_147, %c129_148] : memref<80x320xf32, #tpu.memory_space<vmem>>, vector<16x16xf32>
      %cst_149 = arith.constant 2.503000e-01 : f32
      %182 = vector.broadcast %cst_149 : f32 to vector<16x16xf32>
      %183 = arith.mulf %182, %181 : vector<16x16xf32>
      %184 = arith.addf %180, %183 : vector<16x16xf32>
      %cst_150 = arith.constant 1.910000e-02 : f32
      %185 = vector.broadcast %cst_150 : f32 to vector<16x16xf32>
      %186 = arith.addf %185, %184 : vector<16x16xf32>
      %187 = arith.divf %173, %186 : vector<16x16xf32>
      %cst_151 = arith.constant dense<0.000000e+00> : vector<8x16xf32>
      %188 = tpu.matmul %8, %127, %cst_151 {dimension_numbers = #tpu.dot_dimension_numbers<[1], [0], [0], [1], [0, 0, 1, 1], [], []>} : vector<8x16xf32>, vector<16x16xf32>, vector<8x16xf32> -> vector<8x16xf32>
      %cst_152 = arith.constant dense<0.000000e+00> : vector<8x8xf32>
      %189 = tpu.matmul %188, %9, %cst_152 {dimension_numbers = #tpu.dot_dimension_numbers<[1], [0], [0], [1], [0, 0, 1, 1], [], []>} : vector<8x16xf32>, vector<16x8xf32>, vector<8x8xf32> -> vector<8x8xf32>
      %cst_153 = arith.constant dense<0.000000e+00> : vector<16x8xf32>
      %190 = tpu.matmul %10, %189, %cst_153 {dimension_numbers = #tpu.dot_dimension_numbers<[1], [0], [0], [1], [0, 0, 1, 1], [], []>} : vector<16x8xf32>, vector<8x8xf32>, vector<16x8xf32> -> vector<16x8xf32>
      %cst_154 = arith.constant dense<0.000000e+00> : vector<16x16xf32>
      %191 = tpu.matmul %190, %11, %cst_154 {dimension_numbers = #tpu.dot_dimension_numbers<[1], [0], [0], [1], [0, 0, 1, 1], [], []>} : vector<16x8xf32>, vector<8x16xf32>, vector<16x16xf32> -> vector<16x16xf32>
      %192 = arith.subf %127, %191 : vector<16x16xf32>
      %193 = math.absf %192 : vector<16x16xf32>
      %c8_155 = arith.constant 8 : index
      %c128_156 = arith.constant 128 : index
      %194 = vector.load %arg20[%c8_155, %c128_156] : memref<80x320xf32, #tpu.memory_space<vmem>>, vector<16x16xf32>
      tpu.vector_store %arg20[%c8_155, %c128_156], %193 {strides = array<i32>} : memref<80x320xf32, #tpu.memory_space<vmem>>, vector<16x16xf32>,
      %cst_157 = arith.constant 0.000000e+00 : f32
      %195 = vector.broadcast %cst_157 : f32 to vector<16x16xf32>
      %c8_158 = arith.constant 8 : index
      %c127_159 = arith.constant 127 : index
      %196 = vector.load %arg20[%c8_158, %c127_159] : memref<80x320xf32, #tpu.memory_space<vmem>>, vector<16x16xf32>
      %cst_160 = arith.constant 2.616000e-01 : f32
      %197 = vector.broadcast %cst_160 : f32 to vector<16x16xf32>
      %198 = arith.mulf %197, %196 : vector<16x16xf32>
      %199 = arith.addf %195, %198 : vector<16x16xf32>
      %c8_161 = arith.constant 8 : index
      %c129_162 = arith.constant 129 : index
      %200 = vector.load %arg20[%c8_161, %c129_162] : memref<80x320xf32, #tpu.memory_space<vmem>>, vector<16x16xf32>
      %cst_163 = arith.constant 2.503000e-01 : f32
      %201 = vector.broadcast %cst_163 : f32 to vector<16x16xf32>
      %202 = arith.mulf %201, %200 : vector<16x16xf32>
      %203 = arith.addf %199, %202 : vector<16x16xf32>
      %cst_164 = arith.constant 1.910000e-02 : f32
      %204 = vector.broadcast %cst_164 : f32 to vector<16x16xf32>
      %205 = arith.addf %204, %203 : vector<16x16xf32>
      %206 = arith.divf %192, %205 : vector<16x16xf32>
      %207 = arith.subf %187, %206 : vector<16x16xf32>
      %208 = arith.mulf %207, %207 : vector<16x16xf32>
      %209 = vector.shape_cast %208 : vector<16x16xf32> to vector<1x16x16xf32>
      %cst_165 = arith.constant dense<0.000000e+00> : vector<1xf32>
      %210 = vector.multi_reduction <add>, %209, %cst_165 [1, 2] : vector<1x16x16xf32> to vector<1xf32>
      %211 = vector.shape_cast %210 : vector<1xf32> to vector<1x1x1xf32>
      %212 = vector.extract %211[0, 0, 0] : f32 from vector<1x1x1xf32>
      %213 = vector.broadcast %212 : f32 to vector<1x1xf32>
      %cst_166 = arith.constant 3.906250e-03 : f32
      %214 = vector.broadcast %cst_166 : f32 to vector<1x1xf32>
      %215 = arith.mulf %213, %214 : vector<1x1xf32>
      %216 = math.sqrt %215 : vector<1x1xf32>
      %cst_167 = arith.constant 0.000000e+00 : f32
      %217 = vector.broadcast %cst_167 : f32 to vector<1x8xf32>
      %cst_168 = arith.constant 0.000000e+00 : f32
      %218 = vector.broadcast %cst_168 : f32 to vector<8x1xf32>
      %c7_169 = arith.constant 7 : index
      %c128_170 = arith.constant 128 : index
      %219 = vector.load %arg20[%c7_169, %c128_170] : memref<80x320xf32, #tpu.memory_space<vmem>>, vector<1x8xf32>
      tpu.vector_store %arg20[%c7_169, %c128_170], %217 {strides = array<i32>} : memref<80x320xf32, #tpu.memory_space<vmem>>, vector<1x8xf32>,
      %c16 = arith.constant 16 : index
      %c128_171 = arith.constant 128 : index
      %220 = vector.load %arg20[%c16, %c128_171] : memref<80x320xf32, #tpu.memory_space<vmem>>, vector<1x8xf32>
      tpu.vector_store %arg20[%c16, %c128_171], %217 {strides = array<i32>} : memref<80x320xf32, #tpu.memory_space<vmem>>, vector<1x8xf32>,
      %c8_172 = arith.constant 8 : index
      %c127_173 = arith.constant 127 : index
      %221 = vector.load %arg20[%c8_172, %c127_173] : memref<80x320xf32, #tpu.memory_space<vmem>>, vector<8x1xf32>
      tpu.vector_store %arg20[%c8_172, %c127_173], %218 {strides = array<i32>} : memref<80x320xf32, #tpu.memory_space<vmem>>, vector<8x1xf32>,
      %c8_174 = arith.constant 8 : index
      %c136 = arith.constant 136 : index
      %222 = vector.load %arg20[%c8_174, %c136] : memref<80x320xf32, #tpu.memory_space<vmem>>, vector<8x1xf32>
      tpu.vector_store %arg20[%c8_174, %c136], %218 {strides = array<i32>} : memref<80x320xf32, #tpu.memory_space<vmem>>, vector<8x1xf32>,
      %cst_175 = arith.constant dense<0.000000e+00> : vector<4x8xf32>
      %223 = tpu.matmul %12, %170, %cst_175 {dimension_numbers = #tpu.dot_dimension_numbers<[1], [0], [0], [1], [0, 0, 1, 1], [], []>} : vector<4x8xf32>, vector<8x8xf32>, vector<4x8xf32> -> vector<4x8xf32>
      %cst_176 = arith.constant dense<0.000000e+00> : vector<4x4xf32>
      %224 = tpu.matmul %223, %13, %cst_176 {dimension_numbers = #tpu.dot_dimension_numbers<[1], [0], [0], [1], [0, 0, 1, 1], [], []>} : vector<4x8xf32>, vector<8x4xf32>, vector<4x4xf32> -> vector<4x4xf32>
      %cst_177 = arith.constant dense<0.000000e+00> : vector<8x4xf32>
      %225 = tpu.matmul %14, %224, %cst_177 {dimension_numbers = #tpu.dot_dimension_numbers<[1], [0], [0], [1], [0, 0, 1, 1], [], []>} : vector<8x4xf32>, vector<4x4xf32>, vector<8x4xf32> -> vector<8x4xf32>
      %cst_178 = arith.constant dense<0.000000e+00> : vector<8x8xf32>
      %226 = tpu.matmul %225, %15, %cst_178 {dimension_numbers = #tpu.dot_dimension_numbers<[1], [0], [0], [1], [0, 0, 1, 1], [], []>} : vector<8x4xf32>, vector<4x8xf32>, vector<8x8xf32> -> vector<8x8xf32>
      %227 = arith.subf %170, %226 : vector<8x8xf32>
      %228 = math.absf %227 : vector<8x8xf32>
      %c8_179 = arith.constant 8 : index
      %c128_180 = arith.constant 128 : index
      %229 = vector.load %arg20[%c8_179, %c128_180] : memref<80x320xf32, #tpu.memory_space<vmem>>, vector<8x8xf32>
      tpu.vector_store %arg20[%c8_179, %c128_180], %228 {strides = array<i32>} : memref<80x320xf32, #tpu.memory_space<vmem>>, vector<8x8xf32>,
      %cst_181 = arith.constant 0.000000e+00 : f32
      %230 = vector.broadcast %cst_181 : f32 to vector<8x8xf32>
      %c8_182 = arith.constant 8 : index
      %c127_183 = arith.constant 127 : index
      %231 = vector.load %arg20[%c8_182, %c127_183] : memref<80x320xf32, #tpu.memory_space<vmem>>, vector<8x8xf32>
      %cst_184 = arith.constant 2.552000e-01 : f32
      %232 = vector.broadcast %cst_184 : f32 to vector<8x8xf32>
      %233 = arith.mulf %232, %231 : vector<8x8xf32>
      %234 = arith.addf %230, %233 : vector<8x8xf32>
      %c8_185 = arith.constant 8 : index
      %c129_186 = arith.constant 129 : index
      %235 = vector.load %arg20[%c8_185, %c129_186] : memref<80x320xf32, #tpu.memory_space<vmem>>, vector<8x8xf32>
      %cst_187 = arith.constant 2.598000e-01 : f32
      %236 = vector.broadcast %cst_187 : f32 to vector<8x8xf32>
      %237 = arith.mulf %236, %235 : vector<8x8xf32>
      %238 = arith.addf %234, %237 : vector<8x8xf32>
      %cst_188 = arith.constant 2.200000e-02 : f32
      %239 = vector.broadcast %cst_188 : f32 to vector<8x8xf32>
      %240 = arith.addf %239, %238 : vector<8x8xf32>
      %241 = arith.divf %227, %240 : vector<8x8xf32>
      %cst_189 = arith.constant dense<0.000000e+00> : vector<4x8xf32>
      %242 = tpu.matmul %12, %189, %cst_189 {dimension_numbers = #tpu.dot_dimension_numbers<[1], [0], [0], [1], [0, 0, 1, 1], [], []>} : vector<4x8xf32>, vector<8x8xf32>, vector<4x8xf32> -> vector<4x8xf32>
      %cst_190 = arith.constant dense<0.000000e+00> : vector<4x4xf32>
      %243 = tpu.matmul %242, %13, %cst_190 {dimension_numbers = #tpu.dot_dimension_numbers<[1], [0], [0], [1], [0, 0, 1, 1], [], []>} : vector<4x8xf32>, vector<8x4xf32>, vector<4x4xf32> -> vector<4x4xf32>
      %cst_191 = arith.constant dense<0.000000e+00> : vector<8x4xf32>
      %244 = tpu.matmul %14, %243, %cst_191 {dimension_numbers = #tpu.dot_dimension_numbers<[1], [0], [0], [1], [0, 0, 1, 1], [], []>} : vector<8x4xf32>, vector<4x4xf32>, vector<8x4xf32> -> vector<8x4xf32>
      %cst_192 = arith.constant dense<0.000000e+00> : vector<8x8xf32>
      %245 = tpu.matmul %244, %15, %cst_192 {dimension_numbers = #tpu.dot_dimension_numbers<[1], [0], [0], [1], [0, 0, 1, 1], [], []>} : vector<8x4xf32>, vector<4x8xf32>, vector<8x8xf32> -> vector<8x8xf32>
      %246 = arith.subf %189, %245 : vector<8x8xf32>
      %247 = math.absf %246 : vector<8x8xf32>
      %c8_193 = arith.constant 8 : index
      %c128_194 = arith.constant 128 : index
      %248 = vector.load %arg20[%c8_193, %c128_194] : memref<80x320xf32, #tpu.memory_space<vmem>>, vector<8x8xf32>
      tpu.vector_store %arg20[%c8_193, %c128_194], %247 {strides = array<i32>} : memref<80x320xf32, #tpu.memory_space<vmem>>, vector<8x8xf32>,
      %cst_195 = arith.constant 0.000000e+00 : f32
      %249 = vector.broadcast %cst_195 : f32 to vector<8x8xf32>
      %c8_196 = arith.constant 8 : index
      %c127_197 = arith.constant 127 : index
      %250 = vector.load %arg20[%c8_196, %c127_197] : memref<80x320xf32, #tpu.memory_space<vmem>>, vector<8x8xf32>
      %cst_198 = arith.constant 2.552000e-01 : f32
      %251 = vector.broadcast %cst_198 : f32 to vector<8x8xf32>
      %252 = arith.mulf %251, %250 : vector<8x8xf32>
      %253 = arith.addf %249, %252 : vector<8x8xf32>
      %c8_199 = arith.constant 8 : index
      %c129_200 = arith.constant 129 : index
      %254 = vector.load %arg20[%c8_199, %c129_200] : memref<80x320xf32, #tpu.memory_space<vmem>>, vector<8x8xf32>
      %cst_201 = arith.constant 2.598000e-01 : f32
      %255 = vector.broadcast %cst_201 : f32 to vector<8x8xf32>
      %256 = arith.mulf %255, %254 : vector<8x8xf32>
      %257 = arith.addf %253, %256 : vector<8x8xf32>
      %cst_202 = arith.constant 2.200000e-02 : f32
      %258 = vector.broadcast %cst_202 : f32 to vector<8x8xf32>
      %259 = arith.addf %258, %257 : vector<8x8xf32>
      %260 = arith.divf %246, %259 : vector<8x8xf32>
      %261 = arith.subf %241, %260 : vector<8x8xf32>
      %262 = arith.mulf %261, %261 : vector<8x8xf32>
      %263 = vector.shape_cast %262 : vector<8x8xf32> to vector<1x8x8xf32>
      %cst_203 = arith.constant dense<0.000000e+00> : vector<1xf32>
      %264 = vector.multi_reduction <add>, %263, %cst_203 [1, 2] : vector<1x8x8xf32> to vector<1xf32>
      %265 = vector.shape_cast %264 : vector<1xf32> to vector<1x1x1xf32>
      %266 = vector.extract %265[0, 0, 0] : f32 from vector<1x1x1xf32>
      %267 = vector.broadcast %266 : f32 to vector<1x1xf32>
      %cst_204 = arith.constant 1.562500e-02 : f32
      %268 = vector.broadcast %cst_204 : f32 to vector<1x1xf32>
      %269 = arith.mulf %267, %268 : vector<1x1xf32>
      %270 = math.sqrt %269 : vector<1x1xf32>
      %cst_205 = arith.constant 0.000000e+00 : f32
      %271 = vector.broadcast %cst_205 : f32 to vector<1x4xf32>
      %cst_206 = arith.constant 0.000000e+00 : f32
      %272 = vector.broadcast %cst_206 : f32 to vector<4x1xf32>
      %c7_207 = arith.constant 7 : index
      %c128_208 = arith.constant 128 : index
      %273 = vector.load %arg20[%c7_207, %c128_208] : memref<80x320xf32, #tpu.memory_space<vmem>>, vector<1x4xf32>
      tpu.vector_store %arg20[%c7_207, %c128_208], %271 {strides = array<i32>} : memref<80x320xf32, #tpu.memory_space<vmem>>, vector<1x4xf32>,
      %c12 = arith.constant 12 : index
      %c128_209 = arith.constant 128 : index
      %274 = vector.load %arg20[%c12, %c128_209] : memref<80x320xf32, #tpu.memory_space<vmem>>, vector<1x4xf32>
      tpu.vector_store %arg20[%c12, %c128_209], %271 {strides = array<i32>} : memref<80x320xf32, #tpu.memory_space<vmem>>, vector<1x4xf32>,
      %c8_210 = arith.constant 8 : index
      %c127_211 = arith.constant 127 : index
      %275 = vector.load %arg20[%c8_210, %c127_211] : memref<80x320xf32, #tpu.memory_space<vmem>>, vector<4x1xf32>
      tpu.vector_store %arg20[%c8_210, %c127_211], %272 {strides = array<i32>} : memref<80x320xf32, #tpu.memory_space<vmem>>, vector<4x1xf32>,
      %c8_212 = arith.constant 8 : index
      %c132 = arith.constant 132 : index
      %276 = vector.load %arg20[%c8_212, %c132] : memref<80x320xf32, #tpu.memory_space<vmem>>, vector<4x1xf32>
      tpu.vector_store %arg20[%c8_212, %c132], %272 {strides = array<i32>} : memref<80x320xf32, #tpu.memory_space<vmem>>, vector<4x1xf32>,
      %277 = math.absf %224 : vector<4x4xf32>
      %c8_213 = arith.constant 8 : index
      %c128_214 = arith.constant 128 : index
      %278 = vector.load %arg20[%c8_213, %c128_214] : memref<80x320xf32, #tpu.memory_space<vmem>>, vector<4x4xf32>
      tpu.vector_store %arg20[%c8_213, %c128_214], %277 {strides = array<i32>} : memref<80x320xf32, #tpu.memory_space<vmem>>, vector<4x4xf32>,
      %cst_215 = arith.constant 0.000000e+00 : f32
      %279 = vector.broadcast %cst_215 : f32 to vector<4x4xf32>
      %c8_216 = arith.constant 8 : index
      %c127_217 = arith.constant 127 : index
      %280 = vector.load %arg20[%c8_216, %c127_217] : memref<80x320xf32, #tpu.memory_space<vmem>>, vector<4x4xf32>
      %cst_218 = arith.constant 7.170000e-02 : f32
      %281 = vector.broadcast %cst_218 : f32 to vector<4x4xf32>
      %282 = arith.mulf %281, %280 : vector<4x4xf32>
      %283 = arith.addf %279, %282 : vector<4x4xf32>
      %c8_219 = arith.constant 8 : index
      %c129_220 = arith.constant 129 : index
      %284 = vector.load %arg20[%c8_219, %c129_220] : memref<80x320xf32, #tpu.memory_space<vmem>>, vector<4x4xf32>
      %cst_221 = arith.constant 2.215000e-01 : f32
      %285 = vector.broadcast %cst_221 : f32 to vector<4x4xf32>
      %286 = arith.mulf %285, %284 : vector<4x4xf32>
      %287 = arith.addf %283, %286 : vector<4x4xf32>
      %cst_222 = arith.constant 2.782000e-01 : f32
      %288 = vector.broadcast %cst_222 : f32 to vector<4x4xf32>
      %289 = arith.addf %288, %287 : vector<4x4xf32>
      %290 = arith.divf %224, %289 : vector<4x4xf32>
      %291 = math.absf %243 : vector<4x4xf32>
      %c8_223 = arith.constant 8 : index
      %c128_224 = arith.constant 128 : index
      %292 = vector.load %arg20[%c8_223, %c128_224] : memref<80x320xf32, #tpu.memory_space<vmem>>, vector<4x4xf32>
      tpu.vector_store %arg20[%c8_223, %c128_224], %291 {strides = array<i32>} : memref<80x320xf32, #tpu.memory_space<vmem>>, vector<4x4xf32>,
      %cst_225 = arith.constant 0.000000e+00 : f32
      %293 = vector.broadcast %cst_225 : f32 to vector<4x4xf32>
      %c8_226 = arith.constant 8 : index
      %c127_227 = arith.constant 127 : index
      %294 = vector.load %arg20[%c8_226, %c127_227] : memref<80x320xf32, #tpu.memory_space<vmem>>, vector<4x4xf32>
      %cst_228 = arith.constant 7.170000e-02 : f32
      %295 = vector.broadcast %cst_228 : f32 to vector<4x4xf32>
      %296 = arith.mulf %295, %294 : vector<4x4xf32>
      %297 = arith.addf %293, %296 : vector<4x4xf32>
      %c8_229 = arith.constant 8 : index
      %c129_230 = arith.constant 129 : index
      %298 = vector.load %arg20[%c8_229, %c129_230] : memref<80x320xf32, #tpu.memory_space<vmem>>, vector<4x4xf32>
      %cst_231 = arith.constant 2.215000e-01 : f32
      %299 = vector.broadcast %cst_231 : f32 to vector<4x4xf32>
      %300 = arith.mulf %299, %298 : vector<4x4xf32>
      %301 = arith.addf %297, %300 : vector<4x4xf32>
      %cst_232 = arith.constant 2.782000e-01 : f32
      %302 = vector.broadcast %cst_232 : f32 to vector<4x4xf32>
      %303 = arith.addf %302, %301 : vector<4x4xf32>
      %304 = arith.divf %243, %303 : vector<4x4xf32>
      %305 = arith.subf %290, %304 : vector<4x4xf32>
      %306 = arith.mulf %305, %305 : vector<4x4xf32>
      %307 = vector.shape_cast %306 : vector<4x4xf32> to vector<1x4x4xf32>
      %cst_233 = arith.constant dense<0.000000e+00> : vector<1xf32>
      %308 = vector.multi_reduction <add>, %307, %cst_233 [1, 2] : vector<1x4x4xf32> to vector<1xf32>
      %309 = vector.shape_cast %308 : vector<1xf32> to vector<1x1x1xf32>
      %310 = vector.extract %309[0, 0, 0] : f32 from vector<1x1x1xf32>
      %311 = vector.broadcast %310 : f32 to vector<1x1xf32>
      %cst_234 = arith.constant 6.250000e-02 : f32
      %312 = vector.broadcast %cst_234 : f32 to vector<1x1xf32>
      %313 = arith.mulf %311, %312 : vector<1x1xf32>
      %314 = math.sqrt %313 : vector<1x1xf32>
      %315 = tpu.concatenate %92, %162, %216, %270, %314 in 1 : vector<1x1xf32>, vector<1x1xf32>, vector<1x1xf32>, vector<1x1xf32>, vector<1x1xf32> -> vector<1x5xf32>
      %316 = vector.shape_cast %315 : vector<1x5xf32> to vector<1x1x5xf32>
      %317 = arith.index_cast %arg21 : i32 to index
      %c0_235 = arith.constant 0 : index
      %c0_236 = arith.constant 0 : index
      %318 = vector.load %arg19[%317, %c0_235, %c0_236] : memref<2x1x5xf32, #tpu.memory_space<vmem>>, vector<1x1x5xf32>
      tpu.vector_store %arg19[%317, %c0_235, %c0_236], %316 {strides = array<i32>} : memref<2x1x5xf32, #tpu.memory_space<vmem>>, vector<1x1x5xf32>,
    }
    %c2_i32_31 = arith.constant 2 : i32
    return
  }
  func.func @transform_0(%arg0: i32) -> (i32, i32) {
    %c0_i32 = arith.constant 0 : i32
    %c0_i32_0 = arith.constant 0 : i32
    %c0_i32_1 = arith.constant 0 : i32
    return %c0_i32, %c0_i32_0 : i32, i32
  }
  func.func @transform_1(%arg0: i32) -> (i32, i32) {
    %c0_i32 = arith.constant 0 : i32
    %c0_i32_0 = arith.constant 0 : i32
    %c0_i32_1 = arith.constant 0 : i32
    return %c0_i32, %c0_i32_0 : i32, i32
  }
  func.func @transform_2(%arg0: i32) -> (i32, i32) {
    %c0_i32 = arith.constant 0 : i32
    %c0_i32_0 = arith.constant 0 : i32
    %c0_i32_1 = arith.constant 0 : i32
    return %c0_i32, %c0_i32_0 : i32, i32
  }
  func.func @transform_3(%arg0: i32) -> (i32, i32) {
    %c0_i32 = arith.constant 0 : i32
    %c0_i32_0 = arith.constant 0 : i32
    %c0_i32_1 = arith.constant 0 : i32
    return %c0_i32, %c0_i32_0 : i32, i32
  }
  func.func @transform_4(%arg0: i32) -> (i32, i32) {
    %c0_i32 = arith.constant 0 : i32
    %c0_i32_0 = arith.constant 0 : i32
    %c0_i32_1 = arith.constant 0 : i32
    return %c0_i32, %c0_i32_0 : i32, i32
  }
  func.func @transform_5(%arg0: i32) -> (i32, i32) {
    %c0_i32 = arith.constant 0 : i32
    %c0_i32_0 = arith.constant 0 : i32
    %c0_i32_1 = arith.constant 0 : i32
    return %c0_i32, %c0_i32_0 : i32, i32
  }
  func.func @transform_6(%arg0: i32) -> (i32, i32) {
    %c0_i32 = arith.constant 0 : i32
    %c0_i32_0 = arith.constant 0 : i32
    %c0_i32_1 = arith.constant 0 : i32
    return %c0_i32, %c0_i32_0 : i32, i32
  }
  func.func @transform_7(%arg0: i32) -> (i32, i32) {
    %c0_i32 = arith.constant 0 : i32
    %c0_i32_0 = arith.constant 0 : i32
    %c0_i32_1 = arith.constant 0 : i32
    return %c0_i32, %c0_i32_0 : i32, i32
  }
  func.func @transform_8(%arg0: i32) -> (i32, i32) {
    %c0_i32 = arith.constant 0 : i32
    %c0_i32_0 = arith.constant 0 : i32
    %c0_i32_1 = arith.constant 0 : i32
    return %c0_i32, %c0_i32_0 : i32, i32
  }
  func.func @transform_9(%arg0: i32) -> (i32, i32) {
    %c0_i32 = arith.constant 0 : i32
    %c0_i32_0 = arith.constant 0 : i32
    %c0_i32_1 = arith.constant 0 : i32
    return %c0_i32, %c0_i32_0 : i32, i32
  }
  func.func @transform_10(%arg0: i32) -> (i32, i32) {
    %c0_i32 = arith.constant 0 : i32
    %c0_i32_0 = arith.constant 0 : i32
    %c0_i32_1 = arith.constant 0 : i32
    return %c0_i32, %c0_i32_0 : i32, i32
  }
  func.func @transform_11(%arg0: i32) -> (i32, i32) {
    %c0_i32 = arith.constant 0 : i32
    %c0_i32_0 = arith.constant 0 : i32
    %c0_i32_1 = arith.constant 0 : i32
    return %c0_i32, %c0_i32_0 : i32, i32
  }
  func.func @transform_12(%arg0: i32) -> (i32, i32) {
    %c0_i32 = arith.constant 0 : i32
    %c0_i32_0 = arith.constant 0 : i32
    %c0_i32_1 = arith.constant 0 : i32
    return %c0_i32, %c0_i32_0 : i32, i32
  }
  func.func @transform_13(%arg0: i32) -> (i32, i32) {
    %c0_i32 = arith.constant 0 : i32
    %c0_i32_0 = arith.constant 0 : i32
    %c0_i32_1 = arith.constant 0 : i32
    return %c0_i32, %c0_i32_0 : i32, i32
  }
  func.func @transform_14(%arg0: i32) -> (i32, i32) {
    %c0_i32 = arith.constant 0 : i32
    %c0_i32_0 = arith.constant 0 : i32
    %c0_i32_1 = arith.constant 0 : i32
    return %c0_i32, %c0_i32_0 : i32, i32
  }
  func.func @transform_15(%arg0: i32) -> (i32, i32) {
    %c0_i32 = arith.constant 0 : i32
    %c0_i32_0 = arith.constant 0 : i32
    %c0_i32_1 = arith.constant 0 : i32
    return %c0_i32, %c0_i32_0 : i32, i32
  }
  func.func @transform_16(%arg0: i32) -> (i32, i32, i32) {
    %c0_i32 = arith.constant 0 : i32
    %c0_i32_0 = arith.constant 0 : i32
    %c0_i32_1 = arith.constant 0 : i32
    return %arg0, %c0_i32, %c0_i32_0 : i32, i32, i32
  }
  func.func @transform_17(%arg0: i32) -> (i32, i32, i32) {
    %c0_i32 = arith.constant 0 : i32
    %c0_i32_0 = arith.constant 0 : i32
    %c0_i32_1 = arith.constant 0 : i32
    return %arg0, %c0_i32, %c0_i32_0 : i32, i32, i32
  }
  func.func @transform_18(%arg0: i32) -> (i32, i32, i32) {
    %c0_i32 = arith.constant 0 : i32
    %c0_i32_0 = arith.constant 0 : i32
    %c0_i32_1 = arith.constant 0 : i32
    return %arg0, %c0_i32, %c0_i32_0 : i32, i32, i32
  }
}

</mosaic_0001>

<bundles_post_ra>
// kernel: nlpd_forward.2
= control target key start
LH: loop header
LB: loop body
LE: loop exit
PB: predicated region body
PF: predicated region fallthrough
CT: control target
= control target key end

     0   :  { %s3818_s27 = smov 0   ;;  %s5494_s0 = inlined_call_operand.vmem [shape: bf16[64,128], index: 0, kind: input, shape index: {}]   ;;  %s5495_s1 = inlined_call_operand.vmem [shape: bf16[128,64], index: 1, kind: input, shape index: {}]   ;;  %s5496_s2 = inlined_call_operand.vmem [shape: bf16[128,64], index: 2, kind: input, shape index: {}]   ;;  %s5497_s3 = inlined_call_operand.vmem [shape: bf16[64,128], index: 3, kind: input, shape index: {}]   ;;  %s5498_s4 = inlined_call_operand.vmem [shape: f32[2,128,128], index: 4, kind: input, shape index: {}]   ;;  %s5499_s5 = inlined_call_operand.vmem [shape: f32[2,128,128], index: 5, kind: input, shape index: {}]   ;;  %s5500_s6 = inlined_call_operand.vmem [shape: f32[2,64,64], index: 6, kind: output, shape index: {0}]   ;;  %s5501_s7 = inlined_call_operand.vmem [shape: f32[2,64,64], index: 7, kind: output, shape index: {1}]   ;;  %s5502_s8 = inlined_call_operand.vmem [shape: f32[2,1,1], index: 8, kind: output, shape index: {2}]  }
   0x1 LB: > { %s3261_s28 = sadd.s32 4294967295, %s3768_s27   ;;  %p3265_p0 = scmp.ge.s32.totalorder %s3768_s27, 1  ;;  %s3768_s27 = sphi %s3818_s27, %s19_s27  }
   0x2   : > { %p277_p1 = scmp.lt.s32.totalorder %s3768_s27, 3 }
   0x4   : > { %p278_p2 = pnand %p3265_p0, %p277_p1 }
   0x6   : > { %281 = sbr.rel (%p278_p2) target bundleno = 1774 (0x6ee), region = 44 }
   0xb   : > { %p324_p3 = scmp.lt.s32.totalorder %s3261_s28, 1  ;;  %v3829_v0 = vld [vmem:[%s5494_s0] sm:$0xff]   ;;  %v3838_v1 = vld [vmem:[%s5495_s1 + $0x38] sm:$0xff]   ;;  %v3850_v2 = vld [vmem:[%s5495_s1 + $0x30] sm:$0xff]   ;;  %vm662_vm0 = vcmask 523264   ;;  %vm350_vm1 = vcmask 1048568  }
   0xc   : > { %3448 = vmatprep.mubr.bf16.mxu0 %v3829_v0  ;;  %3456 = vmatprep.subr.bf16.mxu1 %v3838_v1  ;;  %v3867_v14 = vld [vmem:[%s5495_s1 + $0x28] sm:$0xff]   ;;  %v3872_v15 = vld [vmem:[%s5495_s1 + $0x20] sm:$0xff]   ;;  %v3881_v19 = vld [vmem:[%s5495_s1 + $0x18] sm:$0xff]   ;;  %vm367_vm2 = vcmask 7168   ;;  %vm1273_vm3 = vcmask 1046528   ;;  %s3771_s11 = smov 1  }
   0xd   : > { %s5735_s28 = smov (!%p324_p3, %s3261_s28), 1  ;;  %3457 = vmatpush3.bf16.msra.mxu1 %v3838_v1  ;;  %v3889_v22 = vld [vmem:[%s5495_s1 + $0x10] sm:$0xff]   ;;  %v3915_v31 = vld [vmem:[%s5494_s0 + $0x8] sm:$0xff]   ;;  %v3927_v33 = vld [vmem:[%s5494_s0 + $0x18] sm:$0xff]   ;;  %s3772_s12 = smov 127   ;;  %vm1125_vm4 = vcmask 1045504  }
   0xe   : > { %s3332_s9 = sshll.u32 %s5735_s28, 7  ;;  %3458 = vmatprep.subr.bf16.mxu1 %v3850_v2  ;;  %v3920_v32 = vld [vmem:[%s5494_s0 + $0x10] sm:$0xff]   ;;  %v3933_v34 = vld [vmem:[%s5495_s1 + $0x8] sm:$0xff]   ;;  %v3940_v35 = vld [vmem:[%s5495_s1] sm:$0xff]   ;;  %s3334_s23 = sshll.u32 %s5735_s28, 6  ;;  %vm1665_vm5 = vcmask 1039360  }
   0xf   : > { %s3845_s14 = scalar_lea.vmem %s5498_s4, %s3332_s9  ;;  %v3947_v48 = vld [vmem:[%s5496_s2] sm:$0xff]   ;;  %v3954_v49 = vld [vmem:[%s5497_s3 + $0x18] sm:$0xff]   ;;  %v3959_v50 = vld [vmem:[%s5497_s3 + $0x10] sm:$0xff]   ;;  %s338_s26 = scalar_lea.vmem %s5500_s6, %s3334_s23  ;;  %vm1751_vm6 = vcmask 1040384   ;;  %vm3134_vm8 = vcmask 0  }
  0x10   : > { %v446_v3 = vld [vmem:[%s3845_s14 + $0x70] sm:$0xff]  ;;  %v447_v4 = vld [vmem:[%s3845_s14 + $0x78] sm:$0xff]  ;;  %v444_v5 = vld [vmem:[%s3845_s14 + $0x60] sm:$0xff]  ;;  %s3984_s10 = scalar_lea.vmem %s5499_s5, %s3332_s9  ;;  %s4465_s16 = scalar_lea.vmem %s5501_s7, %s3334_s23 }
  0x11   : > { %v455_v6 = vpack.c.bf16 %v447_v4, %v446_v3  ;;  %v445_v7 = vld [vmem:[%s3845_s14 + $0x68] sm:$0xff]  ;;  %v442_v9 = vld [vmem:[%s3845_s14 + $0x50] sm:$0xff]  ;;  %v443_v10 = vld [vmem:[%s3845_s14 + $0x58] sm:$0xff]  ;;  %3459 = vmatpush3.bf16.msra.mxu1 %v3850_v2  ;;  %s346_s13 = scalar_lea.vmem %s5502_s8, %s5735_s28 }
  0x12   : > { %v454_v8 = vpack.c.bf16 %v445_v7, %v444_v5  ;;  %v440_v11 = vld [vmem:[%s3845_s14 + $0x40] sm:$0xff]  ;;  %v453_v12 = vpack.c.bf16 %v443_v10, %v442_v9  ;;  %v441_v13 = vld [vmem:[%s3845_s14 + $0x48] sm:$0xff]  ;;  %v438_v16 = vld [vmem:[%s3845_s14 + $0x30] sm:$0xff]  ;;  %3460 = vmatprep.subr.bf16.mxu1 %v3867_v14 }
  0x13   : > { %3432 = vmatprep.subr.bf16.mxu0 %v455_v6  ;;  %v439_v17 = vld [vmem:[%s3845_s14 + $0x38] sm:$0xff]  ;;  %v452_v18 = vpack.c.bf16 %v441_v13, %v440_v11  ;;  %v436_v20 = vld [vmem:[%s3845_s14 + $0x20] sm:$0xff]  ;;  %v437_v21 = vld [vmem:[%s3845_s14 + $0x28] sm:$0xff] }
  0x14   : > { %3433 = vmatpush3.bf16.msra.mxu0 %v455_v6  ;;  %v451_v23 = vpack.c.bf16 %v439_v17, %v438_v16  ;;  %v3894_v24 = vld [vmem:[%s3845_s14 + $0x10] sm:$0xff]  ;;  %v450_v25 = vpack.c.bf16 %v437_v21, %v436_v20  ;;  %v3898_v26 = vld [vmem:[%s3845_s14 + $0x18] sm:$0xff]  ;;  %v3905_v28 = vld [vmem:[%s3845_s14] sm:$0xff] }
  0x15   : > { %3434 = vmatprep.subr.bf16.mxu0 %v454_v8  ;;  %3461 = vmatpush3.bf16.msra.mxu1 %v3867_v14  ;;  %v449_v27 = vpack.c.bf16 %v3898_v26, %v3894_v24  ;;  %v3908_v29 = vld [vmem:[%s3845_s14 + $0x8] sm:$0xff]  ;;  %v1847_v62 = vld [vmem:[%s3984_s10 + $0x70] sm:$0xff]  ;;  %v1848_v63 = vld [vmem:[%s3984_s10 + $0x78] sm:$0xff] }
  0x16   : > { %3462 = vmatprep.subr.bf16.mxu1 %v3872_v15  ;;  %v448_v30 = vpack.c.bf16 %v3908_v29, %v3905_v28  ;;  %v1856_v4 = vpack.c.bf16 %v1848_v63, %v1847_v62  ;;  %v1845_v5 = vld [vmem:[%s3984_s10 + $0x60] sm:$0xff]  ;;  %v1846_v6 = vld [vmem:[%s3984_s10 + $0x68] sm:$0xff]  ;;  %v1843_v10 = vld [vmem:[%s3984_s10 + $0x50] sm:$0xff] }
  0x17   : > { %v3650_v7 = vld [vmem:[%s5496_s2 + $0x8] sm:$0xff]   ;;  %v1855_v9 = vpack.c.bf16 %v1846_v6, %v1845_v5  ;;  %v1844_v11 = vld [vmem:[%s3984_s10 + $0x58] sm:$0xff]  ;;  %v1841_v13 = vld [vmem:[%s3984_s10 + $0x40] sm:$0xff] }
  0x18   : > { %3435 = vmatpush3.bf16.msra.mxu0 %v454_v8  ;;  %v3651_v8 = vld [vmem:[%s5496_s2 + $0x10] sm:$0xff]   ;;  %v1842_v16 = vld [vmem:[%s3984_s10 + $0x48] sm:$0xff]  ;;  %v3652_v17 = vld [vmem:[%s5496_s2 + $0x18] sm:$0xff]  }
  0x19   : > { %3436 = vmatprep.subr.bf16.mxu0 %v453_v12  ;;  %3463 = vmatpush3.bf16.msra.mxu1 %v3872_v15  ;;  %v1853_v20 = vpack.c.bf16 %v1842_v16, %v1841_v13  ;;  %v1839_v21 = vld [vmem:[%s3984_s10 + $0x30] sm:$0xff] }
  0x1a   : > { %3464 = vmatprep.subr.bf16.mxu1 %v3881_v19 }
  0x1c   : > { %3437 = vmatpush3.bf16.msra.mxu0 %v453_v12  ;;  %v1854_v12 = vpack.c.bf16 %v1844_v11, %v1843_v10 }
  0x1d   : > { %3438 = vmatprep.subr.bf16.mxu0 %v452_v18  ;;  %3465 = vmatpush3.bf16.msra.mxu1 %v3881_v19 }
  0x1e   : > { %3466 = vmatprep.subr.bf16.mxu1 %v3889_v22 }
  0x20   : > { %3439 = vmatpush3.bf16.msra.mxu0 %v452_v18  ;;  %v3653_v18 = vld [vmem:[%s5496_s2 + $0x20] sm:$0xff]  }
  0x21   : > { %3440 = vmatprep.subr.bf16.mxu0 %v451_v23  ;;  %3467 = vmatpush3.bf16.msra.mxu1 %v3889_v22 }
  0x22   : > { %3468 = vmatprep.subr.bf16.mxu1 %v3933_v34 }
  0x24   : > { %3441 = vmatpush3.bf16.msra.mxu0 %v451_v23  ;;  %v1840_v23 = vld [vmem:[%s3984_s10 + $0x38] sm:$0xff] }
  0x25   : > { %3442 = vmatprep.subr.bf16.mxu0 %v450_v25  ;;  %3469 = vmatpush3.bf16.msra.mxu1 %v3933_v34 }
  0x26   : > { %3470 = vmatprep.subr.bf16.mxu1 %v3940_v35 }
  0x28   : > { %3443 = vmatpush3.bf16.msra.mxu0 %v450_v25  ;;  %v1852_v25 = vpack.c.bf16 %v1840_v23, %v1839_v21 }
  0x29   : > { %3444 = vmatprep.subr.bf16.mxu0 %v449_v27  ;;  %3471 = vmatpush3.bf16.msra.mxu1 %v3940_v35 }
  0x2a   : > { %3504 = vmatprep.subr.bf16.mxu1 %v3954_v49 }
  0x2c   : > { %3445 = vmatpush3.bf16.msra.mxu0 %v449_v27  ;;  %v1837_v27 = vld [vmem:[%s3984_s10 + $0x20] sm:$0xff] }
  0x2d   : > { %3446 = vmatprep.subr.bf16.mxu0 %v448_v30 }
  0x30   : > { %3447 = vmatpush3.bf16.msra.mxu0 %v448_v30  ;;  %v1838_v30 = vld [vmem:[%s3984_s10 + $0x28] sm:$0xff] }
  0x33   : > { %3449 = vmatmul.mubr.bf16.vlgmr.msra.gmra.mxu0 %v3915_v31 }
  0x34   : > { %3452 = vmatprep.mubr.bf16.mxu0 %v3920_v32 }
  0x3b   : > { %3453 = vmatmul.mubr.bf16.gmra.mxu0 %v3927_v33 }
  0x3c   : > { %3488 = vmatprep.mubr.msk.bf16.mxu0 %vm662_vm0, %v3947_v48 }
  0xf3   : > { %v3450_v36 = vpop.f32.mrf.mxu0 }
  0xf5   : > { %v514_v37 = vpop.f32.mrf.mxu0 }
  0xf7   : > { %v3451_v38 = vpop.f32.mrf.mxu0 }
  0xf8   : > { %v546_v41 = vpack.c.bf16 %v3451_v38, %v3450_v36  ;;  %v3654_v36 = vld [vmem:[%s5496_s2 + $0x28] sm:$0xff]   ;;  %v1851_v38 = vpack.c.bf16 %v1838_v30, %v1837_v27 }
  0xf9   : > { %v517_v39 = vpop.f32.mrf.mxu0 }
  0xfa   : > { %v545_v40 = vpack.c.bf16 %v517_v39, %v514_v37  ;;  %v3655_v37 = vld [vmem:[%s5496_s2 + $0x30] sm:$0xff]  }
  0xfb   : > { %v3454_v42 = vpop.f32.mrf.mxu0  ;;  %v1835_v39 = vld [vmem:[%s3984_s10 + $0x10] sm:$0xff] }
  0xfc   : > { %3472 = vmatprep.mubr.bf16.mxu1 %v545_v40  ;;  %v1836_v40 = vld [vmem:[%s3984_s10 + $0x18] sm:$0xff] }
  0xfd   : > { %v530_v43 = vpop.f32.mrf.mxu0  ;;  %3473 = vmatmul.mubr.bf16.vlgmr.msra.gmra.mxu1 %v546_v41  ;;  %v1850_v41 = vpack.c.bf16 %v1836_v40, %v1835_v39 }
  0xfe   : > { %3505 = vmatpush3.bf16.msra.mxu1 %v3954_v49 }
  0xff   : > { %v3455_v44 = vpop.f32.mrf.mxu0  ;;  %3506 = vmatprep.subr.bf16.mxu1 %v3959_v50 }
 0x100   : > { %v548_v47 = vpack.c.bf16 %v3455_v44, %v3454_v42  ;;  %v1833_v42 = vld [vmem:[%s3984_s10] sm:$0xff]  ;;  %v3656_v44 = vld [vmem:[%s5496_s2 + $0x38] sm:$0xff]  }
 0x101   : > { %v533_v45 = vpop.f32.mrf.mxu0 }
 0x102   : > { %v547_v46 = vpack.c.bf16 %v533_v45, %v530_v43  ;;  %3507 = vmatpush3.bf16.msra.mxu1 %v3959_v50  ;;  %v1834_v43 = vld [vmem:[%s3984_s10 + $0x8] sm:$0xff] }
 0x103   : > { %v1849_v45 = vpack.c.bf16 %v1834_v43, %v1833_v42 }
 0x104   : > { %3476 = vmatprep.mubr.bf16.mxu1 %v547_v46  ;;  %v4039_v46 = vld [vmem:[%s5497_s3 + $0x8] sm:$0xff]  }
 0x105   : > { %3477 = vmatmul.mubr.bf16.gmra.mxu1 %v548_v47  ;;  %3508 = vmatprep.subr.bf16.mxu1 %v4039_v46 }
 0x106   : > { %3509 = vmatpush3.bf16.msra.mxu1 %v4039_v46 }
 0x1bd   : > { %v3474_v51 = vpop.f32.mrf.mxu1 }
 0x1be   : > { %665 = vst.msk [vmem:[%s338_s26 + $0x10] sm:$0xff] %vm662_vm0, %v3474_v51 }
 0x1bf   : > { %v631_v52 = vpop.f32.mrf.mxu1 }
 0x1c0   : > { %663 = vst.msk [vmem:[%s338_s26] sm:$0xff] %vm662_vm0, %v631_v52 }
 0x1c1   : > { %v3475_v53 = vpop.f32.mrf.mxu1 }
 0x1c2   : > { %666 = vst.msk [vmem:[%s338_s26 + $0x18] sm:$0xff] %vm662_vm0, %v3475_v53  ;;  %v672_v61 = vpack.c.bf16 %v3475_v53, %v3474_v51 }
 0x1c3   : > { %v634_v54 = vpop.f32.mrf.mxu1 }
 0x1c4   : > { %664 = vst.msk [vmem:[%s338_s26 + $0x8] sm:$0xff] %vm662_vm0, %v634_v54  ;;  %v671_v3 = vpack.c.bf16 %v634_v54, %v631_v52 }
 0x1c5   : > { %v3478_v55 = vpop.f32.mrf.mxu1 }
 0x1c6   : > { %669 = vst.msk [vmem:[%s338_s26 + $0x30] sm:$0xff] %vm662_vm0, %v3478_v55 }
 0x1c7   : > { %v647_v56 = vpop.f32.mrf.mxu1 }
 0x1c8   : > { %667 = vst.msk [vmem:[%s338_s26 + $0x20] sm:$0xff] %vm662_vm0, %v647_v56 }
 0x1c9   : > { %v3479_v57 = vpop.f32.mrf.mxu1 }
 0x1ca   : > { %670 = vst.msk [vmem:[%s338_s26 + $0x38] sm:$0xff] %vm662_vm0, %v3479_v57  ;;  %v674_v58 = vpack.c.bf16 %v3479_v57, %v3478_v55 }
 0x1cb   : > { %v650_v59 = vpop.f32.mrf.mxu1 }
 0x1cc   : > { %668 = vst.msk [vmem:[%s338_s26 + $0x28] sm:$0xff] %vm662_vm0, %v650_v59  ;;  %v673_v60 = vpack.c.bf16 %v650_v59, %v647_v56  ;;  %3480 = vmatprep.subr.bf16.mxu0 %v674_v58 }
 0x1cd   : > { %3481 = vmatpush3.bf16.msra.mxu0 %v674_v58 }
 0x1ce   : > { %3482 = vmatprep.subr.bf16.mxu0 %v673_v60 }
 0x1d1   : > { %3483 = vmatpush3.bf16.msra.mxu0 %v673_v60 }
 0x1d2   : > { %3484 = vmatprep.subr.bf16.mxu0 %v672_v61 }
 0x1d5   : > { %3485 = vmatpush3.bf16.msra.mxu0 %v672_v61 }
 0x1d6   : > { %3486 = vmatprep.subr.bf16.mxu0 %v671_v3 }
 0x1d9   : > { %3487 = vmatpush3.bf16.msra.mxu0 %v671_v3 }
 0x1da   : > { %3528 = vmatprep.subr.bf16.mxu0 %v1856_v4 }
 0x1dc   : > { %3489 = vmatmul.mubr.msk.bf16.vlgmr.msra.gmra.mxu0 %vm662_vm0, %v3650_v7 }
 0x1dd   : > { %3529 = vmatpush3.bf16.msra.mxu0 %v1856_v4  ;;  %3492 = vmatprep.mubr.msk.bf16.mxu0 %vm662_vm0, %v3651_v8 }
 0x1de   : > { %3530 = vmatprep.subr.bf16.mxu0 %v1855_v9 }
 0x1e1   : > { %3531 = vmatpush3.bf16.msra.mxu0 %v1855_v9 }
 0x1e2   : > { %3532 = vmatprep.subr.bf16.mxu0 %v1854_v12 }
 0x1e4   : > { %3493 = vmatmul.mubr.msk.bf16.gmra.mxu0 %vm662_vm0, %v3652_v17 }
 0x1e5   : > { %3533 = vmatpush3.bf16.msra.mxu0 %v1854_v12  ;;  %3496 = vmatprep.mubr.msk.bf16.mxu0 %vm662_vm0, %v3653_v18 }
 0x1e6   : > { %3534 = vmatprep.subr.bf16.mxu0 %v1853_v20 }
 0x1e9   : > { %3535 = vmatpush3.bf16.msra.mxu0 %v1853_v20 }
 0x1ea   : > { %3536 = vmatprep.subr.bf16.mxu0 %v1852_v25 }
 0x1ec   : > { %3497 = vmatmul.mubr.msk.bf16.gmra.mxu0 %vm662_vm0, %v3654_v36 }
 0x1ed   : > { %3537 = vmatpush3.bf16.msra.mxu0 %v1852_v25  ;;  %3500 = vmatprep.mubr.msk.bf16.mxu0 %vm662_vm0, %v3655_v37 }
 0x1ee   : > { %3538 = vmatprep.subr.bf16.mxu0 %v1851_v38 }
 0x1f1   : > { %3539 = vmatpush3.bf16.msra.mxu0 %v1851_v38 }
 0x1f2   : > { %3540 = vmatprep.subr.bf16.mxu0 %v1850_v41 }
 0x1f4   : > { %3501 = vmatmul.mubr.msk.bf16.gmra.mxu0 %vm662_vm0, %v3656_v44 }
 0x1f5   : > { %3541 = vmatpush3.bf16.msra.mxu0 %v1850_v41  ;;  %3544 = vmatprep.mubr.bf16.mxu0 %v3829_v0  ;;  %v4046_v0 = vld [vmem:[%s5497_s3] sm:$0xff]  }
 0x1f6   : > { %3542 = vmatprep.subr.bf16.mxu0 %v1849_v45  ;;  %3510 = vmatprep.subr.bf16.mxu1 %v4046_v0 }
 0x1f7   : > { %3511 = vmatpush3.bf16.msra.mxu1 %v4046_v0 }
 0x1f8   : > { %3552 = vmatprep.subr.bf16.mxu1 %v3838_v1 }
 0x1f9   : > { %3543 = vmatpush3.bf16.msra.mxu0 %v1849_v45 }
 0x1fc   : > { %3545 = vmatmul.mubr.bf16.vlgmr.msra.gmra.mxu0 %v3915_v31  ;;  %v3770_v31 = vmov 0.0  }
 0x1fd   : > { %3548 = vmatprep.mubr.bf16.mxu0 %v3920_v32  ;;  %351 = vst.msk [vmem:[#allocation2 + $0x18] sm:$0xff] %vm350_vm1, %v3770_v31  ;;  %348 = vst [vmem:[#allocation2 + $0xf] sm:$0x1] %v3770_v31 }
 0x1fe   : > { %349 = vst [vmem:[#allocation2 + $0x1a0] sm:$0x1] %v3770_v31  ;;  %352 = vst.msk [vmem:[#allocation2 + $0x30] sm:$0xff] %vm350_vm1, %v3770_v31 }
 0x1ff   : > { %353 = vst.msk [vmem:[#allocation2 + $0x48] sm:$0xff] %vm350_vm1, %v3770_v31  ;;  %354 = vst.msk [vmem:[#allocation2 + $0x60] sm:$0xff] %vm350_vm1, %v3770_v31 }
 0x200   : > { %355 = vst.msk [vmem:[#allocation2 + $0x78] sm:$0xff] %vm350_vm1, %v3770_v31  ;;  %356 = vst.msk [vmem:[#allocation2 + $0x90] sm:$0xff] %vm350_vm1, %v3770_v31 }
 0x201   : > { %357 = vst.msk [vmem:[#allocation2 + $0xa8] sm:$0xff] %vm350_vm1, %v3770_v31  ;;  %358 = vst.msk [vmem:[#allocation2 + $0xc0] sm:$0xff] %vm350_vm1, %v3770_v31 }
 0x202   : > { %359 = vst.msk [vmem:[#allocation2 + $0xd8] sm:$0xff] %vm350_vm1, %v3770_v31  ;;  %360 = vst.msk [vmem:[#allocation2 + $0xf0] sm:$0xff] %vm350_vm1, %v3770_v31 }
 0x203   : > { %361 = vst.msk [vmem:[#allocation2 + $0x108] sm:$0xff] %vm350_vm1, %v3770_v31  ;;  %362 = vst.msk [vmem:[#allocation2 + $0x120] sm:$0xff] %vm350_vm1, %v3770_v31 }
 0x204   : > { %3549 = vmatmul.mubr.bf16.gmra.mxu0 %v3927_v33  ;;  %363 = vst.msk [vmem:[#allocation2 + $0x138] sm:$0xff] %vm350_vm1, %v3770_v31  ;;  %364 = vst.msk [vmem:[#allocation2 + $0x150] sm:$0xff] %vm350_vm1, %v3770_v31  ;;  %v1193_v32 = vld [vmem:[#allocation2 + $0x18] sm:$0xff] }
 0x205   : > { %3584 = vmatprep.mubr.msk.bf16.mxu0 %vm662_vm0, %v3947_v48  ;;  %365 = vst.msk [vmem:[#allocation2 + $0x168] sm:$0xff] %vm350_vm1, %v3770_v31  ;;  %366 = vst.msk [vmem:[#allocation2 + $0x180] sm:$0xff] %vm350_vm1, %v3770_v31  ;;  %v1194_v33 = vld [vmem:[#allocation2 + $0x30] sm:$0xff]  ;;  %v1209_v48 = vmul.f32 0.146, %v1193_v32 }
 0x206   : > { %368 = vst.msk [vmem:[#allocation2 + $0x28] sm:$0xff] %vm367_vm2, %v3770_v31  ;;  %369 = vst.msk [vmem:[#allocation2 + $0x40] sm:$0xff] %vm367_vm2, %v3770_v31  ;;  %v1195_v47 = vld [vmem:[#allocation2 + $0x48] sm:$0xff]  ;;  %v1211_v51 = vmul.f32 0.146, %v1194_v33  ;;  %v1196_v53 = vld [vmem:[#allocation2 + $0x60] sm:$0xff] }
 0x207   : > { %370 = vst.msk [vmem:[#allocation2 + $0x58] sm:$0xff] %vm367_vm2, %v3770_v31  ;;  %371 = vst.msk [vmem:[#allocation2 + $0x70] sm:$0xff] %vm367_vm2, %v3770_v31  ;;  %v1213_v52 = vmul.f32 0.146, %v1195_v47  ;;  %v1274_v54 = vrot.slane %v1209_v48, 1  ;;  %v1197_v58 = vld [vmem:[#allocation2 + $0x78] sm:$0xff] }
 0x208   : > { %372 = vst.msk [vmem:[#allocation2 + $0x88] sm:$0xff] %vm367_vm2, %v3770_v31  ;;  %373 = vst.msk [vmem:[#allocation2 + $0xa0] sm:$0xff] %vm367_vm2, %v3770_v31  ;;  %v1276_v55 = vrot.slane %v1211_v51, 1  ;;  %v1215_v57 = vmul.f32 0.146, %v1196_v53  ;;  %v1198_v40 = vld [vmem:[#allocation2 + $0x90] sm:$0xff] }
 0x209   : > { %374 = vst.msk [vmem:[#allocation2 + $0xb8] sm:$0xff] %vm367_vm2, %v3770_v31  ;;  %375 = vst.msk [vmem:[#allocation2 + $0xd0] sm:$0xff] %vm367_vm2, %v3770_v31  ;;  %v1280_v56 = vrot.slane %v1213_v52, 1  ;;  %1336 = vrot.lane.b32.xlu0 %v1274_v54, %s3771_s11  ;;  %2574 = vrot.lane.b32.xlu1 %v1274_v54, %s3771_s11  ;;  %v1217_v61 = vmul.f32 0.146, %v1197_v58  ;;  %v1199_v32 = vld [vmem:[#allocation2 + $0xa8] sm:$0xff] }
 0x20a   : > { %376 = vst.msk [vmem:[#allocation2 + $0xe8] sm:$0xff] %vm367_vm2, %v3770_v31  ;;  %377 = vst.msk [vmem:[#allocation2 + $0x100] sm:$0xff] %vm367_vm2, %v3770_v31  ;;  %v1284_v60 = vrot.slane %v1215_v57, 1  ;;  %v1277_v62 = vsel %vm1273_vm3, %v1274_v54, %v1276_v55  ;;  %v1219_v42 = vmul.f32 0.146, %v1198_v40 }
 0x20b   : > { %378 = vst.msk [vmem:[#allocation2 + $0x118] sm:$0xff] %vm367_vm2, %v3770_v31  ;;  %379 = vst.msk [vmem:[#allocation2 + $0x130] sm:$0xff] %vm367_vm2, %v3770_v31  ;;  %v1281_v59 = vsel %vm1273_vm3, %v1276_v55, %v1280_v56  ;;  %v1288_v3 = vrot.slane %v1217_v61, 1  ;;  %v1221_v48 = vmul.f32 0.146, %v1199_v32  ;;  %v1200_v55 = vld [vmem:[#allocation2 + $0xc0] sm:$0xff] }
 0x20c   : > { %380 = vst.msk [vmem:[#allocation2 + $0x148] sm:$0xff] %vm367_vm2, %v3770_v31  ;;  %381 = vst.msk [vmem:[#allocation2 + $0x160] sm:$0xff] %vm367_vm2, %v3770_v31  ;;  %v1285_v63 = vsel %vm1273_vm3, %v1280_v56, %v1284_v60  ;;  %v1292_v45 = vrot.slane %v1219_v42, 1  ;;  %v1223_v58 = vmul.f32 0.146, %v1200_v55  ;;  %v1204_v32 = vld [vmem:[#allocation2 + $0x120] sm:$0xff] }
 0x20d   : > { %382 = vst.msk [vmem:[#allocation2 + $0x178] sm:$0xff] %vm367_vm2, %v3770_v31  ;;  %383 = vst.msk [vmem:[#allocation2 + $0x190] sm:$0xff] %vm367_vm2, %v3770_v31  ;;  %1344 = vrot.lane.b32.xlu0 %v1281_v59, %s3771_s11  ;;  %1340 = vrot.lane.b32.xlu1 %v1277_v62, %s3771_s11  ;;  %v1455_v4 = vld [vmem:[#allocation2 + $0x28] sm:$0xff]  ;;  %v1456_v5 = vld [vmem:[#allocation2 + $0x40] sm:$0xff]  ;;  %v1289_v9 = vsel %vm1273_vm3, %v1284_v60, %v1288_v3  ;;  %v1296_v53 = vrot.slane %v1221_v48, 1 }
 0x20e   : > { %v1458_v6 = vld [vmem:[#allocation2 + $0x70] sm:$0xff]  ;;  %v1472_v7 = vmul.f32 0.1493, %v1455_v4  ;;  %v1457_v8 = vld [vmem:[#allocation2 + $0x58] sm:$0xff]  ;;  %v1474_v10 = vmul.f32 0.1493, %v1456_v5  ;;  %v1293_v47 = vsel %vm1273_vm3, %v1288_v3, %v1292_v45 }
 0x20f   : > { %v1478_v11 = vmul.f32 0.1493, %v1458_v6  ;;  %v1476_v12 = vmul.f32 0.1493, %v1457_v8  ;;  %v1459_v18 = vld [vmem:[#allocation2 + $0x88] sm:$0xff]  ;;  %v1460_v36 = vld [vmem:[#allocation2 + $0xa0] sm:$0xff]  ;;  %v1297_v57 = vsel %vm1273_vm3, %v1292_v45, %v1296_v53 }
 0x210   : > { %v1536_v13 = vrot.slane %v1472_v7, 1  ;;  %v1539_v16 = vrot.slane %v1474_v10, 1  ;;  %v1480_v25 = vmul.f32 0.1493, %v1459_v18  ;;  %v1482_v38 = vmul.f32 0.1493, %v1460_v36 }
 0x211   : > { %1348 = vrot.lane.b32.xlu0 %v1285_v63, %s3771_s11  ;;  %2578 = vrot.lane.b32.xlu1 %v1277_v62, %s3771_s11  ;;  %v1547_v17 = vrot.slane %v1478_v11, 1  ;;  %v1543_v20 = vrot.slane %v1476_v12, 1  ;;  %v1461_v41 = vld [vmem:[#allocation2 + $0xb8] sm:$0xff]  ;;  %v1462_v33 = vld [vmem:[#allocation2 + $0xd0] sm:$0xff]  ;;  %v1463_v56 = vld [vmem:[#allocation2 + $0xe8] sm:$0xff]  ;;  %v1300_v61 = vrot.slane %v1223_v58, 1 }
 0x212   : > { %v1540_v21 = vsel %vm1273_vm3, %v1536_v13, %v1539_v16  ;;  %v1551_v30 = vrot.slane %v1480_v25, 1  ;;  %v1555_v39 = vrot.slane %v1482_v38, 1  ;;  %v1484_v44 = vmul.f32 0.1493, %v1461_v41  ;;  %v1464_v3 = vld [vmem:[#allocation2 + $0x100] sm:$0xff]  ;;  %v1202_v10 = vld [vmem:[#allocation2 + $0xf0] sm:$0xff] }
 0x213   : > { %v1548_v23 = vsel %vm1273_vm3, %v1543_v20, %v1547_v17  ;;  %v1544_v27 = vsel %vm1273_vm3, %v1539_v16, %v1543_v20  ;;  %v1486_v52 = vmul.f32 0.1493, %v1462_v33  ;;  %v1488_v60 = vmul.f32 0.1493, %v1463_v56  ;;  %v1465_v11 = vld [vmem:[#allocation2 + $0x118] sm:$0xff]  ;;  %v1203_v25 = vld [vmem:[#allocation2 + $0x108] sm:$0xff] }
 0x214   : > { %v1552_v37 = vsel %vm1273_vm3, %v1547_v17, %v1551_v30  ;;  %v1556_v43 = vsel %vm1273_vm3, %v1551_v30, %v1555_v39  ;;  %v1559_v31 = vrot.slane %v1484_v44, 1  ;;  %v1301_v4 = vsel %vm1273_vm3, %v1296_v53, %v1300_v61  ;;  %v1466_v36 = vld [vmem:[#allocation2 + $0x130] sm:$0xff]  ;;  %v1467_v48 = vld [vmem:[#allocation2 + $0x148] sm:$0xff] }
 0x215   : > { %1352 = vrot.lane.b32.xlu0 %v1289_v9, %s3771_s11  ;;  %2582 = vrot.lane.b32.xlu1 %v1281_v59, %s3771_s11  ;;  %v1563_v54 = vrot.slane %v1486_v52, 1  ;;  %v1567_v62 = vrot.slane %v1488_v60, 1  ;;  %v1490_v7 = vmul.f32 0.1493, %v1464_v3  ;;  %v1227_v16 = vmul.f32 0.146, %v1202_v10 }
 0x216   : > { %v1560_v51 = vsel %vm1273_vm3, %v1555_v39, %v1559_v31  ;;  %v1492_v18 = vmul.f32 0.1493, %v1465_v11  ;;  %v1229_v41 = vmul.f32 0.146, %v1203_v25  ;;  %v1496_v56 = vmul.f32 0.1493, %v1467_v48 }
 0x217   : > { %v1564_v59 = vsel %vm1273_vm3, %v1559_v31, %v1563_v54  ;;  %v1568_v6 = vsel %vm1273_vm3, %v1563_v54, %v1567_v62  ;;  %v1231_v54 = vmul.f32 0.146, %v1204_v32  ;;  %v1206_v10 = vld [vmem:[#allocation2 + $0x150] sm:$0xff]  ;;  %v1207_v25 = vld [vmem:[#allocation2 + $0x168] sm:$0xff] }
 0x218   : > { %v1312_v31 = vrot.slane %v1229_v41, 1  ;;  %v1583_v60 = vrot.slane %v1496_v56, 1 }
 0x219   : > { %1599 = vrot.lane.b32.xlu0 %v1536_v13, %s3772_s12  ;;  %2586 = vrot.lane.b32.xlu1 %v1285_v63, %s3771_s11  ;;  %v1201_v63 = vld [vmem:[#allocation2 + $0xd8] sm:$0xff]  ;;  %v1316_v58 = vrot.slane %v1231_v54, 1 }
 0x21a   : > { %v1225_v5 = vmul.f32 0.146, %v1201_v63 }
 0x21c   : > { %v1304_v8 = vrot.slane %v1225_v5, 1 }
 0x21d   : > { %1603 = vrot.lane.b32.xlu0 %v1540_v21, %s3772_s12  ;;  %1611 = vrot.lane.b32.xlu1 %v1548_v23, %s3772_s12 }
 0x221   : > { %1607 = vrot.lane.b32.xlu0 %v1544_v27, %s3772_s12  ;;  %2849 = vrot.lane.b32.xlu1 %v1548_v23, %s3772_s12  ;;  %v1308_v23 = vrot.slane %v1227_v16, 1 }
 0x223   : > { %v1309_v40 = vsel %vm1273_vm3, %v1304_v8, %v1308_v23 }
 0x225   : > { %2837 = vrot.lane.b32.xlu0 %v1536_v13, %s3772_s12  ;;  %1615 = vrot.lane.b32.xlu1 %v1552_v37, %s3772_s12  ;;  %v1305_v13 = vsel %vm1273_vm3, %v1300_v61, %v1304_v8 }
 0x229   : > { %2841 = vrot.lane.b32.xlu0 %v1540_v21, %s3772_s12  ;;  %2853 = vrot.lane.b32.xlu1 %v1552_v37, %s3772_s12 }
 0x22d   : > { %2845 = vrot.lane.b32.xlu0 %v1544_v27, %s3772_s12  ;;  %1619 = vrot.lane.b32.xlu1 %v1556_v43, %s3772_s12  ;;  %v1575_v27 = vrot.slane %v1492_v18, 1  ;;  %v1235_v18 = vmul.f32 0.146, %v1206_v10 }
 0x231   : > { %2590 = vrot.lane.b32.xlu0 %v1289_v9, %s3771_s11  ;;  %2857 = vrot.lane.b32.xlu1 %v1556_v43, %s3772_s12  ;;  %v1571_v9 = vrot.slane %v1490_v7, 1  ;;  %v1494_v43 = vmul.f32 0.1493, %v1466_v36 }
 0x233   : > { %v1572_v17 = vsel %vm1273_vm3, %v1567_v62, %v1571_v9  ;;  %v1576_v42 = vsel %vm1273_vm3, %v1571_v9, %v1575_v27  ;;  %v1579_v33 = vrot.slane %v1494_v43, 1  ;;  %v1468_v62 = vld [vmem:[#allocation2 + $0x160] sm:$0xff] }
 0x234   : > { %v4165_v7 = vmul.f32 0.1493, %v1468_v62 }
 0x235   : > { %1356 = vrot.lane.b32.xlu0 %v1293_v47, %s3771_s11  ;;  %1623 = vrot.lane.b32.xlu1 %v1560_v51, %s3772_s12  ;;  %v1580_v55 = vsel %vm1273_vm3, %v1575_v27, %v1579_v33 }
 0x236   : > { %v1587_v11 = vrot.slane %v4165_v7, 1 }
 0x239   : > { %2594 = vrot.lane.b32.xlu0 %v1293_v47, %s3771_s11  ;;  %2861 = vrot.lane.b32.xlu1 %v1560_v51, %s3772_s12 }
 0x23d   : > { %1360 = vrot.lane.b32.xlu0 %v1297_v57, %s3771_s11  ;;  %1627 = vrot.lane.b32.xlu1 %v1564_v59, %s3772_s12 }
 0x241   : > { %2598 = vrot.lane.b32.xlu0 %v1297_v57, %s3771_s11  ;;  %2865 = vrot.lane.b32.xlu1 %v1564_v59, %s3772_s12  ;;  %v1205_v59 = vld [vmem:[#allocation2 + $0x138] sm:$0xff] }
 0x242   : > { %v1233_v5 = vmul.f32 0.146, %v1205_v59 }
 0x244   : > { %v1320_v9 = vrot.slane %v1233_v5, 1 }
 0x245   : > { %1364 = vrot.lane.b32.xlu0 %v1301_v4, %s3771_s11  ;;  %1631 = vrot.lane.b32.xlu1 %v1568_v6, %s3772_s12 }
 0x249   : > { %2602 = vrot.lane.b32.xlu0 %v1301_v4, %s3771_s11  ;;  %2869 = vrot.lane.b32.xlu1 %v1568_v6, %s3772_s12  ;;  %v1584_v6 = vsel %vm1273_vm3, %v1579_v33, %v1583_v60 }
 0x24d   : > { %1368 = vrot.lane.b32.xlu0 %v1305_v13, %s3771_s11  ;;  %1635 = vrot.lane.b32.xlu1 %v1572_v17, %s3772_s12 }
 0x251   : > { %2606 = vrot.lane.b32.xlu0 %v1305_v13, %s3771_s11  ;;  %2873 = vrot.lane.b32.xlu1 %v1572_v17, %s3772_s12 }
 0x255   : > { %1372 = vrot.lane.b32.xlu0 %v1309_v40, %s3771_s11  ;;  %1639 = vrot.lane.b32.xlu1 %v1576_v42, %s3772_s12 }
 0x259   : > { %2610 = vrot.lane.b32.xlu0 %v1309_v40, %s3771_s11  ;;  %2877 = vrot.lane.b32.xlu1 %v1576_v42, %s3772_s12 }
 0x25d   : > { %1643 = vrot.lane.b32.xlu1 %v1580_v55, %s3772_s12 }
 0x261   : > { %2881 = vrot.lane.b32.xlu1 %v1580_v55, %s3772_s12 }
 0x265   : > { %1647 = vrot.lane.b32.xlu1 %v1584_v6, %s3772_s12 }
 0x269   : > { %2885 = vrot.lane.b32.xlu1 %v1584_v6, %s3772_s12 }
 0x27b   : > { %v4224_v56 = vpop.permute.xlu1 %2574 }
 0x27c   : > { %5545 = vst [vmem:[#allocation4_spill] sm:$0xff] %v4224_v56 }
 0x29c   : > { %v3490_v12 = vpop.f32.mrf.mxu0 }
 0x29e   : > { %v773_v20 = vpop.f32.mrf.mxu0 }
 0x2a0   : > { %v3491_v21 = vpop.f32.mrf.mxu0 }
 0x2a1   : > { %v837_v38 = vpack.c.bf16 %v3491_v21, %v3490_v12 }
 0x2a2   : > { %v776_v30 = vpop.f32.mrf.mxu0 }
 0x2a3   : > { %v836_v37 = vpack.c.bf16 %v776_v30, %v773_v20  ;;  %v1588_v20 = vsel %vm1273_vm3, %v1583_v60, %v1587_v11 }
 0x2a4   : > { %v3494_v39 = vpop.f32.mrf.mxu0  ;;  %1651 = vrot.lane.b32.xlu1 %v1588_v20, %s3772_s12 }
 0x2a5   : > { %3512 = vmatprep.mubr.msk.bf16.mxu1 %vm662_vm0, %v836_v37 }
 0x2a6   : > { %v789_v44 = vpop.f32.mrf.mxu0  ;;  %3513 = vmatmul.mubr.msk.bf16.vlgmr.msra.gmra.mxu1 %vm662_vm0, %v837_v38 }
 0x2a7   : > { %3553 = vmatpush3.bf16.msra.mxu1 %v3838_v1  ;;  %v1313_v1 = vsel %vm1273_vm3, %v1308_v23, %v1312_v31  ;;  %v1324_v23 = vrot.slane %v1235_v18, 1 }
 0x2a8   : > { %v3495_v45 = vpop.f32.mrf.mxu0  ;;  %3554 = vmatprep.subr.bf16.mxu1 %v3850_v2  ;;  %1376 = vrot.lane.b32.xlu0 %v1313_v1, %s3771_s11 }
 0x2a9   : > { %v839_v52 = vpack.c.bf16 %v3495_v45, %v3494_v39  ;;  %v1325_v38 = vsel %vm1273_vm3, %v1320_v9, %v1324_v23  ;;  %2889 = vrot.lane.b32.xlu1 %v1588_v20, %s3772_s12  ;;  %v1469_v45 = vld [vmem:[#allocation2 + $0x178] sm:$0xff] }
 0x2aa   : > { %v792_v47 = vpop.f32.mrf.mxu0 }
 0x2ab   : > { %v838_v51 = vpack.c.bf16 %v792_v47, %v789_v44  ;;  %3555 = vmatpush3.bf16.msra.mxu1 %v3850_v2 }
 0x2ac   : > { %v3498_v53 = vpop.f32.mrf.mxu0  ;;  %3556 = vmatprep.subr.bf16.mxu1 %v3867_v14  ;;  %2614 = vrot.lane.b32.xlu0 %v1313_v1, %s3771_s11 }
 0x2ad   : > { %3516 = vmatprep.mubr.msk.bf16.mxu1 %vm662_vm0, %v838_v51 }
 0x2ae   : > { %v805_v57 = vpop.f32.mrf.mxu0  ;;  %3517 = vmatmul.mubr.msk.bf16.gmra.mxu1 %vm662_vm0, %v839_v52 }
 0x2af   : > { %3557 = vmatpush3.bf16.msra.mxu1 %v3867_v14  ;;  %v1317_v14 = vsel %vm1273_vm3, %v1312_v31, %v1316_v58  ;;  %v1500_v31 = vmul.f32 0.1493, %v1469_v45  ;;  %v3728_v45 = vld [vmem:[%s3845_s14 + $0x20] sm:$0xff] }
 0x2b0   : > { %v3499_v2 = vpop.f32.mrf.mxu0  ;;  %3558 = vmatprep.subr.bf16.mxu1 %v3872_v15  ;;  %1380 = vrot.lane.b32.xlu0 %v1317_v14, %s3771_s11 }
 0x2b1   : > { %v841_v3 = vpack.c.bf16 %v3499_v2, %v3498_v53  ;;  %v1591_v33 = vrot.slane %v1500_v31, 1  ;;  %v4216_v53 = vpop.permute.xlu0 %1336 }
 0x2b2   : > { %v808_v61 = vpop.f32.mrf.mxu0 }
 0x2b3   : > { %v840_v63 = vpack.c.bf16 %v808_v61, %v805_v57  ;;  %3559 = vmatpush3.bf16.msra.mxu1 %v3872_v15  ;;  %v1592_v48 = vsel %vm1273_vm3, %v1587_v11, %v1591_v33 }
 0x2b4   : > { %v3502_v4 = vpop.f32.mrf.mxu0  ;;  %3560 = vmatprep.subr.bf16.mxu1 %v3881_v19  ;;  %2618 = vrot.lane.b32.xlu0 %v1317_v14, %s3771_s11 }
 0x2b5   : > { %3520 = vmatprep.mubr.msk.bf16.mxu1 %vm662_vm0, %v840_v63  ;;  %1655 = vrot.lane.b32.xlu1 %v1592_v48, %s3772_s12  ;;  %v4218_v1 = vpop.permute.xlu0 %1344 }
 0x2b6   : > { %v821_v8 = vpop.f32.mrf.mxu0  ;;  %3521 = vmatmul.mubr.msk.bf16.gmra.mxu1 %vm662_vm0, %v841_v3 }
 0x2b7   : > { %3561 = vmatpush3.bf16.msra.mxu1 %v3881_v19  ;;  %v1321_v19 = vsel %vm1273_vm3, %v1316_v58, %v1320_v9  ;;  %v4230_v58 = vpop.permute.xlu1 %1340 }
 0x2b8   : > { %v3503_v15 = vpop.f32.mrf.mxu0  ;;  %3562 = vmatprep.subr.bf16.mxu1 %v3889_v22  ;;  %1384 = vrot.lane.b32.xlu0 %v1321_v19, %s3771_s11 }
 0x2b9   : > { %v843_v16 = vpack.c.bf16 %v3503_v15, %v3502_v4  ;;  %2893 = vrot.lane.b32.xlu1 %v1592_v48, %s3772_s12  ;;  %v4220_v54 = vpop.permute.xlu0 %1348 }
 0x2ba   : > { %v824_v12 = vpop.f32.mrf.mxu0 }
 0x2bb   : > { %v842_v13 = vpack.c.bf16 %v824_v12, %v821_v8  ;;  %3563 = vmatpush3.bf16.msra.mxu1 %v3889_v22  ;;  %v4234_v60 = vpop.permute.xlu1 %2578 }
 0x2bc   : > { %v3546_v17 = vpop.f32.mrf.mxu0  ;;  %3564 = vmatprep.subr.bf16.mxu1 %v3933_v34  ;;  %2622 = vrot.lane.b32.xlu0 %v1321_v19, %s3771_s11  ;;  %5546 = vst [vmem:[#allocation5_spill] sm:$0xff] %v4234_v60 }
 0x2bd   : > { %3524 = vmatprep.mubr.msk.bf16.mxu1 %vm662_vm0, %v842_v13  ;;  %v4222_v55 = vpop.permute.xlu0 %1352 }
 0x2be   : > { %3525 = vmatmul.mubr.msk.bf16.gmra.mxu1 %vm662_vm0, %v843_v16  ;;  %v1891_v21 = vpop.f32.mrf.mxu0 }
 0x2bf   : > { %3565 = vmatpush3.bf16.msra.mxu1 %v3933_v34  ;;  %v1237_v34 = vmul.f32 0.146, %v1207_v25  ;;  %v4238_v62 = vpop.permute.xlu1 %2582 }
 0x2c0   : > { %v3547_v22 = vpop.f32.mrf.mxu0  ;;  %3566 = vmatprep.subr.bf16.mxu1 %v3940_v35  ;;  %1388 = vrot.lane.b32.xlu0 %v1325_v38, %s3771_s11  ;;  %5548 = vst [vmem:[#allocation7_spill] sm:$0xff] %v4238_v62 }
 0x2c1   : > { %v1923_v36 = vpack.c.bf16 %v3547_v22, %v3546_v17  ;;  %v4226_v57 = vpop.permute.xlu0 %1599 }
 0x2c2   : > { %v1894_v27 = vpop.f32.mrf.mxu0 }
 0x2c3   : > { %v1922_v30 = vpack.c.bf16 %v1894_v27, %v1891_v21  ;;  %3567 = vmatpush3.bf16.msra.mxu1 %v3940_v35  ;;  %v1328_v35 = vrot.slane %v1237_v34, 1  ;;  %v4242_v3 = vpop.permute.xlu1 %2586 }
 0x2c4   : > { %v3550_v37 = vpop.f32.mrf.mxu0  ;;  %3600 = vmatprep.subr.bf16.mxu1 %v3954_v49  ;;  %2626 = vrot.lane.b32.xlu0 %v1325_v38, %s3771_s11  ;;  %5550 = vst [vmem:[#allocation9_spill] sm:$0xff] %v4242_v3 }
 0x2c5   : > { %3568 = vmatprep.mubr.bf16.mxu1 %v1922_v30  ;;  %v1329_v44 = vsel %vm1273_vm3, %v1324_v23, %v1328_v35  ;;  %v4228_v2 = vpop.permute.xlu0 %1603 }
 0x2c6   : > { %v1907_v39 = vpop.f32.mrf.mxu0  ;;  %3569 = vmatmul.mubr.bf16.vlgmr.msra.gmra.mxu1 %v1923_v36 }
 0x2c7   : > { %3601 = vmatpush3.bf16.msra.mxu1 %v3954_v49  ;;  %v1208_v49 = vld [vmem:[#allocation2 + $0x180] sm:$0xff]  ;;  %v4246_v14 = vpop.permute.xlu1 %1611 }
 0x2c8   : > { %v3551_v40 = vpop.f32.mrf.mxu0  ;;  %3602 = vmatprep.subr.bf16.mxu1 %v3959_v50  ;;  %1392 = vrot.lane.b32.xlu0 %v1329_v44, %s3771_s11 }
 0x2c9   : > { %v1925_v43 = vpack.c.bf16 %v3551_v40, %v3550_v37  ;;  %v4232_v59 = vpop.permute.xlu0 %1607  ;;  %v3727_v40 = vld [vmem:[%s3845_s14 + $0x30] sm:$0xff] }
 0x2ca   : > { %v1910_v41 = vpop.f32.mrf.mxu0 }
 0x2cb   : > { %v1924_v42 = vpack.c.bf16 %v1910_v41, %v1907_v39  ;;  %3603 = vmatpush3.bf16.msra.mxu1 %v3959_v50  ;;  %v1239_v50 = vmul.f32 0.146, %v1208_v49  ;;  %v4250_v6 = vpop.permute.xlu1 %2849 }
 0x2cc   : > { %3604 = vmatprep.subr.bf16.mxu1 %v4039_v46  ;;  %2630 = vrot.lane.b32.xlu0 %v1329_v44, %s3771_s11  ;;  %5553 = vst [vmem:[#allocation12_spill] sm:$0xff] %v4250_v6 }
 0x2cd   : > { %3572 = vmatprep.mubr.bf16.mxu1 %v1924_v42  ;;  %v1332_v32 = vrot.slane %v1239_v50, 1  ;;  %v4236_v61 = vpop.permute.xlu0 %2837 }
 0x2ce   : > { %3573 = vmatmul.mubr.bf16.gmra.mxu1 %v1925_v43  ;;  %5547 = vst [vmem:[#allocation6_spill] sm:$0xff] %v4236_v61 }
 0x2cf   : > { %3605 = vmatpush3.bf16.msra.mxu1 %v4039_v46  ;;  %v1333_v47 = vsel %vm1273_vm3, %v1328_v35, %v1332_v32  ;;  %v1470_v46 = vld [vmem:[#allocation2 + $0x190] sm:$0xff]  ;;  %v4254_v8 = vpop.permute.xlu1 %1615 }
 0x2d0   : > { %3606 = vmatprep.subr.bf16.mxu1 %v4046_v0  ;;  %1396 = vrot.lane.b32.xlu0 %v1333_v47, %s3771_s11  ;;  %v1502_v51 = vmul.f32 0.1493, %v1470_v46 }
 0x2d1   : > { %v4240_v63 = vpop.permute.xlu0 %2841 }
 0x2d2   : > { %5549 = vst [vmem:[#allocation8_spill] sm:$0xff] %v4240_v63 }
 0x2d3   : > { %3607 = vmatpush3.bf16.msra.mxu1 %v4046_v0  ;;  %v4208_v0 = vrot.slane %v1502_v51, 1  ;;  %v4258_v9 = vpop.permute.xlu1 %2853 }
 0x2d4   : > { %2634 = vrot.lane.b32.xlu0 %v1333_v47, %s3771_s11  ;;  %5556 = vst [vmem:[#allocation15_spill] sm:$0xff] %v4258_v9 }
 0x2d5   : > { %5544 = vst [vmem:[#allocation3_spill] sm:$0xff] %v4208_v0  ;;  %v1596_v52 = vsel %vm1273_vm3, %v1591_v33, %v4208_v0  ;;  %v4244_v4 = vpop.permute.xlu0 %2845  ;;  %v3738_v0 = vld [vmem:[%s3845_s14 + $0x68] sm:$0xff] }
 0x2d6   : > { %1659 = vrot.lane.b32.xlu1 %v1596_v52, %s3772_s12  ;;  %5551 = vst [vmem:[#allocation10_spill] sm:$0xff] %v4244_v4 }
 0x2d7   : > { %v4262_v11 = vpop.permute.xlu1 %1619 }
 0x2d8   : > { %1400 = vrot.lane.b32.xlu0 %v1332_v32, %s3771_s11  ;;  %5558 = vst [vmem:[#allocation17_spill] sm:$0xff] %v4262_v11 }
 0x2d9   : > { %v4248_v5 = vpop.permute.xlu0 %2590 }
 0x2da   : > { %2897 = vrot.lane.b32.xlu1 %v1596_v52, %s3772_s12  ;;  %5552 = vst [vmem:[#allocation11_spill] sm:$0xff] %v4248_v5 }
 0x2db   : > { %v4266_v13 = vpop.permute.xlu1 %2857 }
 0x2dc   : > { %2638 = vrot.lane.b32.xlu0 %v1332_v32, %s3771_s11  ;;  %5560 = vst [vmem:[#allocation19_spill] sm:$0xff] %v4266_v13  ;;  %v3732_v13 = vld [vmem:[%s3845_s14 + $0x50] sm:$0xff] }
 0x2dd   : > { %v4252_v7 = vpop.permute.xlu0 %1356 }
 0x2de   : > { %5554 = vst [vmem:[#allocation13_spill] sm:$0xff] %v4252_v7 }
 0x2df   : > { %v4285_v27 = vpop.permute.xlu1 %1623 }
 0x2e0   : > { %5564 = vst [vmem:[#allocation23_spill] sm:$0xff] %v4285_v27 }
 0x2e1   : > { %v4256_v15 = vpop.permute.xlu0 %2594 }
 0x2e2   : > { %5555 = vst [vmem:[#allocation14_spill] sm:$0xff] %v4256_v15 }
 0x2e3   : > { %v4329_v47 = vpop.permute.xlu1 %2861 }
 0x2e4   : > { %5569 = vst [vmem:[#allocation28_spill] sm:$0xff] %v4329_v47 }
 0x2e5   : > { %v4260_v10 = vpop.permute.xlu0 %1360 }
 0x2e6   : > { %5557 = vst [vmem:[#allocation16_spill] sm:$0xff] %v4260_v10 }
 0x2e9   : > { %v4264_v12 = vpop.permute.xlu0 %2598 }
 0x2ea   : > { %5559 = vst [vmem:[#allocation18_spill] sm:$0xff] %v4264_v12 }
 0x2ed   : > { %v4283_v25 = vpop.permute.xlu0 %1364 }
 0x2f1   : > { %v4327_v33 = vpop.permute.xlu0 %2602 }
 0x2f2   : > { %5568 = vst [vmem:[#allocation27_spill] sm:$0xff] %v4327_v33 }
 0x366   : > { %v3514_v16 = vpop.f32.mrf.mxu1 }
 0x367   : > { %v4269_v17 = vsub.f32 %v3894_v24, %v3514_v16 }
 0x368   : > { %v926_v19 = vpop.f32.mrf.mxu1 }
 0x369   : > { %5561 = vst [vmem:[#allocation20_spill] sm:$0xff] %v4269_v17  ;;  %v4272_v18 = vand.u32 2147483647, %v4269_v17  ;;  %v4275_v20 = vsub.f32 %v3905_v28, %v926_v19 }
 0x36a   : > { %v3515_v21 = vpop.f32.mrf.mxu1 }
 0x36b   : > { %5562 = vst [vmem:[#allocation21_spill] sm:$0xff] %v4275_v20  ;;  %v4278_v22 = vand.u32 2147483647, %v4275_v20  ;;  %v4281_v23 = vsub.f32 %v3898_v26, %v3515_v21  ;;  %v4288_v30 = vmul.f32 0.1493, %v4272_v18 }
 0x36c   : > { %v929_v24 = vpop.f32.mrf.mxu1  ;;  %v4302_v34 = vmul.f32 0.146, %v4272_v18  ;;  %v4332_v48 = vmul.f32 0.1011, %v4272_v18 }
 0x36d   : > { %5563 = vst [vmem:[#allocation22_spill] sm:$0xff] %v4281_v23  ;;  %1021 = vst [vmem:[#allocation2 + $0x20] sm:$0xff] %v4278_v22  ;;  %v4292_v28 = vand.u32 2147483647, %v4281_v23  ;;  %v4295_v36 = vsub.f32 %v3908_v29, %v929_v24  ;;  %v4298_v26 = vmul.f32 0.1493, %v4278_v22 }
 0x36e   : > { %v1210_v37 = vmul.f32 0.146, %v4278_v22  ;;  %v3518_v38 = vpop.f32.mrf.mxu1  ;;  %v5506_v31 = vrot.slane %v4288_v30, 1  ;;  %v1282_v16 = vrot.slane %v4302_v34, 1  ;;  %v3729_v24 = vld [vmem:[%s3845_s14 + $0x38] sm:$0xff]  ;;  %v3731_v23 = vld [vmem:[%s3845_s14 + $0x40] sm:$0xff] }
 0x36f   : > { %5565 = vst [vmem:[#allocation24_spill] sm:$0xff] %v4295_v36  ;;  %v4305_v39 = vand.u32 2147483647, %v4295_v36  ;;  %v4308_v35 = vsub.f32 %v3727_v40, %v3518_v38  ;;  %v5503_v41 = vrot.slane %v4298_v26, 1  ;;  %v1477_v43 = vmul.f32 0.1493, %v4292_v28 }
 0x370   : > { %v1275_v42 = vrot.slane %v1210_v37, 1  ;;  %v942_v29 = vpop.f32.mrf.mxu1  ;;  %v4313_v44 = vmul.f32 0.146, %v4292_v28  ;;  %v4316_v49 = vmul.f32 0.1011, %v4292_v28 }
 0x371   : > { %5566 = vst [vmem:[#allocation25_spill] sm:$0xff] %v4308_v35  ;;  %v4319_v50 = vsub.f32 %v3728_v45, %v942_v29  ;;  %1597 = vrot.lane.b32.xlu1 %v5503_v41, %s3772_s12  ;;  %v1212_v32 = vmul.f32 0.146, %v4305_v39  ;;  %v4335_v46 = vand.u32 2147483647, %v4308_v35  ;;  %v1545_v52 = vrot.slane %v1477_v43, 1 }
 0x372   : > { %1338 = vrot.lane.b32.xlu0 %v1275_v42, %s3771_s11  ;;  %v3519_v51 = vpop.f32.mrf.mxu1  ;;  %v5505_v19 = vrot.slane %v4313_v44, 1  ;;  %v3730_v41 = vld [vmem:[%s3845_s14 + $0x28] sm:$0xff]  ;;  %v5602_v7 = vrot.slane %v4316_v49, 2 }
 0x373   : > { %5567 = vst [vmem:[#allocation26_spill] sm:$0xff] %v4319_v50  ;;  %v4340_v21 = vand.u32 2147483647, %v4319_v50  ;;  %v4343_v37 = vsub.f32 %v3729_v24, %v3519_v51  ;;  %v1546_v40 = vsel %vm1273_vm3, %v5506_v31, %v1545_v52  ;;  %v1278_v43 = vrot.slane %v1212_v32, 1 }
 0x374   : > { %v945_v38 = vpop.f32.mrf.mxu1  ;;  %v1287_v29 = vsel %vm1273_vm3, %v1282_v16, %v5505_v19  ;;  %v4362_v19 = vmul.f32 0.1493, %v4335_v46  ;;  %v1473_v50 = vmul.f32 0.1493, %v4305_v39  ;;  %v5574_v32 = vrot.slane %v4316_v49, 2 }
 0x375   : > { %5570 = vst [vmem:[#allocation29_spill] sm:$0xff] %v4343_v37  ;;  %v4353_v45 = vand.u32 2147483647, %v4343_v37  ;;  %v4356_v35 = vsub.f32 %v3730_v41, %v945_v38  ;;  %1350 = vrot.lane.b32.xlu1 %v1287_v29, %s3771_s11  ;;  %v1479_v51 = vmul.f32 0.1493, %v4340_v21  ;;  %v4371_v38 = vpop.permute.xlu0 %1368  ;;  %v1279_v37 = vsel %vm1273_vm3, %v1275_v42, %v1278_v43 }
 0x376   : > { %1609 = vrot.lane.b32.xlu0 %v1546_v40, %s3772_s12  ;;  %v3522_v24 = vpop.f32.mrf.mxu1  ;;  %5572 = vst [vmem:[#allocation31_spill] sm:$0xff] %v4371_v38  ;;  %v4373_v40 = vpop.permute.xlu1 %1627  ;;  %v1537_v20 = vrot.slane %v1473_v50, 1  ;;  %v1057_v50 = vmul.f32 0.1015, %v4272_v18 }
 0x377   : > { %5571 = vst [vmem:[#allocation30_spill] sm:$0xff] %v4356_v35  ;;  %v4366_v31 = vand.u32 2147483647, %v4356_v35  ;;  %v1549_v34 = vrot.slane %v1479_v51, 1  ;;  %v4369_v41 = vmul.f32 0.1493, %v4353_v45  ;;  %v4391_v12 = vsub.f32 %v3732_v13, %v3522_v24 }
 0x378   : > { %5573 = vst [vmem:[#allocation32_spill] sm:$0xff] %v4373_v40  ;;  %v958_v29 = vpop.f32.mrf.mxu1  ;;  %v5575_v35 = vrot.slane %v4332_v48, 2 }
 0x379   : > { %v4383_v17 = vsub.f32 %v3731_v23, %v958_v29  ;;  %1342 = vrot.lane.b32.xlu1 %v1279_v37, %s3771_s11  ;;  %v1550_v36 = vsel %vm1273_vm3, %v1545_v52, %v1549_v34  ;;  %v1481_v42 = vmul.f32 0.1493, %v4366_v31  ;;  %5577 = vst [vmem:[#allocation34_spill] sm:$0xff] %v4391_v12  ;;  %v1283_v29 = vsel %vm1273_vm3, %v1278_v43, %v1282_v16  ;;  %v4405_v24 = vpop.permute.xlu0 %2606 }
 0x37a   : > { %v1132_v51 = vsel %vm1125_vm4, %v5575_v35, %v5574_v32  ;;  %v3523_v47 = vpop.f32.mrf.mxu1  ;;  %1613 = vrot.lane.b32.xlu0 %v1550_v36, %s3772_s12  ;;  %v1557_v35 = vrot.slane %v4362_v19, 1  ;;  %v3733_v32 = vld [vmem:[%s3845_s14 + $0x58] sm:$0xff]  ;;  %v5579_v36 = vrot.slane %v4369_v41, 1  ;;  %5580 = vst [vmem:[#allocation36_spill] sm:$0xff] %v4405_v24  ;;  %v4407_v19 = vpop.permute.xlu1 %2865  ;;  %v4415_v16 = vand.u32 2147483647, %v4391_v12 }
 0x37b   : > { %5576 = vst [vmem:[#allocation33_spill] sm:$0xff] %v4383_v17  ;;  %v4395_v23 = vand.u32 2147483647, %v4383_v17  ;;  %v4398_v37 = vsub.f32 %v3733_v32, %v3523_v47  ;;  %v1553_v13 = vrot.slane %v1481_v42, 1  ;;  %5581 = vst [vmem:[#allocation37_spill] sm:$0xff] %v4407_v19  ;;  %v3734_v17 = vld [vmem:[%s3845_s14 + $0x48] sm:$0xff] }
 0x37c   : > { %v961_v52 = vpop.f32.mrf.mxu1  ;;  %v1562_v15 = vsel %vm1273_vm3, %v1557_v35, %v5579_v36  ;;  %v4418_v43 = vmul.f32 0.146, %v4340_v21  ;;  %v4421_v42 = vmul.f32 0.146, %v4353_v45  ;;  %v3735_v36 = vld [vmem:[%s3845_s14 + $0x60] sm:$0xff] }
 0x37d   : > { %5578 = vst [vmem:[#allocation35_spill] sm:$0xff] %v4398_v37  ;;  %1346 = vrot.lane.b32.xlu1 %v1283_v29, %s3771_s11  ;;  %v4410_v33 = vsub.f32 %v3734_v17, %v961_v52  ;;  %v4424_v32 = vand.u32 2147483647, %v4398_v37  ;;  %v5583_v52 = vrot.slane %v4298_v26, 1  ;;  %v4430_v18 = vmul.f32 0.1493, %v4395_v23 }
 0x37e   : > { %v3526_v47 = vpop.f32.mrf.mxu1  ;;  %1625 = vrot.lane.b32.xlu0 %v1562_v15, %s3772_s12  ;;  %v4432_v29 = vadd.f32 %v1132_v51, %v1057_v50  ;;  %v1554_v24 = vsel %vm1273_vm3, %v1549_v34, %v1553_v13  ;;  %v5585_v26 = vrot.slane %v4288_v30, 1  ;;  %v1222_v51 = vmul.f32 0.146, %v4335_v46  ;;  %v4458_v30 = vpop.permute.xlu1 %1631 }
 0x37f   : > { %5582 = vst [vmem:[#allocation38_spill] sm:$0xff] %v4410_v33  ;;  %v1538_v15 = vsel %vm1273_vm3, %v5583_v52, %v1537_v20  ;;  %v4440_v37 = vand.u32 2147483647, %v4410_v33  ;;  %v1220_v50 = vmul.f32 0.146, %v4366_v31  ;;  %v1290_v34 = vrot.slane %v4418_v43, 1 }
 0x380   : > { %v974_v17 = vpop.f32.mrf.mxu1  ;;  %v1542_v52 = vsel %vm1273_vm3, %v1537_v20, %v5585_v26  ;;  %v4454_v33 = vmul.f32 0.1493, %v4415_v16  ;;  %5588 = vst [vmem:[#allocation42_spill] sm:$0xff] %v4458_v30  ;;  %v1565_v43 = vrot.slane %v4430_v18, 1  ;;  %v4473_v26 = vmul.f32 0.146, %v4395_v23 }
 0x381   : > { %v4435_v12 = vsub.f32 %v3735_v36, %v974_v17  ;;  %1601 = vrot.lane.b32.xlu1 %v1538_v15, %s3772_s12  ;;  %v3736_v17 = vld [vmem:[%s3845_s14 + $0x78] sm:$0xff]  ;;  %v1302_v36 = vrot.slane %v4421_v42, 1  ;;  %v4470_v42 = vmul.f32 0.1493, %v4424_v32  ;;  %v1298_v18 = vrot.slane %v1222_v51, 1 }
 0x382   : > { %v3527_v19 = vpop.f32.mrf.mxu1  ;;  %1617 = vrot.lane.b32.xlu0 %v1554_v24, %s3772_s12  ;;  %v4456_v24 = vpop.permute.xlu0 %1372  ;;  %v1294_v5 = vrot.slane %v1220_v50, 1  ;;  %v1092_v51 = vmul.f32 0.1011, %v4305_v39 }
 0x383   : > { %5584 = vst [vmem:[#allocation39_spill] sm:$0xff] %v4435_v12  ;;  %v4449_v15 = vsub.f32 %v3736_v17, %v3527_v19  ;;  %5587 = vst [vmem:[#allocation41_spill] sm:$0xff] %v4456_v24  ;;  %v1558_v19 = vsel %vm1273_vm3, %v1553_v13, %v1557_v35  ;;  %v3737_v17 = vld [vmem:[%s3845_s14 + $0x70] sm:$0xff]  ;;  %v4479_v4 = vand.u32 2147483647, %v4435_v12  ;;  %v1303_v63 = vsel %vm1273_vm3, %v1298_v18, %v1302_v36  ;;  %v4526_v6 = vpop.permute.xlu1 %2869 }
 0x384   : > { %v977_v20 = vpop.f32.mrf.mxu1  ;;  %v4476_v9 = vsub.f32 %v3737_v17, %v3526_v47  ;;  %v4486_v35 = vmul.f32 0.146, %v4424_v32  ;;  %v1489_v47 = vmul.f32 0.1493, %v4440_v37  ;;  %v1055_v17 = vmul.f32 0.1015, %v4278_v22 }
 0x385   : > { %5586 = vst [vmem:[#allocation40_spill] sm:$0xff] %v4449_v15  ;;  %v4482_v62 = vand.u32 2147483647, %v4449_v15  ;;  %1605 = vrot.lane.b32.xlu1 %v1542_v52, %s3772_s12  ;;  %v5590_v52 = vrot.slane %v4313_v44, 1  ;;  %v4501_v12 = vmul.f32 0.146, %v4415_v16  ;;  %v4538_v24 = vsub.f32 %v3738_v0, %v977_v20 }
 0x386   : > { %5589 = vst [vmem:[#allocation43_spill] sm:$0xff] %v4476_v9  ;;  %v4488_v13 = vpop.f32.mrf.mxu1  ;;  %1621 = vrot.lane.b32.xlu0 %v1558_v19, %s3772_s12  ;;  %v1088_v19 = vld [vmem:[#allocation2 + $0x20] sm:$0xfe]  ;;  %v1573_v22 = vrot.slane %v4454_v33, 1  ;;  %v1577_v60 = vrot.slane %v4470_v42, 1  ;;  %v4524_v61 = vpop.permute.xlu0 %2610  ;;  %5593 = vst [vmem:[#allocation45_spill] sm:$0xff] %v4526_v6  ;;  %v1299_v42 = vsel %vm1273_vm3, %v1294_v5, %v1298_v18 }
 0x387   : > { %1036 = vst [vmem:[#allocation2 + $0x188] sm:$0xff] %v4482_v62  ;;  %1993 = vst.msk [vmem:[%s4465_s16 + $0x10] sm:$0xff] %vm662_vm0, %v4488_v13  ;;  %v1291_v15 = vsel %vm1273_vm3, %v5590_v52, %v1290_v34  ;;  %v4511_v44 = vand.u32 2147483647, %v4476_v9  ;;  %v5591_v52 = vrot.slane %v4369_v41, 1  ;;  %v1569_v56 = vrot.slane %v1489_v47, 1 }
 0x388   : > { %v4504_v50 = vpop.f32.mrf.mxu1  ;;  %v4521_v33 = vmul.f32 0.1493, %v4479_v4  ;;  %5592 = vst [vmem:[#allocation44_spill] sm:$0xff] %v4524_v61  ;;  %v4533_v41 = vmul.f32 0.146, %v4440_v37  ;;  %5594 = vst [vmem:[#allocation46_spill] sm:$0xff] %v4538_v24  ;;  %v1578_v47 = vsel %vm1273_vm3, %v1573_v22, %v1577_v60 }
 0x389   : > { %1991 = vst.msk [vmem:[%s4465_s16] sm:$0xff] %vm662_vm0, %v4504_v50  ;;  %1354 = vrot.lane.b32.xlu1 %v1291_v15, %s3771_s11  ;;  %v1566_v3 = vsel %vm1273_vm3, %v5591_v52, %v1565_v43  ;;  %v1295_v15 = vsel %vm1273_vm3, %v1290_v34, %v1294_v5  ;;  %v4535_v52 = vmul.f32 0.1011, %v1088_v19  ;;  %v5523_v61 = vrot.slane %v4501_v12, 1 }
 0x38a   : > { %v4528_v9 = vpop.f32.mrf.mxu1  ;;  %1629 = vrot.lane.b32.xlu0 %v1566_v3, %s3772_s12  ;;  %v4546_v3 = vmul.f32 0.1493, %v4482_v62  ;;  %v5595_v19 = vrot.slane %v4473_v26, 1  ;;  %v1127_v20 = vrot.slane %v1092_v51, 2  ;;  %v5596_v18 = vrot.slane %v4486_v35, 1 }
 0x38b   : > { %1994 = vst.msk [vmem:[%s4465_s16 + $0x18] sm:$0xff] %vm662_vm0, %v4528_v9  ;;  %v1570_v0 = vsel %vm1273_vm3, %v1565_v43, %v1569_v56  ;;  %v5597_v5 = vrot.slane %v4535_v52, 2  ;;  %v4583_v27 = vand.u32 2147483647, %v4538_v24  ;;  %v4590_v43 = vpop.permute.xlu1 %1635  ;;  %v1097_v24 = vmul.f32 0.1011, %v4335_v46 }
 0x38c   : > { %v4548_v34 = vpop.f32.mrf.mxu1  ;;  %v4554_v6 = vsel %vm1273_vm3, %v1302_v36, %v5595_v19  ;;  %v4567_v30 = vsel %vm1273_vm3, %v5523_v61, %v5596_v18  ;;  %v4570_v36 = vmul.f32 0.1493, %v4511_v44  ;;  %v1056_v19 = vmul.f32 0.1015, %v4305_v39  ;;  %5600 = vst [vmem:[#allocation48_spill] sm:$0xff] %v4590_v43 }
 0x38d   : > { %1992 = vst.msk [vmem:[%s4465_s16 + $0x8] sm:$0xff] %vm662_vm0, %v4548_v34  ;;  %1366 = vrot.lane.b32.xlu1 %v1303_v63, %s3771_s11  ;;  %v1128_v38 = vsel %vm1125_vm4, %v5597_v5, %v1127_v20  ;;  %v5598_v18 = vrot.slane %v4332_v48, 2  ;;  %v1574_v48 = vsel %vm1273_vm3, %v1569_v56, %v1573_v22  ;;  %v5601_v39 = vrot.slane %v4521_v33, 1 }
 0x38e   : > { %v3574_v51 = vpop.f32.mrf.mxu1  ;;  %1641 = vrot.lane.b32.xlu0 %v1578_v47, %s3772_s12  ;;  %v4588_v47 = vpop.permute.xlu0 %1376  ;;  %v4592_v63 = vadd.f32 %v1128_v38, %v1055_v17  ;;  %v1098_v17 = vmul.f32 0.1011, %v4353_v45  ;;  %v1096_v56 = vmul.f32 0.1011, %v4366_v31 }
 0x38f   : > { %v1130_v61 = vsel %vm1125_vm4, %v1127_v20, %v5598_v18  ;;  %1997 = vst.msk [vmem:[%s4465_s16 + $0x30] sm:$0xff] %vm662_vm0, %v3574_v51  ;;  %5599 = vst [vmem:[#allocation47_spill] sm:$0xff] %v4588_v47  ;;  %v1058_v20 = vmul.f32 0.1015, %v4292_v28  ;;  %v1095_v18 = vmul.f32 0.1011, %v4340_v21  ;;  %v1582_v38 = vsel %vm1273_vm3, %v1577_v60, %v5601_v39 }
 0x390   : > { %v4594_v10 = vadd.f32 %v1130_v61, %v1056_v19  ;;  %v1976_v5 = vpop.f32.mrf.mxu1  ;;  %v1061_v61 = vmul.f32 0.1015, %v4335_v46  ;;  %v1137_v19 = vrot.slane %v1097_v24, 2  ;;  %v1059_v47 = vmul.f32 0.1015, %v4340_v21 }
 0x391   : > { %1995 = vst.msk [vmem:[%s4465_s16 + $0x20] sm:$0xff] %vm662_vm0, %v1976_v5  ;;  %1358 = vrot.lane.b32.xlu1 %v1295_v15, %s3771_s11  ;;  %v1133_v28 = vrot.slane %v1095_v18, 2  ;;  %v1060_v15 = vmul.f32 0.1015, %v4366_v31  ;;  %v1139_v60 = vrot.slane %v1098_v17, 2  ;;  %v1135_v39 = vrot.slane %v1096_v56, 2  ;;  %v4626_v18 = vpop.permute.xlu1 %2873 }
 0x392   : > { %v3575_v22 = vpop.f32.mrf.mxu1  ;;  %1633 = vrot.lane.b32.xlu0 %v1570_v0, %s3772_s12  ;;  %v1099_v46 = vmul.f32 0.1011, %v4395_v23  ;;  %v1062_v0 = vmul.f32 0.1015, %v4353_v45  ;;  %v1101_v24 = vmul.f32 0.1011, %v4415_v16 }
 0x393   : > { %1998 = vst.msk [vmem:[%s4465_s16 + $0x38] sm:$0xff] %vm662_vm0, %v3575_v22  ;;  %v2002_v43 = vpack.c.bf16 %v3575_v22, %v3574_v51  ;;  %v1134_v40 = vsel %vm1125_vm4, %v5602_v7, %v1133_v28  ;;  %v1102_v21 = vmul.f32 0.1011, %v4424_v32  ;;  %v4624_v51 = vpop.permute.xlu0 %2614  ;;  %v1140_v7 = vsel %vm1125_vm4, %v1137_v19, %v1139_v60 }
 0x394   : > { %v1979_v11 = vpop.f32.mrf.mxu1  ;;  %v4628_v17 = vadd.f32 %v1134_v40, %v1058_v20  ;;  %v1141_v49 = vrot.slane %v1099_v46, 2  ;;  %v4632_v45 = vadd.f32 %v1140_v7, %v1061_v61  ;;  %v1136_v56 = vsel %vm1125_vm4, %v1133_v28, %v1135_v39 }
 0x395   : > { %1996 = vst.msk [vmem:[%s4465_s16 + $0x28] sm:$0xff] %vm662_vm0, %v1979_v11  ;;  %v2001_v31 = vpack.c.bf16 %v1979_v11, %v1976_v5  ;;  %3576 = vmatprep.subr.bf16.mxu0 %v2002_v43  ;;  %1362 = vrot.lane.b32.xlu1 %v1299_v42, %s3771_s11  ;;  %v1138_v11 = vsel %vm1125_vm4, %v1135_v39, %v1137_v19  ;;  %v1145_v5 = vrot.slane %v1101_v24, 2  ;;  %v1147_v20 = vrot.slane %v1102_v21, 2 }
 0x396   : > { %3577 = vmatpush3.bf16.msra.mxu0 %v2002_v43  ;;  %1637 = vrot.lane.b32.xlu0 %v1574_v48, %s3772_s12  ;;  %v4636_v42 = vadd.f32 %v1136_v56, %v1059_v47  ;;  %v4638_v22 = vadd.f32 %v1138_v11, %v1060_v15  ;;  %v1142_v40 = vsel %vm1125_vm4, %v1139_v60, %v1141_v49  ;;  %v4642_v46 = vmul.f32 0.1493, %v4583_v27 }
 0x397   : > { %3578 = vmatprep.subr.bf16.mxu0 %v2001_v31  ;;  %v4644_v43 = vadd.f32 %v1142_v40, %v1062_v0  ;;  %v1065_v48 = vmul.f32 0.1015, %v4415_v16  ;;  %v1100_v61 = vmul.f32 0.1011, %v4440_v37  ;;  %v2000_v28 = vpack.c.bf16 %v4528_v9, %v4488_v13  ;;  %v4664_v9 = vpop.permute.xlu0 %1380 }
 0x398   : > { %v1148_v47 = vsel %vm1125_vm4, %v1145_v5, %v1147_v20  ;;  %v1063_v19 = vmul.f32 0.1015, %v4395_v23  ;;  %v1103_v15 = vmul.f32 0.1011, %v4479_v4  ;;  %v1064_v39 = vmul.f32 0.1015, %v4440_v37  ;;  %v4666_v23 = vpop.permute.xlu1 %1639 }
 0x399   : > { %1370 = vrot.lane.b32.xlu1 %v4554_v6, %s3771_s11  ;;  %v4656_v60 = vadd.f32 %v1148_v47, %v1065_v48  ;;  %v1143_v16 = vrot.slane %v1100_v61, 2  ;;  %v4660_v0 = vmul.f32 0.1011, %v4482_v62  ;;  %v1999_v6 = vpack.c.bf16 %v4548_v34, %v4504_v50 }
 0x39a   : > { %3579 = vmatpush3.bf16.msra.mxu0 %v2001_v31  ;;  %1645 = vrot.lane.b32.xlu0 %v1582_v38, %s3772_s12  ;;  %v1066_v13 = vmul.f32 0.1015, %v4424_v32  ;;  %v1149_v24 = vrot.slane %v1103_v15, 2  ;;  %v1105_v38 = vmul.f32 0.1011, %v4511_v44  ;;  %v1589_v11 = vrot.slane %v4570_v36, 1 }
 0x39b   : > { %3580 = vmatprep.subr.bf16.mxu0 %v2000_v28  ;;  %v1144_v21 = vsel %vm1125_vm4, %v1141_v49, %v1143_v16  ;;  %v1146_v37 = vsel %vm1125_vm4, %v1143_v16, %v1145_v5  ;;  %v5525_v31 = vrot.slane %v4660_v0, 2  ;;  %v1104_v7 = vmul.f32 0.1011, %v4583_v27 }
 0x39c   : > { %v4676_v50 = vadd.f32 %v1144_v21, %v1063_v19  ;;  %v4678_v34 = vadd.f32 %v1146_v37, %v1064_v39  ;;  %v1150_v32 = vsel %vm1125_vm4, %v1147_v20, %v1149_v24  ;;  %v1153_v56 = vrot.slane %v1105_v38, 2  ;;  %v4708_v21 = vpop.permute.xlu0 %2618  ;;  %v4710_v37 = vpop.permute.xlu1 %2877 }
 0x39d   : > { %1382 = vrot.lane.b32.xlu1 %v4567_v30, %s3771_s11  ;;  %v5603_v49 = vrot.slane %v4546_v3, 1  ;;  %v4685_v5 = vadd.f32 %v1150_v32, %v1066_v13  ;;  %v1069_v40 = vmul.f32 0.1015, %v4511_v44  ;;  %v1151_v48 = vrot.slane %v1104_v7, 2  ;;  %5607 = vst [vmem:[#allocation49_spill] sm:$0xff] %v4710_v37 }
 0x39e   : > { %3581 = vmatpush3.bf16.msra.mxu0 %v2000_v28  ;;  %v1234_v30 = vmul.f32 0.146, %v4479_v4  ;;  %v1156_v20 = vsel %vm1125_vm4, %v1153_v56, %v5525_v31  ;;  %v1067_v61 = vmul.f32 0.1015, %v4479_v4  ;;  %v1068_v28 = vmul.f32 0.1015, %v4583_v27 }
 0x39f   : > { %1661 = vrot.lane.b32.xlu0 %v5603_v49, %s3772_s12  ;;  %3582 = vmatprep.subr.bf16.mxu0 %v1999_v6  ;;  %v5604_v47 = vrot.slane %v4533_v41, 1  ;;  %v5605_v36 = vrot.slane %v4473_v26, 1  ;;  %v4699_v15 = vadd.f32 %v1156_v20, %v1069_v40  ;;  %v1152_v16 = vsel %vm1125_vm4, %v1149_v24, %v1151_v48 }
 0x3a0   : > { %v1154_v39 = vsel %vm1125_vm4, %v1151_v48, %v1153_v56  ;;  %v5606_v13 = vmov %v5603_v49  ;;  %v1585_v38 = vrot.slane %v4642_v46, 1  ;;  %v4712_v26 = vadd.f32 %v1152_v16, %v1067_v61  ;;  %v3739_v46 = vld [vmem:[%s5496_s2 + $0x8] sm:$0xff]   ;;  %v4736_v40 = vpop.permute.xlu0 %1384  ;;  %v4738_v48 = vpop.permute.xlu1 %1643 }
 0x3a1   : > { %v1311_v19 = vsel %vm1273_vm3, %v5605_v36, %v5604_v47  ;;  %v1594_v4 = vsel %vm1273_vm3, %v1589_v11, %v5606_v13  ;;  %v4714_v7 = vadd.f32 %v1154_v39, %v1068_v28  ;;  %v5608_v24 = vrot.slane %v4501_v12, 1  ;;  %v3740_v12 = vld [vmem:[%s5496_s2 + $0x10] sm:$0xff]  }
 0x3a2   : > { %1374 = vrot.lane.b32.xlu1 %v1311_v19, %s3771_s11  ;;  %3583 = vmatpush3.bf16.msra.mxu0 %v1999_v6  ;;  %v5609_v32 = vmov %v5604_v47  ;;  %v1322_v56 = vrot.slane %v1234_v30, 1  ;;  %v5610_v49 = vrot.slane %v4521_v33, 1  ;;  %v1240_v41 = vmul.f32 0.146, %v4482_v62  ;;  %v3741_v62 = vld [vmem:[%s5496_s2 + $0x18] sm:$0xff]  }
 0x3a3   : > { %1657 = vrot.lane.b32.xlu0 %v1594_v4, %s3772_s12  ;;  %v1315_v3 = vsel %vm1273_vm3, %v5609_v32, %v5608_v24  ;;  %v5611_v30 = vrot.slane %v4486_v35, 1  ;;  %v1590_v20 = vsel %vm1273_vm3, %v1585_v38, %v1589_v11  ;;  %v1238_v61 = vmul.f32 0.146, %v4511_v44  ;;  %v3742_v11 = vld [vmem:[%s5496_s2 + $0x20] sm:$0xff]   ;;  %v3743_v4 = vld [vmem:[%s5496_s2 + $0x28] sm:$0xff]  }
 0x3a4   : > { %v1586_v6 = vsel %vm1273_vm3, %v5610_v49, %v1585_v38  ;;  %v1334_v28 = vrot.slane %v1240_v41, 1  ;;  %v1236_v47 = vmul.f32 0.146, %v4583_v27  ;;  %v4753_v35 = vpop.permute.xlu0 %2622  ;;  %v4755_v36 = vpop.permute.xlu1 %2881  ;;  %v3744_v38 = vld [vmem:[%s5496_s2 + $0x30] sm:$0xff]  }
 0x3a5   : > { %3585 = vmatmul.mubr.msk.bf16.vlgmr.msra.gmra.mxu0 %vm662_vm0, %v3739_v46  ;;  %v1323_v33 = vsel %vm1273_vm3, %v5611_v30, %v1322_v56  ;;  %v1330_v44 = vrot.slane %v1238_v61, 1 }
 0x3a6   : > { %1378 = vrot.lane.b32.xlu1 %v1315_v3, %s3771_s11  ;;  %3588 = vmatprep.mubr.msk.bf16.mxu0 %vm662_vm0, %v3740_v12  ;;  %v1326_v19 = vrot.slane %v1236_v47, 1  ;;  %v1037_v47 = vld [vmem:[#allocation2 + $0x8] sm:$0x80] }
 0x3a7   : > { %1649 = vrot.lane.b32.xlu0 %v1586_v6, %s3772_s12  ;;  %v1335_v27 = vsel %vm1273_vm3, %v1330_v44, %v1334_v28 }
 0x3a8   : > { %v4763_v16 = vpop.permute.xlu0 %1388  ;;  %v4765_v39 = vpop.permute.xlu1 %1647  ;;  %v1327_v13 = vsel %vm1273_vm3, %v1322_v56, %v1326_v19  ;;  %v1331_v24 = vsel %vm1273_vm3, %v1326_v19, %v1330_v44  ;;  %v3745_v56 = vld [vmem:[%s5496_s2 + $0x38] sm:$0xff]   ;;  %v1054_v44 = vmul.f32 0.1015, %v1037_v47  ;;  %v5620_v19 = vrot.slane %v4535_v52, 2 }
 0x3aa   : > { %1386 = vrot.lane.b32.xlu1 %v1323_v33, %s3771_s11 }
 0x3ab   : > { %1653 = vrot.lane.b32.xlu0 %v1590_v20, %s3772_s12 }
 0x3ac   : > { %v4779_v32 = vpop.permute.xlu0 %2626  ;;  %v4781_v3 = vpop.permute.xlu1 %2885 }
 0x3ad   : > { %3589 = vmatmul.mubr.msk.bf16.gmra.mxu0 %vm662_vm0, %v3741_v62  ;;  %5612 = vst [vmem:[#allocation50_spill] sm:$0xff] %v4779_v32  ;;  %5613 = vst [vmem:[#allocation51_spill] sm:$0xff] %v4781_v3 }
 0x3ae   : > { %1402 = vrot.lane.b32.xlu1 %v1334_v28, %s3771_s11  ;;  %3592 = vmatprep.mubr.msk.bf16.mxu0 %vm662_vm0, %v3742_v11 }
 0x3b0   : > { %v4787_v46 = vpop.permute.xlu0 %1392  ;;  %v4789_v49 = vpop.permute.xlu1 %1651 }
 0x3b2   : > { %1398 = vrot.lane.b32.xlu1 %v1335_v27, %s3771_s11 }
 0x3b4   : > { %v4791_v6 = vpop.permute.xlu0 %2630  ;;  %v4793_v12 = vpop.permute.xlu1 %2889 }
 0x3b5   : > { %3593 = vmatmul.mubr.msk.bf16.gmra.mxu0 %vm662_vm0, %v3743_v4  ;;  %5614 = vst [vmem:[#allocation52_spill] sm:$0xff] %v4791_v6  ;;  %5615 = vst [vmem:[#allocation53_spill] sm:$0xff] %v4793_v12 }
 0x3b6   : > { %1390 = vrot.lane.b32.xlu1 %v1327_v13, %s3771_s11  ;;  %3596 = vmatprep.mubr.msk.bf16.mxu0 %vm662_vm0, %v3744_v38  ;;  %v1176_v13 = vadd.f32 %v5620_v19, %v1054_v44 }
 0x3b8   : > { %v4795_v41 = vpop.permute.xlu0 %1396  ;;  %v4797_v30 = vpop.permute.xlu1 %1655 }
 0x3ba   : > { %1394 = vrot.lane.b32.xlu1 %v1331_v24, %s3771_s11 }
 0x3bc   : > { %v4799_v33 = vpop.permute.xlu0 %2634  ;;  %v4801_v20 = vpop.permute.xlu1 %2893 }
 0x3bd   : > { %3597 = vmatmul.mubr.msk.bf16.gmra.mxu0 %vm662_vm0, %v3745_v56  ;;  %5616 = vst [vmem:[#allocation54_spill] sm:$0xff] %v4799_v33  ;;  %5617 = vst [vmem:[#allocation55_spill] sm:$0xff] %v4801_v20 }
 0x3c0   : > { %v4803_v61 = vpop.permute.xlu0 %1400  ;;  %v4805_v28 = vpop.permute.xlu1 %1659 }
 0x3c4   : > { %v4807_v62 = vpop.permute.xlu0 %2638  ;;  %v4809_v11 = vpop.permute.xlu1 %2897 }
 0x3c5   : > { %5618 = vst [vmem:[#allocation56_spill] sm:$0xff] %v4807_v62  ;;  %5619 = vst [vmem:[#allocation57_spill] sm:$0xff] %v4809_v11 }
 0x3e3   : > { %v1598_v27 = vpop.permute.xlu1 %1597 }
 0x3e4   : > { %v1339_v4 = vpop.permute.xlu0 %1338  ;;  %v1666_v56 = vsel %vm1665_vm5, %v1598_v27, %v4226_v57 }
 0x3e5   : > { %v1404_v38 = vsel %vm367_vm2, %v4216_v53, %v1339_v4 }
 0x3e6   : > { %v1438_v24 = vadd.f32 %v1404_v38, %v1176_v13 }
 0x3e7   : > { %v1351_v6 = vpop.permute.xlu1 %1350 }
 0x3e8   : > { %v1700_v31 = vadd.f32 %v1666_v56, %v1438_v24  ;;  %v1610_v20 = vpop.permute.xlu0 %1609  ;;  %v1407_v62 = vsel %vm367_vm2, %v4220_v54, %v1351_v6 }
 0x3e9   : > { %v1441_v47 = vadd.f32 %v1407_v62, %v4432_v29  ;;  %v1669_v52 = vsel %vm1665_vm5, %v1610_v20, %v4246_v14 }
 0x3ea   : > { %v1717_v20 = vadd.f32 0.0248, %v1700_v31 }
 0x3eb   : > { %v1703_v44 = vadd.f32 %v1669_v52, %v1441_v47  ;;  %v1343_v19 = vpop.permute.xlu1 %1342 }
 0x3ec   : > { %v1405_v53 = vsel %vm367_vm2, %v4230_v58, %v1343_v19  ;;  %v1614_v13 = vpop.permute.xlu0 %1613  ;;  %v1752_v47 = vrot.slane %v1717_v20, 7 }
 0x3ed   : > { %v1439_v4 = vadd.f32 %v1405_v53, %v4592_v63  ;;  %v1720_v52 = vadd.f32 0.0248, %v1703_v44 }
 0x3ef   : > { %v1347_v57 = vpop.permute.xlu1 %1346 }
 0x3f0   : > { %v1406_v27 = vsel %vm367_vm2, %v4218_v1, %v1347_v57  ;;  %v1626_v38 = vpop.permute.xlu0 %1625 }
 0x3f1   : > { %v1440_v54 = vadd.f32 %v1406_v27, %v4594_v10 }
 0x3f3   : > { %v1602_v6 = vpop.permute.xlu1 %1601 }
 0x3f4   : > { %v1667_v29 = vsel %vm1665_vm5, %v1602_v6, %v4228_v2  ;;  %v1618_v14 = vpop.permute.xlu0 %1617 }
 0x3f5   : > { %v1701_v62 = vadd.f32 %v1667_v29, %v1439_v4  ;;  %v1757_v4 = vrot.slane %v1720_v52, 7  ;;  %v5622_v52 = vld [vmem:[#allocation13_spill] sm:$0xff] }
 0x3f7   : > { %v1718_v24 = vadd.f32 0.0248, %v1701_v62  ;;  %v1606_v56 = vpop.permute.xlu1 %1605 }
 0x3f8   : > { %v1668_v58 = vsel %vm1665_vm5, %v1606_v56, %v4232_v59  ;;  %v1622_v63 = vpop.permute.xlu0 %1621  ;;  %v1670_v59 = vsel %vm1665_vm5, %v1614_v13, %v4254_v8 }
 0x3f9   : > { %v1753_v1 = vrot.slane %v1718_v24, 7  ;;  %v1702_v19 = vadd.f32 %v1668_v58, %v1440_v54  ;;  %v5621_v58 = vld [vmem:[#allocation32_spill] sm:$0xff] }
 0x3fb   : > { %v4833_v10 = vsel %vm1751_vm6, %v1752_v47, %v1753_v1  ;;  %v1719_v53 = vadd.f32 0.0248, %v1702_v19  ;;  %v1355_v57 = vpop.permute.xlu1 %1354 }
 0x3fc   : > { %v1408_v2 = vsel %vm367_vm2, %v4222_v55, %v1355_v57  ;;  %v1630_v31 = vpop.permute.xlu0 %1629  ;;  %v5623_v57 = vld [vmem:[#allocation17_spill] sm:$0xff]  ;;  %3661 = vrcp.f32 %v4833_v10  ;;  %v5678_v10 = vld [vmem:[#allocation27_spill] sm:$0xff] }
 0x3fd   : > { %v1755_v27 = vrot.slane %v1719_v53, 7  ;;  %v1442_v6 = vadd.f32 %v1408_v2, %v4628_v17  ;;  %v1673_v17 = vsel %vm1665_vm5, %v1626_v38, %v5621_v58 }
 0x3ff   : > { %v4841_v44 = vsel %vm1751_vm6, %v1753_v1, %v1755_v27  ;;  %v4844_v54 = vsel %vm1751_vm6, %v1755_v27, %v1757_v4  ;;  %v1704_v29 = vadd.f32 %v1670_v59, %v1442_v6  ;;  %v1367_v20 = vpop.permute.xlu1 %1366  ;;  %v5624_v6 = vld [vmem:[#allocation16_spill] sm:$0xff] }
 0x400   : > { %v1411_v62 = vsel %vm367_vm2, %v4283_v25, %v1367_v20  ;;  %v1642_v56 = vpop.permute.xlu0 %1641  ;;  %v1671_v25 = vsel %vm1665_vm5, %v1618_v14, %v5623_v57  ;;  %v5625_v20 = vld [vmem:[#allocation23_spill] sm:$0xff]  ;;  %3663 = vrcp.f32 %v4841_v44 }
 0x401   : > { %v1721_v55 = vadd.f32 0.0248, %v1704_v29  ;;  %v1445_v24 = vadd.f32 %v1411_v62, %v4632_v45  ;;  %v1672_v62 = vsel %vm1665_vm5, %v1622_v63, %v5625_v20 }
 0x403   : > { %v1759_v47 = vrot.slane %v1721_v55, 7  ;;  %v1707_v8 = vadd.f32 %v1673_v17, %v1445_v24  ;;  %v1359_v13 = vpop.permute.xlu1 %1358 }
 0x404   : > { %v1409_v1 = vsel %vm367_vm2, %v5622_v52, %v1359_v13  ;;  %v1634_v45 = vpop.permute.xlu0 %1633 }
 0x405   : > { %v4854_v19 = vsel %vm1751_vm6, %v1757_v4, %v1759_v47  ;;  %v1443_v53 = vadd.f32 %v1409_v1, %v4636_v42  ;;  %v1724_v55 = vadd.f32 0.0248, %v1707_v8  ;;  %v5626_v42 = vld [vmem:[#allocation31_spill] sm:$0xff] }
 0x407   : > { %v1705_v2 = vadd.f32 %v1671_v25, %v1443_v53  ;;  %v1363_v27 = vpop.permute.xlu1 %1362  ;;  %v5627_v53 = vld [vmem:[#allocation42_spill] sm:$0xff]  ;;  %v1765_v57 = vrot.slane %v1724_v55, 7 }
 0x408   : > { %v1410_v38 = vsel %vm367_vm2, %v5624_v6, %v1363_v27  ;;  %v1638_v52 = vpop.permute.xlu0 %1637 }
 0x409   : > { %v1722_v59 = vadd.f32 0.0248, %v1705_v2  ;;  %v1444_v29 = vadd.f32 %v1410_v38, %v4638_v22  ;;  %v1674_v22 = vsel %vm1665_vm5, %v1630_v31, %v5627_v53 }
 0x40b   : > { %v1761_v4 = vrot.slane %v1722_v59, 7  ;;  %v1706_v24 = vadd.f32 %v1672_v62, %v1444_v29  ;;  %v1371_v58 = vpop.permute.xlu1 %1370  ;;  %v5628_v62 = vld [vmem:[#allocation41_spill] sm:$0xff] }
 0x40c   : > { %v1412_v17 = vsel %vm367_vm2, %v5626_v42, %v1371_v58  ;;  %v1646_v59 = vpop.permute.xlu0 %1645  ;;  %v5629_v58 = vld [vmem:[#allocation48_spill] sm:$0xff] }
 0x40d   : > { %v4867_v14 = vsel %vm1751_vm6, %v1759_v47, %v1761_v4  ;;  %v1723_v13 = vadd.f32 0.0248, %v1706_v24  ;;  %v1446_v1 = vadd.f32 %v1412_v17, %v4644_v43  ;;  %v1677_v43 = vsel %vm1665_vm5, %v1642_v56, %v4738_v48  ;;  %v5630_v48 = vld [vmem:[#allocation47_spill] sm:$0xff] }
 0x40e   : > { %v1675_v42 = vsel %vm1665_vm5, %v1634_v45, %v5629_v58 }
 0x40f   : > { %v1763_v25 = vrot.slane %v1723_v13, 7  ;;  %v1708_v63 = vadd.f32 %v1674_v22, %v1446_v1  ;;  %v1383_v8 = vpop.permute.xlu1 %1382 }
 0x410   : > { %v1415_v2 = vsel %vm367_vm2, %v4664_v9, %v1383_v8  ;;  %v1090_v9 = vld [vmem:[#allocation2 + $0x1a0] sm:$0x1] }
 0x411   : > { %v4875_v27 = vsel %vm1751_vm6, %v1761_v4, %v1763_v25  ;;  %v4878_v47 = vsel %vm1751_vm6, %v1763_v25, %v1765_v57  ;;  %v1725_v6 = vadd.f32 0.0248, %v1708_v63  ;;  %v1449_v38 = vadd.f32 %v1415_v2, %v4656_v60  ;;  %v4893_v1 = vpop.permute.xlu0 %1661  ;;  %v1053_v25 = vld [vmem:[#allocation2 + $0x188] sm:$0x7f] }
 0x412   : > { %v1107_v13 = vmul.f32 0.1011, %v1090_v9  ;;  %5631 = vst [vmem:[#allocation32_spill] sm:$0xff] %v4893_v1 }
 0x413   : > { %v1767_v31 = vrot.slane %v1725_v6, 7  ;;  %v1711_v29 = vadd.f32 %v1677_v43, %v1449_v38  ;;  %v1070_v38 = vmul.f32 0.1015, %v1053_v25 }
 0x414   : > { %v1375_v20 = vpop.permute.xlu1 %1374  ;;  %v1157_v45 = vrot.slane %v1107_v13, 2 }
 0x415   : > { %v1413_v55 = vsel %vm367_vm2, %v5628_v62, %v1375_v20  ;;  %v4886_v4 = vsel %vm1751_vm6, %v1765_v57, %v1767_v31  ;;  %v1676_v57 = vsel %vm1665_vm5, %v1638_v52, %v4666_v23  ;;  %v1728_v63 = vadd.f32 0.0248, %v1711_v29  ;;  %v1658_v23 = vpop.permute.xlu0 %1657 }
 0x416   : > { %v1447_v24 = vadd.f32 %v1413_v55, %v4676_v50 }
 0x417   : > { %v1773_v55 = vrot.slane %v1728_v63, 7 }
 0x418   : > { %v1709_v60 = vadd.f32 %v1675_v42, %v1447_v24  ;;  %v1379_v17 = vpop.permute.xlu1 %1378  ;;  %v5632_v24 = vrot.slane %v4660_v0, 2 }
 0x419   : > { %v1414_v56 = vsel %vm367_vm2, %v5630_v48, %v1379_v17  ;;  %v1650_v13 = vpop.permute.xlu0 %1649 }
 0x41a   : > { %v1726_v53 = vadd.f32 0.0248, %v1709_v60  ;;  %v1448_v22 = vadd.f32 %v1414_v56, %v4678_v34  ;;  %v1678_v34 = vsel %vm1665_vm5, %v1646_v59, %v4765_v39  ;;  %v1158_v58 = vsel %vm1125_vm4, %v5632_v24, %v1157_v45 }
 0x41b   : > { %v1681_v56 = vsel %vm1665_vm5, %v1658_v23, %v4805_v28  ;;  %v1679_v63 = vsel %vm1665_vm5, %v1650_v13, %v4789_v49 }
 0x41c   : > { %v1769_v50 = vrot.slane %v1726_v53, 7  ;;  %v1710_v8 = vadd.f32 %v1676_v57, %v1448_v22  ;;  %v1387_v2 = vpop.permute.xlu1 %1386 }
 0x41d   : > { %v1416_v6 = vsel %vm367_vm2, %v4736_v40, %v1387_v2  ;;  %v1192_v40 = vadd.f32 %v1158_v58, %v1070_v38 }
 0x41e   : > { %v4901_v43 = vsel %vm1751_vm6, %v1767_v31, %v1769_v50  ;;  %v1727_v20 = vadd.f32 0.0248, %v1710_v8  ;;  %v1450_v62 = vadd.f32 %v1416_v6, %v4685_v5 }
 0x420   : > { %v1771_v52 = vrot.slane %v1727_v20, 7  ;;  %v1712_v29 = vadd.f32 %v1678_v34, %v1450_v62  ;;  %v1403_v9 = vpop.permute.xlu1 %1402 }
 0x421   : > { %v1420_v31 = vsel %vm367_vm2, %v4803_v61, %v1403_v9 }
 0x422   : > { %v4912_v42 = vsel %vm1751_vm6, %v1769_v50, %v1771_v52  ;;  %v4915_v5 = vsel %vm1751_vm6, %v1771_v52, %v1773_v55  ;;  %v1729_v39 = vadd.f32 0.0248, %v1712_v29  ;;  %v4917_v59 = vadd.f32 %v1420_v31, %v1192_v40 }
 0x423   : > { %5633 = vst [vmem:[#allocation13_spill] sm:$0xff] %v4912_v42  ;;  %5634 = vst [vmem:[#allocation17_spill] sm:$0xff] %v4915_v5 }
 0x424   : > { %5635 = vst [vmem:[#allocation16_spill] sm:$0xff] %v4917_v59  ;;  %v1775_v60 = vrot.slane %v1729_v39, 7  ;;  %v1399_v17 = vpop.permute.xlu1 %1398 }
 0x425   : > { %v1419_v0 = vsel %vm367_vm2, %v4795_v41, %v1399_v17  ;;  %v1654_v41 = vpop.permute.xlu0 %1653 }
 0x426   : > { %v4922_v48 = vsel %vm1751_vm6, %v1773_v55, %v1775_v60  ;;  %v1453_v61 = vadd.f32 %v1419_v0, %v4699_v15  ;;  %v1680_v28 = vsel %vm1665_vm5, %v1654_v41, %v4797_v30 }
 0x427   : > { %5636 = vst [vmem:[#allocation23_spill] sm:$0xff] %v4922_v48 }
 0x428   : > { %v1715_v53 = vadd.f32 %v1681_v56, %v1453_v61  ;;  %v1391_v22 = vpop.permute.xlu1 %1390 }
 0x429   : > { %v1417_v25 = vsel %vm367_vm2, %v4763_v16, %v1391_v22 }
 0x42a   : > { %v1451_v57 = vadd.f32 %v1417_v25, %v4712_v26  ;;  %v4937_v6 = vadd.f32 0.0248, %v1715_v53 }
 0x42c   : > { %v1713_v50 = vadd.f32 %v1679_v63, %v1451_v57  ;;  %v1395_v8 = vpop.permute.xlu1 %1394  ;;  %5637 = vst [vmem:[#allocation31_spill] sm:$0xff] %v4937_v6  ;;  %v5526_v20 = vrot.slane %v4937_v6, 7 }
 0x42d   : > { %v1418_v2 = vsel %vm367_vm2, %v4787_v46, %v1395_v8  ;;  %v3746_v8 = vld [vmem:[%s3984_s10 + $0x10] sm:$0xff] }
 0x42e   : > { %v1730_v15 = vadd.f32 0.0248, %v1713_v50  ;;  %v1452_v45 = vadd.f32 %v1418_v2, %v4714_v7 }
 0x430   : > { %v1777_v16 = vrot.slane %v1730_v15, 7  ;;  %v1714_v38 = vadd.f32 %v1680_v28, %v1452_v45  ;;  %v3747_v28 = vld [vmem:[%s3984_s10] sm:$0xff] }
 0x432   : > { %v4940_v26 = vsel %vm1751_vm6, %v1775_v60, %v1777_v16  ;;  %v1731_v49 = vadd.f32 0.0248, %v1714_v38 }
 0x433   : > { %5638 = vst [vmem:[#allocation42_spill] sm:$0xff] %v4940_v26 }
 0x434   : > { %v1779_v62 = vrot.slane %v1731_v49, 7 }
 0x436   : > { %v4944_v34 = vsel %vm1751_vm6, %v1777_v16, %v1779_v62  ;;  %v4949_v7 = vsel %vm1751_vm6, %v1779_v62, %v5526_v20  ;;  %v3748_v62 = vld [vmem:[%s3984_s10 + $0x18] sm:$0xff] }
 0x437   : > { %5639 = vst [vmem:[#allocation41_spill] sm:$0xff] %v4944_v34  ;;  %5640 = vst [vmem:[#allocation48_spill] sm:$0xff] %v4949_v7 }
 0x465   : > { %v3586_v46 = vpop.f32.mrf.mxu0 }
 0x467   : > { %v2037_v30 = vpop.f32.mrf.mxu0 }
 0x469   : > { %v3587_v55 = vpop.f32.mrf.mxu0 }
 0x46a   : > { %v2101_v29 = vpack.c.bf16 %v3587_v55, %v3586_v46 }
 0x46b   : > { %v2040_v23 = vpop.f32.mrf.mxu0 }
 0x46c   : > { %v2100_v52 = vpack.c.bf16 %v2040_v23, %v2037_v30  ;;  %v3749_v23 = vld [vmem:[%s3984_s10 + $0x8] sm:$0xff] }
 0x46d   : > { %v3590_v9 = vpop.f32.mrf.mxu0 }
 0x46e   : > { %3608 = vmatprep.mubr.msk.bf16.mxu1 %vm662_vm0, %v2100_v52 }
 0x46f   : > { %v2053_v24 = vpop.f32.mrf.mxu0  ;;  %3609 = vmatmul.mubr.msk.bf16.vlgmr.msra.gmra.mxu1 %vm662_vm0, %v2101_v29 }
 0x471   : > { %v3591_v58 = vpop.f32.mrf.mxu0 }
 0x472   : > { %v2103_v39 = vpack.c.bf16 %v3591_v58, %v3590_v9 }
 0x473   : > { %v2056_v40 = vpop.f32.mrf.mxu0 }
 0x474   : > { %v2102_v31 = vpack.c.bf16 %v2056_v40, %v2053_v24 }
 0x475   : > { %v3594_v60 = vpop.f32.mrf.mxu0 }
 0x476   : > { %3612 = vmatprep.mubr.msk.bf16.mxu1 %vm662_vm0, %v2102_v31  ;;  %v3750_v31 = vld [vmem:[%s3984_s10 + $0x30] sm:$0xff] }
 0x477   : > { %v2069_v17 = vpop.f32.mrf.mxu0  ;;  %3613 = vmatmul.mubr.msk.bf16.gmra.mxu1 %vm662_vm0, %v2103_v39 }
 0x479   : > { %v3595_v0 = vpop.f32.mrf.mxu0 }
 0x47a   : > { %v2105_v13 = vpack.c.bf16 %v3595_v0, %v3594_v60 }
 0x47b   : > { %v2072_v61 = vpop.f32.mrf.mxu0 }
 0x47c   : > { %v2104_v56 = vpack.c.bf16 %v2072_v61, %v2069_v17 }
 0x47d   : > { %v3598_v53 = vpop.f32.mrf.mxu0 }
 0x47e   : > { %3616 = vmatprep.mubr.msk.bf16.mxu1 %vm662_vm0, %v2104_v56 }
 0x47f   : > { %v2085_v22 = vpop.f32.mrf.mxu0  ;;  %3617 = vmatmul.mubr.msk.bf16.gmra.mxu1 %vm662_vm0, %v2105_v13 }
 0x481   : > { %v3599_v25 = vpop.f32.mrf.mxu0 }
 0x482   : > { %v2107_v57 = vpack.c.bf16 %v3599_v25, %v3598_v53  ;;  %v3751_v53 = vld [vmem:[%s3984_s10 + $0x20] sm:$0xff] }
 0x483   : > { %v2088_v63 = vpop.f32.mrf.mxu0 }
 0x484   : > { %v2106_v41 = vpack.c.bf16 %v2088_v63, %v2085_v22 }
 0x486   : > { %3620 = vmatprep.mubr.msk.bf16.mxu1 %vm662_vm0, %v2106_v41 }
 0x487   : > { %3621 = vmatmul.mubr.msk.bf16.gmra.mxu1 %vm662_vm0, %v2107_v57 }
 0x52f   : > { %v3610_v50 = vpop.f32.mrf.mxu1 }
 0x530   : > { %v4960_v2 = vsub.f32 %v3746_v8, %v3610_v50 }
 0x531   : > { %v2166_v15 = vpop.f32.mrf.mxu1 }
 0x532   : > { %v4963_v45 = vand.u32 2147483647, %v4960_v2  ;;  %v4966_v16 = vsub.f32 %v3747_v28, %v2166_v15  ;;  %v3752_v15 = vld [vmem:[%s3984_s10 + $0x38] sm:$0xff] }
 0x533   : > { %v3611_v38 = vpop.f32.mrf.mxu1 }
 0x534   : > { %v4969_v49 = vand.u32 2147483647, %v4966_v16  ;;  %v4972_v46 = vsub.f32 %v3748_v62, %v3611_v38  ;;  %v4984_v58 = vmul.f32 0.146, %v4963_v45  ;;  %v2713_v50 = vmul.f32 0.1493, %v4963_v45 }
 0x535   : > { %v2169_v30 = vpop.f32.mrf.mxu1  ;;  %v2297_v42 = vmul.f32 0.1015, %v4963_v45 }
 0x536   : > { %2261 = vst [vmem:[#allocation2 + $0x20] sm:$0xff] %v4969_v49  ;;  %v4976_v55 = vand.u32 2147483647, %v4972_v46  ;;  %v4979_v52 = vsub.f32 %v3749_v23, %v2169_v30  ;;  %v2449_v29 = vmul.f32 0.146, %v4969_v49  ;;  %v2520_v63 = vrot.slane %v4984_v58, 1 }
 0x537   : > { %v2709_v9 = vmul.f32 0.1493, %v4969_v49  ;;  %v3614_v24 = vpop.f32.mrf.mxu1 }
 0x538   : > { %v4987_v40 = vand.u32 2147483647, %v4979_v52  ;;  %v4990_v39 = vsub.f32 %v3750_v31, %v3614_v24  ;;  %v2513_v60 = vrot.slane %v2449_v29, 1  ;;  %v2455_v13 = vmul.f32 0.146, %v4976_v55  ;;  %v3753_v24 = vld [vmem:[%s3984_s10 + $0x28] sm:$0xff] }
 0x539   : > { %v2773_v17 = vrot.slane %v2709_v9, 1  ;;  %v2182_v0 = vpop.f32.mrf.mxu1  ;;  %v4994_v61 = vmul.f32 0.1493, %v4976_v55 }
 0x53a   : > { %5641 = vst [vmem:[#allocation47_spill] sm:$0xff] %v4990_v39  ;;  %v4997_v56 = vand.u32 2147483647, %v4990_v39  ;;  %v5000_v22 = vsub.f32 %v3751_v53, %v2182_v0  ;;  %2576 = vrot.lane.b32.xlu0 %v2513_v60, %s3771_s11  ;;  %v2711_v25 = vmul.f32 0.1493, %v4987_v40  ;;  %v2524_v41 = vrot.slane %v2455_v13, 1 }
 0x53b   : > { %2835 = vrot.lane.b32.xlu1 %v2773_v17, %s3772_s12  ;;  %v3615_v57 = vpop.f32.mrf.mxu1  ;;  %v5528_v23 = vrot.slane %v4994_v61, 1  ;;  %v2451_v29 = vmul.f32 0.146, %v4987_v40  ;;  %v2779_v13 = vrot.slane %v2713_v50, 1  ;;  %v2332_v5 = vmul.f32 0.1011, %v4987_v40 }
 0x53c   : > { %5642 = vst [vmem:[#allocation58_spill] sm:$0xff] %v5000_v22  ;;  %v5008_v8 = vand.u32 2147483647, %v5000_v22  ;;  %v5011_v28 = vsub.f32 %v3752_v15, %v3615_v57  ;;  %v2775_v38 = vrot.slane %v2711_v25, 1  ;;  %v2525_v30 = vsel %vm1273_vm3, %v2520_v63, %v2524_v41  ;;  %v3754_v57 = vld [vmem:[%s3984_s10 + $0x50] sm:$0xff] }
 0x53d   : > { %v2185_v62 = vpop.f32.mrf.mxu1  ;;  %v5078_v34 = vmul.f32 0.1493, %v4997_v56 }
 0x53e   : > { %5643 = vst [vmem:[#allocation59_spill] sm:$0xff] %v5011_v28  ;;  %v5017_v9 = vand.u32 2147483647, %v5011_v28  ;;  %v5020_v58 = vsub.f32 %v3753_v24, %v2185_v62  ;;  %2588 = vrot.lane.b32.xlu0 %v2525_v30, %s3771_s11  ;;  %v2776_v31 = vsel %vm1273_vm3, %v2773_v17, %v2775_v38  ;;  %v5026_v53 = vmul.f32 0.146, %v5008_v8 }
 0x53f   : > { %v3618_v0 = vpop.f32.mrf.mxu1  ;;  %2839 = vrot.lane.b32.xlu1 %v2776_v31, %s3772_s12  ;;  %v2784_v30 = vsel %vm1273_vm3, %v2779_v13, %v5528_v23  ;;  %v2516_v17 = vrot.slane %v2451_v29, 1  ;;  %v3755_v31 = vld [vmem:[%s3984_s10 + $0x40] sm:$0xff]  ;;  %v3756_v23 = vld [vmem:[%s3984_s10 + $0x58] sm:$0xff] }
 0x540   : > { %5644 = vst [vmem:[#allocation60_spill] sm:$0xff] %v5020_v58  ;;  %v5029_v25 = vand.u32 2147483647, %v5020_v58  ;;  %v5032_v15 = vsub.f32 %v3754_v57, %v3618_v0  ;;  %v5038_v24 = vmul.f32 0.146, %v5017_v9  ;;  %v2780_v0 = vsel %vm1273_vm3, %v2775_v38, %v2779_v13 }
 0x541   : > { %v2198_v62 = vpop.f32.mrf.mxu1  ;;  %v2528_v57 = vrot.slane %v5026_v53, 1  ;;  %v5062_v13 = vmul.f32 0.1493, %v5008_v8  ;;  %v5065_v53 = vmul.f32 0.1011, %v4963_v45  ;;  %v2521_v59 = vsel %vm1273_vm3, %v2516_v17, %v2520_v63 }
 0x542   : > { %5645 = vst [vmem:[#allocation61_spill] sm:$0xff] %v5032_v15  ;;  %v5041_v50 = vand.u32 2147483647, %v5032_v15  ;;  %v5044_v20 = vsub.f32 %v3755_v31, %v2198_v62  ;;  %2847 = vrot.lane.b32.xlu0 %v2784_v30, %s3772_s12  ;;  %v5057_v15 = vmul.f32 0.146, %v4997_v56  ;;  %v2517_v30 = vsel %vm1273_vm3, %v2513_v60, %v2516_v17 }
 0x543   : > { %v3619_v6 = vpop.f32.mrf.mxu1  ;;  %2843 = vrot.lane.b32.xlu1 %v2780_v0, %s3772_s12  ;;  %v2529_v0 = vsel %vm1273_vm3, %v2524_v41, %v2528_v57  ;;  %v2459_v60 = vmul.f32 0.146, %v5029_v25  ;;  %v2787_v26 = vrot.slane %v5062_v13, 1  ;;  %v2336_v37 = vmul.f32 0.1011, %v5029_v25 }
 0x544   : > { %5646 = vst [vmem:[#allocation62_spill] sm:$0xff] %v5044_v20  ;;  %v5051_v29 = vand.u32 2147483647, %v5044_v20  ;;  %v5054_v7 = vsub.f32 %v3756_v23, %v3619_v6  ;;  %v3757_v6 = vld [vmem:[%s3984_s10 + $0x48] sm:$0xff]  ;;  %v5081_v20 = vmul.f32 0.1493, %v5017_v9 }
 0x545   : > { %v2201_v62 = vpop.f32.mrf.mxu1  ;;  %v2536_v41 = vrot.slane %v5057_v15, 1  ;;  %v5651_v15 = vrot.slane %v5038_v24, 1  ;;  %v2532_v17 = vrot.slane %v2459_v60, 1  ;;  %v5128_v39 = vmul.f32 0.1493, %v5041_v50 }
 0x546   : > { %5647 = vst [vmem:[#allocation63_spill] sm:$0xff] %v5054_v7  ;;  %v5068_v31 = vand.u32 2147483647, %v5054_v7  ;;  %v5071_v23 = vsub.f32 %v3757_v6, %v2201_v62  ;;  %2580 = vrot.lane.b32.xlu0 %v2517_v30, %s3771_s11  ;;  %v3758_v62 = vld [vmem:[%s3984_s10 + $0x70] sm:$0xff]  ;;  %v2799_v1 = vrot.slane %v5081_v20, 1 }
 0x547   : > { %v3622_v38 = vpop.f32.mrf.mxu1  ;;  %2592 = vrot.lane.b32.xlu1 %v2529_v0, %s3771_s11  ;;  %v5093_v0 = vmul.f32 0.1011, %v4976_v55  ;;  %v2541_v63 = vsel %vm1273_vm3, %v2536_v41, %v5651_v15  ;;  %v2465_v60 = vmul.f32 0.146, %v5051_v29  ;;  %v5119_v15 = vmul.f32 0.1493, %v5051_v29 }
 0x548   : > { %5648 = vst [vmem:[#allocation64_spill] sm:$0xff] %v5071_v23  ;;  %v5084_v7 = vand.u32 2147483647, %v5071_v23  ;;  %v5087_v6 = vsub.f32 %v3758_v62, %v3622_v38  ;;  %v3759_v23 = vld [vmem:[%s3984_s10 + $0x60] sm:$0xff]  ;;  %v2795_v62 = vrot.slane %v5078_v34, 1  ;;  %v5653_v34 = vrot.slane %v4994_v61, 1 }
 0x549   : > { %v2214_v30 = vpop.f32.mrf.mxu1  ;;  %v2328_v38 = vld [vmem:[#allocation2 + $0x20] sm:$0xfe]  ;;  %v5125_v11 = vmul.f32 0.146, %v5068_v31  ;;  %v2533_v61 = vsel %vm1273_vm3, %v2528_v57, %v2532_v17  ;;  %v2370_v3 = vrot.slane %v5093_v0, 2  ;;  %v5542_v57 = vrot.slane %v5119_v15, 1 }
 0x54a   : > { %5649 = vst [vmem:[#allocation65_spill] sm:$0xff] %v5087_v6  ;;  %v5097_v12 = vand.u32 2147483647, %v5087_v6  ;;  %v5100_v28 = vsub.f32 %v3759_v23, %v2214_v30  ;;  %2584 = vrot.lane.b32.xlu0 %v2521_v59, %s3771_s11  ;;  %v2719_v6 = vmul.f32 0.1493, %v5029_v25  ;;  %v3760_v30 = vld [vmem:[%s3984_s10 + $0x78] sm:$0xff]  ;;  %v2788_v20 = vsel %vm1273_vm3, %v5653_v34, %v2787_v26 }
 0x54b   : > { %v3623_v13 = vpop.f32.mrf.mxu1  ;;  %2604 = vrot.lane.b32.xlu1 %v2541_v63, %s3771_s11  ;;  %v2469_v23 = vmul.f32 0.146, %v5041_v50  ;;  %v2467_v34 = vmul.f32 0.146, %v5084_v7  ;;  %v5143_v33 = vmul.f32 0.1011, %v2328_v38  ;;  %v2537_v0 = vsel %vm1273_vm3, %v2532_v17, %v2536_v41 }
 0x54c   : > { %5650 = vst [vmem:[#allocation66_spill] sm:$0xff] %v5100_v28  ;;  %v5112_v59 = vand.u32 2147483647, %v5100_v28  ;;  %v5115_v32 = vsub.f32 %v3760_v30, %v3623_v13  ;;  %v5131_v28 = vmul.f32 0.1493, %v5068_v31  ;;  %v3761_v30 = vld [vmem:[%s3984_s10 + $0x68] sm:$0xff]  ;;  %v2804_v45 = vsel %vm1273_vm3, %v2799_v1, %v5542_v57 }
 0x54d   : > { %v2217_v63 = vpop.f32.mrf.mxu1  ;;  %v2791_v48 = vrot.slane %v2719_v6, 1  ;;  %v2548_v22 = vrot.slane %v2467_v34, 1  ;;  %v5655_v6 = vrot.slane %v5065_v53, 2  ;;  %v5656_v41 = vrot.slane %v5038_v24, 1 }
 0x54e   : > { %5652 = vst [vmem:[#allocation67_spill] sm:$0xff] %v5115_v32  ;;  %v5134_v13 = vand.u32 2147483647, %v5115_v32  ;;  %v5137_v58 = vsub.f32 %v3761_v30, %v2217_v63  ;;  %2851 = vrot.lane.b32.xlu0 %v2788_v20, %s3772_s12  ;;  %v2800_v20 = vsel %vm1273_vm3, %v2795_v62, %v2799_v1  ;;  %v2544_v30 = vrot.slane %v2465_v60, 1 }
 0x54f   : > { %2596 = vrot.lane.b32.xlu1 %v2533_v61, %s3771_s11  ;;  %v2552_v32 = vrot.slane %v2469_v23, 1  ;;  %v5541_v61 = vrot.slane %v5125_v11, 1  ;;  %v2792_v23 = vsel %vm1273_vm3, %v2787_v26, %v2791_v48  ;;  %v5543_v60 = vrot.slane %v5143_v33, 2 }
 0x550   : > { %5654 = vst [vmem:[#allocation68_spill] sm:$0xff] %v5137_v58  ;;  %2276 = vst [vmem:[#allocation2 + $0x188] sm:$0xff] %v5134_v13  ;;  %v5149_v63 = vand.u32 2147483647, %v5137_v58  ;;  %v5159_v58 = vmul.f32 0.1493, %v5084_v7  ;;  %v2371_v38 = vsel %vm1125_vm4, %v5655_v6, %v2370_v3  ;;  %v2545_v17 = vsel %vm1273_vm3, %v5656_v41, %v2544_v30 }
 0x551   : > { %v2796_v34 = vsel %vm1273_vm3, %v2791_v48, %v2795_v62  ;;  %v2557_v26 = vsel %vm1273_vm3, %v2552_v32, %v5541_v61  ;;  %v5657_v6 = vrot.slane %v5131_v28, 1  ;;  %v5187_v41 = vmul.f32 0.146, %v5097_v12 }
 0x552   : > { %2863 = vrot.lane.b32.xlu0 %v2800_v20, %s3772_s12  ;;  %v2295_v20 = vmul.f32 0.1015, %v4969_v49  ;;  %v5658_v49 = vrot.slane %v5128_v39, 1  ;;  %v2366_v48 = vrot.slane %v2332_v5, 2  ;;  %v2549_v1 = vsel %vm1273_vm3, %v2544_v30, %v2548_v22 }
 0x553   : > { %2600 = vrot.lane.b32.xlu1 %v2537_v0, %s3771_s11  ;;  %v5176_v0 = vadd.f32 %v2371_v38, %v2297_v42  ;;  %v2553_v42 = vsel %vm1273_vm3, %v2548_v22, %v2552_v32  ;;  %v5194_v38 = vmul.f32 0.146, %v5112_v59  ;;  %v2296_v5 = vmul.f32 0.1015, %v4987_v40 }
 0x554   : > { %v2816_v24 = vsel %vm1273_vm3, %v5658_v49, %v5657_v6  ;;  %v2367_v6 = vsel %vm1125_vm4, %v5543_v60, %v2366_v48  ;;  %v2335_v49 = vmul.f32 0.1011, %v5008_v8  ;;  %v2298_v22 = vmul.f32 0.1015, %v4976_v55 }
 0x555   : > { %v5205_v32 = vadd.f32 %v2367_v6, %v2295_v20  ;;  %v2337_v61 = vmul.f32 0.1011, %v4997_v56  ;;  %v2301_v60 = vmul.f32 0.1015, %v4997_v56  ;;  %v2299_v20 = vmul.f32 0.1015, %v5008_v8 }
 0x556   : > { %2855 = vrot.lane.b32.xlu0 %v2792_v23, %s3772_s12  ;;  %v5659_v23 = vrot.slane %v5065_v53, 2  ;;  %v2372_v57 = vrot.slane %v2335_v49, 2  ;;  %v2374_v6 = vrot.slane %v2336_v37, 2  ;;  %v2302_v49 = vmul.f32 0.1015, %v5017_v9 }
 0x557   : > { %2608 = vrot.lane.b32.xlu1 %v2545_v17, %s3771_s11  ;;  %v2338_v17 = vmul.f32 0.1011, %v5017_v9  ;;  %v2376_v40 = vrot.slane %v2337_v61, 2  ;;  %v2341_v61 = vmul.f32 0.1011, %v5041_v50 }
 0x558   : > { %v2369_v30 = vsel %vm1125_vm4, %v2366_v48, %v5659_v23  ;;  %v2300_v48 = vmul.f32 0.1015, %v5029_v25  ;;  %v2373_v55 = vsel %vm1125_vm4, %v2370_v3, %v2372_v57  ;;  %v2375_v25 = vsel %vm1125_vm4, %v2372_v57, %v2374_v6 }
 0x559   : > { %v5210_v62 = vadd.f32 %v2369_v30, %v2296_v5  ;;  %v2378_v53 = vrot.slane %v2338_v17, 2  ;;  %v2339_v5 = vmul.f32 0.1011, %v5051_v29  ;;  %v5221_v56 = vadd.f32 %v2373_v55, %v2298_v22 }
 0x55a   : > { %2859 = vrot.lane.b32.xlu0 %v2796_v34, %s3772_s12  ;;  %v2342_v34 = vmul.f32 0.1011, %v5068_v31  ;;  %v5231_v37 = vadd.f32 %v2375_v25, %v2299_v20  ;;  %v2384_v30 = vrot.slane %v2341_v61, 2  ;;  %v5237_v17 = vmul.f32 0.1493, %v5112_v59 }
 0x55b   : > { %2620 = vrot.lane.b32.xlu1 %v2557_v26, %s3771_s11  ;;  %v2379_v23 = vsel %vm1125_vm4, %v2376_v40, %v2378_v53  ;;  %v2377_v26 = vsel %vm1125_vm4, %v2374_v6, %v2376_v40  ;;  %v2380_v3 = vrot.slane %v2339_v5, 2  ;;  %v2305_v57 = vmul.f32 0.1015, %v5041_v50 }
 0x55c   : > { %v5226_v8 = vadd.f32 %v2379_v23, %v2301_v60  ;;  %v5233_v9 = vadd.f32 %v2377_v26, %v2300_v48  ;;  %v2386_v22 = vrot.slane %v2342_v34, 2  ;;  %v2340_v40 = vmul.f32 0.1011, %v5084_v7 }
 0x55d   : > { %v2381_v60 = vsel %vm1125_vm4, %v2378_v53, %v2380_v3  ;;  %v2303_v20 = vmul.f32 0.1015, %v5051_v29  ;;  %v2343_v48 = vmul.f32 0.1011, %v5112_v59  ;;  %v2304_v5 = vmul.f32 0.1015, %v5084_v7 }
 0x55e   : > { %2867 = vrot.lane.b32.xlu0 %v2804_v45, %s3772_s12  ;;  %v5242_v55 = vadd.f32 %v2381_v60, %v2302_v49  ;;  %v2387_v45 = vsel %vm1125_vm4, %v2384_v30, %v2386_v22  ;;  %v5251_v23 = vmul.f32 0.1011, %v5134_v13  ;;  %v2560_v50 = vrot.slane %v5194_v38, 1 }
 0x55f   : > { %2612 = vrot.lane.b32.xlu1 %v2549_v1, %s3771_s11  ;;  %v5247_v6 = vadd.f32 %v2387_v45, %v2305_v57  ;;  %v2382_v1 = vrot.slane %v2340_v40, 2  ;;  %v2306_v53 = vmul.f32 0.1015, %v5068_v31  ;;  %v2388_v49 = vrot.slane %v2343_v48, 2 }
 0x560   : > { %v2345_v61 = vmul.f32 0.1011, %v5097_v12  ;;  %v2394_v7 = vrot.slane %v5251_v23, 2  ;;  %v2309_v25 = vmul.f32 0.1015, %v5097_v12  ;;  %v5660_v60 = vrot.slane %v5159_v58, 1 }
 0x561   : > { %v2383_v29 = vsel %vm1125_vm4, %v2380_v3, %v2382_v1  ;;  %v2385_v34 = vsel %vm1125_vm4, %v2382_v1, %v2384_v30  ;;  %v2389_v38 = vsel %vm1125_vm4, %v2386_v22, %v2388_v49  ;;  %v5661_v57 = vrot.slane %v5119_v15, 1 }
 0x562   : > { %2879 = vrot.lane.b32.xlu0 %v2816_v24, %s3772_s12  ;;  %v5262_v26 = vadd.f32 %v2383_v29, %v2303_v20  ;;  %v5264_v24 = vadd.f32 %v2385_v34, %v2304_v5  ;;  %v2392_v31 = vrot.slane %v2345_v61, 2  ;;  %v2479_v3 = vmul.f32 0.146, %v5134_v13 }
 0x563   : > { %2616 = vrot.lane.b32.xlu1 %v2553_v42, %s3771_s11  ;;  %v2808_v42 = vsel %vm1273_vm3, %v5661_v57, %v5660_v60  ;;  %v5273_v30 = vadd.f32 %v2389_v38, %v2306_v53  ;;  %v2344_v40 = vmul.f32 0.1011, %v5149_v63  ;;  %v5662_v45 = vrot.slane %v5125_v11, 1 }
 0x564   : > { %v2395_v22 = vsel %vm1125_vm4, %v2392_v31, %v2394_v7  ;;  %v2307_v15 = vmul.f32 0.1015, %v5112_v59  ;;  %v2308_v48 = vmul.f32 0.1015, %v5149_v63  ;;  %v5663_v53 = vrot.slane %v5128_v39, 1 }
 0x565   : > { %v2561_v20 = vsel %vm1273_vm3, %v5662_v45, %v2560_v50  ;;  %v5286_v1 = vadd.f32 %v2395_v22, %v2309_v25  ;;  %v2390_v5 = vrot.slane %v2344_v40, 2  ;;  %v5664_v61 = vmov %v5660_v60 }
 0x566   : > { %2871 = vrot.lane.b32.xlu0 %v2808_v42, %s3772_s12  ;;  %v2812_v11 = vsel %vm1273_vm3, %v5664_v61, %v5663_v53  ;;  %v2819_v29 = vrot.slane %v5237_v17, 1  ;;  %v2737_v34 = vmul.f32 0.1493, %v5097_v12  ;;  %v2572_v38 = vrot.slane %v2479_v3, 1  ;;  %v5667_v61 = vld [vmem:[#allocation4_spill] sm:$0xff] }
 0x567   : > { %2624 = vrot.lane.b32.xlu1 %v2561_v20, %s3771_s11  ;;  %v2739_v59 = vmul.f32 0.1493, %v5134_v13  ;;  %v2391_v60 = vsel %vm1125_vm4, %v2388_v49, %v2390_v5  ;;  %v2393_v57 = vsel %vm1125_vm4, %v2390_v5, %v2392_v31  ;;  %v2568_v25 = vrot.slane %v5187_v41, 1 }
 0x568   : > { %v2475_v39 = vmul.f32 0.146, %v5149_v63  ;;  %v5301_v58 = vadd.f32 %v2391_v60, %v2307_v15  ;;  %v5303_v42 = vadd.f32 %v2393_v57, %v2308_v48  ;;  %v5665_v12 = vrot.slane %v5131_v28, 1  ;;  %v5666_v15 = vld [vmem:[#allocation3_spill] sm:$0xff] }
 0x569   : > { %v2827_v17 = vrot.slane %v2737_v34, 1  ;;  %v2831_v49 = vrot.slane %v2739_v59, 1  ;;  %v2735_v31 = vmul.f32 0.1493, %v5149_v63  ;;  %v2573_v41 = vsel %vm1273_vm3, %v2568_v25, %v2572_v38 }
 0x56a   : > { %2875 = vrot.lane.b32.xlu0 %v2812_v11, %s3772_s12  ;;  %v2820_v13 = vsel %vm1273_vm3, %v5665_v12, %v2819_v29  ;;  %v2564_v3 = vrot.slane %v2475_v39, 1  ;;  %v5668_v34 = vrot.slane %v5143_v33, 2  ;;  %v5669_v39 = vld [vmem:[#allocation6_spill] sm:$0xff] }
 0x56b   : > { %2640 = vrot.lane.b32.xlu1 %v2572_v38, %s3771_s11  ;;  %v2832_v40 = vsel %vm1273_vm3, %v2827_v17, %v2831_v49  ;;  %v2823_v45 = vrot.slane %v2735_v31, 1 }
 0x56c   : > { %v2565_v28 = vsel %vm1273_vm3, %v2560_v50, %v2564_v3  ;;  %v2569_v63 = vsel %vm1273_vm3, %v2564_v3, %v2568_v25  ;;  %v2277_v50 = vld [vmem:[#allocation2 + $0x8] sm:$0x80] }
 0x56d   : > { %v2824_v20 = vsel %vm1273_vm3, %v2819_v29, %v2823_v45  ;;  %v2828_v22 = vsel %vm1273_vm3, %v2823_v45, %v2827_v17  ;;  %v2294_v53 = vmul.f32 0.1015, %v2277_v50  ;;  %v5670_v17 = vld [vmem:[#allocation9_spill] sm:$0xff] }
 0x56e   : > { %2883 = vrot.lane.b32.xlu0 %v2820_v13, %s3772_s12 }
 0x56f   : > { %2636 = vrot.lane.b32.xlu1 %v2573_v41, %s3771_s11  ;;  %v2415_v38 = vadd.f32 %v5668_v34, %v2294_v53  ;;  %v5671_v41 = vld [vmem:[#allocation12_spill] sm:$0xff]  ;;  %v5674_v53 = vld [vmem:[#allocation11_spill] sm:$0xff] }
 0x572   : > { %2895 = vrot.lane.b32.xlu0 %v2832_v40, %s3772_s12  ;;  %v5672_v40 = vld [vmem:[#allocation5_spill] sm:$0xff] }
 0x573   : > { %2628 = vrot.lane.b32.xlu1 %v2565_v28, %s3771_s11 }
 0x576   : > { %2887 = vrot.lane.b32.xlu0 %v2824_v20, %s3772_s12 }
 0x577   : > { %2632 = vrot.lane.b32.xlu1 %v2569_v63, %s3771_s11 }
 0x57a   : > { %2891 = vrot.lane.b32.xlu0 %v2828_v22, %s3772_s12  ;;  %v5673_v22 = vld [vmem:[#allocation8_spill] sm:$0xff] }
 0x57b   : > { %1663 = vrot.lane.b32.xlu1 %v5666_v15, %s3772_s12 }
 0x57e   : > { %2899 = vrot.lane.b32.xlu0 %v2831_v49, %s3772_s12 }
 0x57f   : > { %2901 = vrot.lane.b32.xlu1 %v5666_v15, %s3772_s12 }
 0x5ac   : > { %v2577_v48 = vpop.permute.xlu0 %2576 }
 0x5ad   : > { %v2836_v5 = vpop.permute.xlu1 %2835  ;;  %v2642_v11 = vsel %vm367_vm2, %v5667_v61, %v2577_v48 }
 0x5ae   : > { %v2676_v60 = vadd.f32 %v2642_v11, %v2415_v38  ;;  %v2903_v12 = vsel %vm1665_vm5, %v2836_v5, %v5669_v39  ;;  %v5675_v11 = vld [vmem:[#allocation7_spill] sm:$0xff] }
 0x5b0   : > { %v2589_v29 = vpop.permute.xlu0 %2588  ;;  %v2937_v13 = vadd.f32 %v2903_v12, %v2676_v60 }
 0x5b1   : > { %v2840_v59 = vpop.permute.xlu1 %2839  ;;  %v2645_v49 = vsel %vm367_vm2, %v5670_v17, %v2589_v29 }
 0x5b2   : > { %v2679_v28 = vadd.f32 %v2645_v49, %v5176_v0  ;;  %v2954_v63 = vadd.f32 0.0248, %v2937_v13  ;;  %v2904_v15 = vsel %vm1665_vm5, %v2840_v59, %v5673_v22  ;;  %v5677_v49 = vld [vmem:[#allocation15_spill] sm:$0xff] }
 0x5b4   : > { %v2848_v57 = vpop.permute.xlu0 %2847  ;;  %v2988_v0 = vrot.slane %v2954_v63, 7 }
 0x5b5   : > { %v2844_v25 = vpop.permute.xlu1 %2843  ;;  %v2906_v3 = vsel %vm1665_vm5, %v2848_v57, %v5671_v41  ;;  %v5676_v57 = vld [vmem:[#allocation10_spill] sm:$0xff] }
 0x5b6   : > { %v2940_v50 = vadd.f32 %v2906_v3, %v2679_v28 }
 0x5b8   : > { %v2581_v31 = vpop.permute.xlu0 %2580  ;;  %v2957_v39 = vadd.f32 0.0248, %v2940_v50 }
 0x5b9   : > { %v2643_v45 = vsel %vm367_vm2, %v5672_v40, %v2581_v31  ;;  %v2593_v33 = vpop.permute.xlu1 %2592 }
 0x5ba   : > { %v2677_v20 = vadd.f32 %v2643_v45, %v5205_v32  ;;  %v2646_v61 = vsel %vm367_vm2, %v5674_v53, %v2593_v33  ;;  %v2905_v32 = vsel %vm1665_vm5, %v2844_v25, %v5676_v57  ;;  %v2993_v25 = vrot.slane %v2957_v39, 7 }
 0x5bb   : > { %v2680_v59 = vadd.f32 %v2646_v61, %v5221_v56 }
 0x5bc   : > { %v2938_v48 = vadd.f32 %v2904_v15, %v2677_v20  ;;  %v2585_v5 = vpop.permute.xlu0 %2584  ;;  %v5679_v20 = vld [vmem:[#allocation14_spill] sm:$0xff] }
 0x5bd   : > { %v2644_v29 = vsel %vm367_vm2, %v5675_v11, %v2585_v5  ;;  %v2605_v34 = vpop.permute.xlu1 %2604  ;;  %v5681_v11 = vld [vmem:[#allocation18_spill] sm:$0xff] }
 0x5be   : > { %v2955_v38 = vadd.f32 0.0248, %v2938_v48  ;;  %v2678_v60 = vadd.f32 %v2644_v29, %v5210_v62  ;;  %v2649_v28 = vsel %vm367_vm2, %v5678_v10, %v2605_v34  ;;  %v5682_v34 = vld [vmem:[#allocation19_spill] sm:$0xff] }
 0x5bf   : > { %v2683_v5 = vadd.f32 %v2649_v28, %v5226_v8  ;;  %v5686_v28 = vld [vmem:[#allocation45_spill] sm:$0xff] }
 0x5c0   : > { %v2989_v12 = vrot.slane %v2955_v38, 7  ;;  %v2939_v13 = vadd.f32 %v2905_v32, %v2678_v60  ;;  %v2852_v17 = vpop.permute.xlu0 %2851 }
 0x5c1   : > { %v2907_v31 = vsel %vm1665_vm5, %v2852_v17, %v5677_v49  ;;  %v2597_v41 = vpop.permute.xlu1 %2596  ;;  %v3662_v49 = vpop.eup %3661 }
 0x5c2   : > { %v2990_v62 = vsel %vm1751_vm6, %v2988_v0, %v2989_v12  ;;  %v2956_v3 = vadd.f32 0.0248, %v2939_v13  ;;  %v2941_v40 = vadd.f32 %v2907_v31, %v2680_v59  ;;  %v2647_v63 = vsel %vm367_vm2, %v5679_v20, %v2597_v41  ;;  %v5684_v59 = vld [vmem:[#allocation28_spill] sm:$0xff] }
 0x5c3   : > { %3665 = vrcp.f32 %v2990_v62  ;;  %v2681_v53 = vadd.f32 %v2647_v63, %v5231_v37 }
 0x5c4   : > { %3667 = vrcp.f32 %v4844_v54  ;;  %v2991_v45 = vrot.slane %v2956_v3, 7  ;;  %v2958_v56 = vadd.f32 0.0248, %v2941_v40  ;;  %v2864_v33 = vpop.permute.xlu0 %2863  ;;  %v5680_v54 = vld [vmem:[#allocation37_spill] sm:$0xff]  ;;  %v3664_v3 = vpop.eup %3663 }
 0x5c5   : > { %3669 = vrcp.f32 %v4854_v19  ;;  %v2601_v44 = vpop.permute.xlu1 %2600  ;;  %v2910_v48 = vsel %vm1665_vm5, %v2864_v33, %v5680_v54  ;;  %v5685_v33 = vld [vmem:[#allocation21_spill] sm:$0xff] }
 0x5c6   : > { %v2992_v22 = vsel %vm1751_vm6, %v2989_v12, %v2991_v45  ;;  %v2994_v15 = vsel %vm1751_vm6, %v2991_v45, %v2993_v25  ;;  %v2995_v50 = vrot.slane %v2958_v56, 7  ;;  %v2648_v29 = vsel %vm367_vm2, %v5681_v11, %v2601_v44  ;;  %v5683_v12 = vld [vmem:[#allocation36_spill] sm:$0xff] }
 0x5c7   : > { %3671 = vrcp.f32 %v2992_v22  ;;  %v2944_v0 = vadd.f32 %v2910_v48, %v2683_v5  ;;  %v2682_v32 = vadd.f32 %v2648_v29, %v5233_v9  ;;  %v1802_v10 = vmul.f32 %v3662_v49, %v5685_v33 }
 0x5c8   : > { %3673 = vrcp.f32 %v2994_v15  ;;  %v2996_v19 = vsel %vm1751_vm6, %v2993_v25, %v2995_v50  ;;  %v2856_v61 = vpop.permute.xlu0 %2855  ;;  %v5687_v15 = vld [vmem:[#allocation24_spill] sm:$0xff] }
 0x5c9   : > { %3675 = vrcp.f32 %v2996_v19  ;;  %v2908_v38 = vsel %vm1665_vm5, %v2856_v61, %v5682_v34  ;;  %v2609_v60 = vpop.permute.xlu1 %2608  ;;  %v2961_v31 = vadd.f32 0.0248, %v2944_v0  ;;  %v5689_v34 = vld [vmem:[#allocation20_spill] sm:$0xff] }
 0x5ca   : > { %v2942_v57 = vadd.f32 %v2908_v38, %v2681_v53  ;;  %3677 = vrcp.f32 %v4867_v14  ;;  %v2650_v37 = vsel %vm367_vm2, %v5683_v12, %v2609_v60  ;;  %v5688_v53 = vld [vmem:[#allocation44_spill] sm:$0xff]  ;;  %v5690_v60 = vld [vmem:[#allocation22_spill] sm:$0xff] }
 0x5cb   : > { %3679 = vrcp.f32 %v4875_v27  ;;  %v2684_v40 = vadd.f32 %v2650_v37, %v5242_v55  ;;  %v3001_v44 = vrot.slane %v2961_v31, 7 }
 0x5cc   : > { %v2959_v8 = vadd.f32 0.0248, %v2942_v57  ;;  %v2860_v39 = vpop.permute.xlu0 %2859  ;;  %3681 = vrcp.f32 %v4878_v47 }
 0x5cd   : > { %v2909_v13 = vsel %vm1665_vm5, %v2860_v39, %v5684_v59  ;;  %v2621_v17 = vpop.permute.xlu1 %2620  ;;  %3683 = vrcp.f32 %v4886_v4 }
 0x5ce   : > { %v2997_v41 = vrot.slane %v2959_v8, 7  ;;  %v2943_v62 = vadd.f32 %v2909_v13, %v2682_v32  ;;  %v2653_v55 = vsel %vm367_vm2, %v4708_v21, %v2621_v17 }
 0x5cf   : > { %v2687_v39 = vadd.f32 %v2653_v55, %v5247_v6 }
 0x5d0   : > { %v3666_v14 = vpop.eup %3665  ;;  %v2998_v9 = vsel %vm1751_vm6, %v2995_v50, %v2997_v41  ;;  %v2960_v25 = vadd.f32 0.0248, %v2943_v62  ;;  %v2868_v45 = vpop.permute.xlu0 %2867  ;;  %v1804_v50 = vmul.f32 %v3664_v3, %v5687_v15  ;;  %v5693_v15 = vld [vmem:[#allocation30_spill] sm:$0xff] }
 0x5d1   : > { %v3668_v56 = vpop.eup %3667  ;;  %v3038_v27 = vmul.f32 %v3666_v14, %v4966_v16  ;;  %3685 = vrcp.f32 %v2998_v9  ;;  %v2911_v20 = vsel %vm1665_vm5, %v2868_v45, %v5686_v28  ;;  %v2613_v63 = vpop.permute.xlu1 %2612 }
 0x5d2   : > { %v3670_v47 = vpop.eup %3669  ;;  %v2999_v22 = vrot.slane %v2960_v25, 7  ;;  %v2945_v4 = vadd.f32 %v2911_v20, %v2684_v40  ;;  %v2651_v61 = vsel %vm367_vm2, %v5688_v53, %v2613_v63  ;;  %v1806_v38 = vmul.f32 %v3668_v56, %v5689_v34  ;;  %v5691_v56 = vld [vmem:[#allocation26_spill] sm:$0xff]  ;;  %v2330_v34 = vld [vmem:[#allocation2 + $0x1a0] sm:$0x1] }
 0x5d3   : > { %v3069_v54 = vsub.f32 %v1802_v10, %v3038_v27  ;;  %v1808_v0 = vmul.f32 %v3670_v47, %v5690_v60  ;;  %v2685_v13 = vadd.f32 %v2651_v61, %v5262_v26  ;;  %v5692_v47 = vld [vmem:[#allocation49_spill] sm:$0xff] }
 0x5d4   : > { %v3672_v48 = vpop.eup %3671  ;;  %v3000_v5 = vsel %vm1751_vm6, %v2997_v41, %v2999_v22  ;;  %v3002_v16 = vsel %vm1751_vm6, %v2999_v22, %v3001_v44  ;;  %v2962_v19 = vadd.f32 0.0248, %v2945_v4  ;;  %v2880_v11 = vpop.permute.xlu0 %2879  ;;  %v5697_v61 = vld [vmem:[#allocation17_spill] sm:$0xff] }
 0x5d5   : > { %v3674_v29 = vpop.eup %3673  ;;  %v3040_v57 = vmul.f32 %v3672_v48, %v4979_v52  ;;  %3687 = vrcp.f32 %v3000_v5  ;;  %v2617_v32 = vpop.permute.xlu1 %2616  ;;  %v2914_v17 = vsel %vm1665_vm5, %v2880_v11, %v4755_v36  ;;  %v3085_v49 = vmul.f32 %v3069_v54, %v3069_v54  ;;  %v5695_v5 = vld [vmem:[#allocation13_spill] sm:$0xff] }
 0x5d6   : > { %v3676_v21 = vpop.eup %3675  ;;  %v3042_v8 = vmul.f32 %v3674_v29, %v4960_v2  ;;  %3689 = vrcp.f32 %v3002_v16  ;;  %v3003_v12 = vrot.slane %v2962_v19, 7  ;;  %v2652_v41 = vsel %vm367_vm2, %v4624_v51, %v2617_v32  ;;  %v5696_v19 = vld [vmem:[#allocation58_spill] sm:$0xff] }
 0x5d7   : > { %v3070_v37 = vsub.f32 %v1804_v50, %v3040_v57  ;;  %v3044_v59 = vmul.f32 %v3676_v21, %v4972_v46  ;;  %v3678_v62 = vpop.eup %3677  ;;  %v2948_v26 = vadd.f32 %v2914_v17, %v2687_v39  ;;  %v2686_v51 = vadd.f32 %v2652_v41, %v5264_v24  ;;  %v5694_v24 = vld [vmem:[#allocation25_spill] sm:$0xff]  ;;  %v5700_v17 = vld [vmem:[#allocation54_spill] sm:$0xff] }
 0x5d8   : > { %v3071_v31 = vsub.f32 %v1806_v38, %v3042_v8  ;;  %v3004_v52 = vsel %vm1751_vm6, %v3001_v44, %v3003_v12  ;;  %v2872_v2 = vpop.permute.xlu0 %2871  ;;  %v3680_v40 = vpop.eup %3679  ;;  %v1810_v33 = vmul.f32 %v3678_v62, %v5691_v56  ;;  %v5699_v21 = vld [vmem:[#allocation29_spill] sm:$0xff]  ;;  %v5703_v62 = vld [vmem:[#allocation47_spill] sm:$0xff] }
 0x5d9   : > { %v3086_v3 = vmul.f32 %v3070_v37, %v3070_v37  ;;  %v3072_v6 = vsub.f32 %v1808_v0, %v3044_v59  ;;  %3691 = vrcp.f32 %v3004_v52  ;;  %v2912_v46 = vsel %vm1665_vm5, %v2872_v2, %v4626_v18  ;;  %v2625_v14 = vpop.permute.xlu1 %2624  ;;  %v3682_v45 = vpop.eup %3681  ;;  %v5698_v0 = vld [vmem:[#allocation51_spill] sm:$0xff]  ;;  %v5702_v52 = vld [vmem:[#allocation60_spill] sm:$0xff] }
 0x5da   : > { %v2946_v9 = vadd.f32 %v2912_v46, %v2685_v13  ;;  %v3087_v36 = vmul.f32 %v3071_v31, %v3071_v31  ;;  %3693 = vrcp.f32 %v4901_v43  ;;  %v3684_v28 = vpop.eup %3683  ;;  %v2654_v18 = vsel %vm367_vm2, %v4753_v35, %v2625_v14 }
 0x5db   : > { %v3101_v25 = vadd.f32 %v3086_v3, %v3085_v49  ;;  %v3088_v20 = vmul.f32 %v3072_v6, %v3072_v6  ;;  %v1812_v50 = vmul.f32 %v3680_v40, %v5693_v15  ;;  %v2965_v54 = vadd.f32 0.0248, %v2948_v26 }
 0x5dc   : > { %v2963_v10 = vadd.f32 0.0248, %v2946_v9  ;;  %v2876_v27 = vpop.permute.xlu0 %2875  ;;  %v1814_v48 = vmul.f32 %v3682_v45, %v5694_v24  ;;  %3695 = vrcp.f32 %v5695_v5  ;;  %v2688_v11 = vadd.f32 %v2654_v18, %v5273_v30  ;;  %v5701_v30 = vld [vmem:[#allocation23_spill] sm:$0xff] }
 0x5dd   : > { %v3102_v63 = vadd.f32 %v3101_v25, %v3087_v36  ;;  %v2913_v44 = vsel %vm1665_vm5, %v2876_v27, %v5692_v47  ;;  %v5417_v22 = vpop.permute.xlu1 %2640  ;;  %3697 = vrcp.f32 %v5697_v61  ;;  %v1816_v8 = vmul.f32 %v3684_v28, %v5699_v21 }
 0x5de   : > { %v3686_v4 = vpop.eup %3685  ;;  %v3005_v43 = vrot.slane %v2963_v10, 7  ;;  %v2947_v55 = vadd.f32 %v2913_v44, %v2686_v51  ;;  %v3009_v37 = vrot.slane %v2965_v54, 7  ;;  %v2347_v2 = vmul.f32 0.1011, %v2330_v34  ;;  %v5705_v10 = vld [vmem:[#allocation50_spill] sm:$0xff] }
 0x5df   : > { %v3103_v16 = vadd.f32 %v3102_v63, %v3088_v20  ;;  %v3046_v53 = vmul.f32 %v3686_v4, %v5696_v19  ;;  %v5706_v20 = vld [vmem:[#allocation59_spill] sm:$0xff]  ;;  %v2293_v44 = vld [vmem:[#allocation2 + $0x188] sm:$0x7f]  ;;  %v5708_v19 = vld [vmem:[#allocation52_spill] sm:$0xff] }
 0x5e0   : > { %v3006_v35 = vsel %vm1751_vm6, %v3003_v12, %v3005_v43  ;;  %v2964_v29 = vadd.f32 0.0248, %v2947_v55  ;;  %v2884_v38 = vpop.permute.xlu0 %2883  ;;  %v2396_v4 = vrot.slane %v2347_v2, 2 }
 0x5e1   : > { %v3073_v60 = vsub.f32 %v1810_v33, %v3046_v53  ;;  %3699 = vrcp.f32 %v3006_v35  ;;  %v2915_v57 = vsel %vm1665_vm5, %v2884_v38, %v5698_v0  ;;  %v2637_v32 = vpop.permute.xlu1 %2636  ;;  %v5704_v33 = vld [vmem:[#allocation57_spill] sm:$0xff] }
 0x5e2   : > { %v3688_v39 = vpop.eup %3687  ;;  %v3007_v59 = vrot.slane %v2964_v29, 7  ;;  %v2949_v13 = vadd.f32 %v2915_v57, %v2688_v11  ;;  %v2657_v12 = vsel %vm367_vm2, %v5700_v17, %v2637_v32  ;;  %3701 = vrcp.f32 %v5701_v30  ;;  %v5709_v32 = vld [vmem:[#allocation56_spill] sm:$0xff] }
 0x5e3   : > { %v3690_v49 = vpop.eup %3689  ;;  %v3089_v31 = vmul.f32 %v3073_v60, %v3073_v60  ;;  %v3048_v41 = vmul.f32 %v3688_v39, %v5702_v52  ;;  %v2691_v40 = vadd.f32 %v2657_v12, %v5286_v1  ;;  %v2397_v34 = vsel %vm1125_vm4, %v2394_v7, %v2396_v4  ;;  %v5710_v39 = vld [vmem:[#allocation55_spill] sm:$0xff] }
 0x5e4   : > { %v3050_v3 = vmul.f32 %v3690_v49, %v5703_v62  ;;  %v3008_v6 = vsel %vm1751_vm6, %v3005_v43, %v3007_v59  ;;  %v3010_v46 = vsel %vm1751_vm6, %v3007_v59, %v3009_v37  ;;  %v2966_v14 = vadd.f32 0.0248, %v2949_v13  ;;  %v2896_v26 = vpop.permute.xlu0 %2895  ;;  %v5707_v43 = vld [vmem:[#allocation53_spill] sm:$0xff]  ;;  %v5712_v49 = vld [vmem:[#allocation32_spill] sm:$0xff] }
 0x5e5   : > { %v3074_v9 = vsub.f32 %v1812_v50, %v3048_v41  ;;  %3703 = vrcp.f32 %v3008_v6  ;;  %v2629_v36 = vpop.permute.xlu1 %2628  ;;  %v3104_v25 = vadd.f32 %v3103_v16, %v3089_v31  ;;  %v2918_v51 = vsel %vm1665_vm5, %v2896_v26, %v5704_v33  ;;  %v5713_v31 = vld [vmem:[#allocation42_spill] sm:$0xff]  ;;  %v5714_v41 = vld [vmem:[#allocation16_spill] sm:$0xff] }
 0x5e6   : > { %v3692_v45 = vpop.eup %3691  ;;  %3705 = vrcp.f32 %v3010_v46  ;;  %v3011_v56 = vrot.slane %v2966_v14, 7  ;;  %v2655_v27 = vsel %vm367_vm2, %v5705_v10, %v2629_v36  ;;  %v3075_v47 = vsub.f32 %v1814_v48, %v3050_v3  ;;  %v5716_v26 = vld [vmem:[#allocation38_spill] sm:$0xff] }
 0x5e7   : > { %v3090_v28 = vmul.f32 %v3074_v9, %v3074_v9  ;;  %v3052_v63 = vmul.f32 %v3692_v45, %v5706_v20  ;;  %v2689_v18 = vadd.f32 %v2655_v27, %v5301_v58  ;;  %v3694_v50 = vpop.eup %3693  ;;  %v2952_v54 = vadd.f32 %v2918_v51, %v2691_v40  ;;  %v5717_v40 = vld [vmem:[#allocation34_spill] sm:$0xff]  ;;  %v5718_v27 = vld [vmem:[#allocation41_spill] sm:$0xff] }
 0x5e8   : > { %v3012_v1 = vsel %vm1751_vm6, %v3009_v37, %v3011_v56  ;;  %v2888_v15 = vpop.permute.xlu0 %2887  ;;  %v3091_v61 = vmul.f32 %v3075_v47, %v3075_v47  ;;  %v2310_v48 = vmul.f32 0.1015, %v2293_v44  ;;  %v2658_v21 = vsel %vm367_vm2, %v5709_v32, %v5417_v22  ;;  %v5715_v22 = vld [vmem:[#allocation62_spill] sm:$0xff]  ;;  %v5719_v44 = vld [vmem:[#allocation64_spill] sm:$0xff] }
 0x5e9   : > { %3707 = vrcp.f32 %v3012_v1  ;;  %v2916_v55 = vsel %vm1665_vm5, %v2888_v15, %v5707_v43  ;;  %v2633_v24 = vpop.permute.xlu1 %2632  ;;  %v3076_v5 = vsub.f32 %v1816_v8, %v3052_v63  ;;  %v3105_v58 = vadd.f32 %v3104_v25, %v3090_v28  ;;  %v3696_v29 = vpop.eup %3695  ;;  %v5720_v15 = vld [vmem:[#allocation48_spill] sm:$0xff]  ;;  %v5721_v43 = vld [vmem:[#allocation61_spill] sm:$0xff] }
 0x5ea   : > { %v2950_v16 = vadd.f32 %v2916_v55, %v2689_v18  ;;  %v2656_v53 = vsel %vm367_vm2, %v5708_v19, %v2633_v24  ;;  %v3698_v57 = vpop.eup %3697  ;;  %v2969_v8 = vadd.f32 0.0248, %v2952_v54  ;;  %3709 = vrcp.f32 %v5713_v31  ;;  %v5722_v24 = vld [vmem:[#allocation31_spill] sm:$0xff] }
 0x5eb   : > { %v2690_v35 = vadd.f32 %v2656_v53, %v5303_v42  ;;  %v3092_v11 = vmul.f32 %v3076_v5, %v3076_v5  ;;  %v3106_v0 = vadd.f32 %v3105_v58, %v3091_v61  ;;  %v5711_v42 = vld [vmem:[#allocation33_spill] sm:$0xff]  ;;  %v2431_v52 = vadd.f32 %v2397_v34, %v2310_v48  ;;  %v5725_v34 = vld [vmem:[#allocation63_spill] sm:$0xff] }
 0x5ec   : > { %v2967_v38 = vadd.f32 0.0248, %v2950_v16  ;;  %v2892_v60 = vpop.permute.xlu0 %2891  ;;  %v1818_v13 = vmul.f32 %v3694_v50, %v5711_v42  ;;  %v1820_v9 = vmul.f32 %v3696_v29, %v5716_v26  ;;  %v1822_v36 = vmul.f32 %v3698_v57, %v5717_v40 }
 0x5ed   : > { %v2917_v37 = vsel %vm1665_vm5, %v2892_v60, %v5710_v39  ;;  %v1664_v59 = vpop.permute.xlu1 %1663  ;;  %v3107_v30 = vadd.f32 %v3106_v0, %v3092_v11  ;;  %v2692_v25 = vadd.f32 %v2658_v21, %v2431_v52  ;;  %v3017_v28 = vrot.slane %v2969_v8, 7  ;;  %v5724_v11 = vld [vmem:[#allocation35_spill] sm:$0xff] }
 0x5ee   : > { %v3700_v17 = vpop.eup %3699  ;;  %v3013_v12 = vrot.slane %v2967_v38, 7  ;;  %v2951_v23 = vadd.f32 %v2917_v37, %v2690_v35  ;;  %v1682_v7 = vsel %vm1665_vm5, %v5712_v49, %v1664_v59  ;;  %v5723_v5 = vrot.slane %v5722_v24, 7 }
 0x5ef   : > { %v1716_v2 = vadd.f32 %v1682_v7, %v5714_v41  ;;  %v3054_v62 = vmul.f32 %v3700_v17, %v5715_v22  ;;  %v3702_v3 = vpop.eup %3701  ;;  %v5726_v17 = vld [vmem:[#allocation39_spill] sm:$0xff]  ;;  %v5728_v41 = vld [vmem:[#allocation46_spill] sm:$0xff]  ;;  %v5729_v22 = vld [vmem:[#allocation68_spill] sm:$0xff] }
 0x5f0   : > { %v3014_v6 = vsel %vm1751_vm6, %v3011_v56, %v3013_v12  ;;  %v2968_v46 = vadd.f32 0.0248, %v2951_v23  ;;  %v2900_v14 = vpop.permute.xlu0 %2899  ;;  %v1824_v29 = vmul.f32 %v3702_v3, %v5724_v11  ;;  %v5727_v23 = vld [vmem:[#allocation66_spill] sm:$0xff] }
 0x5f1   : > { %3711 = vrcp.f32 %v3014_v6  ;;  %v1733_v45 = vadd.f32 0.0248, %v1716_v2  ;;  %v2902_v33 = vpop.permute.xlu1 %2901  ;;  %v3077_v51 = vsub.f32 %v1818_v13, %v3054_v62  ;;  %v5730_v6 = vld [vmem:[#allocation43_spill] sm:$0xff] }
 0x5f2   : > { %v3704_v10 = vpop.eup %3703  ;;  %3713 = vrcp.f32 %v5718_v27  ;;  %v3015_v20 = vrot.slane %v2968_v46, 7  ;;  %v2919_v63 = vsel %vm1665_vm5, %v2900_v14, %v2902_v33  ;;  %v5731_v14 = vld [vmem:[#allocation65_spill] sm:$0xff]  ;;  %v5733_v27 = vld [vmem:[#allocation67_spill] sm:$0xff] }
 0x5f3   : > { %v3706_v18 = vpop.eup %3705  ;;  %v1783_v56 = vrot.slane %v1733_v45, 7  ;;  %v2953_v47 = vadd.f32 %v2919_v63, %v2692_v25  ;;  %v3056_v4 = vmul.f32 %v3704_v10, %v5719_v44  ;;  %v3093_v1 = vmul.f32 %v3077_v51, %v3077_v51  ;;  %v5732_v51 = vld [vmem:[#allocation40_spill] sm:$0xff] }
 0x5f4   : > { %3715 = vrcp.f32 %v5720_v15  ;;  %v3016_v50 = vsel %vm1751_vm6, %v3013_v12, %v3015_v20  ;;  %v3018_v54 = vsel %vm1751_vm6, %v3015_v20, %v3017_v28  ;;  %v3058_v55 = vmul.f32 %v3706_v18, %v5721_v43 }
 0x5f5   : > { %3717 = vrcp.f32 %v3016_v50  ;;  %v1784_v16 = vsel %vm1751_vm6, %v5723_v5, %v1783_v56  ;;  %v2970_v19 = vadd.f32 0.0248, %v2953_v47  ;;  %v3078_v53 = vsub.f32 %v1820_v9, %v3056_v4 }
 0x5f6   : > { %v3708_v61 = vpop.eup %3707  ;;  %3719 = vrcp.f32 %v3018_v54  ;;  %v3079_v58 = vsub.f32 %v1822_v36, %v3058_v55  ;;  %v3108_v48 = vadd.f32 %v3107_v30, %v3093_v1 }
 0x5f7   : > { %v3019_v35 = vrot.slane %v2970_v19, 7  ;;  %v3060_v38 = vmul.f32 %v3708_v61, %v5725_v34  ;;  %v3094_v60 = vmul.f32 %v3078_v53, %v3078_v53  ;;  %3721 = vrcp.f32 %v1784_v16  ;;  %v3710_v37 = vpop.eup %3709 }
 0x5f8   : > { %v3095_v32 = vmul.f32 %v3079_v58, %v3079_v58  ;;  %v1826_v12 = vmul.f32 %v3710_v37, %v5726_v17 }
 0x5f9   : > { %v3020_v0 = vsel %vm1751_vm6, %v3017_v28, %v3019_v35  ;;  %v3080_v57 = vsub.f32 %v1824_v29, %v3060_v38  ;;  %v3109_v21 = vadd.f32 %v3108_v48, %v3094_v60 }
 0x5fa   : > { %3723 = vrcp.f32 %v3020_v0 }
 0x5fb   : > { %v3096_v8 = vmul.f32 %v3080_v57, %v3080_v57  ;;  %v3110_v39 = vadd.f32 %v3109_v21, %v3095_v32 }
 0x5fd   : > { %v3111_v59 = vadd.f32 %v3110_v39, %v3096_v8 }
 0x5fe   : > { %v3712_v42 = vpop.eup %3711 }
 0x5ff   : > { %v3714_v13 = vpop.eup %3713  ;;  %v3062_v49 = vmul.f32 %v3712_v42, %v5727_v23 }
 0x600   : > { %v1828_v2 = vmul.f32 %v3714_v13, %v5728_v41 }
 0x601   : > { %v3716_v7 = vpop.eup %3715  ;;  %v3081_v30 = vsub.f32 %v1826_v12, %v3062_v49 }
 0x602   : > { %v3718_v31 = vpop.eup %3717  ;;  %v1830_v46 = vmul.f32 %v3716_v7, %v5730_v6 }
 0x603   : > { %v3720_v52 = vpop.eup %3719  ;;  %v3064_v62 = vmul.f32 %v3718_v31, %v5729_v22  ;;  %v3097_v3 = vmul.f32 %v3081_v30, %v3081_v30 }
 0x604   : > { %v3066_v26 = vmul.f32 %v3720_v52, %v5731_v14  ;;  %v3722_v9 = vpop.eup %3721 }
 0x605   : > { %v3082_v40 = vsub.f32 %v1828_v2, %v3064_v62  ;;  %v3112_v36 = vadd.f32 %v3111_v59, %v3097_v3  ;;  %v1832_v10 = vmul.f32 %v3722_v9, %v5732_v51 }
 0x606   : > { %v3083_v25 = vsub.f32 %v1830_v46, %v3066_v26 }
 0x607   : > { %v3724_v45 = vpop.eup %3723  ;;  %v3098_v33 = vmul.f32 %v3082_v40, %v3082_v40 }
 0x608   : > { %v3068_v28 = vmul.f32 %v3724_v45, %v5733_v27  ;;  %v3099_v20 = vmul.f32 %v3083_v25, %v3083_v25 }
 0x609   : > { %v3113_v63 = vadd.f32 %v3112_v36, %v3098_v33 }
 0x60a   : > { %v3084_v18 = vsub.f32 %v1832_v10, %v3068_v28 }
 0x60b   : > { %v3114_v56 = vadd.f32 %v3113_v63, %v3099_v20 }
 0x60c   : > { %v3100_v47 = vmul.f32 %v3084_v18, %v3084_v18 }
 0x60e   : > { %v3115_v44 = vadd.f32 %v3114_v56, %v3100_v47 }
 0x610   : > { %3116 = vadd.xlane.f32.xlu0 %v3115_v44 }
 0x699   : > { %v3117_v4 = vpop.xlane.xlu0 %3116 }
 0x69a   : > { %v3118_v1 = vrot.slane %v3117_v4, 4 }
 0x69c   : > { %v3119_v15 = vadd.f32 %v3118_v1, %v3117_v4 }
 0x69e   : > { %v3120_v50 = vrot.slane %v3119_v15, 2 }
 0x6a0   : > { %v3121_v54 = vadd.f32 %v3120_v50, %v3119_v15 }
 0x6a2   : > { %v3122_v43 = vrot.slane %v3121_v54, 1 }
 0x6a4   : > { %v3123_v55 = vadd.f32 %v3122_v43, %v3121_v54 }
 0x6a6   : > { %3624 = vpush %v3123_v55 }
 0x6d7   : > { %s3625_s10 = spop %3624 }
 0x6d8   : > { %v3125_v24 = vstv %s3625_s10 }
 0x6d9   : > { %v3126_v5 = vmul.f32 6.1035156e-05, %v3125_v24 }
 0x6db   : > { %3725 = vrsqrt.f32 %v3126_v5  ;;  %vm3129_vm7 = vcmp.eq.f32.partialorder %v3126_v5, inf  ;;  %v3132_v53 = vand.u32 2147483648, %v3126_v5  ;;  %vm3131_vm9 = vcmp.eq.f32.partialorder %v3126_v5, 0.0 }
 0x6e8   : > { %v3726_v16 = vpop.eup %3725 }
 0x6e9   : > { %v3128_v19 = vmul.f32 %v3726_v16, %v3126_v5 }
 0x6eb   : > { %v3130_v61 = vsel %vm3129_vm7, %v3126_v5, %v3128_v19 }
 0x6ec   : > { %v3133_v58 = vsel %vm3131_vm9, %v3132_v53, %v3130_v61 }
 0x6ed   : > { %3135 = vst.msk [vmem:[%s346_s13] sm:$0x1] %vm3134_vm8, %v3133_v58 }
 0x6ee PF: > { %s19_s27 = sadd.s32 1, %s3768_s27  }
 0x6ef   : > { %p16_p4 = scmp.ge.s32.totalorder %s19_s27, 4  }
 0x6f1   :  { %18 = sbr.rel (!%p16_p4) target bundleno = 1 (0x1), region = 101 }

// kernel: nlpd_forward.3
= control target key start
LH: loop header
LB: loop body
LE: loop exit
PB: predicated region body
PF: predicated region fallthrough
CT: control target
= control target key end

     0   :  { %s6915_s0 = inlined_call_operand.vmem [shape: f32[32,64], index: 0, kind: input, shape index: {}]   ;;  %s6916_s1 = inlined_call_operand.vmem [shape: f32[64,32], index: 1, kind: input, shape index: {}]   ;;  %s6917_s16 = inlined_call_operand.vmem [shape: f32[2,64,64], index: 16, kind: input, shape index: {}]   ;;  %s6918_s17 = inlined_call_operand.vmem [shape: f32[2,64,64], index: 17, kind: input, shape index: {}]   ;;  %s6919_s18 = inlined_call_operand.vmem [shape: f32[2,1,5], index: 18, kind: output, shape index: {}]   ;;  %s6920_s2 = inlined_call_operand.vmem [shape: f32[64,32], index: 2, kind: input, shape index: {}]   ;;  %s6921_s3 = inlined_call_operand.vmem [shape: f32[32,64], index: 3, kind: input, shape index: {}]   ;;  %s6922_s4 = inlined_call_operand.vmem [shape: f32[16,32], index: 4, kind: input, shape index: {}]   ;;  %s6923_s5 = inlined_call_operand.vmem [shape: f32[32,16], index: 5, kind: input, shape index: {}]   ;;  %s6924_s6 = inlined_call_operand.vmem [shape: f32[32,16], index: 6, kind: input, shape index: {}]   ;;  %s6925_s7 = inlined_call_operand.vmem [shape: f32[16,32], index: 7, kind: input, shape index: {}]   ;;  %s6926_s8 = inlined_call_operand.vmem [shape: f32[8,16], index: 8, kind: input, shape index: {}]   ;;  %s6927_s9 = inlined_call_operand.vmem [shape: f32[16,8], index: 9, kind: input, shape index: {}]   ;;  %s6928_s10 = inlined_call_operand.vmem [shape: f32[16,8], index: 10, kind: input, shape index: {}]   ;;  %s6929_s11 = inlined_call_operand.vmem [shape: f32[8,16], index: 11, kind: input, shape index: {}]   ;;  %s6930_s12 = inlined_call_operand.vmem [shape: f32[4,8], index: 12, kind: input, shape index: {}]   ;;  %s6931_s13 = inlined_call_operand.vmem [shape: f32[8,4], index: 13, kind: input, shape index: {}]   ;;  %s6932_s14 = inlined_call_operand.vmem [shape: f32[8,4], index: 14, kind: input, shape index: {}]   ;;  %s6933_s15 = inlined_call_operand.vmem [shape: f32[4,8], index: 15, kind: input, shape index: {}]  }
   0x1   :  { %7036 = sst [smem:[#allocation80_spill]] %s6915_s0  ;;  %v5358_v12 = vld [vmem:[%s6920_s2] sm:$0xff]  ;;  %v5363_v13 = vld [vmem:[%s6920_s2 + $0x8] sm:$0xff]  ;;  %v5368_v14 = vld [vmem:[%s6920_s2 + $0x10] sm:$0xff] }
   0x2   :  { %7037 = sst [smem:[#allocation81_spill]] %s6916_s1  ;;  %7053 = vst [vmem:[#allocation15_spill] sm:$0xff] %v5358_v12  ;;  %7054 = vst [vmem:[#allocation16_spill] sm:$0xff] %v5363_v13  ;;  %v5373_v15 = vld [vmem:[%s6920_s2 + $0x18] sm:$0xff]  ;;  %v5378_v16 = vld [vmem:[%s6920_s2 + $0x20] sm:$0xff] }
   0x3   :  { %7038 = sst [smem:[#allocation82_spill]] %s6917_s16  ;;  %7055 = vst [vmem:[#allocation17_spill] sm:$0xff] %v5368_v14  ;;  %7056 = vst [vmem:[#allocation18_spill] sm:$0xff] %v5373_v15  ;;  %v5383_v17 = vld [vmem:[%s6920_s2 + $0x28] sm:$0xff]  ;;  %v5388_v18 = vld [vmem:[%s6920_s2 + $0x30] sm:$0xff] }
   0x4   :  { %s7039_s29 = sld [smem:[#allocation80_spill]]  ;;  %7057 = vst [vmem:[#allocation19_spill] sm:$0xff] %v5378_v16  ;;  %7058 = vst [vmem:[#allocation20_spill] sm:$0xff] %v5383_v17  ;;  %v5393_v19 = vld [vmem:[%s6920_s2 + $0x38] sm:$0xff]  ;;  %v5398_v20 = vld [vmem:[%s6921_s3] sm:$0xff] }
   0x5   :  { %s7044_s23 = sld [smem:[#allocation81_spill]]  ;;  %7059 = vst [vmem:[#allocation21_spill] sm:$0xff] %v5388_v18  ;;  %7060 = vst [vmem:[#allocation22_spill] sm:$0xff] %v5393_v19  ;;  %v5403_v21 = vld [vmem:[%s6921_s3 + $0x8] sm:$0xff]  ;;  %v5408_v22 = vld [vmem:[%s6921_s3 + $0x10] sm:$0xff] }
   0x6   :  { %7061 = vst [vmem:[#allocation23_spill] sm:$0xff] %v5398_v20  ;;  %7062 = vst [vmem:[#allocation24_spill] sm:$0xff] %v5403_v21  ;;  %v5413_v23 = vld [vmem:[%s6921_s3 + $0x18] sm:$0xff]  ;;  %v5418_v24 = vld [vmem:[%s6922_s4] sm:$0xff] }
   0x7   :  { %7063 = vst [vmem:[#allocation25_spill] sm:$0xff] %v5408_v22  ;;  %7064 = vst [vmem:[#allocation26_spill] sm:$0xff] %v5413_v23  ;;  %v5423_v25 = vld [vmem:[%s6922_s4 + $0x8] sm:$0xff]  ;;  %v5428_v26 = vld [vmem:[%s6923_s5] sm:$0xff] }
   0x8   :  { %7065 = vst [vmem:[#allocation27_spill] sm:$0xff] %v5418_v24  ;;  %7066 = vst [vmem:[#allocation28_spill] sm:$0xff] %v5423_v25  ;;  %v5433_v27 = vld [vmem:[%s6923_s5 + $0x8] sm:$0xff]  ;;  %v5438_v28 = vld [vmem:[%s6923_s5 + $0x10] sm:$0xff] }
   0x9   :  { %7067 = vst [vmem:[#allocation29_spill] sm:$0xff] %v5428_v26  ;;  %7068 = vst [vmem:[#allocation30_spill] sm:$0xff] %v5433_v27  ;;  %v5443_v29 = vld [vmem:[%s6923_s5 + $0x18] sm:$0xff]  ;;  %v5448_v30 = vld [vmem:[%s6924_s6] sm:$0xff] }
   0xa   :  { %v5298_v0 = vld [vmem:[%s7039_s29] sm:$0xff]  ;;  %v5303_v1 = vld [vmem:[%s7039_s29 + $0x8] sm:$0xff]  ;;  %v5308_v2 = vld [vmem:[%s7039_s29 + $0x10] sm:$0xff]  ;;  %7069 = vst [vmem:[#allocation31_spill] sm:$0xff] %v5438_v28 }
   0xb   :  { %7040 = vst [vmem:[#allocation3_spill] sm:$0xff] %v5298_v0  ;;  %7041 = vst [vmem:[#allocation4_spill] sm:$0xff] %v5303_v1  ;;  %v5313_v3 = vld [vmem:[%s7039_s29 + $0x18] sm:$0xff]  ;;  %v5318_v4 = vld [vmem:[%s7044_s23] sm:$0xff] }
   0xc   :  { %7042 = vst [vmem:[#allocation5_spill] sm:$0xff] %v5308_v2  ;;  %7043 = vst [vmem:[#allocation6_spill] sm:$0xff] %v5313_v3  ;;  %v5323_v5 = vld [vmem:[%s7044_s23 + $0x8] sm:$0xff]  ;;  %v5328_v6 = vld [vmem:[%s7044_s23 + $0x10] sm:$0xff] }
   0xd   :  { %7045 = vst [vmem:[#allocation7_spill] sm:$0xff] %v5318_v4  ;;  %7046 = vst [vmem:[#allocation8_spill] sm:$0xff] %v5323_v5  ;;  %v5333_v7 = vld [vmem:[%s7044_s23 + $0x18] sm:$0xff]  ;;  %v5338_v8 = vld [vmem:[%s7044_s23 + $0x20] sm:$0xff] }
   0xe   :  { %7047 = vst [vmem:[#allocation9_spill] sm:$0xff] %v5328_v6  ;;  %7048 = vst [vmem:[#allocation10_spill] sm:$0xff] %v5333_v7  ;;  %v5343_v9 = vld [vmem:[%s7044_s23 + $0x28] sm:$0xff]  ;;  %v5348_v10 = vld [vmem:[%s7044_s23 + $0x30] sm:$0xff] }
   0xf   :  { %7049 = vst [vmem:[#allocation11_spill] sm:$0xff] %v5338_v8  ;;  %7050 = vst [vmem:[#allocation12_spill] sm:$0xff] %v5343_v9  ;;  %v5353_v11 = vld [vmem:[%s7044_s23 + $0x38] sm:$0xff]  ;;  %v5453_v31 = vld [vmem:[%s6924_s6 + $0x8] sm:$0xff] }
  0x10   :  { %7051 = vst [vmem:[#allocation13_spill] sm:$0xff] %v5348_v10  ;;  %7052 = vst [vmem:[#allocation14_spill] sm:$0xff] %v5353_v11  ;;  %v5458_v32 = vld [vmem:[%s6924_s6 + $0x10] sm:$0xff]  ;;  %v5463_v33 = vld [vmem:[%s6924_s6 + $0x18] sm:$0xff] }
  0x11   :  { %7070 = vst [vmem:[#allocation32_spill] sm:$0xff] %v5443_v29  ;;  %7071 = vst [vmem:[#allocation33_spill] sm:$0xff] %v5448_v30  ;;  %v5468_v34 = vld [vmem:[%s6925_s7] sm:$0xff]  ;;  %v5473_v35 = vld [vmem:[%s6925_s7 + $0x8] sm:$0xff] }
  0x12   :  { %7072 = vst [vmem:[#allocation34_spill] sm:$0xff] %v5453_v31  ;;  %7073 = vst [vmem:[#allocation35_spill] sm:$0xff] %v5458_v32  ;;  %v5478_v36 = vld [vmem:[%s6926_s8] sm:$0xff]  ;;  %v5488_v38 = vld [vmem:[%s6927_s9 + $0x8] sm:$0xff] }
  0x13   :  { %7074 = vst [vmem:[#allocation36_spill] sm:$0xff] %v5463_v33  ;;  %7075 = vst [vmem:[#allocation37_spill] sm:$0xff] %v5468_v34  ;;  %v5483_v37 = vld [vmem:[%s6927_s9] sm:$0xff]  ;;  %v5498_v40 = vld [vmem:[%s6928_s10 + $0x8] sm:$0xff] }
  0x14   :  { %7076 = vst [vmem:[#allocation38_spill] sm:$0xff] %v5473_v35  ;;  %7077 = vst [vmem:[#allocation39_spill] sm:$0xff] %v5478_v36  ;;  %v5493_v39 = vld [vmem:[%s6928_s10] sm:$0xff] }
  0x15   :  { %7078 = vst [vmem:[#allocation40_spill] sm:$0xff] %v5483_v37  ;;  %7079 = vst [vmem:[#allocation41_spill] sm:$0xff] %v5488_v38  ;;  %v5503_v41 = vld [vmem:[%s6929_s11] sm:$0xff]  ;;  %s5525_s11 = smov 0  }
  0x16   :  { %7080 = vst [vmem:[#allocation42_spill] sm:$0xff] %v5493_v39  ;;  %7081 = vst [vmem:[#allocation43_spill] sm:$0xff] %v5498_v40  ;;  %v5508_v42 = vld [vmem:[%s6930_s12] sm:$0xf] }
  0x17   :  { %7082 = vst [vmem:[#allocation44_spill] sm:$0xff] %v5503_v41  ;;  %7083 = vst [vmem:[#allocation45_spill] sm:$0xff] %v5508_v42  ;;  %v5513_v43 = vld [vmem:[%s6931_s13] sm:$0xff] }
  0x18   :  { %7084 = vst [vmem:[#allocation46_spill] sm:$0xff] %v5513_v43  ;;  %v5518_v44 = vld [vmem:[%s6932_s14] sm:$0xff] }
  0x19   :  { %7085 = vst [vmem:[#allocation47_spill] sm:$0xff] %v5518_v44  ;;  %v5523_v45 = vld [vmem:[%s6933_s15] sm:$0xf] }
  0x1a   :  { %7086 = vst [vmem:[#allocation48_spill] sm:$0xff] %v5523_v45 }
  0x1b LB: > { %v7087_v35 = vld [vmem:[#allocation38_spill] sm:$0xff]  ;;  %v7088_v34 = vld [vmem:[#allocation37_spill] sm:$0xff]  ;;  %v7090_v29 = vld [vmem:[#allocation32_spill] sm:$0xff]  ;;  %vm151_vm0 = vcmask 523264   ;;  %s4465_s12 = sshll.u32 %s5193_s11, 6  ;;  %s7121_s15 = sld [smem:[#allocation82_spill]]  ;;  %s5193_s11 = sphi %s5525_s11, %s110_s11  }
  0x1c   : > { %v7089_v31 = vld [vmem:[#allocation34_spill] sm:$0xff]  ;;  %v7091_v28 = vld [vmem:[#allocation31_spill] sm:$0xff]  ;;  %v7093_v26 = vld [vmem:[#allocation29_spill] sm:$0xff]  ;;  %vm346_vm1 = vcmask 261120   ;;  %s5633_s21 = scalar_lea.vmem %s6918_s17, %s4465_s12  ;;  %vm133_vm2 = vcmask 1048568   ;;  %vm142_vm3 = vcmask 531968   ;;  %s4448_s8 = scalar_lea.vmem %s6919_s18, %s5193_s11 }
  0x1d   : > { %v7092_v27 = vld [vmem:[#allocation30_spill] sm:$0xff]  ;;  %v7094_v30 = vld [vmem:[#allocation33_spill] sm:$0xff]  ;;  %v7095_v25 = vld [vmem:[#allocation28_spill] sm:$0xff]  ;;  %vm753_vm4 = vcmask 1046528   ;;  %s5196_s22 = smov 1   ;;  %vm130_vm5 = vcmask 516096  }
  0x1e   : > { %v7096_v24 = vld [vmem:[#allocation27_spill] sm:$0xff]  ;;  %v7097_v23 = vld [vmem:[#allocation26_spill] sm:$0xff]  ;;  %v7098_v22 = vld [vmem:[#allocation25_spill] sm:$0xff]  ;;  %s5197_s16 = smov 127   ;;  %vm677_vm6 = vcmask 1045504   ;;  %vm820_vm7 = vcmask 7168  }
  0x1f   : > { %v7099_v21 = vld [vmem:[#allocation24_spill] sm:$0xff]  ;;  %v7100_v20 = vld [vmem:[#allocation23_spill] sm:$0xff]  ;;  %v7101_v19 = vld [vmem:[#allocation22_spill] sm:$0xff]  ;;  %vm933_vm8 = vcmask 1040384   ;;  %vm1980_vm9 = vcmask 130048   ;;  %vm1806_vm10 = vcmask 253952  }
  0x20   : > { %v7102_v18 = vld [vmem:[#allocation21_spill] sm:$0xff]  ;;  %v7103_v17 = vld [vmem:[#allocation20_spill] sm:$0xff]  ;;  %v7104_v16 = vld [vmem:[#allocation19_spill] sm:$0xff]  ;;  %vm1813_vm11 = vcmask 269568   ;;  %vm5198_vm12 = vmmov 0   ;;  %vm3088_vm13 = vcmask 64512  }
  0x21   : > { %v7105_v15 = vld [vmem:[#allocation18_spill] sm:$0xff]  ;;  %v7106_v14 = vld [vmem:[#allocation17_spill] sm:$0xff]  ;;  %v7107_v13 = vld [vmem:[#allocation16_spill] sm:$0xff]  ;;  %s5541_s5 = scalar_lea.vmem %s7121_s15, %s4465_s12  ;;  %vm2934_vm14 = vcmask 122880   ;;  %vm2939_vm15 = vcmask 138368   ;;  %s5199_s24 = smov 126  }
  0x22   : > { %v7108_v11 = vld [vmem:[#allocation14_spill] sm:$0xff]  ;;  %v7109_v10 = vld [vmem:[#allocation13_spill] sm:$0xff]  ;;  %v7110_v9 = vld [vmem:[#allocation12_spill] sm:$0xff]  ;;  %s110_s11 = sadd.s32 1, %s5193_s11  }
  0x23   : > { %v7111_v8 = vld [vmem:[#allocation11_spill] sm:$0xff]  ;;  %v7112_v7 = vld [vmem:[#allocation10_spill] sm:$0xff]  ;;  %v7113_v6 = vld [vmem:[#allocation9_spill] sm:$0xff]  ;;  %4768 = vmatprep.subr.mxu1 %v7108_v11  ;;  %p107_p0 = scmp.ge.s32.totalorder %s110_s11, 2  }
  0x24   : > { %v7114_v5 = vld [vmem:[#allocation8_spill] sm:$0xff]  ;;  %v7115_v4 = vld [vmem:[#allocation7_spill] sm:$0xff]  ;;  %v7117_v3 = vld [vmem:[#allocation6_spill] sm:$0xff]  ;;  %4769 = vmatpush3.msra.mxu1 %v7108_v11 }
  0x25   : > { %v7116_v12 = vld [vmem:[#allocation15_spill] sm:$0xff]  ;;  %v7118_v2 = vld [vmem:[#allocation5_spill] sm:$0xff]  ;;  %v7119_v1 = vld [vmem:[#allocation4_spill] sm:$0xff]  ;;  %4770 = vmatprep.subr.mxu1 %v7109_v10 }
  0x26   : > { %v7120_v0 = vld [vmem:[#allocation3_spill] sm:$0xff]  ;;  %4771 = vmatpush3.msra.mxu1 %v7109_v10  ;;  %v5545_v46 = vld [vmem:[%s5541_s5 + $0x38] sm:$0xff]  ;;  %v5555_v48 = vld [vmem:[%s5541_s5 + $0x28] sm:$0xff] }
  0x27   : > { %4762 = vmatprep.mubr.msk.f32.mxu0 %vm151_vm0, %v7120_v0  ;;  %v5548_v47 = vld [vmem:[%s5541_s5 + $0x30] sm:$0xff]  ;;  %4772 = vmatprep.subr.mxu1 %v7110_v9  ;;  %v5562_v49 = vld [vmem:[%s5541_s5 + $0x20] sm:$0xff]  ;;  %v5569_v50 = vld [vmem:[%s5541_s5 + $0x18] sm:$0xff] }
  0x28   : > { %4746 = vmatprep.subr.mxu0 %v5545_v46  ;;  %4773 = vmatpush3.msra.mxu1 %v7110_v9  ;;  %v5576_v51 = vld [vmem:[%s5541_s5 + $0x10] sm:$0xff]  ;;  %v5583_v52 = vld [vmem:[%s5541_s5 + $0x8] sm:$0xff]  ;;  %v5590_v53 = vld [vmem:[%s5541_s5] sm:$0xff] }
  0x29   : > { %4747 = vmatpush3.msra.mxu0 %v5545_v46  ;;  %4774 = vmatprep.subr.mxu1 %v7111_v8  ;;  %v129_v62 = vld [vmem:[%s5633_s21 + $0x38] sm:$0xff]  ;;  %v128_v63 = vld [vmem:[%s5633_s21 + $0x30] sm:$0xff] }
  0x2a   : > { %4748 = vmatprep.subr.mxu0 %v5548_v47  ;;  %4775 = vmatpush3.msra.mxu1 %v7111_v8 }
  0x2b   : > { %4749 = vmatpush3.msra.mxu0 %v5548_v47  ;;  %4776 = vmatprep.subr.mxu1 %v7112_v7 }
  0x2c   : > { %4750 = vmatprep.subr.mxu0 %v5555_v48  ;;  %4777 = vmatpush3.msra.mxu1 %v7112_v7 }
  0x2d   : > { %4751 = vmatpush3.msra.mxu0 %v5555_v48  ;;  %4778 = vmatprep.subr.mxu1 %v7113_v6 }
  0x2e   : > { %4752 = vmatprep.subr.mxu0 %v5562_v49  ;;  %4779 = vmatpush3.msra.mxu1 %v7113_v6 }
  0x2f   : > { %4753 = vmatpush3.msra.mxu0 %v5562_v49  ;;  %4780 = vmatprep.subr.mxu1 %v7114_v5 }
  0x30   : > { %4754 = vmatprep.subr.mxu0 %v5569_v50  ;;  %4781 = vmatpush3.msra.mxu1 %v7114_v5 }
  0x31   : > { %4755 = vmatpush3.msra.mxu0 %v5569_v50  ;;  %4782 = vmatprep.subr.mxu1 %v7115_v4 }
  0x32   : > { %4756 = vmatprep.subr.mxu0 %v5576_v51  ;;  %4783 = vmatpush3.msra.mxu1 %v7115_v4 }
  0x33   : > { %4757 = vmatpush3.msra.mxu0 %v5576_v51  ;;  %4810 = vmatprep.subr.mxu1 %v7097_v23 }
  0x34   : > { %4758 = vmatprep.subr.mxu0 %v5583_v52 }
  0x35   : > { %4759 = vmatpush3.msra.mxu0 %v5583_v52 }
  0x36   : > { %4760 = vmatprep.subr.mxu0 %v5590_v53 }
  0x37   : > { %4761 = vmatpush3.msra.mxu0 %v5590_v53 }
  0x38   : > { %4763 = vmatmul.mubr.msk.f32.vlgmr.msra.gmra.mxu0 %vm151_vm0, %v7119_v1 }
  0x39   : > { %4765 = vmatprep.mubr.msk.f32.mxu0 %vm151_vm0, %v7118_v2 }
  0x3c   : > { %4766 = vmatmul.mubr.msk.f32.gmra.mxu0 %vm151_vm0, %v7117_v3 }
  0x3d   : > { %4798 = vmatprep.mubr.msk.f32.mxu0 %vm346_vm1, %v7116_v12 }
  0xf8   : > { %v4764_v54 = vpop.f32.mrf.mxu0 }
  0xfa   : > { %v230_v55 = vpop.f32.mrf.mxu0 }
  0xfb   : > { %4784 = vmatprep.mubr.msk.f32.mxu1 %vm151_vm0, %v230_v55  ;;  %v126_v55 = vld [vmem:[%s5633_s21 + $0x20] sm:$0xff] }
  0xfc   : > { %v4767_v56 = vpop.f32.mrf.mxu0  ;;  %4785 = vmatmul.mubr.msk.f32.vlgmr.msra.gmra.mxu1 %vm151_vm0, %v4764_v54  ;;  %v127_v54 = vld [vmem:[%s5633_s21 + $0x28] sm:$0xff] }
  0xfd   : > { %4811 = vmatpush3.msra.mxu1 %v7097_v23 }
  0xfe   : > { %v240_v57 = vpop.f32.mrf.mxu0  ;;  %4812 = vmatprep.subr.mxu1 %v7098_v22 }
  0xff   : > { %4787 = vmatprep.mubr.msk.f32.mxu1 %vm151_vm0, %v240_v57  ;;  %4813 = vmatpush3.msra.mxu1 %v7098_v22  ;;  %v5656_v57 = vld [vmem:[%s5633_s21 + $0x10] sm:$0xff] }
 0x100   : > { %4788 = vmatmul.mubr.msk.f32.gmra.mxu1 %vm151_vm0, %v4767_v56  ;;  %4814 = vmatprep.subr.mxu1 %v7099_v21  ;;  %v5653_v56 = vld [vmem:[%s5633_s21 + $0x18] sm:$0xff] }
 0x101   : > { %4815 = vmatpush3.msra.mxu1 %v7099_v21 }
 0x102   : > { %4816 = vmatprep.subr.mxu1 %v7100_v20 }
 0x103   : > { %4817 = vmatpush3.msra.mxu1 %v7100_v20 }
 0x104   : > { %4852 = vmatprep.subr.mxu1 %v7108_v11 }
 0x1bc   : > { %v5617_v58 = vpop.f32.mrf.mxu1 }
 0x1bd   : > { %7122 = vst [vmem:[#allocation49_spill] sm:$0xff] %v5617_v58 }
 0x1be   : > { %v5619_v59 = vpop.f32.mrf.mxu1 }
 0x1bf   : > { %7123 = vst [vmem:[#allocation50_spill] sm:$0xff] %v5619_v59 }
 0x1c0   : > { %v5621_v60 = vpop.f32.mrf.mxu1 }
 0x1c1   : > { %7124 = vst [vmem:[#allocation51_spill] sm:$0xff] %v5621_v60  ;;  %4790 = vmatprep.subr.mxu0 %v5621_v60 }
 0x1c2   : > { %v5624_v61 = vpop.f32.mrf.mxu1  ;;  %4791 = vmatpush3.msra.mxu0 %v5621_v60 }
 0x1c3   : > { %7125 = vst [vmem:[#allocation52_spill] sm:$0xff] %v5624_v61  ;;  %4792 = vmatprep.subr.mxu0 %v5624_v61 }
 0x1c4   : > { %4793 = vmatpush3.msra.mxu0 %v5624_v61 }
 0x1c5   : > { %4794 = vmatprep.subr.mxu0 %v5617_v58 }
 0x1c6   : > { %4795 = vmatpush3.msra.mxu0 %v5617_v58 }
 0x1c7   : > { %4796 = vmatprep.subr.mxu0 %v5619_v59 }
 0x1c8   : > { %4797 = vmatpush3.msra.mxu0 %v5619_v59 }
 0x1c9   : > { %4799 = vmatmul.mubr.msk.f32.vlgmr.msra.gmra.mxu0 %vm346_vm1, %v7107_v13  ;;  %4830 = vmatprep.subr.mxu0 %v129_v62 }
 0x1ca   : > { %4831 = vmatpush3.msra.mxu0 %v129_v62  ;;  %4801 = vmatprep.mubr.msk.f32.mxu0 %vm346_vm1, %v7106_v14  ;;  %v5665_v62 = vld [vmem:[%s5633_s21 + $0x8] sm:$0xff] }
 0x1cb   : > { %4832 = vmatprep.subr.mxu0 %v128_v63 }
 0x1cc   : > { %4833 = vmatpush3.msra.mxu0 %v128_v63  ;;  %v5670_v63 = vld [vmem:[%s5633_s21] sm:$0xff] }
 0x1cd   : > { %4802 = vmatmul.mubr.msk.f32.gmra.mxu0 %vm346_vm1, %v7105_v15  ;;  %4834 = vmatprep.subr.mxu0 %v127_v54 }
 0x1ce   : > { %4835 = vmatpush3.msra.mxu0 %v127_v54  ;;  %4804 = vmatprep.mubr.msk.f32.mxu0 %vm346_vm1, %v7104_v16  ;;  %v6952_v54 = vmov 0.0  }
 0x1cf   : > { %4836 = vmatprep.subr.mxu0 %v126_v55  ;;  %134 = vst.msk [vmem:[#allocation2 + $0x18] sm:$0xff] %vm133_vm2, %v6952_v54  ;;  %135 = vst.msk [vmem:[#allocation2 + $0x30] sm:$0xff] %vm133_vm2, %v6952_v54 }
 0x1d0   : > { %4837 = vmatpush3.msra.mxu0 %v126_v55  ;;  %136 = vst.msk [vmem:[#allocation2 + $0x48] sm:$0xff] %vm133_vm2, %v6952_v54  ;;  %137 = vst.msk [vmem:[#allocation2 + $0x60] sm:$0xff] %vm133_vm2, %v6952_v54 }
 0x1d1   : > { %4805 = vmatmul.mubr.msk.f32.gmra.mxu0 %vm346_vm1, %v7103_v17  ;;  %4838 = vmatprep.subr.mxu0 %v5653_v56  ;;  %138 = vst.msk [vmem:[#allocation2 + $0x78] sm:$0xff] %vm133_vm2, %v6952_v54  ;;  %139 = vst.msk [vmem:[#allocation2 + $0x90] sm:$0xff] %vm133_vm2, %v6952_v54 }
 0x1d2   : > { %4839 = vmatpush3.msra.mxu0 %v5653_v56  ;;  %4807 = vmatprep.mubr.msk.f32.mxu0 %vm346_vm1, %v7102_v18  ;;  %140 = vst.msk [vmem:[#allocation2 + $0xa8] sm:$0xff] %vm133_vm2, %v6952_v54  ;;  %141 = vst.msk [vmem:[#allocation2 + $0xc0] sm:$0xff] %vm133_vm2, %v6952_v54 }
 0x1d3   : > { %4840 = vmatprep.subr.mxu0 %v5656_v57  ;;  %144 = vst.msk [vmem:[#allocation2 + $0x38] sm:$0xff] %vm142_vm3, %v6952_v54  ;;  %143 = vst.msk [vmem:[#allocation2 + $0x20] sm:$0xff] %vm142_vm3, %v6952_v54 }
 0x1d4   : > { %4841 = vmatpush3.msra.mxu0 %v5656_v57  ;;  %145 = vst.msk [vmem:[#allocation2 + $0x50] sm:$0xff] %vm142_vm3, %v6952_v54  ;;  %146 = vst.msk [vmem:[#allocation2 + $0x68] sm:$0xff] %vm142_vm3, %v6952_v54 }
 0x1d5   : > { %4808 = vmatmul.mubr.msk.f32.gmra.mxu0 %vm346_vm1, %v7101_v19  ;;  %4842 = vmatprep.subr.mxu0 %v5665_v62  ;;  %147 = vst.msk [vmem:[#allocation2 + $0x80] sm:$0xff] %vm142_vm3, %v6952_v54  ;;  %148 = vst.msk [vmem:[#allocation2 + $0x98] sm:$0xff] %vm142_vm3, %v6952_v54 }
 0x1d6   : > { %4843 = vmatpush3.msra.mxu0 %v5665_v62  ;;  %4846 = vmatprep.mubr.msk.f32.mxu0 %vm151_vm0, %v7120_v0  ;;  %149 = vst.msk [vmem:[#allocation2 + $0xb0] sm:$0xff] %vm142_vm3, %v6952_v54  ;;  %150 = vst.msk [vmem:[#allocation2 + $0xc8] sm:$0xff] %vm142_vm3, %v6952_v54  ;;  %v713_v55 = vld [vmem:[#allocation2 + $0x18] sm:$0xff]  ;;  %v714_v0 = vld [vmem:[#allocation2 + $0x30] sm:$0xff]  ;;  %vm3687_vm3 = vcmask 57344  }
 0x1d7   : > { %4844 = vmatprep.subr.mxu0 %v5670_v63  ;;  %1809 = vst.msk [vmem:[#allocation2 + $0x18] sm:$0xff] %vm133_vm2, %v6952_v54  ;;  %1810 = vst.msk [vmem:[#allocation2 + $0x30] sm:$0xff] %vm133_vm2, %v6952_v54  ;;  %v716_v44 = vld [vmem:[#allocation2 + $0x60] sm:$0xff] }
 0x1d8   : > { %4845 = vmatpush3.msra.mxu0 %v5670_v63  ;;  %v727_v40 = vmul.f32 0.1846, %v716_v44  ;;  %v717_v39 = vld [vmem:[#allocation2 + $0x78] sm:$0xff]  ;;  %1812 = vst.msk [vmem:[#allocation2 + $0x60] sm:$0xff] %vm133_vm2, %v6952_v54  ;;  %v718_v37 = vld [vmem:[#allocation2 + $0x90] sm:$0xff] }
 0x1d9   : > { %4847 = vmatmul.mubr.msk.f32.vlgmr.msra.gmra.mxu0 %vm151_vm0, %v7119_v1  ;;  %v715_v1 = vld [vmem:[#allocation2 + $0x48] sm:$0xff]  ;;  %v729_v41 = vmul.f32 0.1846, %v717_v39  ;;  %v731_v38 = vmul.f32 0.1846, %v718_v37  ;;  %v720_v33 = vld [vmem:[#allocation2 + $0xc0] sm:$0xff] }
 0x1da   : > { %4849 = vmatprep.mubr.msk.f32.mxu0 %vm151_vm0, %v7118_v2  ;;  %v721_v2 = vmul.f32 0.1846, %v713_v55  ;;  %1811 = vst.msk [vmem:[#allocation2 + $0x48] sm:$0xff] %vm133_vm2, %v6952_v54  ;;  %v764_v55 = vrot.slane %v727_v40, 1  ;;  %v719_v39 = vld [vmem:[#allocation2 + $0xa8] sm:$0xff] }
 0x1db   : > { %v768_v44 = vrot.slane %v729_v41, 1  ;;  %v733_v36 = vmul.f32 0.1846, %v719_v39 }
 0x1dc   : > { %v754_v45 = vrot.slane %v721_v2, 1 }
 0x1dd   : > { %4850 = vmatmul.mubr.msk.f32.gmra.mxu0 %vm151_vm0, %v7117_v3  ;;  %v723_v3 = vmul.f32 0.1846, %v714_v0  ;;  %v769_v40 = vsel %vm753_vm4, %v764_v55, %v768_v44  ;;  %v776_v32 = vrot.slane %v733_v36, 1 }
 0x1de   : > { %4882 = vmatprep.mubr.msk.f32.mxu0 %vm346_vm1, %v7116_v12  ;;  %v725_v12 = vmul.f32 0.1846, %v715_v1  ;;  %784 = vrot.lane.b32.xlu0 %v754_v45, %s5196_s22  ;;  %v2234_v2 = vld [vmem:[#allocation2 + $0x18] sm:$0xff] }
 0x1df   : > { %v756_v43 = vrot.slane %v723_v3, 1  ;;  %v2235_v3 = vld [vmem:[#allocation2 + $0x30] sm:$0xff]  ;;  %2937 = vst.msk [vmem:[#allocation2 + $0x18] sm:$0xff] %vm133_vm2, %v6952_v54 }
 0x1e0   : > { %v760_v42 = vrot.slane %v725_v12, 1  ;;  %2938 = vst.msk [vmem:[#allocation2 + $0x30] sm:$0xff] %vm133_vm2, %v6952_v54  ;;  %v2240_v36 = vmul.f32 0.2243, %v2235_v3 }
 0x1e1   : > { %v757_v0 = vsel %vm753_vm4, %v754_v45, %v756_v43 }
 0x1e2   : > { %v761_v1 = vsel %vm753_vm4, %v756_v43, %v760_v42  ;;  %788 = vrot.lane.b32.xlu1 %v757_v0, %s5196_s22  ;;  %v765_v12 = vsel %vm753_vm4, %v760_v42, %v764_v55  ;;  %v772_v43 = vrot.slane %v731_v38, 1  ;;  %v735_v42 = vmul.f32 0.1846, %v720_v33 }
 0x1e3   : > { %792 = vrot.lane.b32.xlu0 %v761_v1, %s5196_s22  ;;  %v2238_v33 = vmul.f32 0.2243, %v2234_v2 }
 0x1e4   : > { %v773_v54 = vsel %vm753_vm4, %v768_v44, %v772_v43  ;;  %v777_v37 = vsel %vm753_vm4, %v772_v43, %v776_v32  ;;  %v5747_v41 = vrot.slane %v735_v42, 1 }
 0x1e6   : > { %1568 = vrot.lane.b32.xlu1 %v754_v45, %s5196_s22  ;;  %7126 = vst [vmem:[#allocation53_spill] sm:$0xff] %v5747_v41  ;;  %v781_v38 = vsel %vm753_vm4, %v776_v32, %v5747_v41  ;;  %v2254_v45 = vrot.slane %v2238_v33, 1 }
 0x1e7   : > { %796 = vrot.lane.b32.xlu0 %v765_v12, %s5196_s22 }
 0x1ea   : > { %1572 = vrot.lane.b32.xlu1 %v757_v0, %s5196_s22  ;;  %v2256_v0 = vrot.slane %v2240_v36, 1 }
 0x1eb   : > { %800 = vrot.lane.b32.xlu0 %v769_v40, %s5196_s22 }
 0x1ec   : > { %v2257_v32 = vsel %vm753_vm4, %v2254_v45, %v2256_v0 }
 0x1ee   : > { %1576 = vrot.lane.b32.xlu1 %v761_v1, %s5196_s22 }
 0x1ef   : > { %804 = vrot.lane.b32.xlu0 %v773_v54, %s5196_s22 }
 0x1f2   : > { %1580 = vrot.lane.b32.xlu1 %v765_v12, %s5196_s22 }
 0x1f3   : > { %808 = vrot.lane.b32.xlu0 %v777_v37, %s5196_s22 }
 0x1f6   : > { %1588 = vrot.lane.b32.xlu1 %v773_v54, %s5196_s22 }
 0x1f7   : > { %812 = vrot.lane.b32.xlu0 %v781_v38, %s5196_s22 }
 0x1fa   : > { %1596 = vrot.lane.b32.xlu1 %v781_v38, %s5196_s22  ;;  %v2236_v38 = vld [vmem:[#allocation2 + $0x48] sm:$0xff] }
 0x1fb   : > { %816 = vrot.lane.b32.xlu0 %v5747_v41, %s5196_s22  ;;  %v2242_v33 = vmul.f32 0.2243, %v2236_v38 }
 0x1fd   : > { %v2260_v36 = vrot.slane %v2242_v33, 1 }
 0x1ff   : > { %1584 = vrot.lane.b32.xlu0 %v769_v40, %s5196_s22 }
 0x203   : > { %1592 = vrot.lane.b32.xlu0 %v777_v37, %s5196_s22 }
 0x207   : > { %2268 = vrot.lane.b32.xlu0 %v2254_v45, %s5196_s22 }
 0x20b   : > { %2272 = vrot.lane.b32.xlu0 %v2257_v32, %s5196_s22 }
 0x289   : > { %v4800_v54 = vpop.f32.mrf.mxu0 }
 0x28b   : > { %v437_v1 = vpop.f32.mrf.mxu0 }
 0x28c   : > { %4818 = vmatprep.mubr.msk.f32.mxu1 %vm346_vm1, %v437_v1  ;;  %v2237_v1 = vld [vmem:[#allocation2 + $0x60] sm:$0xff] }
 0x28d   : > { %v4803_v55 = vpop.f32.mrf.mxu0  ;;  %4819 = vmatmul.mubr.msk.f32.vlgmr.msra.gmra.mxu1 %vm346_vm1, %v4800_v54  ;;  %v2261_v54 = vsel %vm753_vm4, %v2256_v0, %v2260_v36 }
 0x28e   : > { %4853 = vmatpush3.msra.mxu1 %v7108_v11  ;;  %2276 = vrot.lane.b32.xlu0 %v2261_v54, %s5196_s22 }
 0x28f   : > { %v447_v2 = vpop.f32.mrf.mxu0  ;;  %4854 = vmatprep.subr.mxu1 %v7109_v10 }
 0x290   : > { %4821 = vmatprep.mubr.msk.f32.mxu1 %vm346_vm1, %v447_v2  ;;  %4855 = vmatpush3.msra.mxu1 %v7109_v10 }
 0x291   : > { %v4806_v3 = vpop.f32.mrf.mxu0  ;;  %4822 = vmatmul.mubr.msk.f32.gmra.mxu1 %vm346_vm1, %v4803_v55  ;;  %4856 = vmatprep.subr.mxu1 %v7110_v9  ;;  %v2244_v55 = vmul.f32 0.2243, %v2237_v1 }
 0x292   : > { %4857 = vmatpush3.msra.mxu1 %v7110_v9  ;;  %2800 = vrot.lane.b32.xlu0 %v2254_v45, %s5196_s22 }
 0x293   : > { %v457_v12 = vpop.f32.mrf.mxu0  ;;  %4858 = vmatprep.subr.mxu1 %v7111_v8  ;;  %v5802_v2 = vrot.slane %v2244_v55, 1 }
 0x294   : > { %4824 = vmatprep.mubr.msk.f32.mxu1 %vm346_vm1, %v457_v12  ;;  %4859 = vmatpush3.msra.mxu1 %v7111_v8 }
 0x295   : > { %v4809_v44 = vpop.f32.mrf.mxu0  ;;  %4825 = vmatmul.mubr.msk.f32.gmra.mxu1 %vm346_vm1, %v4806_v3  ;;  %4860 = vmatprep.subr.mxu1 %v7112_v7  ;;  %7127 = vst [vmem:[#allocation54_spill] sm:$0xff] %v5802_v2  ;;  %v7128_v3 = vmov 0.0   ;;  %v2265_v12 = vsel %vm753_vm4, %v2260_v36, %v5802_v2 }
 0x296   : > { %4861 = vmatpush3.msra.mxu1 %v7112_v7  ;;  %131 = vst.msk [vmem:[#allocation2 + $0xf] sm:$0x1] %vm130_vm5, %v7128_v3  ;;  %132 = vst.msk [vmem:[#allocation2 + $0xe0] sm:$0x1] %vm130_vm5, %v7128_v3  ;;  %2804 = vrot.lane.b32.xlu0 %v2257_v32, %s5196_s22  ;;  %vm3839_vm5 = vcmask 31744  }
 0x297   : > { %v467_v39 = vpop.f32.mrf.mxu0  ;;  %4862 = vmatprep.subr.mxu1 %v7113_v6  ;;  %2280 = vrot.lane.b32.xlu1 %v2265_v12, %s5196_s22 }
 0x298   : > { %4827 = vmatprep.mubr.msk.f32.mxu1 %vm346_vm1, %v467_v39  ;;  %4863 = vmatpush3.msra.mxu1 %v7113_v6 }
 0x299   : > { %4828 = vmatmul.mubr.msk.f32.gmra.mxu1 %vm346_vm1, %v4809_v44  ;;  %v4848_v40 = vpop.f32.mrf.mxu0  ;;  %4864 = vmatprep.subr.mxu1 %v7114_v5 }
 0x29a   : > { %4865 = vmatpush3.msra.mxu1 %v7114_v5  ;;  %2808 = vrot.lane.b32.xlu0 %v2261_v54, %s5196_s22 }
 0x29b   : > { %v1041_v43 = vpop.f32.mrf.mxu0  ;;  %4866 = vmatprep.subr.mxu1 %v7115_v4  ;;  %2812 = vrot.lane.b32.xlu1 %v2265_v12, %s5196_s22 }
 0x29c   : > { %4867 = vmatpush3.msra.mxu1 %v7115_v4  ;;  %4868 = vmatprep.mubr.msk.f32.mxu1 %vm151_vm0, %v1041_v43 }
 0x29d   : > { %v4851_v42 = vpop.f32.mrf.mxu0  ;;  %4869 = vmatmul.mubr.msk.f32.vlgmr.msra.gmra.mxu1 %vm151_vm0, %v4848_v40  ;;  %4894 = vmatprep.subr.mxu1 %v7097_v23  ;;  %v629_v41 = vld [vmem:[#allocation2 + $0x8] sm:$0x80] }
 0x29e   : > { %4895 = vmatpush3.msra.mxu1 %v7097_v23 }
 0x29f   : > { %v1051_v37 = vpop.f32.mrf.mxu0  ;;  %4896 = vmatprep.subr.mxu1 %v7098_v22 }
 0x2a0   : > { %4871 = vmatprep.mubr.msk.f32.mxu1 %vm151_vm0, %v1051_v37  ;;  %4897 = vmatpush3.msra.mxu1 %v7098_v22 }
 0x2a1   : > { %4872 = vmatmul.mubr.msk.f32.gmra.mxu1 %vm151_vm0, %v4851_v42  ;;  %4898 = vmatprep.subr.mxu1 %v7099_v21 }
 0x2a2   : > { %4899 = vmatpush3.msra.mxu1 %v7099_v21 }
 0x2a3   : > { %4900 = vmatprep.subr.mxu1 %v7100_v20 }
 0x2a4   : > { %4901 = vmatpush3.msra.mxu1 %v7100_v20 }
 0x2a5   : > { %4925 = vmatprep.subr.mxu1 %v7090_v29 }
 0x34d   : > { %v4820_v45 = vpop.f32.mrf.mxu1 }
 0x34e   : > { %v5813_v0 = vsub.f32 %v5583_v52, %v4820_v45 }
 0x34f   : > { %v566_v44 = vpop.f32.mrf.mxu1 }
 0x350   : > { %7129 = vst [vmem:[#allocation55_spill] sm:$0xff] %v5813_v0  ;;  %v614_v39 = vand.u32 2147483647, %v5813_v0  ;;  %v5817_v40 = vsub.f32 %v5590_v53, %v566_v44 }
 0x351   : > { %v4823_v32 = vpop.f32.mrf.mxu1 }
 0x352   : > { %7130 = vst [vmem:[#allocation56_spill] sm:$0xff] %v5817_v40  ;;  %622 = vst.msk [vmem:[#allocation2 + $0x38] sm:$0xff] %vm151_vm0, %v614_v39  ;;  %v613_v43 = vand.u32 2147483647, %v5817_v40  ;;  %v5822_v42 = vsub.f32 %v5569_v50, %v4823_v32 }
 0x353   : > { %v576_v37 = vpop.f32.mrf.mxu1 }
 0x354   : > { %7131 = vst [vmem:[#allocation57_spill] sm:$0xff] %v5822_v42  ;;  %621 = vst.msk [vmem:[#allocation2 + $0x20] sm:$0xff] %vm151_vm0, %v613_v43  ;;  %v616_v52 = vand.u32 2147483647, %v5822_v42  ;;  %v5827_v38 = vsub.f32 %v5576_v51, %v576_v37 }
 0x355   : > { %v4826_v33 = vpop.f32.mrf.mxu1 }
 0x356   : > { %7132 = vst [vmem:[#allocation58_spill] sm:$0xff] %v5827_v38  ;;  %624 = vst.msk [vmem:[#allocation2 + $0x68] sm:$0xff] %vm151_vm0, %v616_v52  ;;  %v615_v53 = vand.u32 2147483647, %v5827_v38  ;;  %v5832_v36 = vsub.f32 %v5555_v48, %v4826_v33 }
 0x357   : > { %v586_v54 = vpop.f32.mrf.mxu1 }
 0x358   : > { %7133 = vst [vmem:[#allocation59_spill] sm:$0xff] %v5832_v36  ;;  %623 = vst.msk [vmem:[#allocation2 + $0x50] sm:$0xff] %vm151_vm0, %v615_v53  ;;  %v618_v50 = vand.u32 2147483647, %v5832_v36  ;;  %v5837_v1 = vsub.f32 %v5562_v49, %v586_v54 }
 0x359   : > { %v4829_v55 = vpop.f32.mrf.mxu1  ;;  %v5839_v12 = vld [vmem:[#allocation2 + $0x38] sm:$0xff] }
 0x35a   : > { %7134 = vst [vmem:[#allocation60_spill] sm:$0xff] %v5837_v1  ;;  %626 = vst.msk [vmem:[#allocation2 + $0x98] sm:$0xff] %vm151_vm0, %v618_v50  ;;  %v617_v51 = vand.u32 2147483647, %v5837_v1  ;;  %v5844_v45 = vsub.f32 %v5545_v46, %v4829_v55  ;;  %v724_v48 = vmul.f32 0.1846, %v5839_v12 }
 0x35b   : > { %v596_v44 = vpop.f32.mrf.mxu1  ;;  %v5847_v39 = vld [vmem:[#allocation2 + $0x20] sm:$0xff]  ;;  %v849_v54 = vmul.f32 0.1986, %v5839_v12  ;;  %v660_v2 = vmul.f32 0.0757, %v5839_v12 }
 0x35c   : > { %7135 = vst [vmem:[#allocation61_spill] sm:$0xff] %v5844_v45  ;;  %625 = vst.msk [vmem:[#allocation2 + $0x80] sm:$0xff] %vm151_vm0, %v617_v51  ;;  %v620_v49 = vand.u32 2147483647, %v5844_v45  ;;  %v5852_v32 = vsub.f32 %v5548_v47, %v596_v44  ;;  %v722_v43 = vmul.f32 0.1846, %v5847_v39 }
 0x35d   : > { %v5855_v37 = vpop.f32.mrf.mxu1  ;;  %v848_v52 = vmul.f32 0.1986, %v5847_v39  ;;  %v758_v53 = vrot.slane %v724_v48, 1  ;;  %v5874_v4 = vld [vmem:[#allocation2 + $0x68] sm:$0xff]  ;;  %v656_v22 = vld [vmem:[#allocation2 + $0x20] sm:$0xfe] }
 0x35e   : > { %7136 = vst [vmem:[#allocation62_spill] sm:$0xff] %v5852_v32  ;;  %7137 = vst [vmem:[#allocation63_spill] sm:$0xff] %v5855_v37  ;;  %v619_v46 = vand.u32 2147483647, %v5852_v32  ;;  %v755_v33 = vrot.slane %v722_v43, 1  ;;  %v865_v43 = vrot.slane %v849_v54, 1 }
 0x35f   : > { %628 = vst.msk [vmem:[#allocation2 + $0xc8] sm:$0xff] %vm151_vm0, %v620_v49  ;;  %v5861_v50 = vpop.f32.mrf.mxu1  ;;  %v5863_v55 = vld [vmem:[#allocation2 + $0x50] sm:$0xff]  ;;  %v864_v51 = vrot.slane %v848_v52, 1  ;;  %v851_v54 = vmul.f32 0.1986, %v5874_v4 }
 0x360   : > { %7138 = vst [vmem:[#allocation64_spill] sm:$0xff] %v5861_v50  ;;  %627 = vst.msk [vmem:[#allocation2 + $0xb0] sm:$0xff] %vm151_vm0, %v619_v46  ;;  %786 = vrot.lane.b32.xlu0 %v755_v33, %s5196_s22  ;;  %v759_v47 = vsel %vm753_vm4, %v755_v33, %v758_v53  ;;  %v850_v44 = vmul.f32 0.1986, %v5863_v55  ;;  %v726_v49 = vmul.f32 0.1846, %v5863_v55 }
 0x361   : > { %790 = vrot.lane.b32.xlu1 %v759_v47, %s5196_s22  ;;  %v5871_v48 = vpop.f32.mrf.mxu1  ;;  %v866_v52 = vsel %vm753_vm4, %v864_v51, %v865_v43  ;;  %v869_v9 = vrot.slane %v851_v54, 1  ;;  %v659_v32 = vmul.f32 0.0757, %v656_v22  ;;  %v662_v1 = vmul.f32 0.0757, %v5874_v4 }
 0x362   : > { %7139 = vst [vmem:[#allocation65_spill] sm:$0xff] %v5871_v48  ;;  %4874 = vmatprep.subr.mxu0 %v5871_v48  ;;  %v867_v46 = vrot.slane %v850_v44, 1  ;;  %v762_v47 = vrot.slane %v726_v49, 1  ;;  %v728_v44 = vmul.f32 0.1846, %v5874_v4 }
 0x363   : > { %v5876_v5 = vpop.f32.mrf.mxu1  ;;  %4875 = vmatpush3.msra.mxu0 %v5871_v48  ;;  %v5879_v33 = vld [vmem:[#allocation2 + $0x80] sm:$0xff] }
 0x364   : > { %7140 = vst [vmem:[#allocation66_spill] sm:$0xff] %v5876_v5  ;;  %879 = vrot.lane.b32.xlu0 %v864_v51, %s5197_s16  ;;  %4876 = vmatprep.subr.mxu0 %v5876_v5  ;;  %v5885_v6 = vmul.f32 0.1986, %v5879_v33  ;;  %v868_v7 = vsel %vm753_vm4, %v865_v43, %v867_v46 }
 0x365   : > { %881 = vrot.lane.b32.xlu1 %v866_v52, %s5197_s16  ;;  %4877 = vmatpush3.msra.mxu0 %v5876_v5  ;;  %v763_v52 = vsel %vm753_vm4, %v758_v53, %v762_v47 }
 0x366   : > { %4878 = vmatprep.subr.mxu0 %v5855_v37  ;;  %v871_v51 = vrot.slane %v5885_v6, 1  ;;  %v5895_v49 = vld [vmem:[#allocation2 + $0xc8] sm:$0xff]  ;;  %v766_v6 = vrot.slane %v728_v44, 1  ;;  %v730_v44 = vmul.f32 0.1846, %v5879_v33 }
 0x367   : > { %4879 = vmatpush3.msra.mxu0 %v5855_v37  ;;  %v5900_v8 = vld [vmem:[#allocation2 + $0xb0] sm:$0xff]  ;;  %v855_v43 = vmul.f32 0.1986, %v5895_v49 }
 0x368   : > { %883 = vrot.lane.b32.xlu0 %v868_v7, %s5197_s16  ;;  %4880 = vmatprep.subr.mxu0 %v5861_v50  ;;  %v5908_v7 = vld [vmem:[#allocation2 + $0x98] sm:$0xff]  ;;  %v872_v53 = vsel %vm753_vm4, %v869_v9, %v871_v51  ;;  %v767_v54 = vsel %vm753_vm4, %v762_v47, %v766_v6 }
 0x369   : > { %794 = vrot.lane.b32.xlu1 %v763_v52, %s5196_s22  ;;  %4881 = vmatpush3.msra.mxu0 %v5861_v50  ;;  %v854_v52 = vmul.f32 0.1986, %v5900_v8  ;;  %v853_v10 = vmul.f32 0.1986, %v5908_v7  ;;  %v877_v11 = vrot.slane %v855_v43, 1 }
 0x36a   : > { %4883 = vmatmul.mubr.msk.f32.vlgmr.msra.gmra.mxu0 %vm346_vm1, %v7107_v13  ;;  %4914 = vmatprep.subr.mxu0 %v5621_v60  ;;  %v732_v43 = vmul.f32 0.1846, %v5908_v7 }
 0x36b   : > { %4915 = vmatpush3.msra.mxu0 %v5621_v60  ;;  %4885 = vmatprep.mubr.msk.f32.mxu0 %vm346_vm1, %v7106_v14  ;;  %v875_v47 = vrot.slane %v854_v52, 1  ;;  %v873_v13 = vrot.slane %v853_v10, 1  ;;  %v5936_v14 = vpop.permute.xlu0 %784  ;;  %v679_v60 = vrot.slane %v660_v2, 2 }
 0x36c   : > { %887 = vrot.lane.b32.xlu0 %v872_v53, %s5197_s16  ;;  %4916 = vmatprep.subr.mxu0 %v5624_v61  ;;  %v870_v53 = vsel %vm753_vm4, %v867_v46, %v869_v9  ;;  %v774_v10 = vrot.slane %v732_v43, 1 }
 0x36d   : > { %798 = vrot.lane.b32.xlu1 %v767_v54, %s5196_s22  ;;  %4917 = vmatpush3.msra.mxu0 %v5624_v61  ;;  %v770_v54 = vrot.slane %v730_v44, 1  ;;  %v876_v52 = vsel %vm753_vm4, %v873_v13, %v875_v47 }
 0x36e   : > { %4886 = vmatmul.mubr.msk.f32.gmra.mxu0 %vm346_vm1, %v7105_v15  ;;  %4918 = vmatprep.subr.mxu0 %v5617_v58 }
 0x36f   : > { %4919 = vmatpush3.msra.mxu0 %v5617_v58  ;;  %4888 = vmatprep.mubr.msk.f32.mxu0 %vm346_vm1, %v7104_v16  ;;  %v771_v9 = vsel %vm753_vm4, %v766_v6, %v770_v54  ;;  %v775_v46 = vsel %vm753_vm4, %v770_v54, %v774_v10  ;;  %v5949_v44 = vpop.permute.xlu0 %792  ;;  %v736_v6 = vmul.f32 0.1846, %v5895_v49 }
 0x370   : > { %895 = vrot.lane.b32.xlu0 %v877_v11, %s5197_s16  ;;  %4920 = vmatprep.subr.mxu0 %v5619_v59 }
 0x371   : > { %885 = vrot.lane.b32.xlu1 %v870_v53, %s5197_s16  ;;  %4921 = vmatpush3.msra.mxu0 %v5619_v59  ;;  %v874_v53 = vsel %vm753_vm4, %v871_v51, %v873_v13  ;;  %v878_v51 = vsel %vm753_vm4, %v875_v47, %v877_v11 }
 0x372   : > { %4889 = vmatmul.mubr.msk.f32.gmra.mxu0 %vm346_vm1, %v7103_v17 }
 0x373   : > { %4891 = vmatprep.mubr.msk.f32.mxu0 %vm346_vm1, %v7102_v18  ;;  %v5958_v43 = vpop.permute.xlu0 %796 }
 0x374   : > { %891 = vrot.lane.b32.xlu0 %v876_v52, %s5197_s16  ;;  %v734_v52 = vmul.f32 0.1846, %v5900_v8 }
 0x375   : > { %802 = vrot.lane.b32.xlu1 %v771_v9, %s5196_s22  ;;  %v782_v9 = vrot.slane %v736_v6, 1 }
 0x376   : > { %4892 = vmatmul.mubr.msk.f32.gmra.mxu0 %vm346_vm1, %v7101_v19  ;;  %v778_v15 = vrot.slane %v734_v52, 1 }
 0x377   : > { %4922 = vmatprep.mubr.msk.f32.mxu0 %vm346_vm1, %v7096_v24 }
 0x378   : > { %v779_v54 = vsel %vm753_vm4, %v774_v10, %v778_v15  ;;  %v783_v16 = vsel %vm753_vm4, %v778_v15, %v782_v9  ;;  %v789_v10 = vpop.permute.xlu1 %788 }
 0x379   : > { %806 = vrot.lane.b32.xlu1 %v775_v46, %s5196_s22  ;;  %v5962_v46 = vpop.permute.xlu0 %800 }
 0x37a   : > { %4923 = vmatmul.mubr.msk.f32.vlgmr.msra.gmra.mxu0 %vm346_vm1, %v7095_v25 }
 0x37b   : > { %4940 = vmatprep.mubr.msk.f32.mxu0 %vm1980_vm9, %v7094_v30 }
 0x37d   : > { %889 = vrot.lane.b32.xlu1 %v874_v53, %s5197_s16  ;;  %v5967_v13 = vpop.permute.xlu0 %804 }
 0x381   : > { %818 = vrot.lane.b32.xlu1 %v782_v9, %s5196_s22  ;;  %v5971_v6 = vpop.permute.xlu0 %808 }
 0x385   : > { %810 = vrot.lane.b32.xlu1 %v779_v54, %s5196_s22  ;;  %v5973_v53 = vpop.permute.xlu0 %812  ;;  %v5979_v54 = vpop.permute.xlu1 %1568 }
 0x389   : > { %814 = vrot.lane.b32.xlu1 %v783_v16, %s5196_s22  ;;  %v5975_v52 = vpop.permute.xlu0 %816  ;;  %v5983_v16 = vpop.permute.xlu1 %1572 }
 0x38d   : > { %893 = vrot.lane.b32.xlu1 %v878_v51, %s5197_s16  ;;  %v5977_v17 = vpop.permute.xlu0 %1584  ;;  %v5987_v11 = vpop.permute.xlu1 %1576 }
 0x391   : > { %v5981_v15 = vpop.permute.xlu0 %1592  ;;  %v5991_v51 = vpop.permute.xlu1 %1580 }
 0x395   : > { %v5985_v9 = vpop.permute.xlu0 %2268  ;;  %v5995_v19 = vpop.permute.xlu1 %1588 }
 0x396   : > { %7141 = vst [vmem:[#allocation67_spill] sm:$0xff] %v5985_v9  ;;  %v678_v9 = vrot.slane %v659_v32, 2 }
 0x399   : > { %v5989_v47 = vpop.permute.xlu0 %2272  ;;  %v5999_v21 = vpop.permute.xlu1 %1596 }
 0x39a   : > { %7142 = vst [vmem:[#allocation68_spill] sm:$0xff] %v5989_v47  ;;  %7145 = vst [vmem:[#allocation71_spill] sm:$0xff] %v5999_v21  ;;  %v680_v21 = vsel %vm677_vm6, %v678_v9, %v679_v60 }
 0x39d   : > { %v5993_v18 = vpop.permute.xlu0 %2276  ;;  %v6003_v45 = vpop.permute.xlu1 %2280 }
 0x39e   : > { %7143 = vst [vmem:[#allocation69_spill] sm:$0xff] %v5993_v18  ;;  %7147 = vst [vmem:[#allocation73_spill] sm:$0xff] %v6003_v45  ;;  %v638_v18 = vmul.f32 0.0837, %v629_v41 }
 0x3a0   : > { %v704_v22 = vadd.f32 %v678_v9, %v638_v18  ;;  %v640_v18 = vmul.f32 0.0837, %v5839_v12 }
 0x3a1   : > { %v5997_v20 = vpop.permute.xlu0 %2800  ;;  %v6008_v61 = vpop.permute.xlu1 %2812 }
 0x3a2   : > { %7144 = vst [vmem:[#allocation70_spill] sm:$0xff] %v5997_v20  ;;  %7149 = vst [vmem:[#allocation75_spill] sm:$0xff] %v6008_v61  ;;  %v661_v20 = vmul.f32 0.0757, %v5863_v55 }
 0x3a4   : > { %v681_v36 = vrot.slane %v661_v20, 2 }
 0x3a5   : > { %v6001_v23 = vpop.permute.xlu0 %2804 }
 0x3a6   : > { %7146 = vst [vmem:[#allocation72_spill] sm:$0xff] %v6001_v23  ;;  %v639_v23 = vmul.f32 0.0837, %v5847_v39  ;;  %v682_v39 = vsel %vm677_vm6, %v679_v60, %v681_v36  ;;  %v641_v60 = vmul.f32 0.0837, %v5863_v55 }
 0x3a9   : > { %v6006_v47 = vpop.permute.xlu0 %2808 }
 0x3aa   : > { %7148 = vst [vmem:[#allocation74_spill] sm:$0xff] %v6006_v47  ;;  %v705_v47 = vadd.f32 %v680_v21, %v639_v23  ;;  %v706_v23 = vadd.f32 %v682_v39, %v640_v18  ;;  %v658_v39 = vld [vmem:[#allocation2 + $0xe0] sm:$0x1] }
 0x3d2   : > { %v787_v45 = vpop.permute.xlu0 %786 }
 0x3d3   : > { %v821_v59 = vsel %vm820_vm7, %v5936_v14, %v787_v45  ;;  %v791_v58 = vpop.permute.xlu1 %790  ;;  %v683_v14 = vrot.slane %v662_v1, 2 }
 0x3d4   : > { %v822_v32 = vsel %vm820_vm7, %v789_v10, %v791_v58  ;;  %v839_v61 = vadd.f32 %v821_v59, %v704_v22 }
 0x3d5   : > { %v840_v41 = vadd.f32 %v822_v32, %v705_v47  ;;  %v684_v59 = vsel %vm677_vm6, %v681_v36, %v683_v14  ;;  %v664_v36 = vmul.f32 0.0757, %v5908_v7 }
 0x3d6   : > { %v880_v2 = vpop.permute.xlu0 %879  ;;  %v707_v12 = vadd.f32 %v684_v59, %v641_v60  ;;  %v666_v60 = vmul.f32 0.0757, %v5895_v49  ;;  %v637_v49 = vld [vmem:[#allocation2 + $0xc8] sm:$0x7f] }
 0x3d7   : > { %v906_v42 = vadd.f32 %v880_v2, %v839_v61  ;;  %v882_v38 = vpop.permute.xlu1 %881  ;;  %v663_v61 = vmul.f32 0.0757, %v5879_v33 }
 0x3d8   : > { %v907_v0 = vadd.f32 %v882_v38, %v840_v41 }
 0x3d9   : > { %v915_v40 = vadd.f32 0.0185, %v906_v42  ;;  %v685_v47 = vrot.slane %v663_v61, 2 }
 0x3da   : > { %v916_v9 = vadd.f32 0.0185, %v907_v0  ;;  %v884_v0 = vpop.permute.xlu0 %883 }
 0x3db   : > { %v934_v45 = vrot.slane %v915_v40, 7  ;;  %v795_v21 = vpop.permute.xlu1 %794  ;;  %v686_v55 = vsel %vm677_vm6, %v683_v14, %v685_v47 }
 0x3dc   : > { %v935_v58 = vrot.slane %v916_v9, 7  ;;  %v823_v20 = vsel %vm820_vm7, %v5949_v44, %v795_v21  ;;  %v642_v9 = vmul.f32 0.0837, %v5874_v4  ;;  %v687_v21 = vrot.slane %v664_v36, 2 }
 0x3dd   : > { %v841_v38 = vadd.f32 %v823_v20, %v706_v23  ;;  %v667_v20 = vmul.f32 0.0757, %v658_v39 }
 0x3de   : > { %v6025_v42 = vsel %vm933_vm8, %v934_v45, %v935_v58 }
 0x3df   : > { %v908_v1 = vadd.f32 %v884_v0, %v841_v38  ;;  %v799_v40 = vpop.permute.xlu1 %798  ;;  %v688_v38 = vsel %vm677_vm6, %v685_v47, %v687_v21  ;;  %v643_v0 = vmul.f32 0.0837, %v5879_v33  ;;  %5109 = vrcp.f32 %v6025_v42 }
 0x3e0   : > { %v824_v10 = vsel %vm820_vm7, %v5958_v43, %v799_v40  ;;  %v708_v43 = vadd.f32 %v686_v55, %v642_v9  ;;  %v646_v9 = vmul.f32 0.0837, %v637_v49 }
 0x3e1   : > { %v917_v22 = vadd.f32 0.0185, %v908_v1  ;;  %v842_v44 = vadd.f32 %v824_v10, %v707_v12  ;;  %v709_v12 = vadd.f32 %v688_v38, %v643_v0 }
 0x3e3   : > { %v937_v32 = vrot.slane %v917_v22, 7  ;;  %v886_v41 = vpop.permute.xlu1 %885  ;;  %v693_v22 = vrot.slane %v667_v20, 2 }
 0x3e4   : > { %v909_v2 = vadd.f32 %v886_v41, %v842_v44  ;;  %v691_v44 = vrot.slane %v666_v60, 2 }
 0x3e5   : > { %v6032_v18 = vsel %vm933_vm8, %v935_v58, %v937_v32  ;;  %v888_v58 = vpop.permute.xlu0 %887 }
 0x3e6   : > { %v918_v45 = vadd.f32 0.0185, %v909_v2  ;;  %v694_v55 = vsel %vm677_vm6, %v691_v44, %v693_v22  ;;  %v645_v22 = vmul.f32 0.0837, %v5900_v8 }
 0x3e7   : > { %v803_v23 = vpop.permute.xlu1 %802 }
 0x3e8   : > { %v939_v59 = vrot.slane %v918_v45, 7  ;;  %v825_v61 = vsel %vm820_vm7, %v5962_v46, %v803_v23  ;;  %v665_v46 = vmul.f32 0.0757, %v5900_v8 }
 0x3e9   : > { %v843_v14 = vadd.f32 %v825_v61, %v708_v43  ;;  %v896_v43 = vpop.permute.xlu0 %895 }
 0x3ea   : > { %v6041_v1 = vsel %vm933_vm8, %v937_v32, %v939_v59  ;;  %v689_v32 = vrot.slane %v665_v46, 2 }
 0x3eb   : > { %v910_v4 = vadd.f32 %v888_v58, %v843_v14  ;;  %v807_v40 = vpop.permute.xlu1 %806  ;;  %v644_v14 = vmul.f32 0.0837, %v5908_v7 }
 0x3ec   : > { %v826_v10 = vsel %vm820_vm7, %v5967_v13, %v807_v40  ;;  %v712_v13 = vadd.f32 %v694_v55, %v646_v9  ;;  %v690_v38 = vsel %vm677_vm6, %v687_v21, %v689_v32 }
 0x3ed   : > { %v919_v47 = vadd.f32 0.0185, %v910_v4  ;;  %v844_v36 = vadd.f32 %v826_v10, %v709_v12  ;;  %v710_v4 = vadd.f32 %v690_v38, %v644_v14  ;;  %v692_v12 = vsel %vm677_vm6, %v689_v32, %v691_v44 }
 0x3ef   : > { %v941_v41 = vrot.slane %v919_v47, 7  ;;  %v890_v2 = vpop.permute.xlu1 %889  ;;  %v711_v47 = vadd.f32 %v692_v12, %v645_v22 }
 0x3f0   : > { %v911_v33 = vadd.f32 %v890_v2, %v844_v36 }
 0x3f1   : > { %v6048_v39 = vsel %vm933_vm8, %v939_v59, %v941_v41 }
 0x3f2   : > { %v920_v45 = vadd.f32 0.0185, %v911_v33 }
 0x3f3   : > { %v819_v23 = vpop.permute.xlu1 %818 }
 0x3f4   : > { %v943_v20 = vrot.slane %v920_v45, 7  ;;  %v829_v61 = vsel %vm820_vm7, %v5975_v52, %v819_v23  ;;  %v892_v52 = vpop.permute.xlu0 %891 }
 0x3f5   : > { %v847_v60 = vadd.f32 %v829_v61, %v712_v13 }
 0x3f6   : > { %v6055_v0 = vsel %vm933_vm8, %v941_v41, %v943_v20 }
 0x3f7   : > { %v914_v58 = vadd.f32 %v896_v43, %v847_v60  ;;  %v811_v59 = vpop.permute.xlu1 %810 }
 0x3f8   : > { %v827_v40 = vsel %vm820_vm7, %v5971_v6, %v811_v59  ;;  %v6096_v59 = vld [vmem:[#allocation2 + $0x8] sm:$0x80] }
 0x3f9   : > { %v845_v10 = vadd.f32 %v827_v40, %v710_v4  ;;  %v923_v33 = vadd.f32 0.0185, %v914_v58  ;;  %1807 = vst.msk [vmem:[#allocation2 + $0xf] sm:$0x1] %vm1806_vm10, %v7128_v3 }
 0x3fb   : > { %v912_v46 = vadd.f32 %v892_v52, %v845_v10  ;;  %v815_v21 = vpop.permute.xlu1 %814  ;;  %v949_v32 = vrot.slane %v923_v33, 7  ;;  %v5184_v33 = vld [vmem:[%s5633_s21 + $0x20] sm:$0xff] }
 0x3fc   : > { %v828_v7 = vsel %vm820_vm7, %v5973_v53, %v815_v21 }
 0x3fd   : > { %v921_v36 = vadd.f32 0.0185, %v912_v46  ;;  %v846_v49 = vadd.f32 %v828_v7, %v711_v47 }
 0x3ff   : > { %v945_v41 = vrot.slane %v921_v36, 7  ;;  %v894_v2 = vpop.permute.xlu1 %893 }
 0x400   : > { %v913_v55 = vadd.f32 %v894_v2, %v846_v49  ;;  %v5183_v49 = vld [vmem:[%s5633_s21 + $0x28] sm:$0xff] }
 0x401   : > { %v6064_v6 = vsel %vm933_vm8, %v943_v20, %v945_v41 }
 0x402   : > { %v922_v44 = vadd.f32 0.0185, %v913_v55 }
 0x404   : > { %v947_v9 = vrot.slane %v922_v44, 7 }
 0x406   : > { %v6067_v8 = vsel %vm933_vm8, %v945_v41, %v947_v9  ;;  %v6070_v45 = vsel %vm933_vm8, %v947_v9, %v949_v32  ;;  %v5185_v32 = vld [vmem:[%s5633_s21 + $0x38] sm:$0xff] }
 0x407   : > { %7150 = vst [vmem:[#allocation76_spill] sm:$0xff] %v6067_v8  ;;  %7151 = vst [vmem:[#allocation77_spill] sm:$0xff] %v6070_v45 }
 0x42a   : > { %v4884_v23 = vpop.f32.mrf.mxu0 }
 0x42c   : > { %v1223_v53 = vpop.f32.mrf.mxu0 }
 0x42d   : > { %4902 = vmatprep.mubr.msk.f32.mxu1 %vm346_vm1, %v1223_v53 }
 0x42e   : > { %v4887_v13 = vpop.f32.mrf.mxu0  ;;  %4903 = vmatmul.mubr.msk.f32.vlgmr.msra.gmra.mxu1 %vm346_vm1, %v4884_v23 }
 0x42f   : > { %4926 = vmatpush3.msra.mxu1 %v7090_v29 }
 0x430   : > { %v1233_v43 = vpop.f32.mrf.mxu0  ;;  %4927 = vmatprep.subr.mxu1 %v7091_v28 }
 0x431   : > { %4905 = vmatprep.mubr.msk.f32.mxu1 %vm346_vm1, %v1233_v43  ;;  %4928 = vmatpush3.msra.mxu1 %v7091_v28 }
 0x432   : > { %v4890_v20 = vpop.f32.mrf.mxu0  ;;  %4906 = vmatmul.mubr.msk.f32.gmra.mxu1 %vm346_vm1, %v4887_v13  ;;  %4929 = vmatprep.subr.mxu1 %v7092_v27 }
 0x433   : > { %4930 = vmatpush3.msra.mxu1 %v7092_v27 }
 0x434   : > { %v1243_v61 = vpop.f32.mrf.mxu0  ;;  %4931 = vmatprep.subr.mxu1 %v7093_v26 }
 0x435   : > { %4908 = vmatprep.mubr.msk.f32.mxu1 %vm346_vm1, %v1243_v61  ;;  %4932 = vmatpush3.msra.mxu1 %v7093_v26 }
 0x436   : > { %v4893_v38 = vpop.f32.mrf.mxu0  ;;  %4909 = vmatmul.mubr.msk.f32.gmra.mxu1 %vm346_vm1, %v4890_v20  ;;  %4946 = vmatprep.subr.mxu1 %v7087_v35  ;;  %v5186_v20 = vld [vmem:[%s5633_s21 + $0x30] sm:$0xff] }
 0x438   : > { %v1253_v60 = vpop.f32.mrf.mxu0 }
 0x439   : > { %4911 = vmatprep.mubr.msk.f32.mxu1 %vm346_vm1, %v1253_v60 }
 0x43a   : > { %4912 = vmatmul.mubr.msk.f32.gmra.mxu1 %vm346_vm1, %v4893_v38  ;;  %v4924_v14 = vpop.f32.mrf.mxu0 }
 0x43c   : > { %v1890_v58 = vpop.f32.mrf.mxu0 }
 0x43d   : > { %4933 = vmatprep.mubr.msk.f32.mxu1 %vm346_vm1, %v1890_v58 }
 0x43e   : > { %4934 = vmatmul.mubr.msk.f32.vlgmr.msra.gmra.mxu1 %vm346_vm1, %v4924_v14 }
 0x43f   : > { %4947 = vmatpush3.msra.mxu1 %v7087_v35 }
 0x440   : > { %4948 = vmatprep.subr.mxu1 %v7088_v34 }
 0x441   : > { %4949 = vmatpush3.msra.mxu1 %v7088_v34 }
 0x442   : > { %4967 = vmatprep.subr.mxu1 %v7090_v29 }
 0x4ee   : > { %v4904_v4 = vpop.f32.mrf.mxu1 }
 0x4ef   : > { %v6101_v40 = vsub.f32 %v5665_v62, %v4904_v4 }
 0x4f0   : > { %v1352_v12 = vpop.f32.mrf.mxu1 }
 0x4f1   : > { %v1400_v10 = vand.u32 2147483647, %v6101_v40  ;;  %v6105_v22 = vsub.f32 %v5670_v63, %v1352_v12 }
 0x4f2   : > { %v4907_v52 = vpop.f32.mrf.mxu1 }
 0x4f3   : > { %1408 = vst.msk [vmem:[#allocation2 + $0x38] sm:$0xff] %vm151_vm0, %v1400_v10  ;;  %v1399_v46 = vand.u32 2147483647, %v6105_v22  ;;  %v6110_v21 = vsub.f32 %v5653_v56, %v4907_v52 }
 0x4f4   : > { %v1362_v47 = vpop.f32.mrf.mxu1 }
 0x4f5   : > { %1407 = vst.msk [vmem:[#allocation2 + $0x20] sm:$0xff] %vm151_vm0, %v1399_v46  ;;  %v1402_v62 = vand.u32 2147483647, %v6110_v21  ;;  %v6115_v7 = vsub.f32 %v5656_v57, %v1362_v47 }
 0x4f6   : > { %v4910_v63 = vpop.f32.mrf.mxu1 }
 0x4f7   : > { %1410 = vst.msk [vmem:[#allocation2 + $0x68] sm:$0xff] %vm151_vm0, %v1402_v62  ;;  %v1401_v36 = vand.u32 2147483647, %v6115_v7  ;;  %v6120_v41 = vsub.f32 %v5183_v49, %v4910_v63 }
 0x4f8   : > { %v1372_v56 = vpop.f32.mrf.mxu1 }
 0x4f9   : > { %1409 = vst.msk [vmem:[#allocation2 + $0x50] sm:$0xff] %vm151_vm0, %v1401_v36  ;;  %v1404_v2 = vand.u32 2147483647, %v6120_v41  ;;  %v6125_v55 = vsub.f32 %v5184_v33, %v1372_v56 }
 0x4fa   : > { %v4913_v44 = vpop.f32.mrf.mxu1  ;;  %v6132_v23 = vld [vmem:[#allocation2 + $0x38] sm:$0xff] }
 0x4fb   : > { %1412 = vst.msk [vmem:[#allocation2 + $0x98] sm:$0xff] %vm151_vm0, %v1404_v2  ;;  %v1403_v57 = vand.u32 2147483647, %v6125_v55  ;;  %v6130_v9 = vsub.f32 %v5185_v32, %v4913_v44  ;;  %v1509_v58 = vmul.f32 0.1846, %v6132_v23  ;;  %v7154_v44 = vld [vmem:[#allocation35_spill] sm:$0xff] }
 0x4fc   : > { %v1382_v53 = vpop.f32.mrf.mxu1  ;;  %v6134_v13 = vld [vmem:[#allocation2 + $0x20] sm:$0xff]  ;;  %v1632_v52 = vmul.f32 0.1986, %v6132_v23  ;;  %1815 = vst.msk [vmem:[#allocation2 + $0x38] sm:$0xff] %vm1813_vm11, %v7128_v3 }
 0x4fd   : > { %7152 = vst [vmem:[#allocation78_spill] sm:$0xff] %v6130_v9  ;;  %1411 = vst.msk [vmem:[#allocation2 + $0x80] sm:$0xff] %vm151_vm0, %v1403_v57  ;;  %v1406_v43 = vand.u32 2147483647, %v6130_v9  ;;  %v6139_v61 = vsub.f32 %v5186_v20, %v1382_v53  ;;  %v1507_v38 = vmul.f32 0.1846, %v6134_v13 }
 0x4fe   : > { %v1631_v60 = vmul.f32 0.1986, %v6134_v13  ;;  %v6143_v14 = vpop.f32.mrf.mxu1  ;;  %v6155_v62 = vld [vmem:[#allocation2 + $0x68] sm:$0xff]  ;;  %v1542_v36 = vrot.slane %v1509_v58, 1  ;;  %v1648_v49 = vrot.slane %v1632_v52, 1 }
 0x4ff   : > { %7153 = vst [vmem:[#allocation79_spill] sm:$0xff] %v6139_v61  ;;  %1414 = vst.msk [vmem:[#allocation2 + $0xc8] sm:$0xff] %vm151_vm0, %v1406_v43  ;;  %v1405_v4 = vand.u32 2147483647, %v6139_v61  ;;  %4936 = vmatprep.subr.mxu0 %v6143_v14  ;;  %v1539_v12 = vrot.slane %v1507_v38, 1 }
 0x500   : > { %v1647_v10 = vrot.slane %v1631_v60, 1  ;;  %v6150_v46 = vpop.f32.mrf.mxu1  ;;  %4937 = vmatpush3.msra.mxu0 %v6143_v14  ;;  %v6153_v47 = vld [vmem:[#allocation2 + $0x50] sm:$0xff]  ;;  %v1513_v2 = vmul.f32 0.1846, %v6155_v62  ;;  %v1634_v38 = vmul.f32 0.1986, %v6155_v62 }
 0x501   : > { %1413 = vst.msk [vmem:[#allocation2 + $0xb0] sm:$0xff] %vm151_vm0, %v1405_v4  ;;  %4938 = vmatprep.subr.mxu0 %v6150_v46  ;;  %1570 = vrot.lane.b32.xlu0 %v1539_v12, %s5196_s22  ;;  %v6161_v63 = vmul.f32 0.1986, %v6153_v47  ;;  %v1543_v33 = vsel %vm753_vm4, %v1539_v12, %v1542_v36  ;;  %v1511_v32 = vmul.f32 0.1846, %v6153_v47  ;;  %v7155_v60 = vld [vmem:[#allocation36_spill] sm:$0xff] }
 0x502   : > { %1662 = vrot.lane.b32.xlu1 %v1647_v10, %s5197_s16  ;;  %4939 = vmatpush3.msra.mxu0 %v6150_v46  ;;  %v1550_v58 = vrot.slane %v1513_v2, 1  ;;  %v1649_v12 = vsel %vm753_vm4, %v1647_v10, %v1648_v49  ;;  %v1652_v10 = vrot.slane %v1634_v38, 1  ;;  %1816 = vst.msk [vmem:[#allocation2 + $0x50] sm:$0xff] %vm1813_vm11, %v7128_v3  ;;  %1817 = vst.msk [vmem:[#allocation2 + $0x68] sm:$0xff] %vm1813_vm11, %v7128_v3 }
 0x503   : > { %4941 = vmatmul.mubr.msk.f32.vlgmr.msra.gmra.mxu0 %vm1980_vm9, %v7089_v31  ;;  %4956 = vmatprep.subr.mxu0 %v5871_v48  ;;  %v6989_v56 = vrot.slane %v6161_v63, 1  ;;  %v1546_v52 = vrot.slane %v1511_v32, 1 }
 0x504   : > { %4957 = vmatpush3.msra.mxu0 %v5871_v48  ;;  %4943 = vmatprep.mubr.msk.f32.mxu0 %vm1980_vm9, %v7154_v44  ;;  %v1420_v57 = vld [vmem:[#allocation2 + $0x80] sm:$0xff] }
 0x505   : > { %4958 = vmatprep.subr.mxu0 %v5876_v5  ;;  %1574 = vrot.lane.b32.xlu0 %v1543_v33, %s5196_s22  ;;  %v1651_v53 = vsel %vm753_vm4, %v1648_v49, %v6989_v56  ;;  %v6180_v43 = vmul.f32 0.1846, %v1420_v57  ;;  %1808 = vst.msk [vmem:[#allocation2 + $0x80] sm:$0x1] %vm1806_vm10, %v7128_v3  ;;  %v6184_v20 = vmul.f32 0.1986, %v1420_v57 }
 0x506   : > { %4959 = vmatpush3.msra.mxu0 %v5876_v5  ;;  %1666 = vrot.lane.b32.xlu1 %v1651_v53, %s5197_s16  ;;  %v1421_v33 = vld [vmem:[#allocation2 + $0x98] sm:$0xff]  ;;  %vm3691_vm10 = vcmask 72768  }
 0x507   : > { %4944 = vmatmul.mubr.msk.f32.gmra.mxu0 %vm1980_vm9, %v7155_v60  ;;  %4960 = vmatprep.subr.mxu0 %v5855_v37  ;;  %v1554_v4 = vrot.slane %v6180_v43, 1  ;;  %v1654_v2 = vrot.slane %v6184_v20, 1  ;;  %v1517_v49 = vmul.f32 0.1846, %v1421_v33  ;;  %v6205_v43 = vmul.f32 0.0757, %v1420_v57 }
 0x508   : > { %4961 = vmatpush3.msra.mxu0 %v5855_v37  ;;  %4964 = vmatprep.mubr.msk.f32.mxu0 %vm346_vm1, %v7096_v24  ;;  %v1422_v53 = vld [vmem:[#allocation2 + $0xb0] sm:$0xff]  ;;  %v1547_v24 = vsel %vm753_vm4, %v1542_v36, %v1546_v52  ;;  %v1551_v36 = vsel %vm753_vm4, %v1546_v52, %v1550_v58 }
 0x509   : > { %4962 = vmatprep.subr.mxu0 %v5861_v50  ;;  %1664 = vrot.lane.b32.xlu0 %v1649_v12, %s5197_s16  ;;  %v1555_v56 = vsel %vm753_vm4, %v1550_v58, %v1554_v4  ;;  %v1519_v9 = vmul.f32 0.1846, %v1422_v53  ;;  %v1637_v32 = vmul.f32 0.1986, %v1422_v53  ;;  %v1443_v12 = vld [vmem:[#allocation2 + $0xc8] sm:$0xff]  ;;  %v1655_v20 = vsel %vm753_vm4, %v1652_v10, %v1654_v2 }
 0x50a   : > { %4963 = vmatpush3.msra.mxu0 %v5861_v50  ;;  %1586 = vrot.lane.b32.xlu1 %v1555_v56, %s5196_s22  ;;  %v1636_v56 = vmul.f32 0.1986, %v1421_v33  ;;  %v1451_v45 = vmul.f32 0.0757, %v1422_v53  ;;  %v1558_v8 = vrot.slane %v1517_v49, 1  ;;  %v7156_v60 = vrot.slane %v6205_v43, 2 }
 0x50b   : > { %4965 = vmatmul.mubr.msk.f32.vlgmr.msra.gmra.mxu0 %vm346_vm1, %v7095_v25  ;;  %v1562_v61 = vrot.slane %v1519_v9, 1  ;;  %v1450_v25 = vmul.f32 0.0757, %v1421_v33  ;;  %v1658_v5 = vrot.slane %v1637_v32, 1  ;;  %v6214_v48 = vmul.f32 0.1986, %v1443_v12 }
 0x50c   : > { %4982 = vmatprep.mubr.msk.f32.mxu0 %vm1980_vm9, %v7094_v30  ;;  %v1474_v30 = vrot.slane %v1451_v45, 2  ;;  %v6217_v37 = vmul.f32 0.0757, %v1443_v12  ;;  %v1430_v9 = vmul.f32 0.0837, %v1421_v33  ;;  %v1656_v49 = vrot.slane %v1636_v56, 1 }
 0x50d   : > { %1578 = vrot.lane.b32.xlu0 %v1547_v24, %s5196_s22  ;;  %v1472_v50 = vrot.slane %v1450_v25, 2  ;;  %v1563_v24 = vsel %vm753_vm4, %v1558_v8, %v1562_v61  ;;  %v7003_v38 = vrot.slane %v6214_v48, 1  ;;  %v1431_v33 = vmul.f32 0.0837, %v1422_v53 }
 0x50e   : > { %1670 = vrot.lane.b32.xlu1 %v1655_v20, %s5197_s16  ;;  %v1429_v20 = vmul.f32 0.0837, %v1420_v57  ;;  %v6999_v45 = vrot.slane %v6217_v37, 2  ;;  %v7157_v56 = vrot.slane %v6161_v63, 1  ;;  %v6250_v53 = vmul.f32 0.1846, %v1443_v12 }
 0x50f   : > { %v1475_v32 = vsel %vm677_vm6, %v1472_v50, %v1474_v30  ;;  %v1473_v25 = vsel %vm677_vm6, %v7156_v60, %v1472_v50  ;;  %v6235_v57 = vsel %vm753_vm4, %v1658_v5, %v7003_v38  ;;  %v1659_v60 = vsel %vm753_vm4, %v1656_v49, %v1658_v5 }
 0x510   : > { %v6228_v58 = vadd.f32 %v1475_v32, %v1430_v9  ;;  %v6230_v52 = vadd.f32 %v1473_v25, %v1429_v20  ;;  %v1477_v50 = vsel %vm677_vm6, %v1474_v30, %v6999_v45  ;;  %v1559_v9 = vsel %vm753_vm4, %v1554_v4, %v1558_v8 }
 0x511   : > { %1582 = vrot.lane.b32.xlu0 %v1551_v36, %s5196_s22  ;;  %v1653_v36 = vsel %vm753_vm4, %v7157_v56, %v1652_v10  ;;  %v1657_v63 = vsel %vm753_vm4, %v1654_v2, %v1656_v49  ;;  %v7005_v30 = vrot.slane %v6250_v53, 1  ;;  %v1442_v10 = vld [vmem:[#allocation2 + $0x20] sm:$0xfe]  ;;  %v1446_v4 = vmul.f32 0.0757, %v6132_v23 }
 0x512   : > { %1594 = vrot.lane.b32.xlu1 %v1563_v24, %s5196_s22  ;;  %v6245_v24 = vadd.f32 %v1477_v50, %v1431_v33  ;;  %1814 = vst.msk [vmem:[#allocation2 + $0x20] sm:$0xff] %vm1813_vm11, %v7128_v3  ;;  %v1445_v8 = vmul.f32 0.0757, %v1442_v10  ;;  %v1424_v2 = vmul.f32 0.0837, %v6096_v59  ;;  %vm4359_vm11 = vcmask 24576  }
 0x513   : > { %v1567_v5 = vsel %vm753_vm4, %v1562_v61, %v7005_v30  ;;  %v1464_v20 = vrot.slane %v1446_v4, 2  ;;  %v1448_v32 = vmul.f32 0.0757, %v6155_v62 }
 0x514   : > { %v1463_v12 = vrot.slane %v1445_v8, 2 }
 0x515   : > { %1668 = vrot.lane.b32.xlu0 %v1653_v36, %s5197_s16  ;;  %v1447_v36 = vmul.f32 0.0757, %v6153_v47 }
 0x516   : > { %1674 = vrot.lane.b32.xlu1 %v1659_v60, %s5197_s16  ;;  %v1489_v49 = vadd.f32 %v1463_v12, %v1424_v2  ;;  %v1465_v56 = vsel %vm677_vm6, %v1463_v12, %v1464_v20  ;;  %v1425_v60 = vmul.f32 0.0837, %v6134_v13  ;;  %v1428_v12 = vmul.f32 0.0837, %v6155_v62 }
 0x517   : > { %v1466_v4 = vrot.slane %v1447_v36, 2 }
 0x518   : > { %v1490_v59 = vadd.f32 %v1465_v56, %v1425_v60 }
 0x519   : > { %1590 = vrot.lane.b32.xlu0 %v1559_v9, %s5196_s22 }
 0x51d   : > { %1672 = vrot.lane.b32.xlu0 %v1657_v63, %s5197_s16 }
 0x521   : > { %1598 = vrot.lane.b32.xlu0 %v1567_v5, %s5196_s22  ;;  %v1468_v5 = vrot.slane %v1448_v32, 2 }
 0x573   : > { %v1571_v61 = vpop.permute.xlu0 %1570 }
 0x574   : > { %v1604_v25 = vsel %vm820_vm7, %v5979_v54, %v1571_v61  ;;  %v1663_v33 = vpop.permute.xlu1 %1662  ;;  %v7158_v54 = vrot.slane %v6205_v43, 2 }
 0x575   : > { %v1622_v50 = vadd.f32 %v1604_v25, %v1489_v49 }
 0x576   : > { %v1471_v61 = vsel %vm677_vm6, %v1468_v5, %v7158_v54 }
 0x577   : > { %v1689_v9 = vadd.f32 %v1663_v33, %v1622_v50  ;;  %v1575_v63 = vpop.permute.xlu0 %1574  ;;  %v1467_v33 = vsel %vm677_vm6, %v1464_v20, %v1466_v4  ;;  %v1493_v56 = vadd.f32 %v1471_v61, %v1428_v12 }
 0x578   : > { %v1605_v10 = vsel %vm820_vm7, %v5983_v16, %v1575_v63  ;;  %v1667_v8 = vpop.permute.xlu1 %1666  ;;  %v1426_v16 = vmul.f32 0.0837, %v6132_v23 }
 0x579   : > { %v1623_v2 = vadd.f32 %v1605_v10, %v1490_v59  ;;  %v1698_v49 = vadd.f32 0.0185, %v1689_v9 }
 0x57a   : > { %v1491_v60 = vadd.f32 %v1467_v33, %v1426_v16 }
 0x57b   : > { %v1665_v45 = vpop.permute.xlu0 %1664  ;;  %v1716_v63 = vrot.slane %v1698_v49, 7 }
 0x57c   : > { %v1690_v25 = vadd.f32 %v1665_v45, %v1623_v2  ;;  %v1587_v13 = vpop.permute.xlu1 %1586  ;;  %v1469_v45 = vsel %vm677_vm6, %v1466_v4, %v1468_v5 }
 0x57d   : > { %v1608_v32 = vsel %vm820_vm7, %v5977_v17, %v1587_v13  ;;  %v1427_v17 = vmul.f32 0.0837, %v6153_v47 }
 0x57e   : > { %v1699_v36 = vadd.f32 0.0185, %v1690_v25  ;;  %v1626_v50 = vadd.f32 %v1608_v32, %v1493_v56 }
 0x57f   : > { %v1579_v43 = vpop.permute.xlu0 %1578  ;;  %v1492_v61 = vadd.f32 %v1469_v45, %v1427_v17  ;;  %v7159_v45 = vld [vmem:[#allocation56_spill] sm:$0xff] }
 0x580   : > { %v1717_v59 = vrot.slane %v1699_v36, 7  ;;  %v1606_v62 = vsel %vm820_vm7, %v5987_v11, %v1579_v43  ;;  %v1671_v9 = vpop.permute.xlu1 %1670 }
 0x581   : > { %v1624_v20 = vadd.f32 %v1606_v62, %v1491_v60  ;;  %v1693_v10 = vadd.f32 %v1671_v9, %v1626_v50  ;;  %v5110_v60 = vpop.eup %5109 }
 0x582   : > { %v1718_v23 = vsel %vm933_vm8, %v1716_v63, %v1717_v59 }
 0x583   : > { %5111 = vrcp.f32 %v1718_v23  ;;  %v1691_v2 = vadd.f32 %v1667_v8, %v1624_v20  ;;  %v1583_v54 = vpop.permute.xlu0 %1582  ;;  %v1702_v47 = vadd.f32 0.0185, %v1693_v10 }
 0x584   : > { %v1607_v12 = vsel %vm820_vm7, %v5991_v51, %v1583_v54  ;;  %v1595_v49 = vpop.permute.xlu1 %1594  ;;  %5113 = vrcp.f32 %v6032_v18 }
 0x585   : > { %v1700_v11 = vadd.f32 0.0185, %v1691_v2  ;;  %v1610_v5 = vsel %vm820_vm7, %v5981_v15, %v1595_v49  ;;  %v1625_v4 = vadd.f32 %v1607_v12, %v1492_v61  ;;  %v1723_v16 = vrot.slane %v1702_v47, 7 }
 0x586   : > { %v1628_v42 = vadd.f32 %v1610_v5, %v6228_v58 }
 0x587   : > { %v1719_v25 = vrot.slane %v1700_v11, 7  ;;  %v1669_v13 = vpop.permute.xlu0 %1668 }
 0x588   : > { %v1692_v33 = vadd.f32 %v1669_v13, %v1625_v4  ;;  %v1675_v56 = vpop.permute.xlu1 %1674 }
 0x589   : > { %v1720_v8 = vsel %vm933_vm8, %v1717_v59, %v1719_v25  ;;  %v1695_v50 = vadd.f32 %v1675_v56, %v1628_v42 }
 0x58a   : > { %5115 = vrcp.f32 %v1720_v8  ;;  %v1701_v32 = vadd.f32 0.0185, %v1692_v33  ;;  %v7162_v33 = vld [vmem:[#allocation57_spill] sm:$0xff] }
 0x58b   : > { %v1591_v51 = vpop.permute.xlu0 %1590  ;;  %5117 = vrcp.f32 %v6041_v1  ;;  %v6301_v62 = vadd.f32 0.0185, %v1695_v50 }
 0x58c   : > { %v1721_v36 = vrot.slane %v1701_v32, 7  ;;  %v1609_v15 = vsel %vm820_vm7, %v5995_v19, %v1591_v51  ;;  %5119 = vrcp.f32 %v6048_v39  ;;  %v960_v19 = vmul.f32 %v5110_v60, %v7159_v45 }
 0x58d   : > { %v1627_v58 = vadd.f32 %v1609_v15, %v6230_v52  ;;  %v7000_v10 = vrot.slane %v6301_v62, 7 }
 0x58e   : > { %v1722_v18 = vsel %vm933_vm8, %v1719_v25, %v1721_v36  ;;  %v1724_v43 = vsel %vm933_vm8, %v1721_v36, %v1723_v16  ;;  %v7161_v25 = vld [vmem:[#allocation58_spill] sm:$0xff] }
 0x58f   : > { %5121 = vrcp.f32 %v1722_v18  ;;  %v1673_v63 = vpop.permute.xlu0 %1672 }
 0x590   : > { %v5112_v59 = vpop.eup %5111  ;;  %5123 = vrcp.f32 %v1724_v43  ;;  %v1694_v9 = vadd.f32 %v1673_v63, %v1627_v58 }
 0x591   : > { %v1742_v1 = vmul.f32 %v5112_v59, %v6105_v22  ;;  %v5114_v17 = vpop.eup %5113  ;;  %5125 = vrcp.f32 %v6055_v0  ;;  %v7160_v22 = vld [vmem:[#allocation55_spill] sm:$0xff]  ;;  %v7163_v59 = vld [vmem:[#allocation60_spill] sm:$0xff] }
 0x592   : > { %v1703_v20 = vadd.f32 0.0185, %v1694_v9  ;;  %5127 = vrcp.f32 %v6064_v6  ;;  %v962_v61 = vmul.f32 %v5114_v17, %v7160_v22 }
 0x593   : > { %v1757_v52 = vsub.f32 %v960_v19, %v1742_v1  ;;  %v7164_v19 = vld [vmem:[#allocation59_spill] sm:$0xff] }
 0x594   : > { %v1725_v39 = vrot.slane %v1703_v20, 7 }
 0x595   : > { %v1765_v5 = vmul.f32 %v1757_v52, %v1757_v52 }
 0x596   : > { %v1726_v23 = vsel %vm933_vm8, %v1723_v16, %v1725_v39  ;;  %v1728_v2 = vsel %vm933_vm8, %v1725_v39, %v7000_v10 }
 0x597   : > { %v5116_v54 = vpop.eup %5115  ;;  %5129 = vrcp.f32 %v1726_v23  ;;  %v1773_v32 = vsel %vm151_vm0, %v1765_v5, 0.0 }
 0x598   : > { %5131 = vrcp.f32 %v1728_v2  ;;  %v1744_v12 = vmul.f32 %v5116_v54, %v6101_v40  ;;  %v5118_v49 = vpop.eup %5117 }
 0x599   : > { %v5120_v4 = vpop.eup %5119  ;;  %v964_v13 = vmul.f32 %v5118_v49, %v7161_v25 }
 0x59a   : > { %v1758_v11 = vsub.f32 %v962_v61, %v1744_v12  ;;  %v966_v8 = vmul.f32 %v5120_v4, %v7162_v33 }
 0x59c   : > { %v5122_v0 = vpop.eup %5121  ;;  %v1766_v42 = vmul.f32 %v1758_v11, %v1758_v11 }
 0x59d   : > { %v5124_v6 = vpop.eup %5123  ;;  %v1746_v47 = vmul.f32 %v5122_v0, %v6115_v7 }
 0x59e   : > { %v1748_v56 = vmul.f32 %v5124_v6, %v6110_v21  ;;  %v1774_v51 = vsel %vm151_vm0, %v1766_v42, 0.0  ;;  %v5126_v15 = vpop.eup %5125  ;;  %v7165_v42 = vld [vmem:[#allocation49_spill] sm:$0xff] }
 0x59f   : > { %v1759_v40 = vsub.f32 %v964_v13, %v1746_v47  ;;  %v1775_v16 = vadd.f32 %v1774_v51, %v1773_v32  ;;  %v5128_v60 = vpop.eup %5127  ;;  %v968_v9 = vmul.f32 %v5126_v15, %v7163_v59  ;;  %v7166_v47 = vld [vmem:[#allocation50_spill] sm:$0xff]  ;;  %v7167_v32 = vld [vmem:[#allocation51_spill] sm:$0xff] }
 0x5a0   : > { %v1760_v36 = vsub.f32 %v966_v8, %v1748_v56  ;;  %v970_v1 = vmul.f32 %v5128_v60, %v7164_v19 }
 0x5a1   : > { %v1767_v50 = vmul.f32 %v1759_v40, %v1759_v40 }
 0x5a2   : > { %v1768_v58 = vmul.f32 %v1760_v36, %v1760_v36  ;;  %v7168_v36 = vld [vmem:[#allocation52_spill] sm:$0xff] }
 0x5a3   : > { %v1776_v18 = vsel %vm151_vm0, %v1767_v50, 0.0 }
 0x5a4   : > { %v5130_v43 = vpop.eup %5129  ;;  %v1777_v63 = vadd.f32 %v1776_v18, %v1775_v16  ;;  %v1778_v45 = vsel %vm151_vm0, %v1768_v58, 0.0 }
 0x5a5   : > { %v5132_v7 = vpop.eup %5131  ;;  %v1750_v21 = vmul.f32 %v5130_v43, %v6125_v55 }
 0x5a6   : > { %v1752_v20 = vmul.f32 %v5132_v7, %v6120_v41  ;;  %v1779_v52 = vadd.f32 %v1778_v45, %v1777_v63 }
 0x5a7   : > { %v1761_v39 = vsub.f32 %v968_v9, %v1750_v21  ;;  %v7169_v21 = vld [vmem:[#allocation36_spill] sm:$0xff] }
 0x5a8   : > { %v1762_v17 = vsub.f32 %v970_v1, %v1752_v20 }
 0x5a9   : > { %v1769_v23 = vmul.f32 %v1761_v39, %v1761_v39 }
 0x5aa   : > { %v1770_v2 = vmul.f32 %v1762_v17, %v1762_v17 }
 0x5ab   : > { %v1780_v54 = vsel %vm151_vm0, %v1769_v23, 0.0  ;;  %v7170_v23 = vld [vmem:[#allocation39_spill] sm:$0xff] }
 0x5ac   : > { %v1781_v22 = vadd.f32 %v1780_v54, %v1779_v52  ;;  %v1782_v61 = vsel %vm151_vm0, %v1770_v2, 0.0 }
 0x5ae   : > { %v6328_v12 = vadd.f32 %v1782_v61, %v1781_v22 }
 0x5c3   : > { %v4942_v49 = vpop.f32.mrf.mxu0 }
 0x5c5   : > { %v2059_v55 = vpop.f32.mrf.mxu0 }
 0x5c6   : > { %4950 = vmatprep.mubr.msk.f32.mxu1 %vm1980_vm9, %v2059_v55 }
 0x5c7   : > { %v4945_v11 = vpop.f32.mrf.mxu0  ;;  %4951 = vmatmul.mubr.msk.f32.vlgmr.msra.gmra.mxu1 %vm1980_vm9, %v4942_v49 }
 0x5c8   : > { %4968 = vmatpush3.msra.mxu1 %v7090_v29 }
 0x5c9   : > { %v2069_v41 = vpop.f32.mrf.mxu0  ;;  %4969 = vmatprep.subr.mxu1 %v7091_v28 }
 0x5ca   : > { %4953 = vmatprep.mubr.msk.f32.mxu1 %vm1980_vm9, %v2069_v41  ;;  %4970 = vmatpush3.msra.mxu1 %v7091_v28 }
 0x5cb   : > { %4954 = vmatmul.mubr.msk.f32.gmra.mxu1 %vm1980_vm9, %v4945_v11  ;;  %v4966_v5 = vpop.f32.mrf.mxu0  ;;  %4971 = vmatprep.subr.mxu1 %v7092_v27 }
 0x5cc   : > { %4972 = vmatpush3.msra.mxu1 %v7092_v27 }
 0x5cd   : > { %v2435_v4 = vpop.f32.mrf.mxu0  ;;  %4973 = vmatprep.subr.mxu1 %v7093_v26 }
 0x5ce   : > { %4974 = vmatpush3.msra.mxu1 %v7093_v26  ;;  %4975 = vmatprep.mubr.msk.f32.mxu1 %vm346_vm1, %v2435_v4  ;;  %v2187_v4 = vld [vmem:[#allocation2 + $0x8] sm:$0x80] }
 0x5cf   : > { %4976 = vmatmul.mubr.msk.f32.vlgmr.msra.gmra.mxu1 %vm346_vm1, %v4966_v5  ;;  %4988 = vmatprep.subr.mxu1 %v7087_v35 }
 0x5d0   : > { %4989 = vmatpush3.msra.mxu1 %v7087_v35 }
 0x5d1   : > { %4990 = vmatprep.subr.mxu1 %v7088_v34 }
 0x5d2   : > { %4991 = vmatpush3.msra.mxu1 %v7088_v34 }
 0x5d3   : > { %5005 = vmatprep.subr.mxu1 %v7128_v3 }
 0x687   : > { %v4952_v0 = vpop.f32.mrf.mxu1 }
 0x688   : > { %v6349_v6 = vsub.f32 %v7165_v42, %v4952_v0  ;;  %v2192_v42 = vmul.f32 0.0467, %v2187_v4 }
 0x689   : > { %v2156_v25 = vpop.f32.mrf.mxu1 }
 0x68a   : > { %v2180_v13 = vand.u32 2147483647, %v6349_v6  ;;  %v6353_v33 = vsub.f32 %v7166_v47, %v2156_v25 }
 0x68b   : > { %v4955_v8 = vpop.f32.mrf.mxu1 }
 0x68c   : > { %2184 = vst.msk [vmem:[#allocation2 + $0x38] sm:$0xff] %vm346_vm1, %v2180_v13  ;;  %v2179_v56 = vand.u32 2147483647, %v6353_v33  ;;  %v6358_v51 = vsub.f32 %v7167_v32, %v4955_v8  ;;  %v6423_v13 = vpop.permute.xlu0 %1598  ;;  %v7171_v32 = vld [vmem:[#allocation67_spill] sm:$0xff] }
 0x68d   : > { %v2166_v40 = vpop.f32.mrf.mxu1 }
 0x68e   : > { %2183 = vst.msk [vmem:[#allocation2 + $0x20] sm:$0xff] %vm346_vm1, %v2179_v56  ;;  %v2182_v16 = vand.u32 2147483647, %v6358_v51  ;;  %v6363_v50 = vsub.f32 %v7168_v36, %v2166_v40 }
 0x68f   : > { %v6365_v15 = vpop.f32.mrf.mxu1 }
 0x690   : > { %2186 = vst.msk [vmem:[#allocation2 + $0x68] sm:$0xff] %vm346_vm1, %v2182_v16  ;;  %v2181_v58 = vand.u32 2147483647, %v6363_v50  ;;  %4978 = vmatprep.subr.mxu0 %v6365_v15 }
 0x691   : > { %v6370_v60 = vpop.f32.mrf.mxu1  ;;  %4979 = vmatpush3.msra.mxu0 %v6365_v15 }
 0x692   : > { %2185 = vst.msk [vmem:[#allocation2 + $0x50] sm:$0xff] %vm346_vm1, %v2181_v58  ;;  %4980 = vmatprep.subr.mxu0 %v6370_v60 }
 0x693   : > { %4981 = vmatpush3.msra.mxu0 %v6370_v60  ;;  %v6379_v18 = vld [vmem:[#allocation2 + $0x38] sm:$0xff] }
 0x694   : > { %4983 = vmatmul.mubr.msk.f32.vlgmr.msra.gmra.mxu0 %vm1980_vm9, %v7089_v31  ;;  %4998 = vmatprep.subr.mxu0 %v7128_v3  ;;  %v2241_v59 = vmul.f32 0.2243, %v6379_v18  ;;  %v6402_v17 = vmul.f32 0.2138, %v6379_v18  ;;  %v6421_v0 = vmul.f32 0.0477, %v6379_v18 }
 0x695   : > { %4999 = vmatpush3.msra.mxu0 %v6143_v14  ;;  %4985 = vmatprep.mubr.msk.f32.mxu0 %vm1980_vm9, %v7154_v44  ;;  %v2188_v43 = vld [vmem:[#allocation2 + $0x20] sm:$0xff]  ;;  %v7188_v31 = vld [vmem:[#allocation47_spill] sm:$0xff] }
 0x696   : > { %5000 = vmatprep.subr.mxu0 %v7128_v3  ;;  %v2303_v63 = vmul.f32 0.2138, %v2188_v43  ;;  %v2239_v7 = vmul.f32 0.2243, %v2188_v43  ;;  %v2258_v39 = vrot.slane %v2241_v59, 1  ;;  %v7006_v49 = vrot.slane %v6402_v17, 1 }
 0x697   : > { %5001 = vmatpush3.msra.mxu0 %v6150_v46  ;;  %v6387_v9 = vld [vmem:[#allocation2 + $0x68] sm:$0xff]  ;;  %v2202_v41 = vld [vmem:[#allocation2 + $0x20] sm:$0xfe]  ;;  %v7002_v47 = vrot.slane %v6421_v0, 2  ;;  %v2193_v58 = vmul.f32 0.0467, %v2188_v43 }
 0x698   : > { %4986 = vmatmul.mubr.msk.f32.gmra.mxu0 %vm1980_vm9, %v7169_v21  ;;  %v2311_v45 = vrot.slane %v2303_v63, 1  ;;  %v2255_v19 = vrot.slane %v2239_v7, 1  ;;  %v6392_v1 = vmul.f32 0.2243, %v6387_v9  ;;  %v2205_v5 = vmul.f32 0.0477, %v2202_v41 }
 0x699   : > { %5002 = vmatprep.mubr.msk.f32.mxu0 %vm5198_vm12, %v7128_v3  ;;  %v6396_v20 = vld [vmem:[#allocation2 + $0x50] sm:$0xff] }
 0x69a   : > { %2318 = vrot.lane.b32.xlu0 %v2311_v45, %s5197_s16  ;;  %2270 = vrot.lane.b32.xlu1 %v2255_v19, %s5196_s22  ;;  %v2243_v52 = vmul.f32 0.2243, %v6396_v20  ;;  %v7004_v54 = vrot.slane %v6392_v1, 1  ;;  %v2259_v22 = vsel %vm753_vm4, %v2255_v19, %v2258_v39  ;;  %v2313_v55 = vsel %vm753_vm4, %v2311_v45, %v7006_v49  ;;  %v7172_v45 = vld [vmem:[#allocation68_spill] sm:$0xff] }
 0x69b   : > { %v2215_v25 = vrot.slane %v2205_v5, 2 }
 0x69c   : > { %5003 = vmatmul.mubr.msk.f32.vlgmr.msra.gmra.mxu0 %vm1980_vm9, %v7170_v23  ;;  %v2262_v2 = vrot.slane %v2243_v52, 1 }
 0x69d   : > { %v2229_v8 = vadd.f32 %v2215_v25, %v2192_v42  ;;  %v2217_v16 = vsel %vm677_vm6, %v2215_v25, %v7002_v47  ;;  %v7173_v42 = vld [vmem:[#allocation41_spill] sm:$0xff] }
 0x69e   : > { %2274 = vrot.lane.b32.xlu1 %v2259_v22, %s5196_s22  ;;  %v2267_v61 = vsel %vm753_vm4, %v2262_v2, %v7004_v54  ;;  %v2263_v11 = vsel %vm753_vm4, %v2258_v39, %v2262_v2  ;;  %v2230_v21 = vadd.f32 %v2217_v16, %v2193_v58  ;;  %v7176_v16 = vld [vmem:[#allocation42_spill] sm:$0xff] }
 0x69f   : > { %2282 = vrot.lane.b32.xlu0 %v2267_v61, %s5196_s22  ;;  %5014 = vmatprep.mubr.msk.f32.mxu0 %vm3088_vm13, %v7176_v16 }
 0x6a2   : > { %2320 = vrot.lane.b32.xlu1 %v2313_v55, %s5197_s16 }
 0x6a6   : > { %2278 = vrot.lane.b32.xlu1 %v2263_v11, %s5196_s22 }
 0x70c   : > { %v2271_v56 = vpop.permute.xlu1 %2270  ;;  %v2319_v63 = vpop.permute.xlu0 %2318 }
 0x70d   : > { %v2288_v40 = vsel %vm820_vm7, %v7171_v32, %v2271_v56  ;;  %v7175_v32 = vld [vmem:[#allocation44_spill] sm:$0xff] }
 0x70e   : > { %v2298_v36 = vadd.f32 %v2288_v40, %v2229_v8  ;;  %v7174_v8 = vld [vmem:[#allocation40_spill] sm:$0xff] }
 0x710   : > { %v2333_v7 = vadd.f32 %v2319_v63, %v2298_v36  ;;  %v2275_v59 = vpop.permute.xlu1 %2274  ;;  %v6456_v36 = vld [vmem:[#allocation2 + $0x8] sm:$0x80]  ;;  %v7177_v63 = vld [vmem:[#allocation63_spill] sm:$0xff] }
 0x711   : > { %v2289_v19 = vsel %vm820_vm7, %v7172_v45, %v2275_v59  ;;  %2935 = vst.msk [vmem:[#allocation2 + $0xf] sm:$0x1] %vm2934_vm14, %v7128_v3  ;;  %v7178_v45 = vld [vmem:[#allocation64_spill] sm:$0xff] }
 0x712   : > { %v2299_v52 = vadd.f32 %v2289_v19, %v2230_v21  ;;  %v2338_v2 = vadd.f32 0.0179, %v2333_v7  ;;  %3688 = vst.msk [vmem:[#allocation2 + $0xf] sm:$0x1] %vm3687_vm3, %v7128_v3 }
 0x713   : > { %4360 = vst.msk [vmem:[#allocation2 + $0xf] sm:$0x1] %vm4359_vm11, %v7128_v3 }
 0x714   : > { %v2321_v39 = vpop.permute.xlu1 %2320  ;;  %v2348_v55 = vrot.slane %v2338_v2, 7  ;;  %v7179_v2 = vld [vmem:[#allocation65_spill] sm:$0xff] }
 0x715   : > { %v2334_v22 = vadd.f32 %v2321_v39, %v2299_v52 }
 0x717   : > { %v6433_v61 = vadd.f32 0.0179, %v2334_v22 }
 0x719   : > { %v7001_v11 = vrot.slane %v6433_v61, 7 }
 0x71b   : > { %v6439_v43 = vsel %vm933_vm8, %v2348_v55, %v7001_v11 }
 0x71c   : > { %5133 = vrcp.f32 %v6439_v43 }
 0x754   : > { %v4984_v41 = vpop.f32.mrf.mxu0 }
 0x756   : > { %v2591_v5 = vpop.f32.mrf.mxu0 }
 0x757   : > { %4992 = vmatprep.mubr.msk.f32.mxu1 %vm1980_vm9, %v2591_v5  ;;  %v7180_v5 = vld [vmem:[#allocation66_spill] sm:$0xff] }
 0x758   : > { %v4987_v4 = vpop.f32.mrf.mxu0  ;;  %4993 = vmatmul.mubr.msk.f32.vlgmr.msra.gmra.mxu1 %vm1980_vm9, %v4984_v41 }
 0x759   : > { %5006 = vmatpush3.msra.mxu1 %v7173_v42 }
 0x75a   : > { %v2601_v25 = vpop.f32.mrf.mxu0  ;;  %5007 = vmatprep.subr.mxu1 %v7128_v3 }
 0x75b   : > { %4995 = vmatprep.mubr.msk.f32.mxu1 %vm1980_vm9, %v2601_v25  ;;  %5008 = vmatpush3.msra.mxu1 %v7174_v8  ;;  %v6477_v25 = vld [vmem:[#allocation2 + $0x68] sm:$0x7f] }
 0x75c   : > { %4996 = vmatmul.mubr.msk.f32.gmra.mxu1 %vm1980_vm9, %v4987_v4  ;;  %v3011_v56 = vpop.f32.mrf.mxu0  ;;  %5017 = vmatprep.subr.mxu1 %v7175_v32 }
 0x75d   : > { %5009 = vmatprep.mubr.msk.f32.mxu1 %vm5198_vm12, %v7128_v3 }
 0x75e   : > { %v5004_v40 = vpop.f32.mrf.mxu0 }
 0x760   : > { %5010 = vmatmul.mubr.msk.f32.vlgmr.msra.gmra.mxu1 %vm1980_vm9, %v3011_v56 }
 0x761   : > { %5018 = vmatpush3.msra.mxu1 %v7175_v32 }
 0x762   : > { %5029 = vmatprep.subr.mxu1 %v7128_v3 }
 0x818   : > { %v4994_v58 = vpop.f32.mrf.mxu1 }
 0x819   : > { %v6461_v7 = vsub.f32 %v7177_v63, %v4994_v58  ;;  %v7181_v63 = vld [vmem:[#allocation43_spill] sm:$0xff] }
 0x81a   : > { %v2688_v59 = vpop.f32.mrf.mxu1 }
 0x81b   : > { %v2712_v21 = vand.u32 2147483647, %v6461_v7  ;;  %v6465_v19 = vsub.f32 %v7178_v45, %v2688_v59 }
 0x81c   : > { %v4997_v52 = vpop.f32.mrf.mxu1 }
 0x81d   : > { %2716 = vst.msk [vmem:[#allocation2 + $0x38] sm:$0xff] %vm346_vm1, %v2712_v21  ;;  %v2711_v39 = vand.u32 2147483647, %v6465_v19  ;;  %v6470_v22 = vsub.f32 %v7179_v2, %v4997_v52 }
 0x81e   : > { %v2698_v55 = vpop.f32.mrf.mxu1 }
 0x81f   : > { %2715 = vst.msk [vmem:[#allocation2 + $0x20] sm:$0xff] %vm346_vm1, %v2711_v39  ;;  %v2714_v41 = vand.u32 2147483647, %v6470_v22  ;;  %v6475_v4 = vsub.f32 %v7180_v5, %v2698_v55 }
 0x820   : > { %v6479_v56 = vpop.f32.mrf.mxu1 }
 0x821   : > { %2718 = vst.msk [vmem:[#allocation2 + $0x68] sm:$0xff] %vm346_vm1, %v2714_v41  ;;  %v2713_v40 = vand.u32 2147483647, %v6475_v4  ;;  %5012 = vmatprep.subr.mxu0 %v6479_v56 }
 0x822   : > { %v5011_v58 = vpop.f32.mrf.mxu1  ;;  %5013 = vmatpush3.msra.mxu0 %v6479_v56 }
 0x823   : > { %2717 = vst.msk [vmem:[#allocation2 + $0x50] sm:$0xff] %vm346_vm1, %v2713_v40  ;;  %5015 = vmatmul.mubr.msk.f32.vlgmr.msra.gmra.mxu0 %vm3088_vm13, %v7181_v63  ;;  %5022 = vmatprep.subr.mxu0 %v7128_v3 }
 0x824   : > { %5023 = vmatpush3.msra.mxu0 %v6365_v15  ;;  %5026 = vmatprep.mubr.msk.f32.mxu0 %vm5198_vm12, %v7128_v3  ;;  %v6493_v59 = vld [vmem:[#allocation2 + $0x38] sm:$0xff] }
 0x825   : > { %5024 = vmatprep.subr.mxu0 %v7128_v3  ;;  %v2773_v52 = vmul.f32 0.2243, %v6493_v59  ;;  %2941 = vst.msk [vmem:[#allocation2 + $0x38] sm:$0xff] %vm2939_vm15, %v7128_v3 }
 0x826   : > { %5025 = vmatpush3.msra.mxu0 %v6370_v60  ;;  %v6496_v21 = vld [vmem:[#allocation2 + $0x20] sm:$0xff] }
 0x827   : > { %5027 = vmatmul.mubr.msk.f32.vlgmr.msra.gmra.mxu0 %vm1980_vm9, %v7170_v23  ;;  %v2771_v45 = vmul.f32 0.2243, %v6496_v21  ;;  %v2790_v10 = vrot.slane %v2773_v52, 1  ;;  %v2835_v44 = vmul.f32 0.2138, %v6496_v21 }
 0x828   : > { %v2735_v39 = vld [vmem:[#allocation2 + $0x68] sm:$0xff]  ;;  %5038 = vmatprep.mubr.msk.f32.mxu0 %vm3088_vm13, %v7176_v16 }
 0x829   : > { %v2787_v2 = vrot.slane %v2771_v45, 1  ;;  %v6504_v55 = vmul.f32 0.2243, %v2735_v39  ;;  %v6506_v5 = vmul.f32 0.2138, %v2735_v39 }
 0x82a   : > { %v2722_v41 = vld [vmem:[#allocation2 + $0x50] sm:$0xff]  ;;  %v6511_v58 = vmul.f32 0.0477, %v2735_v39 }
 0x82b   : > { %2802 = vrot.lane.b32.xlu1 %v2787_v2, %s5196_s22  ;;  %v2775_v40 = vmul.f32 0.2243, %v2722_v41  ;;  %2936 = vst.msk [vmem:[#allocation2 + $0x50] sm:$0x1] %vm2934_vm14, %v7128_v3  ;;  %v6513_v11 = vmul.f32 0.2138, %v2722_v41  ;;  %v2791_v54 = vsel %vm753_vm4, %v2787_v2, %v2790_v10 }
 0x82c   : > { %v7008_v38 = vrot.slane %v6504_v55, 1  ;;  %v6516_v45 = vmul.f32 0.0477, %v2722_v41  ;;  %v7010_v49 = vrot.slane %v6506_v5, 1  ;;  %v2727_v16 = vmul.f32 0.0467, %v2722_v41 }
 0x82d   : > { %v2794_v47 = vrot.slane %v2775_v40, 1  ;;  %v7013_v30 = vrot.slane %v6513_v11, 1  ;;  %v7011_v40 = vrot.slane %v6511_v58, 2  ;;  %vm4364_vm14 = vcmask 35872  }
 0x82e   : > { %v7012_v52 = vrot.slane %v6516_v45, 2 }
 0x82f   : > { %2806 = vrot.lane.b32.xlu1 %v2791_v54, %s5196_s22  ;;  %v2799_v39 = vsel %vm753_vm4, %v2794_v47, %v7008_v38  ;;  %v6533_v2 = vsel %vm753_vm4, %v7013_v30, %v7010_v49  ;;  %v2795_v38 = vsel %vm753_vm4, %v2790_v10, %v2794_v47 }
 0x830   : > { %2814 = vrot.lane.b32.xlu0 %v2799_v39, %s5196_s22  ;;  %v2753_v54 = vsel %vm677_vm6, %v7012_v52, %v7011_v40  ;;  %v6544_v39 = vld [vmem:[#allocation2 + $0x20] sm:$0xfe] }
 0x831   : > { %v6541_v23 = vadd.f32 %v2753_v54, %v2727_v16  ;;  %2940 = vst.msk [vmem:[#allocation2 + $0x20] sm:$0xff] %vm2939_vm15, %v7128_v3  ;;  %vm4367_vm15 = vcmask 27648  }
 0x833   : > { %2810 = vrot.lane.b32.xlu1 %v2795_v38, %s5196_s22 }
 0x8e3   : > { %v5016_v41 = vpop.f32.mrf.mxu0 }
 0x8e5   : > { %v3161_v49 = vpop.f32.mrf.mxu0 }
 0x8e6   : > { %5019 = vmatprep.mubr.msk.f32.mxu1 %vm3088_vm13, %v3161_v49 }
 0x8e7   : > { %5020 = vmatmul.mubr.msk.f32.vlgmr.msra.gmra.mxu1 %vm3088_vm13, %v5016_v41  ;;  %v3373_v40 = vpop.f32.mrf.mxu0 }
 0x8e8   : > { %5030 = vmatpush3.msra.mxu1 %v7173_v42  ;;  %5033 = vmatprep.mubr.msk.f32.mxu1 %vm5198_vm12, %v7128_v3 }
 0x8e9   : > { %5031 = vmatprep.subr.mxu1 %v7128_v3  ;;  %v5028_v38 = vpop.f32.mrf.mxu0 }
 0x8ea   : > { %5032 = vmatpush3.msra.mxu1 %v7174_v8  ;;  %v6568_v38 = vld [vmem:[#allocation2 + $0x18] sm:$0xff]  ;;  %v7184_v8 = vld [vmem:[#allocation46_spill] sm:$0xff] }
 0x8eb   : > { %5034 = vmatmul.mubr.msk.f32.vlgmr.msra.gmra.mxu1 %vm1980_vm9, %v3373_v40  ;;  %5041 = vmatprep.subr.mxu1 %v7175_v32  ;;  %3690 = vst.msk [vmem:[#allocation2 + $0x18] sm:$0xff] %vm133_vm2, %v7128_v3  ;;  %vm3843_vm2 = vcmask 1043456  }
 0x8ec   : > { %5042 = vmatpush3.msra.mxu1 %v7175_v32 }
 0x8ed   : > { %5051 = vmatprep.subr.mxu1 %v7128_v3 }
 0x9a7   : > { %v5021_v10 = vpop.f32.mrf.mxu1 }
 0x9a8   : > { %v6560_v49 = vsub.f32 %v6143_v14, %v5021_v10 }
 0x9a9   : > { %v3242_v47 = vpop.f32.mrf.mxu1 }
 0x9aa   : > { %7182 = vst [vmem:[#allocation56_spill] sm:$0xff] %v6560_v49  ;;  %v3254_v16 = vand.u32 2147483647, %v6560_v49  ;;  %v6564_v54 = vsub.f32 %v6150_v46, %v3242_v47  ;;  %v7183_v46 = vld [vmem:[#allocation45_spill] sm:$0xff] }
 0x9ab   : > { %v6566_v41 = vpop.f32.mrf.mxu1 }
 0x9ac   : > { %3256 = vst.msk [vmem:[#allocation2 + $0x38] sm:$0xff] %vm1980_vm9, %v3254_v16  ;;  %v3253_v40 = vand.u32 2147483647, %v6564_v54  ;;  %5036 = vmatprep.subr.mxu0 %v6566_v41 }
 0x9ad   : > { %v5035_v14 = vpop.f32.mrf.mxu1  ;;  %5037 = vmatpush3.msra.mxu0 %v6566_v41 }
 0x9ae   : > { %3255 = vst.msk [vmem:[#allocation2 + $0x20] sm:$0xff] %vm1980_vm9, %v3253_v40  ;;  %5039 = vmatmul.mubr.msk.f32.vlgmr.msra.gmra.mxu0 %vm3088_vm13, %v7181_v63  ;;  %5046 = vmatprep.subr.mxu0 %v7128_v3 }
 0x9af   : > { %5047 = vmatpush3.msra.mxu0 %v6479_v56  ;;  %5048 = vmatprep.mubr.msk.f32.mxu0 %vm5198_vm12, %v7128_v3 }
 0x9b0   : > { %5056 = vmatprep.subr.mxu0 %v7128_v3 }
 0x9b2   : > { %5049 = vmatmul.mubr.msk.f32.vlgmr.msra.gmra.mxu0 %vm3088_vm13, %v7183_v46 }
 0x9b3   : > { %v6586_v10 = vld [vmem:[#allocation2 + $0x38] sm:$0xff]  ;;  %5058 = vmatprep.mubr.msk.f32.mxu0 %vm5198_vm12, %v7128_v3 }
 0x9b4   : > { %v3270_v47 = vmul.f32 0.2503, %v6586_v10 }
 0x9b5   : > { %v6591_v16 = vld [vmem:[#allocation2 + $0x20] sm:$0xff] }
 0x9b6   : > { %3275 = vrot.lane.b32.xlu1 %v3270_v47, %s5199_s24  ;;  %v3269_v40 = vmul.f32 0.2503, %v6591_v16  ;;  %v7185_v47 = vld [vmem:[#allocation48_spill] sm:$0xff] }
 0x9b8   : > { %3273 = vrot.lane.b32.xlu0 %v3269_v40, %s5199_s24 }
 0xa6e   : > { %v5040_v14 = vpop.f32.mrf.mxu0 }
 0xa70   : > { %v3516_v52 = vpop.f32.mrf.mxu0 }
 0xa71   : > { %5043 = vmatprep.mubr.msk.f32.mxu1 %vm3088_vm13, %v3516_v52 }
 0xa72   : > { %5044 = vmatmul.mubr.msk.f32.vlgmr.msra.gmra.mxu1 %vm3088_vm13, %v5040_v14  ;;  %v3762_v30 = vpop.f32.mrf.mxu0 }
 0xa73   : > { %5052 = vmatpush3.msra.mxu1 %v7184_v8  ;;  %5053 = vmatprep.mubr.msk.f32.mxu1 %vm5198_vm12, %v7128_v3 }
 0xa74   : > { %v5050_v26 = vpop.f32.mrf.mxu0  ;;  %5061 = vmatprep.subr.mxu1 %v7128_v3 }
 0xa76   : > { %5054 = vmatmul.mubr.msk.f32.vlgmr.msra.gmra.mxu1 %vm3088_vm13, %v3762_v30 }
 0xa77   : > { %5063 = vmatprep.mubr.msk.f32.mxu1 %vm5198_vm12, %v7128_v3  ;;  %5062 = vmatpush3.msk.msra.mxu1 %vm3843_vm2, %v7185_v47 }
 0xa78   : > { %5071 = vmatprep.subr.mxu1 %v7128_v3 }
 0xb32   : > { %v5045_v52 = vpop.f32.mrf.mxu1 }
 0xb33   : > { %v6611_v26 = vsub.f32 %v6365_v15, %v5045_v52 }
 0xb34   : > { %v3597_v40 = vpop.f32.mrf.mxu1 }
 0xb35   : > { %7186 = vst [vmem:[#allocation55_spill] sm:$0xff] %v6611_v26  ;;  %v3609_v30 = vand.u32 2147483647, %v6611_v26  ;;  %v6615_v14 = vsub.f32 %v6370_v60, %v3597_v40  ;;  %v3262_v26 = vmul.f32 0.2616, %v6591_v16 }
 0xb36   : > { %v6617_v27 = vpop.f32.mrf.mxu1 }
 0xb37   : > { %7187 = vst [vmem:[#allocation58_spill] sm:$0xff] %v6617_v27  ;;  %3611 = vst.msk [vmem:[#allocation2 + $0x38] sm:$0xff] %vm1980_vm9, %v3609_v30  ;;  %v3608_v28 = vand.u32 2147483647, %v6615_v14  ;;  %5057 = vmatpush3.msk.msra.mxu0 %vm3843_vm2, %v6617_v27 }
 0xb38   : > { %v5055_v29 = vpop.f32.mrf.mxu1  ;;  %5059 = vmatmul.mubr.msk.f32.vlgmr.msra.gmra.mxu0 %vm3839_vm5, %v7188_v31  ;;  %5066 = vmatprep.subr.mxu0 %v7128_v3 }
 0xb39   : > { %3610 = vst.msk [vmem:[#allocation2 + $0x20] sm:$0xff] %vm1980_vm9, %v3608_v28  ;;  %5067 = vmatpush3.msra.mxu0 %v6566_v41  ;;  %5068 = vmatprep.mubr.msk.f32.mxu0 %vm5198_vm12, %v7128_v3 }
 0xb3a   : > { %5076 = vmatprep.subr.mxu0 %v7128_v3 }
 0xb3c   : > { %5069 = vmatmul.mubr.msk.f32.vlgmr.msra.gmra.mxu0 %vm3088_vm13, %v7183_v46  ;;  %v2843_v46 = vrot.slane %v2835_v44, 1 }
 0xb3d   : > { %5078 = vmatprep.mubr.msk.f32.mxu0 %vm5198_vm12, %v7128_v3 }
 0xb3e   : > { %v6635_v29 = vld [vmem:[#allocation2 + $0x38] sm:$0xff] }
 0xb3f   : > { %v3625_v15 = vmul.f32 0.2503, %v6635_v29  ;;  %3689 = vst.msk [vmem:[#allocation2 + $0x38] sm:$0x1] %vm3687_vm3, %v7128_v3 }
 0xb40   : > { %v6640_v28 = vld [vmem:[#allocation2 + $0x20] sm:$0xff] }
 0xb41   : > { %3630 = vrot.lane.b32.xlu1 %v3625_v15, %s5199_s24  ;;  %v3624_v60 = vmul.f32 0.2503, %v6640_v28  ;;  %3692 = vst.msk [vmem:[#allocation2 + $0x20] sm:$0xff] %vm3691_vm10, %v7128_v3  ;;  %vm4445_vm10 = vcmask 23552  }
 0xb43   : > { %3628 = vrot.lane.b32.xlu0 %v3624_v60, %s5199_s24 }
 0xbf8   : > { %v3913_v52 = vpop.f32.mrf.mxu0 }
 0xbf9   : > { %5064 = vmatmul.mubr.msk.f32.vlgmr.msra.gmra.mxu1 %vm3839_vm5, %v3913_v52 }
 0xbfa   : > { %v5060_v40 = vpop.f32.mrf.mxu0  ;;  %5072 = vmatpush3.msra.mxu1 %v7184_v8  ;;  %5073 = vmatprep.mubr.msk.f32.mxu1 %vm5198_vm12, %v7128_v3 }
 0xbfb   : > { %5081 = vmatprep.subr.mxu1 %v7128_v3 }
 0xbfc   : > { %v4087_v30 = vpop.f32.mrf.mxu0 }
 0xbfd   : > { %5074 = vmatmul.mubr.msk.f32.vlgmr.msra.gmra.mxu1 %vm3088_vm13, %v4087_v30 }
 0xbfe   : > { %v5070_v15 = vpop.f32.mrf.mxu0  ;;  %5082 = vmatpush3.msk.msra.mxu1 %vm3843_vm2, %v7185_v47  ;;  %5083 = vmatprep.mubr.msk.f32.mxu1 %vm5198_vm12, %v7128_v3  ;;  %vm4362_vm12 = vcmask 1044472  }
 0xcb9   : > { %v3989_v60 = vpop.f32.mrf.mxu1 }
 0xcba   : > { %v6657_v52 = vsub.f32 %v6479_v56, %v3989_v60 }
 0xcbb   : > { %v5065_v40 = vpop.f32.mrf.mxu1 }
 0xcbc   : > { %7189 = vst [vmem:[#allocation57_spill] sm:$0xff] %v6657_v52  ;;  %v3994_v8 = vand.u32 2147483647, %v6657_v52 }
 0xcbd   : > { %v6660_v32 = vpop.f32.mrf.mxu1 }
 0xcbe   : > { %7190 = vst [vmem:[#allocation60_spill] sm:$0xff] %v6660_v32  ;;  %3995 = vst.msk [vmem:[#allocation2 + $0x20] sm:$0xff] %vm3088_vm13, %v3994_v8  ;;  %5077 = vmatpush3.msk.msra.mxu0 %vm3843_vm2, %v6660_v32  ;;  %v6673_v8 = vld [vmem:[#allocation2 + $0x18] sm:$0xff]  ;;  %vm4443_vm2 = vcmask 15360  }
 0xcbf   : > { %v5075_v30 = vpop.f32.mrf.mxu1  ;;  %5079 = vmatmul.mubr.msk.f32.vlgmr.msra.gmra.mxu0 %vm3839_vm5, %v7188_v31  ;;  %4363 = vst.msk [vmem:[#allocation2 + $0x18] sm:$0xf] %vm4362_vm12, %v7128_v3  ;;  %v3998_v49 = vmul.f32 0.2552, %v6673_v8 }
 0xcc5   : > { %v6667_v15 = vld [vmem:[#allocation2 + $0x20] sm:$0xff] }
 0xcc6   : > { %v4002_v34 = vmul.f32 0.2598, %v6667_v15 }
 0xcc8   : > { %4004 = vrot.lane.b32.xlu0 %v4002_v34, %s5199_s24  ;;  %v4366_v34 = vand.u32 2147483647, %v6617_v27 }
 0xd7f   : > { %v4233_v56 = vpop.f32.mrf.mxu0 }
 0xd80   : > { %5084 = vmatmul.mubr.msk.f32.vlgmr.msra.gmra.mxu1 %vm3839_vm5, %v4233_v56 }
 0xd81   : > { %v5080_v60 = vpop.f32.mrf.mxu0 }
 0xe40   : > { %v4306_v40 = vpop.f32.mrf.mxu1 }
 0xe41   : > { %v6677_v30 = vsub.f32 %v6566_v41, %v4306_v40 }
 0xe42   : > { %v5085_v31 = vpop.f32.mrf.mxu1 }
 0xe43   : > { %7191 = vst [vmem:[#allocation59_spill] sm:$0xff] %v6677_v30  ;;  %v4311_v35 = vand.u32 2147483647, %v6677_v30  ;;  %v2305_v31 = vmul.f32 0.2138, %v6396_v20 }
 0xe45   : > { %4312 = vst.msk [vmem:[#allocation2 + $0x20] sm:$0xff] %vm3088_vm13, %v4311_v35  ;;  %v4394_v35 = vand.u32 2147483647, %v6660_v32  ;;  %v2314_v42 = vrot.slane %v2305_v31, 1 }
 0xe4c   : > { %v6682_v56 = vld [vmem:[#allocation2 + $0x20] sm:$0xff] }
 0xe4d   : > { %v4319_v60 = vmul.f32 0.2598, %v6682_v56  ;;  %4361 = vst.msk [vmem:[#allocation2 + $0x24] sm:$0x1] %vm4359_vm11, %v7128_v3 }
 0xe4e   : > { %4365 = vst.msk [vmem:[#allocation2 + $0x20] sm:$0xf] %vm4364_vm14, %v7128_v3  ;;  %v2836_v3 = vmul.f32 0.2138, %v6493_v59  ;;  %vm4449_vm14 = vcmask 32768  }
 0xe4f   : > { %4368 = vst.msk [vmem:[#allocation2 + $0x20] sm:$0xf] %vm4367_vm15, %v4366_v34  ;;  %4321 = vrot.lane.b32.xlu1 %v4319_v60, %s5199_s24  ;;  %v7192_v34 = vrot.slane %v6402_v17, 1  ;;  %v7193_v17 = vld [vmem:[#allocation53_spill] sm:$0xff] }
 0xe50   : > { %v2844_v47 = vrot.slane %v2836_v3, 1 }
 0xe51   : > { %v2315_v60 = vsel %vm753_vm4, %v7192_v34, %v2314_v42  ;;  %v7195_v34 = vld [vmem:[#allocation54_spill] sm:$0xff] }
 0xe52   : > { %v2845_v31 = vsel %vm753_vm4, %v2843_v46, %v2844_v47 }
 0xe56   : > { %v6691_v41 = vld [vmem:[#allocation2 + $0x20] sm:$0xf] }
 0xe57   : > { %v4375_v40 = vmul.f32 0.2215, %v6691_v41  ;;  %4395 = vst.msk [vmem:[#allocation2 + $0x20] sm:$0xf] %vm4367_vm15, %v4394_v35  ;;  %v6708_v35 = vpop.permute.xlu1 %2278 }
 0xe59   : > { %4377 = vrot.lane.b32.xlu0 %v4375_v40, %s5199_s24  ;;  %v7194_v40 = vrot.slane %v6513_v11, 1  ;;  %v7197_v11 = vrot.slane %v6392_v1, 1 }
 0xe5b   : > { %v6713_v44 = vpop.permute.xlu1 %2802  ;;  %v2847_v3 = vsel %vm753_vm4, %v2844_v47, %v7194_v40  ;;  %v2306_v47 = vmul.f32 0.2138, %v6387_v9 }
 0xe5d   : > { %2322 = vrot.lane.b32.xlu0 %v2315_v60, %s5197_s16  ;;  %v6721_v60 = vpop.permute.xlu0 %2282 }
 0xe5e   : > { %v6702_v63 = vld [vmem:[#allocation2 + $0x20] sm:$0xf] }
 0xe5f   : > { %v4402_v32 = vmul.f32 0.2215, %v6702_v63 }
 0xe61   : > { %2852 = vrot.lane.b32.xlu0 %v2845_v31, %s5197_s16  ;;  %4404 = vrot.lane.b32.xlu1 %v4402_v32, %s5199_s24  ;;  %v7196_v32 = vrot.slane %v6250_v53, 1  ;;  %v6730_v31 = vpop.permute.xlu0 %2814 }
 0xe65   : > { %1600 = vrot.lane.b32.xlu0 %v7193_v17, %s5196_s22  ;;  %2850 = vrot.lane.b32.xlu1 %v2843_v46, %s5197_s16  ;;  %v6728_v46 = vpop.permute.xlu1 %2806  ;;  %v3261_v17 = vmul.f32 0.2616, %v6568_v38  ;;  %v3274_v53 = vpop.permute.xlu0 %3273 }
 0xe67   : > { %v3279_v27 = vadd.f32 %v3274_v53, %v3261_v17 }
 0xe69   : > { %2284 = vrot.lane.b32.xlu0 %v7195_v34, %s5196_s22  ;;  %2854 = vrot.lane.b32.xlu1 %v2847_v3, %s5197_s16  ;;  %v6739_v40 = vpop.permute.xlu1 %2810  ;;  %v3259_v3 = vld [vmem:[#allocation2 + $0x30] sm:$0xff]  ;;  %v3283_v30 = vadd.f32 0.0191, %v3279_v27  ;;  %v3629_v52 = vpop.permute.xlu0 %3628 }
 0xe6d   : > { %2816 = vrot.lane.b32.xlu0 %v7195_v34, %s5196_s22  ;;  %1602 = vrot.lane.b32.xlu1 %v7196_v32, %s5196_s22  ;;  %v7198_v34 = vrot.slane %v6504_v55, 1  ;;  %v3263_v32 = vmul.f32 0.2616, %v3259_v3  ;;  %v3276_v1 = vpop.permute.xlu1 %3275  ;;  %v7199_v55 = vrot.slane %v6214_v48, 1  ;;  %v3634_v3 = vadd.f32 %v3629_v52, %v3261_v17  ;;  %v4005_v48 = vpop.permute.xlu0 %4004 }
 0xe6f   : > { %v3281_v38 = vadd.f32 %v3276_v1, %v3263_v32 }
 0xe71   : > { %1676 = vrot.lane.b32.xlu0 %v6235_v57, %s5197_s16  ;;  %2286 = vrot.lane.b32.xlu1 %v7197_v11, %s5196_s22  ;;  %v2316_v57 = vrot.slane %v2306_v47, 1  ;;  %v3280_v47 = vadd.f32 %v3274_v53, %v3262_v26  ;;  %v3619_v53 = vmul.f32 0.2616, %v6635_v29  ;;  %v4316_v29 = vmul.f32 0.2552, %v6682_v56 }
 0xe73   : > { %v2317_v11 = vsel %vm753_vm4, %v2314_v42, %v2316_v57  ;;  %v3264_v42 = vmul.f32 0.2616, %v6586_v10  ;;  %v3284_v16 = vadd.f32 0.0191, %v3280_v47 }
 0xe75   : > { %2856 = vrot.lane.b32.xlu0 %v6533_v2, %s5197_s16  ;;  %2818 = vrot.lane.b32.xlu1 %v7198_v34, %s5196_s22  ;;  %v3285_v2 = vadd.f32 0.0191, %v3281_v38  ;;  %v3631_v34 = vpop.permute.xlu1 %3630  ;;  %v3282_v27 = vadd.f32 %v3276_v1, %v3264_v42  ;;  %v3617_v38 = vmul.f32 0.2616, %v6640_v28 }
 0xe77   : > { %v3286_v10 = vadd.f32 0.0191, %v3282_v27  ;;  %v3635_v17 = vadd.f32 %v3629_v52, %v3617_v38 }
 0xe79   : > { %2326 = vrot.lane.b32.xlu0 %v2316_v57, %s5197_s16  ;;  %2324 = vrot.lane.b32.xlu1 %v2317_v11, %s5197_s16  ;;  %v7200_v57 = vrot.slane %v6506_v5, 1  ;;  %v3636_v11 = vadd.f32 %v3631_v34, %v3263_v32  ;;  %v4007_v5 = vadd.f32 %v4005_v48, %v3998_v49  ;;  %v3637_v32 = vadd.f32 %v3631_v34, %v3619_v53 }
 0xe7a   : > { %v3639_v1 = vadd.f32 0.0191, %v3635_v17  ;;  %v6773_v34 = vmul.f32 0.0477, %v6396_v20  ;;  %v2194_v53 = vmul.f32 0.0467, %v6379_v18 }
 0xe7b   : > { %v3640_v26 = vadd.f32 0.0191, %v3636_v11  ;;  %v4009_v8 = vadd.f32 0.022, %v4007_v5  ;;  %v3641_v28 = vadd.f32 0.0191, %v3637_v32 }
 0xe7c   : > { %v2218_v11 = vrot.slane %v6773_v34, 2  ;;  %v7202_v32 = vld [vmem:[#allocation69_spill] sm:$0xff] }
 0xe7d   : > { %3291 = vrot.lane.b32.xlu0 %v3283_v30, %s5196_s22  ;;  %1678 = vrot.lane.b32.xlu1 %v7199_v55, %s5197_s16  ;;  %v3638_v30 = vadd.f32 0.0191, %v3634_v3  ;;  %v3999_v55 = vmul.f32 0.2552, %v6667_v15  ;;  %v2737_v15 = vmul.f32 0.0477, %v6544_v39 }
 0xe7e   : > { %v7201_v39 = vrot.slane %v6421_v0, 2  ;;  %v7203_v0 = vld [vmem:[#allocation72_spill] sm:$0xff] }
 0xe81   : > { %2858 = vrot.lane.b32.xlu1 %v7200_v57, %s5197_s16  ;;  %3295 = vrot.lane.b32.xlu0 %v3285_v2, %s5196_s22  ;;  %v4008_v2 = vadd.f32 %v4005_v48, %v3999_v55  ;;  %v2747_v48 = vrot.slane %v2737_v15, 2  ;;  %v4396_v55 = vld [vmem:[#allocation2 + $0x18] sm:$0xf] }
 0xe83   : > { %v4010_v52 = vadd.f32 0.022, %v4008_v2 }
 0xe85   : > { %3293 = vrot.lane.b32.xlu1 %v3284_v16, %s5196_s22  ;;  %3646 = vrot.lane.b32.xlu0 %v3638_v30, %s5196_s22  ;;  %v4369_v16 = vld [vmem:[#allocation2 + $0x18] sm:$0xf]  ;;  %v2738_v30 = vmul.f32 0.0477, %v6493_v59 }
 0xe86   : > { %v4371_v56 = vmul.f32 0.0717, %v4369_v16 }
 0xe89   : > { %3297 = vrot.lane.b32.xlu1 %v3286_v10, %s5196_s22  ;;  %3650 = vrot.lane.b32.xlu0 %v3640_v26, %s5196_s22  ;;  %v2219_v10 = vsel %vm677_vm6, %v7201_v39, %v2218_v11  ;;  %v2748_v26 = vrot.slane %v2738_v30, 2 }
 0xe8a   : > { %v2231_v2 = vadd.f32 %v2219_v10, %v2194_v53  ;;  %v2726_v10 = vmul.f32 0.0467, %v6493_v59 }
 0xe8d   : > { %3648 = vrot.lane.b32.xlu1 %v3639_v1, %s5196_s22  ;;  %4013 = vrot.lane.b32.xlu0 %v4009_v8, %s5196_s22  ;;  %v2290_v1 = vsel %vm820_vm7, %v7202_v32, %v6708_v35  ;;  %v2749_v8 = vsel %vm677_vm6, %v2747_v48, %v2748_v26  ;;  %v4398_v35 = vmul.f32 0.0717, %v4396_v55 }
 0xe91   : > { %3652 = vrot.lane.b32.xlu1 %v3641_v28, %s5196_s22 }
 0xe95   : > { %4015 = vrot.lane.b32.xlu1 %v4010_v52, %s5196_s22  ;;  %v2725_v52 = vmul.f32 0.0467, %v6496_v21  ;;  %v7204_v21 = vld [vmem:[#allocation70_spill] sm:$0xff] }
 0xe96   : > { %v2820_v16 = vsel %vm820_vm7, %v7204_v21, %v6713_v44  ;;  %v7208_v21 = vld [vmem:[#allocation71_spill] sm:$0xff] }
 0xe97   : > { %v2762_v18 = vadd.f32 %v2749_v8, %v2725_v52 }
 0xec1   : > { %v4322_v47 = vpop.permute.xlu1 %4321 }
 0xec2   : > { %v4324_v3 = vadd.f32 %v4322_v47, %v3998_v49  ;;  %v4325_v42 = vadd.f32 %v4322_v47, %v4316_v29  ;;  %v4372_v49 = vmul.f32 0.0717, %v6691_v41  ;;  %v2821_v29 = vsel %vm820_vm7, %v7203_v0, %v6728_v46 }
 0xec4   : > { %v4326_v57 = vadd.f32 0.022, %v4324_v3  ;;  %v4327_v27 = vadd.f32 0.022, %v4325_v42  ;;  %v2300_v3 = vadd.f32 %v2290_v1, %v2231_v2  ;;  %v2724_v42 = vmul.f32 0.0467, %v6456_v36 }
 0xec5   : > { %v7206_v1 = vld [vmem:[#allocation74_spill] sm:$0xff]  ;;  %v2204_v2 = vld [vmem:[#allocation2 + $0x80] sm:$0x1] }
 0xec6   : > { %4332 = vrot.lane.b32.xlu1 %v4327_v27, %s5196_s22  ;;  %4330 = vrot.lane.b32.xlu0 %v4326_v57, %s5196_s22  ;;  %v2831_v57 = vadd.f32 %v2821_v29, %v2762_v18  ;;  %v4399_v27 = vmul.f32 0.0717, %v6702_v63  ;;  %v2761_v39 = vadd.f32 %v2747_v48, %v2724_v42  ;;  %v2822_v44 = vsel %vm820_vm7, %v7206_v1, %v6739_v40  ;;  %v1423_v1 = vld [vmem:[#allocation2 + $0xc8] sm:$0x7f] }
 0xec7   : > { %v2209_v18 = vmul.f32 0.0477, %v2204_v2 }
 0xec8   : > { %v2830_v32 = vadd.f32 %v2820_v16, %v2761_v39  ;;  %v1611_v16 = vsel %vm820_vm7, %v7208_v21, %v6423_v13  ;;  %v2736_v39 = vld [vmem:[#allocation2 + $0x80] sm:$0x1] }
 0xecb   : > { %v4378_v38 = vpop.permute.xlu0 %4377 }
 0xecc   : > { %v4380_v17 = vadd.f32 %v4378_v38, %v4371_v56  ;;  %v4381_v5 = vadd.f32 %v4378_v38, %v4372_v49 }
 0xece   : > { %v4382_v41 = vadd.f32 0.2782, %v4380_v17  ;;  %v4383_v28 = vadd.f32 0.2782, %v4381_v5  ;;  %v7205_v17 = vrot.slane %v6516_v45, 2 }
 0xecf   : > { %v2323_v47 = vpop.permute.xlu0 %2322 }
 0xed0   : > { %4388 = vrot.lane.b32.xlu1 %v4383_v28, %s5196_s22  ;;  %4386 = vrot.lane.b32.xlu0 %v4382_v41, %s5196_s22  ;;  %v2335_v15 = vadd.f32 %v2323_v47, %v2300_v3  ;;  %v2751_v36 = vsel %vm677_vm6, %v2748_v26, %v7205_v17  ;;  %v2208_v3 = vmul.f32 0.0477, %v6387_v9 }
 0xed1   : > { %v2763_v59 = vadd.f32 %v2751_v36, %v2726_v10  ;;  %v7209_v10 = vld [vmem:[#allocation75_spill] sm:$0xff] }
 0xed2   : > { %v6806_v5 = vadd.f32 0.0179, %v2335_v15  ;;  %v2220_v9 = vrot.slane %v2208_v3, 2  ;;  %v2823_v17 = vsel %vm820_vm7, %v7209_v10, %v6730_v31  ;;  %v2195_v31 = vmul.f32 0.0467, %v6396_v20 }
 0xed3   : > { %v2853_v30 = vpop.permute.xlu0 %2852  ;;  %v4405_v46 = vpop.permute.xlu1 %4404  ;;  %v2832_v28 = vadd.f32 %v2822_v44, %v2763_v59  ;;  %v7210_v59 = vld [vmem:[#allocation73_spill] sm:$0xff] }
 0xed4   : > { %v2866_v56 = vadd.f32 %v2853_v30, %v2831_v57  ;;  %v4407_v49 = vadd.f32 %v4405_v46, %v4398_v35  ;;  %v4408_v38 = vadd.f32 %v4405_v46, %v4399_v27  ;;  %v2351_v45 = vrot.slane %v6806_v5, 7  ;;  %v1444_v27 = vld [vmem:[#allocation2 + $0xe0] sm:$0x1] }
 0xed5   : > { %v7207_v35 = vrot.slane %v6433_v61, 7 }
 0xed6   : > { %v4409_v53 = vadd.f32 0.2782, %v4407_v49  ;;  %v4410_v63 = vadd.f32 0.2782, %v4408_v38  ;;  %v2871_v41 = vadd.f32 0.0179, %v2866_v56  ;;  %v1629_v38 = vadd.f32 %v1611_v16, %v6245_v24 }
 0xed7   : > { %v6811_v8 = vpop.permute.xlu0 %1600  ;;  %v2851_v55 = vpop.permute.xlu1 %2850  ;;  %v2352_v42 = vsel %vm933_vm8, %v7207_v35, %v2351_v45  ;;  %v2222_v56 = vrot.slane %v2209_v18, 2  ;;  %v1453_v49 = vmul.f32 0.0757, %v1444_v27  ;;  %v2833_v24 = vadd.f32 %v2823_v17, %v6541_v23 }
 0xed8   : > { %v2865_v48 = vadd.f32 %v2851_v55, %v2830_v32  ;;  %4415 = vrot.lane.b32.xlu1 %v4410_v63, %s5196_s22  ;;  %4413 = vrot.lane.b32.xlu0 %v4409_v53, %s5196_s22  ;;  %v2881_v29 = vrot.slane %v2871_v41, 7  ;;  %v2221_v32 = vsel %vm677_vm6, %v2218_v11, %v2220_v9  ;;  %v2741_v55 = vmul.f32 0.0477, %v2736_v39  ;;  %v5134_v18 = vpop.eup %5133 }
 0xed9   : > { %v2223_v63 = vsel %vm677_vm6, %v2220_v9, %v2222_v56  ;;  %v1478_v44 = vrot.slane %v1453_v49, 2  ;;  %v1432_v23 = vmul.f32 0.0837, %v1423_v1  ;;  %v2362_v10 = vmul.f32 %v5134_v18, %v6353_v33 }
 0xeda   : > { %v2870_v26 = vadd.f32 0.0179, %v2865_v48  ;;  %v2196_v48 = vmul.f32 0.0467, %v6477_v25  ;;  %v7212_v25 = vrot.slane %v6217_v37, 2  ;;  %v2754_v3 = vrot.slane %v2741_v55, 2 }
 0xedb   : > { %v2285_v52 = vpop.permute.xlu0 %2284  ;;  %v2855_v0 = vpop.permute.xlu1 %2854 }
 0xedc   : > { %v2880_v47 = vrot.slane %v2870_v26, 7  ;;  %v2867_v40 = vadd.f32 %v2855_v0, %v2832_v28  ;;  %v2291_v26 = vsel %vm820_vm7, %v7210_v59, %v6721_v60  ;;  %v1479_v20 = vsel %vm677_vm6, %v7212_v25, %v1478_v44 }
 0xedd   : > { %v7213_v60 = vrot.slane %v6301_v62, 7  ;;  %v7214_v62 = vrot.slane %v6511_v58, 2 }
 0xede   : > { %v2882_v15 = vsel %vm933_vm8, %v2880_v47, %v2881_v29  ;;  %v2872_v57 = vadd.f32 0.0179, %v2867_v40  ;;  %v2232_v47 = vadd.f32 %v2221_v32, %v2195_v31  ;;  %v7211_v40 = vld [vmem:[#allocation76_spill] sm:$0xff] }
 0xedf   : > { %5135 = vrcp.f32 %v2882_v15  ;;  %v2817_v30 = vpop.permute.xlu0 %2816  ;;  %v1603_v43 = vpop.permute.xlu1 %1602  ;;  %v2755_v39 = vsel %vm677_vm6, %v7214_v62, %v2754_v3 }
 0xee0   : > { %v2883_v46 = vrot.slane %v2872_v57, 7  ;;  %5137 = vrcp.f32 %v2352_v42  ;;  %v2301_v15 = vadd.f32 %v2291_v26, %v2232_v47  ;;  %v2723_v57 = vld [vmem:[#allocation2 + $0x68] sm:$0x7f]  ;;  %v1612_v27 = vsel %vm820_vm7, %v6811_v8, %v1603_v43 }
 0xee2   : > { %v2884_v61 = vsel %vm933_vm8, %v2881_v29, %v2883_v46  ;;  %v2233_v29 = vadd.f32 %v2223_v63, %v2196_v48 }
 0xee3   : > { %5139 = vrcp.f32 %v2884_v61  ;;  %v1677_v36 = vpop.permute.xlu0 %1676  ;;  %v2287_v13 = vpop.permute.xlu1 %2286  ;;  %v1497_v61 = vadd.f32 %v1479_v20, %v1432_v23 }
 0xee4   : > { %v1696_v53 = vadd.f32 %v1677_v36, %v1629_v38  ;;  %v2292_v28 = vsel %vm820_vm7, %v2285_v52, %v2287_v13  ;;  %5141 = vrcp.f32 %v7211_v40  ;;  %v2728_v38 = vmul.f32 0.0467, %v2723_v57 }
 0xee5   : > { %v2302_v42 = vadd.f32 %v2292_v28, %v2233_v29 }
 0xee6   : > { %v6836_v41 = vadd.f32 0.0185, %v1696_v53  ;;  %v1630_v53 = vadd.f32 %v1612_v27, %v1497_v61  ;;  %v2765_v58 = vadd.f32 %v2755_v39, %v2728_v38 }
 0xee7   : > { %v2857_v34 = vpop.permute.xlu0 %2856  ;;  %v2819_v2 = vpop.permute.xlu1 %2818 }
 0xee8   : > { %v1729_v11 = vrot.slane %v6836_v41, 7  ;;  %v2868_v0 = vadd.f32 %v2857_v34, %v2833_v24  ;;  %v2824_v63 = vsel %vm820_vm7, %v2817_v30, %v2819_v2 }
 0xee9   : > { %v2834_v59 = vadd.f32 %v2824_v63, %v2765_v58  ;;  %v7218_v63 = vld [vmem:[#allocation61_spill] sm:$0xff] }
 0xeea   : > { %v1730_v52 = vsel %vm933_vm8, %v7213_v60, %v1729_v11  ;;  %v2873_v35 = vadd.f32 0.0179, %v2868_v0  ;;  %v7215_v0 = vld [vmem:[#allocation77_spill] sm:$0xff]  ;;  %v7216_v60 = vld [vmem:[#allocation62_spill] sm:$0xff] }
 0xeeb   : > { %5143 = vrcp.f32 %v1730_v52  ;;  %v2327_v21 = vpop.permute.xlu0 %2326  ;;  %v2325_v16 = vpop.permute.xlu1 %2324 }
 0xeec   : > { %v5136_v9 = vpop.eup %5135  ;;  %v2885_v37 = vrot.slane %v2873_v35, 7  ;;  %v2337_v56 = vadd.f32 %v2327_v21, %v2302_v42  ;;  %v2336_v49 = vadd.f32 %v2325_v16, %v2301_v15  ;;  %v7217_v35 = vld [vmem:[#allocation79_spill] sm:$0xff] }
 0xeed   : > { %v2894_v17 = vmul.f32 %v5136_v9, %v6465_v19  ;;  %v5138_v36 = vpop.eup %5137 }
 0xeee   : > { %v2886_v8 = vsel %vm933_vm8, %v2883_v46, %v2885_v37  ;;  %v2342_v43 = vadd.f32 0.0179, %v2337_v56  ;;  %v2341_v13 = vadd.f32 0.0179, %v2336_v49  ;;  %v2364_v33 = vmul.f32 %v5138_v36, %v6349_v6 }
 0xeef   : > { %v1679_v32 = vpop.permute.xlu1 %1678  ;;  %v2901_v1 = vsub.f32 %v2362_v10, %v2894_v17  ;;  %5145 = vrcp.f32 %v2886_v8  ;;  %v3292_v24 = vpop.permute.xlu0 %3291 }
 0xef0   : > { %v5140_v44 = vpop.eup %5139  ;;  %v2353_v55 = vrot.slane %v2341_v13, 7  ;;  %v1697_v41 = vadd.f32 %v1679_v32, %v1630_v53  ;;  %v2355_v48 = vrot.slane %v2342_v43, 7 }
 0xef1   : > { %v2896_v19 = vmul.f32 %v5140_v44, %v6461_v7  ;;  %v2905_v28 = vmul.f32 %v2901_v1, %v2901_v1  ;;  %v5142_v47 = vpop.eup %5141  ;;  %v7219_v1 = vld [vmem:[#allocation78_spill] sm:$0xff] }
 0xef2   : > { %v2354_v46 = vsel %vm933_vm8, %v2351_v45, %v2353_v55  ;;  %v1706_v31 = vadd.f32 0.0185, %v1697_v41  ;;  %v2356_v6 = vsel %vm933_vm8, %v2353_v55, %v2355_v48  ;;  %v972_v52 = vmul.f32 %v5142_v47, %v7216_v60 }
 0xef3   : > { %5147 = vrcp.f32 %v2354_v46  ;;  %v2859_v30 = vpop.permute.xlu1 %2858  ;;  %v2902_v26 = vsub.f32 %v2364_v33, %v2896_v19  ;;  %v3296_v5 = vpop.permute.xlu0 %3295  ;;  %v2909_v23 = vsel %vm346_vm1, %v2905_v28, 0.0 }
 0xef4   : > { %v1731_v34 = vrot.slane %v1706_v31, 7  ;;  %v2869_v2 = vadd.f32 %v2859_v30, %v2834_v59  ;;  %5149 = vrcp.f32 %v7215_v0 }
 0xef5   : > { %v2906_v29 = vmul.f32 %v2902_v26, %v2902_v26 }
 0xef6   : > { %v1732_v7 = vsel %vm933_vm8, %v1729_v11, %v1731_v34  ;;  %v2874_v40 = vadd.f32 0.0179, %v2869_v2 }
 0xef7   : > { %5151 = vrcp.f32 %v1732_v7  ;;  %v3294_v45 = vpop.permute.xlu1 %3293  ;;  %v2910_v25 = vsel %vm346_vm1, %v2906_v29, 0.0  ;;  %v3647_v21 = vpop.permute.xlu0 %3646  ;;  %v7221_v7 = vld [vmem:[#allocation55_spill] sm:$0xff] }
 0xef8   : > { %v5144_v20 = vpop.eup %5143  ;;  %v2887_v3 = vrot.slane %v2874_v40, 7  ;;  %v2911_v18 = vadd.f32 %v2910_v25, %v2909_v23  ;;  %5153 = vrcp.f32 %v2356_v6  ;;  %v3299_v27 = vsel %vm820_vm7, %v3292_v24, %v3294_v45 }
 0xef9   : > { %v1754_v42 = vmul.f32 %v5144_v20, %v7217_v35 }
 0xefa   : > { %v2888_v15 = vsel %vm933_vm8, %v2885_v37, %v2887_v3 }
 0xefb   : > { %5155 = vrcp.f32 %v2888_v15  ;;  %v3298_v11 = vpop.permute.xlu1 %3297  ;;  %v1763_v57 = vsub.f32 %v972_v52, %v1754_v42  ;;  %v3651_v36 = vpop.permute.xlu0 %3650 }
 0xefc   : > { %v5146_v9 = vpop.eup %5145  ;;  %5157 = vrcp.f32 %v3299_v27  ;;  %v3300_v38 = vsel %vm820_vm7, %v3296_v5, %v3298_v11 }
 0xefd   : > { %v1771_v16 = vmul.f32 %v1763_v57, %v1763_v57  ;;  %v2898_v10 = vmul.f32 %v5146_v9, %v6475_v4  ;;  %v7223_v9 = vld [vmem:[#allocation59_spill] sm:$0xff] }
 0xeff   : > { %v3649_v56 = vpop.permute.xlu1 %3648  ;;  %v1784_v49 = vsel %vm151_vm0, %v1771_v16, 0.0 }
 0xf00   : > { %v5148_v61 = vpop.eup %5147  ;;  %v3654_v62 = vsel %vm820_vm7, %v3647_v21, %v3649_v56  ;;  %v1785_v39 = vadd.f32 %v1784_v49, %v6328_v12  ;;  %v7222_v21 = vld [vmem:[#allocation57_spill] sm:$0xff] }
 0xf01   : > { %5159 = vrcp.f32 %v3654_v62  ;;  %v2366_v37 = vmul.f32 %v5148_v61, %v6363_v50  ;;  %v5150_v17 = vpop.eup %5149 }
 0xf02   : > { %5161 = vrcp.f32 %v3300_v38  ;;  %v974_v32 = vmul.f32 %v5150_v17, %v7218_v63 }
 0xf03   : > { %v3653_v8 = vpop.permute.xlu1 %3652  ;;  %v2903_v43 = vsub.f32 %v2366_v37, %v2898_v10 }
 0xf04   : > { %v5152_v13 = vpop.eup %5151  ;;  %v3655_v53 = vsel %vm820_vm7, %v3651_v36, %v3653_v8  ;;  %v7224_v36 = vld [vmem:[#allocation58_spill] sm:$0xff] }
 0xf05   : > { %5163 = vrcp.f32 %v3655_v53  ;;  %v1756_v44 = vmul.f32 %v5152_v13, %v7219_v1  ;;  %v2907_v55 = vmul.f32 %v2903_v43, %v2903_v43  ;;  %v5154_v12 = vpop.eup %5153  ;;  %v7225_v43 = vld [vmem:[#allocation60_spill] sm:$0xff] }
 0xf06   : > { %v2368_v33 = vmul.f32 %v5154_v12, %v6358_v51 }
 0xf07   : > { %v1764_v41 = vsub.f32 %v974_v32, %v1756_v44  ;;  %v2912_v50 = vsel %vm346_vm1, %v2907_v55, 0.0 }
 0xf08   : > { %v5156_v58 = vpop.eup %5155  ;;  %v2913_v4 = vadd.f32 %v2912_v50, %v2911_v18 }
 0xf09   : > { %v1772_v24 = vmul.f32 %v1764_v41, %v1764_v41  ;;  %v2900_v19 = vmul.f32 %v5156_v58, %v6470_v22  ;;  %v5158_v31 = vpop.eup %5157  ;;  %v7220_v22 = vld [vmem:[#allocation56_spill] sm:$0xff] }
 0xf0a   : > { %v3304_v34 = vmul.f32 %v5158_v31, %v6564_v54  ;;  %v4016_v54 = vpop.permute.xlu1 %4015 }
 0xf0b   : > { %v1786_v48 = vsel %vm151_vm0, %v1772_v24, 0.0  ;;  %v2904_v46 = vsub.f32 %v2368_v33, %v2900_v19 }
 0xf0c   : > { %v1787_v59 = vadd.f32 %v1786_v48, %v1785_v39 }
 0xf0d   : > { %v2908_v30 = vmul.f32 %v2904_v46, %v2904_v46 }
 0xf0e   : > { %v5160_v26 = vpop.eup %5159  ;;  %1788 = vadd.xlane.f32.xlu0 %v1787_v59 }
 0xf0f   : > { %v2914_v28 = vsel %vm346_vm1, %v2908_v30, 0.0  ;;  %v3659_v2 = vmul.f32 %v5160_v26, %v6615_v14  ;;  %v5162_v0 = vpop.eup %5161  ;;  %v4014_v14 = vpop.permute.xlu0 %4013 }
 0xf10   : > { %v2915_v29 = vadd.f32 %v2914_v28, %v2913_v4  ;;  %v3306_v6 = vmul.f32 %v5162_v0, %v7220_v22  ;;  %v4017_v18 = vsel %vm820_vm7, %v4014_v14, %v4016_v54 }
 0xf11   : > { %v3662_v47 = vsub.f32 %v3304_v34, %v3659_v2  ;;  %5165 = vrcp.f32 %v4017_v18 }
 0xf12   : > { %v5164_v51 = vpop.eup %5163  ;;  %2916 = vadd.xlane.f32.xlu1 %v2915_v29 }
 0xf13   : > { %v3661_v40 = vmul.f32 %v5164_v51, %v7221_v7  ;;  %v3664_v45 = vmul.f32 %v3662_v47, %v3662_v47 }
 0xf15   : > { %v3663_v5 = vsub.f32 %v3306_v6, %v3661_v40  ;;  %v3666_v25 = vsel %vm1980_vm9, %v3664_v45, 0.0 }
 0xf17   : > { %v3665_v23 = vmul.f32 %v3663_v5, %v3663_v5 }
 0xf19   : > { %v3667_v20 = vsel %vm1980_vm9, %v3665_v23, 0.0 }
 0xf1a   : > { %v3668_v3 = vadd.f32 %v3667_v20, %v3666_v25 }
 0xf1c   : > { %3669 = vadd.xlane.f32.xlu0 %v3668_v3 }
 0xf1e   : > { %v5166_v11 = vpop.eup %5165 }
 0xf1f   : > { %v4020_v16 = vmul.f32 %v5166_v11, %v7222_v21 }
 0xf38   : > { %v4331_v60 = vpop.permute.xlu0 %4330  ;;  %v4333_v52 = vpop.permute.xlu1 %4332 }
 0xf39   : > { %v4334_v35 = vsel %vm820_vm7, %v4331_v60, %v4333_v52 }
 0xf3a   : > { %5167 = vrcp.f32 %v4334_v35 }
 0xf42   : > { %v4387_v42 = vpop.permute.xlu0 %4386  ;;  %v4389_v15 = vpop.permute.xlu1 %4388 }
 0xf43   : > { %v4390_v57 = vsel %vm820_vm7, %v4387_v42, %v4389_v15 }
 0xf44   : > { %5169 = vrcp.f32 %v4390_v57 }
 0xf47   : > { %v5168_v27 = vpop.eup %5167 }
 0xf48   : > { %v4337_v56 = vmul.f32 %v5168_v27, %v7223_v9 }
 0xf4a   : > { %v4414_v49 = vpop.permute.xlu0 %4413  ;;  %v4416_v61 = vpop.permute.xlu1 %4415  ;;  %v4338_v62 = vsub.f32 %v4020_v16, %v4337_v56 }
 0xf4b   : > { %v4417_v38 = vsel %vm820_vm7, %v4414_v49, %v4416_v61 }
 0xf4c   : > { %5171 = vrcp.f32 %v4417_v38  ;;  %v4339_v39 = vmul.f32 %v4338_v62, %v4338_v62 }
 0xf4e   : > { %v4340_v37 = vsel %vm3088_vm13, %v4339_v39, 0.0 }
 0xf4f   : > { %4341 = vadd.xlane.f32.xlu0 %v4340_v37 }
 0xf51   : > { %v5170_v10 = vpop.eup %5169 }
 0xf52   : > { %v4393_v8 = vmul.f32 %v5170_v10, %v7224_v36 }
 0xf59   : > { %v5172_v17 = vpop.eup %5171 }
 0xf5a   : > { %v4420_v13 = vmul.f32 %v5172_v17, %v7225_v43 }
 0xf5c   : > { %v4421_v53 = vsub.f32 %v4393_v8, %v4420_v13 }
 0xf5e   : > { %v4422_v63 = vmul.f32 %v4421_v53, %v4421_v53 }
 0xf60   : > { %v4423_v32 = vsel %vm4367_vm15, %v4422_v63, 0.0 }
 0xf61   : > { %4424 = vadd.xlane.f32.xlu1 %v4423_v32 }
 0xf97   : > { %v1789_v1 = vpop.xlane.xlu0 %1788 }
 0xf98   : > { %v1790_v44 = vrot.slane %v1789_v1, 4 }
 0xf9a   : > { %v1791_v55 = vadd.f32 %v1790_v44, %v1789_v1 }
 0xf9b   : > { %v2917_v12 = vpop.xlane.xlu1 %2916 }
 0xf9c   : > { %v1792_v41 = vrot.slane %v1791_v55, 2  ;;  %v2918_v50 = vrot.slane %v2917_v12, 4 }
 0xf9e   : > { %v2919_v58 = vadd.f32 %v2918_v50, %v2917_v12  ;;  %v1793_v4 = vadd.f32 %v1792_v41, %v1791_v55 }
 0xfa0   : > { %v2920_v24 = vrot.slane %v2919_v58, 2  ;;  %v1794_v33 = vrot.slane %v1793_v4, 1 }
 0xfa2   : > { %v1795_v19 = vadd.f32 %v1794_v33, %v1793_v4  ;;  %v2921_v48 = vadd.f32 %v2920_v24, %v2919_v58 }
 0xfa4   : > { %5086 = vpush %v1795_v19  ;;  %v2922_v46 = vrot.slane %v2921_v48, 1 }
 0xfa5   : > { %v3670_v31 = vpop.xlane.xlu0 %3669 }
 0xfa6   : > { %v3671_v59 = vrot.slane %v3670_v31, 4  ;;  %v2923_v30 = vadd.f32 %v2922_v46, %v2921_v48 }
 0xfa8   : > { %v3672_v26 = vadd.f32 %v3671_v59, %v3670_v31  ;;  %5088 = vpush %v2923_v30 }
 0xfaa   : > { %v3673_v28 = vrot.slane %v3672_v26, 2 }
 0xfac   : > { %v3674_v34 = vadd.f32 %v3673_v28, %v3672_v26 }
 0xfae   : > { %v3675_v2 = vrot.slane %v3674_v34, 1 }
 0xfb0   : > { %v3676_v0 = vadd.f32 %v3675_v2, %v3674_v34 }
 0xfb2   : > { %5090 = vpush %v3676_v0 }
 0xfd5   : > { %s5087_s3 = spop %5086 }
 0xfd6   : > { %v1797_v14 = vstv %s5087_s3 }
 0xfd7   : > { %v1798_v52 = vmul.f32 0.00024414063, %v1797_v14 }
 0xfd8   : > { %v4342_v29 = vpop.xlane.xlu0 %4341 }
 0xfd9   : > { %v4343_v47 = vrot.slane %v4342_v29, 4  ;;  %s5089_s6 = spop %5088  ;;  %5173 = vrsqrt.f32 %v1798_v52  ;;  %vm1801_vm4 = vcmp.eq.f32.partialorder %v1798_v52, inf  ;;  %v1804_v43 = vand.u32 2147483648, %v1798_v52 }
 0xfda   : > { %v2925_v18 = vstv %s5089_s6  ;;  %vm1803_vm13 = vcmp.eq.f32.partialorder %v1798_v52, 0.0 }
 0xfdb   : > { %v4344_v51 = vadd.f32 %v4343_v47, %v4342_v29  ;;  %v2926_v42 = vmul.f32 0.0009765625, %v2925_v18 }
 0xfdd   : > { %v4345_v22 = vrot.slane %v4344_v51, 2  ;;  %5175 = vrsqrt.f32 %v2926_v42  ;;  %vm2929_vm0 = vcmp.eq.f32.partialorder %v2926_v42, inf  ;;  %v2932_v37 = vand.u32 2147483648, %v2926_v42 }
 0xfde   : > { %vm2931_vm8 = vcmp.eq.f32.partialorder %v2926_v42, 0.0 }
 0xfdf   : > { %v4346_v6 = vadd.f32 %v4345_v22, %v4344_v51 }
 0xfe1   : > { %v4347_v7 = vrot.slane %v4346_v6, 1 }
 0xfe3   : > { %v4348_v40 = vadd.f32 %v4347_v7, %v4346_v6  ;;  %s5091_s25 = spop %5090 }
 0xfe4   : > { %v3678_v60 = vstv %s5091_s25 }
 0xfe5   : > { %5092 = vpush %v4348_v40  ;;  %v3679_v15 = vmul.f32 0.00390625, %v3678_v60 }
 0xfe6   : > { %v5174_v21 = vpop.eup %5173 }
 0xfe7   : > { %5177 = vrsqrt.f32 %v3679_v15  ;;  %v1800_v38 = vmul.f32 %v5174_v21, %v1798_v52  ;;  %vm3682_vm1 = vcmp.eq.f32.partialorder %v3679_v15, inf  ;;  %v3685_v36 = vand.u32 2147483648, %v3679_v15 }
 0xfe8   : > { %vm3684_vm9 = vcmp.eq.f32.partialorder %v3679_v15, 0.0 }
 0xfe9   : > { %v1802_v17 = vsel %vm1801_vm4, %v1798_v52, %v1800_v38 }
 0xfea   : > { %v4425_v5 = vpop.xlane.xlu1 %4424  ;;  %v5176_v16 = vpop.eup %5175  ;;  %v1805_v1 = vsel %vm1803_vm13, %v1804_v43, %v1802_v17 }
 0xfeb   : > { %v4426_v45 = vrot.slane %v4425_v5, 4  ;;  %v2928_v49 = vmul.f32 %v5176_v16, %v2926_v42 }
 0xfed   : > { %v4427_v23 = vadd.f32 %v4426_v45, %v4425_v5  ;;  %v2930_v39 = vsel %vm2929_vm0, %v2926_v42, %v2928_v49 }
 0xfee   : > { %v2933_v13 = vsel %vm2931_vm8, %v2932_v37, %v2930_v39 }
 0xfef   : > { %v4428_v25 = vrot.slane %v4427_v23, 2  ;;  %v4442_v12 = vsel %vm820_vm7, %v1805_v1, %v2933_v13 }
 0xff1   : > { %v4429_v20 = vadd.f32 %v4428_v25, %v4427_v23 }
 0xff3   : > { %v4430_v3 = vrot.slane %v4429_v20, 1 }
 0xff4   : > { %v5178_v9 = vpop.eup %5177 }
 0xff5   : > { %v4431_v54 = vadd.f32 %v4430_v3, %v4429_v20  ;;  %v3681_v61 = vmul.f32 %v5178_v9, %v3679_v15 }
 0xff7   : > { %5094 = vpush %v4431_v54  ;;  %v3683_v10 = vsel %vm3682_vm1, %v3679_v15, %v3681_v61 }
 0xff8   : > { %v3686_v32 = vsel %vm3684_vm9, %v3685_v36, %v3683_v10 }
 0xff9   : > { %v4444_v50 = vsel %vm4443_vm2, %v4442_v12, %v3686_v32 }
0x1016   : > { %s5093_s26 = spop %5092 }
0x1017   : > { %v4350_v35 = vstv %s5093_s26 }
0x1018   : > { %v4351_v11 = vmul.f32 0.015625, %v4350_v35 }
0x101a   : > { %5179 = vrsqrt.f32 %v4351_v11  ;;  %vm4354_vm6 = vcmp.eq.f32.partialorder %v4351_v11, inf  ;;  %v4357_v53 = vand.u32 2147483648, %v4351_v11  ;;  %vm4356_vm3 = vcmp.eq.f32.partialorder %v4351_v11, 0.0 }
0x1027   : > { %v5180_v56 = vpop.eup %5179 }
0x1028   : > { %s5095_s27 = spop %5094  ;;  %v4353_v62 = vmul.f32 %v5180_v56, %v4351_v11 }
0x1029   : > { %v4433_v57 = vstv %s5095_s27 }
0x102a   : > { %v4434_v27 = vmul.f32 0.0625, %v4433_v57  ;;  %v4355_v8 = vsel %vm4354_vm6, %v4351_v11, %v4353_v62 }
0x102b   : > { %v4358_v44 = vsel %vm4356_vm3, %v4357_v53, %v4355_v8 }
0x102c   : > { %5181 = vrsqrt.f32 %v4434_v27  ;;  %vm4437_vm11 = vcmp.eq.f32.partialorder %v4434_v27, inf  ;;  %v4440_v41 = vand.u32 2147483648, %v4434_v27  ;;  %vm4439_vm12 = vcmp.eq.f32.partialorder %v4434_v27, 0.0 }
0x102d   : > { %v4446_v4 = vsel %vm4445_vm10, %v4444_v50, %v4358_v44 }
0x1039   : > { %v5182_v63 = vpop.eup %5181 }
0x103a   : > { %v4436_v55 = vmul.f32 %v5182_v63, %v4434_v27 }
0x103b   :  { %109 = sbr.rel (!%p107_p0) target bundleno = 27 (0x1b), region = 102 }
0x103c   : > { %v4438_v58 = vsel %vm4437_vm11, %v4434_v27, %v4436_v55 }
0x103d   : > { %v4441_v24 = vsel %vm4439_vm12, %v4440_v41, %v4438_v58 }
0x103e   : > { %v4447_v33 = vsel %vm3839_vm5, %v4446_v4, %v4441_v24 }
0x103f   : > { %4450 = vst.msk [vmem:[%s4448_s8] sm:$0x1] %vm4449_vm14, %v4447_v33 }

</bundles_post_ra>
